<compile_context>
chip_gen: v6e
topology: v6e:2x2x1
jax: 0.10.0
libtpu: 0.0.40
codegen_flags: <defaults>
</compile_context>

<pallas_src>
import math

import jax
import jax.numpy as jnp
from jax import lax
from jax.experimental import pallas as pl
from jax.experimental.pallas import tpu as pltpu


def _round_up(x, m):
    return ((x + m - 1) // m) * m


def _largest_divisor_leq(n, cap):
    cap = max(1, min(n, cap))
    for d in range(cap, 0, -1):
        if n % d == 0:
            return d
    return 1


def _vmem_limit_bytes():
    """Generation-aware VMEM limit (v7x has only 64 MiB per TensorCore)."""
    try:
        cap = int(pltpu.get_tpu_info().vmem_capacity_bytes)
    except Exception:
        cap = None
    if not cap:
        return 48 * 1024 * 1024
    return int(max(32 * 1024 * 1024, min(cap * 7 // 8, 112 * 1024 * 1024)))


VMEM_LIMIT = _vmem_limit_bytes()
GATES_VMEM_BUDGET = 16 * 1024 * 1024     # LSTM per-chunk (gates + out) budget


# ----------------------------------------------------------------------------
# Pallas kernels
# ----------------------------------------------------------------------------
def matmul_bias(a, w, b, activation=None, tile_m=256):
    """act(A @ W + b), bf16 MXU operands / f32 accumulation, parallel M-tiles.

    N must be a multiple of 128 (lane-dense stores).
    """
    M, K = a.shape
    K2, N = w.shape
    assert K == K2 and N % 128 == 0
    tm = _round_up(M, 8) if M <= tile_m else tile_m
    Mp = _round_up(M, tm)
    a_p = jnp.pad(a, ((0, Mp - M), (0, 0))) if Mp != M else a

    def kernel(a_ref, w_ref, b_ref, o_ref):
        acc = jnp.dot(a_ref[...], w_ref[...], preferred_element_type=jnp.float32)
        acc = acc + b_ref[...]
        if activation == "relu":
            acc = jnp.maximum(acc, 0.0)
        elif activation == "tanh":
            acc = jnp.tanh(acc)
        o_ref[...] = acc

    out = pl.pallas_call(
        kernel,
        out_shape=jax.ShapeDtypeStruct((Mp, N), jnp.float32),
        grid=(Mp // tm,),
        in_specs=[pl.BlockSpec((tm, K), lambda i: (i, 0)),
                  pl.BlockSpec((K, N), lambda i: (0, 0)),
                  pl.BlockSpec((1, N), lambda i: (0, 0))],
        out_specs=pl.BlockSpec((tm, N), lambda i: (i, 0)),
        compiler_params=pltpu.CompilerParams(
            dimension_semantics=("parallel",),
            vmem_limit_bytes=VMEM_LIMIT),
    )(a_p.astype(jnp.bfloat16), w.astype(jnp.bfloat16),
      b.astype(jnp.float32).reshape(1, N))
    return out[:M] if Mp != M else out


def conv_bn_chain(x_btc, layer_params, activations, eps=1e-5):
    """Fused chain of Conv1d(k=5,p=2,s=1)+BatchNorm1d(eval)+activation.

    Grid is "parallel" over batch (both TensorCores on v7x); activations
    ping-pong between two bf16 VMEM scratch buffers (no HBM round trip
    between layers).  Every cout is padded to a multiple of 128 (lane-dense,
    padded channels are exactly zero); the 8-row halos keep interior stores
    sublane-aligned and only the halo bands are zeroed.
    """
    B, T, cin_arr = x_btc.shape
    K = layer_params[0]["w"].shape[2]
    pad = (K - 1) // 2
    n = len(layer_params)
    assert len(activations) == n
    HALO = 8                                            # >= pad, sublane aligned

    ws, bs, dims = [], [], []
    prev_cout_p = cin_arr
    for li, p in enumerate(layer_params):
        cout, cin_w, k = p["w"].shape
        assert k == K and cin_w <= prev_cout_p
        scale = p["gamma"] / jnp.sqrt(p["var"] + eps)              # fold BN
        w_f = (p["w"] * scale[:, None, None]).transpose(2, 1, 0)   # (K,cin,cout)
        b_f = (p["b"] - p["mu"]) * scale + p["beta"]
        if cin_w < prev_cout_p:                                    # zero-padded cin
            w_f = jnp.pad(w_f, ((0, 0), (0, prev_cout_p - cin_w), (0, 0)))
        cout_p = _round_up(cout, 128)                              # lane-dense cout
        if cout_p != cout:
            w_f = jnp.pad(w_f, ((0, 0), (0, 0), (0, cout_p - cout)))
            b_f = jnp.pad(b_f, (0, cout_p - cout))
        ws.append(w_f.astype(jnp.bfloat16))
        bs.append(b_f.astype(jnp.float32).reshape(1, cout_p))
        dims.append((prev_cout_p, cout_p))
        prev_cout_p = cout_p
    c_max = max(max(ci, co) for ci, co in dims)
    c_last = dims[-1][1]

    def kernel(*refs):
        x_ref = refs[0]
        w_refs = refs[1:1 + n]
        b_refs = refs[1 + n:1 + 2 * n]
        o_ref = refs[1 + 2 * n]
        scr = (refs[1 + 2 * n + 1], refs[1 + 2 * n + 2])

        zero_band = jnp.zeros((HALO, c_max), jnp.bfloat16)
        for buf in scr:                                  # halo rows only
            buf[0:HALO, :] = zero_band
            buf[HALO + T:HALO + T + HALO, :] = zero_band
        scr[0][HALO:HALO + T, 0:cin_arr] = x_ref[...]

        for l, (ci, co) in enumerate(dims):
            cur, nxt = scr[l % 2], scr[(l + 1) % 2]
            acc = jnp.zeros((T, co), jnp.float32)
            for k in range(K):                           # K shifted MXU matmuls
                s0 = HALO - pad + k
                acc = acc + jnp.dot(cur[s0:s0 + T, 0:ci], w_refs[l][k],
                                    preferred_element_type=jnp.float32)
            y = acc + b_refs[l][...]
            if activations[l] == "relu":
                y = jnp.maximum(y, 0.0)
            elif activations[l] == "tanh":
                y = jnp.tanh(y)
            if l == n - 1:
                o_ref[...] = y
            else:
                nxt[HALO:HALO + T, 0:co] = y.astype(jnp.bfloat16)

    in_specs = ([pl.BlockSpec((None, T, cin_arr), lambda b: (b, 0, 0))]
                + [pl.BlockSpec(w.shape, lambda b: (0, 0, 0)) for w in ws]
                + [pl.BlockSpec(b_.shape, lambda b: (0, 0)) for b_ in bs])

    return pl.pallas_call(
        kernel,
        out_shape=jax.ShapeDtypeStruct((B, T, c_last), jnp.float32),
        grid=(B,),
        in_specs=in_specs,
        out_specs=pl.BlockSpec((None, T, c_last), lambda b: (b, 0, 0)),
        scratch_shapes=[pltpu.VMEM((T + 2 * HALO, c_max), jnp.bfloat16),
                        pltpu.VMEM((T + 2 * HALO, c_max), jnp.bfloat16)],
        compiler_params=pltpu.CompilerParams(
            dimension_semantics=("parallel",),
            vmem_limit_bytes=VMEM_LIMIT),
    )(x_btc.astype(jnp.bfloat16), *ws, *bs)


def _lstm_rec_kernel(Tc, B, Hp, Gp, D):
    """Recurrence-only LSTM kernel: per step h@W_hh + precomputed input gates."""

    def kernel(g_ref, whh_ref, o_ref, h_scr, c_scr):
        @pl.when(pl.program_id(1) == 0)                 # first T-chunk: h0=c0=0
        def _():
            h_scr[...] = jnp.zeros_like(h_scr)
            c_scr[...] = jnp.zeros_like(c_scr)

        whh = whh_ref[...]                              # (Hp, Gp) bf16, invariant
        if D == 2:
            rev = pl.program_id(0) == 1

        def step(s, hc):
            h, c = hc
            lt = jnp.where(rev, Tc - 1 - s, s) if D == 2 else s
            g = g_ref[lt] + jnp.dot(h.astype(jnp.bfloat16), whh,
                                    preferred_element_type=jnp.float32)
            i_g = jax.nn.sigmoid(g[:, 0 * Hp:1 * Hp])
            f_g = jax.nn.sigmoid(g[:, 1 * Hp:2 * Hp])
            g_g = jnp.tanh(g[:, 2 * Hp:3 * Hp])
            o_g = jax.nn.sigmoid(g[:, 3 * Hp:4 * Hp])
            c_new = f_g * c + i_g * g_g
            h_new = o_g * jnp.tanh(c_new)
            o_ref[lt] = h_new
            return (h_new, c_new)

        h_fin, c_fin = lax.fori_loop(0, Tc, step, (h_scr[...], c_scr[...]))
        h_scr[...] = h_fin
        c_scr[...] = c_fin

    return kernel


def _pad_gate_cols(w, H, Hp):
    """(..., 4H) -> (..., 4Hp) with each gate block zero-padded to Hp columns."""
    if Hp == H:
        return w
    out = jnp.zeros(w.shape[:-1] + (4 * Hp,), w.dtype)
    for g in range(4):
        out = out.at[..., g * Hp:g * Hp + H].set(w[..., g * H:(g + 1) * H])
    return out


def _scatter_rows(w, segments, total_rows):
    """Place dense input rows of w at the channel offsets given by segments."""
    out = jnp.zeros((total_rows,) + w.shape[1:], w.dtype)
    cur = 0
    for off, size in segments:
        out = out.at[off:off + size].set(w[cur:cur + size])
        cur += size
    return out


def lstm_layer(x_tbc, dir_params, hidden, in_segments):
    """One (optionally bidirectional) LSTM layer.

    x_tbc: (T, B, Cin) f32; real input features live at `in_segments`
    (list of (channel_offset, size)), all other channels are zero.
    Returns ((T, B, D*Hp) f32, output segments); Hp = round_up(hidden, 128),
    padded columns are exactly zero.
    """
    T, B, cin = x_tbc.shape
    D = len(dir_params)
    H = hidden
    Hp = _round_up(H, 128)
    Gp = 4 * Hp
    assert sum(s for _, s in in_segments) == dir_params[0]["w_ih"].shape[1]

    w_ih_cols, w_hh_list, bias_cols = [], [], []
    for lp in dir_params:
        w_ih = _pad_gate_cols(_scatter_rows(lp["w_ih"].T, in_segments, cin), H, Hp)
        w_hh = _pad_gate_cols(lp["w_hh"].T, H, Hp)
        w_hh = jnp.pad(w_hh, ((0, Hp - H), (0, 0)))
        b = _pad_gate_cols((lp["b_ih"] + lp["b_hh"]).reshape(1, 4 * H), H, Hp)
        w_ih_cols.append(w_ih)
        w_hh_list.append(w_hh)
        bias_cols.append(b)
    w_ih_all = jnp.concatenate(w_ih_cols, axis=1)        # (Cin, D*Gp)
    bias_all = jnp.concatenate(bias_cols, axis=1)        # (1, D*Gp)
    w_hh = jnp.stack(w_hh_list).astype(jnp.bfloat16)     # (D, Hp, Gp)

    # Hoisted input projection: one big MXU matmul for every timestep & gate.
    gates = matmul_bias(x_tbc.reshape(T * B, cin), w_ih_all, bias_all)
    gates = gates.reshape(T, B, D * Gp)

    # T-chunking keeps the per-step gate/output blocks inside a VMEM budget.
    per_t_bytes = B * (Gp + Hp) * 4 * 2
    Tc = _largest_divisor_leq(T, GATES_VMEM_BUDGET // max(per_t_bytes, 1))
    NC = T // Tc

    # Backward direction walks the T-chunks (and steps inside a chunk) reversed.
    def g_map(d, c):
        return (c + d * (NC - 1 - 2 * c), 0, d)

    def o_map(d, c):
        return (c + d * (NC - 1 - 2 * c), 0, d)

    out = pl.pallas_call(
        _lstm_rec_kernel(Tc, B, Hp, Gp, D),
        out_shape=jax.ShapeDtypeStruct((T, B, D * Hp), jnp.float32),
        grid=(D, NC),
        in_specs=[pl.BlockSpec((Tc, B, Gp), g_map),
                  pl.BlockSpec((None, Hp, Gp), lambda d, c: (d, 0, 0))],
        out_specs=pl.BlockSpec((Tc, B, Hp), o_map),
        scratch_shapes=[pltpu.VMEM((B, Hp), jnp.float32),
                        pltpu.VMEM((B, Hp), jnp.float32)],
        compiler_params=pltpu.CompilerParams(
            dimension_semantics=("parallel", "arbitrary"),
            vmem_limit_bytes=VMEM_LIMIT),
    )(gates, w_hh)
    return out, [(d * Hp, H) for d in range(D)]


# ----------------------------------------------------------------------------
# Glue around the Pallas kernels
# ----------------------------------------------------------------------------
def adjust_apply(x_btm, c, p):
    # TODO(synk): stand-in for the unavailable `Adjust` module (plain jnp on
    # purpose: a (B, n_mel+emb)x(., emb) matmul is pure pallas-launch overhead).
    feat = jnp.concatenate([jnp.mean(x_btm, axis=1), c], axis=-1)
    return jnp.tanh(feat @ p["w"] + p["b"])


# ----------------------------------------------------------------------------
# Parameter initialization (deterministic, PyTorch-default-like scales)
# ----------------------------------------------------------------------------
def _uniform(key, shape, scale):
    return jax.random.uniform(key, shape, jnp.float32, -scale, scale)


def init_conv_bn(key, cin, cout, k=5):
    ks = jax.random.split(key, 6)
    s = 1.0 / math.sqrt(cin * k)
    return {
        "w": _uniform(ks[0], (cout, cin, k), s),
        "b": _uniform(ks[1], (cout,), s),
        "gamma": 1.0 + 0.1 * jax.random.normal(ks[2], (cout,), jnp.float32),
        "beta": 0.05 * jax.random.normal(ks[3], (cout,), jnp.float32),
        "mu": 0.02 * jax.random.normal(ks[4], (cout,), jnp.float32),
        "var": 1.0 + 0.1 * jax.random.uniform(ks[5], (cout,), jnp.float32),
    }


def init_lstm_dir(key, input_size, hidden):
    ks = jax.random.split(key, 4)
    s = 1.0 / math.sqrt(hidden)
    return {
        "w_ih": _uniform(ks[0], (4 * hidden, input_size), s),
        "w_hh": _uniform(ks[1], (4 * hidden, hidden), s),
        "b_ih": _uniform(ks[2], (4 * hidden,), s),
        "b_hh": _uniform(ks[3], (4 * hidden,), s),
    }


def init_params(key, dim_neck, dim_emb, dim_pre, freq, n_mel=80):
    keys = iter(jax.random.split(key, 64))
    p = {"dim_neck": dim_neck, "dim_emb": dim_emb, "dim_pre": dim_pre,
         "freq": freq, "n_mel": n_mel}

    s = 1.0 / math.sqrt(n_mel + dim_emb)
    p["adjust"] = {"w": _uniform(next(keys), (n_mel + dim_emb, dim_emb), s),
                   "b": _uniform(next(keys), (dim_emb,), s)}

    p["enc_convs"] = [init_conv_bn(next(keys), n_mel + dim_emb, 512)] + \
                     [init_conv_bn(next(keys), 512, 512) for _ in range(2)]
    p["enc_lstm"] = [
        {"fw": init_lstm_dir(next(keys), 512, dim_neck),
         "bw": init_lstm_dir(next(keys), 512, dim_neck)},
        {"fw": init_lstm_dir(next(keys), 2 * dim_neck, dim_neck),
         "bw": init_lstm_dir(next(keys), 2 * dim_neck, dim_neck)},
    ]

    p["dec_lstm1"] = [init_lstm_dir(next(keys), 2 * dim_neck + dim_emb, dim_pre)]
    p["dec_convs"] = [init_conv_bn(next(keys), dim_pre, dim_pre) for _ in range(3)]
    p["dec_lstm2"] = [init_lstm_dir(next(keys), dim_pre, 1024),
                      init_lstm_dir(next(keys), 1024, 1024)]
    s = 1.0 / math.sqrt(1024)
    p["proj"] = {"w": _uniform(next(keys), (1024, n_mel), s),
                 "b": _uniform(next(keys), (n_mel,), s)}

    p["post_convs"] = [init_conv_bn(next(keys), n_mel, 512)] + \
                      [init_conv_bn(next(keys), 512, 512) for _ in range(3)] + \
                      [init_conv_bn(next(keys), 512, n_mel)]
    return p


# ----------------------------------------------------------------------------
# AutoVC_Adjust forward (isConvert=False path, c_trg given)
# ----------------------------------------------------------------------------
def autovc_forward(params, x, c_org, c_trg):
    B, T, n_mel = x.shape
    dim_neck = params["dim_neck"]
    dim_emb = params["dim_emb"]
    dim_pre = params["dim_pre"]
    freq = params["freq"]
    assert T % freq == 0, "sequence length must be a multiple of freq"

    c_org_adj = adjust_apply(x, c_org, params["adjust"])
    c_trg_adj = adjust_apply(x, c_trg, params["adjust"])

    # ---- Encoder ----
    h0 = jnp.concatenate(
        [x, jnp.broadcast_to(c_org_adj[:, None, :], (B, T, dim_emb))], axis=-1)
    e = conv_bn_chain(h0, params["enc_convs"], ["relu"] * 3)          # (B,T,512)
    e = jnp.transpose(e, (1, 0, 2))                                   # (T,B,512)
    segs = [(0, e.shape[-1])]
    for lp in params["enc_lstm"]:
        e, segs = lstm_layer(e, [lp["fw"], lp["bw"]], dim_neck, segs)
    Hp_neck = _round_up(dim_neck, 128)
    out_fw = e[:, :, 0:dim_neck]                                      # (T,B,neck)
    out_bw = e[:, :, Hp_neck:Hp_neck + dim_neck]
    codes = []
    for i in range(0, T, freq):
        codes.append(jnp.concatenate([out_fw[i + freq - 1], out_bw[i]], axis=-1))
    codes_cat = jnp.concatenate(codes, axis=-1)                       # (B,2*neck*T/freq)

    # ---- code expansion + target embedding ----
    rep = T // len(codes)
    code_exp = jnp.concatenate(
        [jnp.broadcast_to(c[None], (rep, B, 2 * dim_neck)) for c in codes], axis=0)
    enc_out = jnp.concatenate(
        [code_exp, jnp.broadcast_to(c_trg_adj[None], (T, B, dim_emb))], axis=-1)

    # ---- Decoder ----
    d1, _ = lstm_layer(enc_out, [params["dec_lstm1"][0]], dim_pre,
                       [(0, enc_out.shape[-1])])                      # (T,B,128)
    d1 = jnp.transpose(d1, (1, 0, 2))                                 # (B,T,128)
    d2 = conv_bn_chain(d1, params["dec_convs"], ["relu"] * 3)         # (B,T,128)
    h = jnp.transpose(d2, (1, 0, 2))                                  # (T,B,128)
    segs = [(0, dim_pre)]
    for lp in params["dec_lstm2"]:
        h, segs = lstm_layer(h, [lp], 1024, segs)                     # (T,B,1024)
    n_mel_p = _round_up(n_mel, 128)
    proj_w = jnp.pad(params["proj"]["w"], ((0, 0), (0, n_mel_p - n_mel)))
    proj_b = jnp.pad(params["proj"]["b"], (0, n_mel_p - n_mel))
    mel_tb = matmul_bias(h.reshape(T * B, 1024), proj_w, proj_b)
    mel_bt = jnp.transpose(mel_tb.reshape(T, B, n_mel_p), (1, 0, 2))  # (B,T,128)

    # ---- Postnet ----
    post = conv_bn_chain(mel_bt, params["post_convs"], ["tanh"] * 4 + [None])
    mel = mel_bt[:, :, :n_mel]
    mel_postnet = mel + post[:, :, :n_mel]

    return c_org_adj, mel[:, None, :, :], mel_postnet[:, None, :, :], codes_cat


# ----------------------------------------------------------------------------
if __name__ == "__main__":
    dim_neck, dim_emb, dim_pre, freq = 8, 16, 32, 4
    B, T, n_mel = 2, 8, 80

    key = jax.random.PRNGKey(0)
    kp, kx, ko, kt = jax.random.split(key, 4)
    params = init_params(kp, dim_neck, dim_emb, dim_pre, freq, n_mel)

    x = jax.random.normal(kx, (B, T, n_mel), jnp.float32)
    c_org = jax.random.normal(ko, (B, dim_emb), jnp.float32)
    c_trg = jax.random.normal(kt, (B, dim_emb), jnp.float32)

    c_org_adj, mel, mel_post, codes = autovc_forward(params, x, c_org, c_trg)
    jax.block_until_ready((c_org_adj, mel, mel_post, codes))

    assert c_org_adj.shape == (B, dim_emb)
    assert mel.shape == (B, 1, T, n_mel)
    assert mel_post.shape == (B, 1, T, n_mel)
    assert codes.shape == (B, 2 * dim_neck * (T // freq))
    assert bool(jnp.all(jnp.isfinite(mel_post)))
    print("KERNEL_OK")
</pallas_src>

<mosaic_0001>
module attributes {stable_mosaic.version = 11 : i64} {
  func.func @kernel(%arg0: i32, %arg1: memref<1x8x96xbf16, #tpu.memory_space<vmem>>, %arg2: memref<5x96x512xbf16, #tpu.memory_space<vmem>>, %arg3: memref<5x512x512xbf16, #tpu.memory_space<vmem>>, %arg4: memref<5x512x512xbf16, #tpu.memory_space<vmem>>, %arg5: memref<1x512xf32, #tpu.memory_space<vmem>>, %arg6: memref<1x512xf32, #tpu.memory_space<vmem>>, %arg7: memref<1x512xf32, #tpu.memory_space<vmem>>, %arg8: memref<1x8x512xf32, #tpu.memory_space<vmem>>, %arg9: memref<24x512xbf16, #tpu.memory_space<vmem>>, %arg10: memref<24x512xbf16, #tpu.memory_space<vmem>>) attributes {dimension_semantics = [#tpu.dimension_semantics<parallel>], iteration_bounds = array<i64: 2>, scalar_prefetch = 0 : i64, scratch_operands = 2 : i64, tpu.core_type = #tpu.core_type<tc>, window_params = [{transform_indices = @transform_0, window_bounds = array<i64: 1, 8, 96>}, {pipeline_mode = #tpu.pipeline_mode<synchronous>, transform_indices = @transform_1, window_bounds = array<i64: 5, 96, 512>}, {pipeline_mode = #tpu.pipeline_mode<synchronous>, transform_indices = @transform_2, window_bounds = array<i64: 5, 512, 512>}, {pipeline_mode = #tpu.pipeline_mode<synchronous>, transform_indices = @transform_3, window_bounds = array<i64: 5, 512, 512>}, {pipeline_mode = #tpu.pipeline_mode<synchronous>, transform_indices = @transform_4, window_bounds = array<i64: 1, 512>}, {pipeline_mode = #tpu.pipeline_mode<synchronous>, transform_indices = @transform_5, window_bounds = array<i64: 1, 512>}, {pipeline_mode = #tpu.pipeline_mode<synchronous>, transform_indices = @transform_6, window_bounds = array<i64: 1, 512>}, {transform_indices = @transform_7, window_bounds = array<i64: 1, 8, 512>}]} {
    %cst = arith.constant 0.000000e+00 : bf16
    %0 = vector.broadcast %cst : bf16 to vector<8x512xbf16>
    %c0 = arith.constant 0 : index
    %c0_0 = arith.constant 0 : index
    %1 = vector.load %arg9[%c0, %c0_0] : memref<24x512xbf16, #tpu.memory_space<vmem>>, vector<8x512xbf16>
    tpu.vector_store %arg9[%c0, %c0_0], %0 {strides = array<i32>} : memref<24x512xbf16, #tpu.memory_space<vmem>>, vector<8x512xbf16>,
    %c16 = arith.constant 16 : index
    %c0_1 = arith.constant 0 : index
    %2 = vector.load %arg9[%c16, %c0_1] : memref<24x512xbf16, #tpu.memory_space<vmem>>, vector<8x512xbf16>
    tpu.vector_store %arg9[%c16, %c0_1], %0 {strides = array<i32>} : memref<24x512xbf16, #tpu.memory_space<vmem>>, vector<8x512xbf16>,
    %c0_2 = arith.constant 0 : index
    %c0_3 = arith.constant 0 : index
    %3 = vector.load %arg10[%c0_2, %c0_3] : memref<24x512xbf16, #tpu.memory_space<vmem>>, vector<8x512xbf16>
    tpu.vector_store %arg10[%c0_2, %c0_3], %0 {strides = array<i32>} : memref<24x512xbf16, #tpu.memory_space<vmem>>, vector<8x512xbf16>,
    %c16_4 = arith.constant 16 : index
    %c0_5 = arith.constant 0 : index
    %4 = vector.load %arg10[%c16_4, %c0_5] : memref<24x512xbf16, #tpu.memory_space<vmem>>, vector<8x512xbf16>
    tpu.vector_store %arg10[%c16_4, %c0_5], %0 {strides = array<i32>} : memref<24x512xbf16, #tpu.memory_space<vmem>>, vector<8x512xbf16>,
    %c0_6 = arith.constant 0 : index
    %c0_7 = arith.constant 0 : index
    %c0_8 = arith.constant 0 : index
    %5 = vector.load %arg1[%c0_6, %c0_7, %c0_8] : memref<1x8x96xbf16, #tpu.memory_space<vmem>>, vector<1x8x96xbf16>
    %6 = vector.shape_cast %5 : vector<1x8x96xbf16> to vector<8x96xbf16>
    %c8 = arith.constant 8 : index
    %c0_9 = arith.constant 0 : index
    %7 = vector.load %arg9[%c8, %c0_9] : memref<24x512xbf16, #tpu.memory_space<vmem>>, vector<8x96xbf16>
    tpu.vector_store %arg9[%c8, %c0_9], %6 {strides = array<i32>} : memref<24x512xbf16, #tpu.memory_space<vmem>>, vector<8x96xbf16>,
    %cst_10 = arith.constant 0.000000e+00 : f32
    %8 = vector.broadcast %cst_10 : f32 to vector<8x512xf32>
    %c6 = arith.constant 6 : index
    %c0_11 = arith.constant 0 : index
    %9 = vector.load %arg9[%c6, %c0_11] : memref<24x512xbf16, #tpu.memory_space<vmem>>, vector<8x96xbf16>
    %c0_12 = arith.constant 0 : index
    %c0_13 = arith.constant 0 : index
    %c0_14 = arith.constant 0 : index
    %10 = vector.load %arg2[%c0_12, %c0_13, %c0_14] : memref<5x96x512xbf16, #tpu.memory_space<vmem>>, vector<1x96x512xbf16>
    %11 = vector.shape_cast %10 : vector<1x96x512xbf16> to vector<96x512xbf16>
    %cst_15 = arith.constant dense<0.000000e+00> : vector<8x512xf32>
    %12 = tpu.matmul %9, %11, %cst_15 {dimension_numbers = #tpu.dot_dimension_numbers<[1], [0], [0], [1], [0, 0, 1, 1], [], []>} : vector<8x96xbf16>, vector<96x512xbf16>, vector<8x512xf32> -> vector<8x512xf32>
    %13 = arith.addf %8, %12 : vector<8x512xf32>
    %c7 = arith.constant 7 : index
    %c0_16 = arith.constant 0 : index
    %14 = vector.load %arg9[%c7, %c0_16] : memref<24x512xbf16, #tpu.memory_space<vmem>>, vector<8x96xbf16>
    %c1 = arith.constant 1 : index
    %c0_17 = arith.constant 0 : index
    %c0_18 = arith.constant 0 : index
    %15 = vector.load %arg2[%c1, %c0_17, %c0_18] : memref<5x96x512xbf16, #tpu.memory_space<vmem>>, vector<1x96x512xbf16>
    %16 = vector.shape_cast %15 : vector<1x96x512xbf16> to vector<96x512xbf16>
    %cst_19 = arith.constant dense<0.000000e+00> : vector<8x512xf32>
    %17 = tpu.matmul %14, %16, %cst_19 {dimension_numbers = #tpu.dot_dimension_numbers<[1], [0], [0], [1], [0, 0, 1, 1], [], []>} : vector<8x96xbf16>, vector<96x512xbf16>, vector<8x512xf32> -> vector<8x512xf32>
    %18 = arith.addf %13, %17 : vector<8x512xf32>
    %c8_20 = arith.constant 8 : index
    %c0_21 = arith.constant 0 : index
    %19 = vector.load %arg9[%c8_20, %c0_21] : memref<24x512xbf16, #tpu.memory_space<vmem>>, vector<8x96xbf16>
    %c2 = arith.constant 2 : index
    %c0_22 = arith.constant 0 : index
    %c0_23 = arith.constant 0 : index
    %20 = vector.load %arg2[%c2, %c0_22, %c0_23] : memref<5x96x512xbf16, #tpu.memory_space<vmem>>, vector<1x96x512xbf16>
    %21 = vector.shape_cast %20 : vector<1x96x512xbf16> to vector<96x512xbf16>
    %cst_24 = arith.constant dense<0.000000e+00> : vector<8x512xf32>
    %22 = tpu.matmul %19, %21, %cst_24 {dimension_numbers = #tpu.dot_dimension_numbers<[1], [0], [0], [1], [0, 0, 1, 1], [], []>} : vector<8x96xbf16>, vector<96x512xbf16>, vector<8x512xf32> -> vector<8x512xf32>
    %23 = arith.addf %18, %22 : vector<8x512xf32>
    %c9 = arith.constant 9 : index
    %c0_25 = arith.constant 0 : index
    %24 = vector.load %arg9[%c9, %c0_25] : memref<24x512xbf16, #tpu.memory_space<vmem>>, vector<8x96xbf16>
    %c3 = arith.constant 3 : index
    %c0_26 = arith.constant 0 : index
    %c0_27 = arith.constant 0 : index
    %25 = vector.load %arg2[%c3, %c0_26, %c0_27] : memref<5x96x512xbf16, #tpu.memory_space<vmem>>, vector<1x96x512xbf16>
    %26 = vector.shape_cast %25 : vector<1x96x512xbf16> to vector<96x512xbf16>
    %cst_28 = arith.constant dense<0.000000e+00> : vector<8x512xf32>
    %27 = tpu.matmul %24, %26, %cst_28 {dimension_numbers = #tpu.dot_dimension_numbers<[1], [0], [0], [1], [0, 0, 1, 1], [], []>} : vector<8x96xbf16>, vector<96x512xbf16>, vector<8x512xf32> -> vector<8x512xf32>
    %28 = arith.addf %23, %27 : vector<8x512xf32>
    %c10 = arith.constant 10 : index
    %c0_29 = arith.constant 0 : index
    %29 = vector.load %arg9[%c10, %c0_29] : memref<24x512xbf16, #tpu.memory_space<vmem>>, vector<8x96xbf16>
    %c4 = arith.constant 4 : index
    %c0_30 = arith.constant 0 : index
    %c0_31 = arith.constant 0 : index
    %30 = vector.load %arg2[%c4, %c0_30, %c0_31] : memref<5x96x512xbf16, #tpu.memory_space<vmem>>, vector<1x96x512xbf16>
    %31 = vector.shape_cast %30 : vector<1x96x512xbf16> to vector<96x512xbf16>
    %cst_32 = arith.constant dense<0.000000e+00> : vector<8x512xf32>
    %32 = tpu.matmul %29, %31, %cst_32 {dimension_numbers = #tpu.dot_dimension_numbers<[1], [0], [0], [1], [0, 0, 1, 1], [], []>} : vector<8x96xbf16>, vector<96x512xbf16>, vector<8x512xf32> -> vector<8x512xf32>
    %33 = arith.addf %28, %32 : vector<8x512xf32>
    %c0_33 = arith.constant 0 : index
    %c0_34 = arith.constant 0 : index
    %34 = vector.load %arg5[%c0_33, %c0_34] : memref<1x512xf32, #tpu.memory_space<vmem>>, vector<1x512xf32>
    %35 = vector.broadcast %34 : vector<1x512xf32> to vector<8x512xf32>
    %36 = arith.addf %33, %35 : vector<8x512xf32>
    %cst_35 = arith.constant 0.000000e+00 : f32
    %37 = vector.broadcast %cst_35 : f32 to vector<8x512xf32>
    %38 = arith.maximumf %36, %37 : vector<8x512xf32>
    %39 = arith.truncf %38 : vector<8x512xf32> to vector<8x512xbf16>
    %c8_36 = arith.constant 8 : index
    %c0_37 = arith.constant 0 : index
    %40 = vector.load %arg10[%c8_36, %c0_37] : memref<24x512xbf16, #tpu.memory_space<vmem>>, vector<8x512xbf16>
    tpu.vector_store %arg10[%c8_36, %c0_37], %39 {strides = array<i32>} : memref<24x512xbf16, #tpu.memory_space<vmem>>, vector<8x512xbf16>,
    %cst_38 = arith.constant 0.000000e+00 : f32
    %41 = vector.broadcast %cst_38 : f32 to vector<8x512xf32>
    %c6_39 = arith.constant 6 : index
    %c0_40 = arith.constant 0 : index
    %42 = vector.load %arg10[%c6_39, %c0_40] : memref<24x512xbf16, #tpu.memory_space<vmem>>, vector<8x512xbf16>
    %c0_41 = arith.constant 0 : index
    %c0_42 = arith.constant 0 : index
    %c0_43 = arith.constant 0 : index
    %43 = vector.load %arg3[%c0_41, %c0_42, %c0_43] : memref<5x512x512xbf16, #tpu.memory_space<vmem>>, vector<1x512x512xbf16>
    %44 = vector.shape_cast %43 : vector<1x512x512xbf16> to vector<512x512xbf16>
    %cst_44 = arith.constant dense<0.000000e+00> : vector<8x512xf32>
    %45 = tpu.matmul %42, %44, %cst_44 {dimension_numbers = #tpu.dot_dimension_numbers<[1], [0], [0], [1], [0, 0, 1, 1], [], []>} : vector<8x512xbf16>, vector<512x512xbf16>, vector<8x512xf32> -> vector<8x512xf32>
    %46 = arith.addf %41, %45 : vector<8x512xf32>
    %c7_45 = arith.constant 7 : index
    %c0_46 = arith.constant 0 : index
    %47 = vector.load %arg10[%c7_45, %c0_46] : memref<24x512xbf16, #tpu.memory_space<vmem>>, vector<8x512xbf16>
    %c1_47 = arith.constant 1 : index
    %c0_48 = arith.constant 0 : index
    %c0_49 = arith.constant 0 : index
    %48 = vector.load %arg3[%c1_47, %c0_48, %c0_49] : memref<5x512x512xbf16, #tpu.memory_space<vmem>>, vector<1x512x512xbf16>
    %49 = vector.shape_cast %48 : vector<1x512x512xbf16> to vector<512x512xbf16>
    %cst_50 = arith.constant dense<0.000000e+00> : vector<8x512xf32>
    %50 = tpu.matmul %47, %49, %cst_50 {dimension_numbers = #tpu.dot_dimension_numbers<[1], [0], [0], [1], [0, 0, 1, 1], [], []>} : vector<8x512xbf16>, vector<512x512xbf16>, vector<8x512xf32> -> vector<8x512xf32>
    %51 = arith.addf %46, %50 : vector<8x512xf32>
    %c8_51 = arith.constant 8 : index
    %c0_52 = arith.constant 0 : index
    %52 = vector.load %arg10[%c8_51, %c0_52] : memref<24x512xbf16, #tpu.memory_space<vmem>>, vector<8x512xbf16>
    %c2_53 = arith.constant 2 : index
    %c0_54 = arith.constant 0 : index
    %c0_55 = arith.constant 0 : index
    %53 = vector.load %arg3[%c2_53, %c0_54, %c0_55] : memref<5x512x512xbf16, #tpu.memory_space<vmem>>, vector<1x512x512xbf16>
    %54 = vector.shape_cast %53 : vector<1x512x512xbf16> to vector<512x512xbf16>
    %cst_56 = arith.constant dense<0.000000e+00> : vector<8x512xf32>
    %55 = tpu.matmul %52, %54, %cst_56 {dimension_numbers = #tpu.dot_dimension_numbers<[1], [0], [0], [1], [0, 0, 1, 1], [], []>} : vector<8x512xbf16>, vector<512x512xbf16>, vector<8x512xf32> -> vector<8x512xf32>
    %56 = arith.addf %51, %55 : vector<8x512xf32>
    %c9_57 = arith.constant 9 : index
    %c0_58 = arith.constant 0 : index
    %57 = vector.load %arg10[%c9_57, %c0_58] : memref<24x512xbf16, #tpu.memory_space<vmem>>, vector<8x512xbf16>
    %c3_59 = arith.constant 3 : index
    %c0_60 = arith.constant 0 : index
    %c0_61 = arith.constant 0 : index
    %58 = vector.load %arg3[%c3_59, %c0_60, %c0_61] : memref<5x512x512xbf16, #tpu.memory_space<vmem>>, vector<1x512x512xbf16>
    %59 = vector.shape_cast %58 : vector<1x512x512xbf16> to vector<512x512xbf16>
    %cst_62 = arith.constant dense<0.000000e+00> : vector<8x512xf32>
    %60 = tpu.matmul %57, %59, %cst_62 {dimension_numbers = #tpu.dot_dimension_numbers<[1], [0], [0], [1], [0, 0, 1, 1], [], []>} : vector<8x512xbf16>, vector<512x512xbf16>, vector<8x512xf32> -> vector<8x512xf32>
    %61 = arith.addf %56, %60 : vector<8x512xf32>
    %c10_63 = arith.constant 10 : index
    %c0_64 = arith.constant 0 : index
    %62 = vector.load %arg10[%c10_63, %c0_64] : memref<24x512xbf16, #tpu.memory_space<vmem>>, vector<8x512xbf16>
    %c4_65 = arith.constant 4 : index
    %c0_66 = arith.constant 0 : index
    %c0_67 = arith.constant 0 : index
    %63 = vector.load %arg3[%c4_65, %c0_66, %c0_67] : memref<5x512x512xbf16, #tpu.memory_space<vmem>>, vector<1x512x512xbf16>
    %64 = vector.shape_cast %63 : vector<1x512x512xbf16> to vector<512x512xbf16>
    %cst_68 = arith.constant dense<0.000000e+00> : vector<8x512xf32>
    %65 = tpu.matmul %62, %64, %cst_68 {dimension_numbers = #tpu.dot_dimension_numbers<[1], [0], [0], [1], [0, 0, 1, 1], [], []>} : vector<8x512xbf16>, vector<512x512xbf16>, vector<8x512xf32> -> vector<8x512xf32>
    %66 = arith.addf %61, %65 : vector<8x512xf32>
    %c0_69 = arith.constant 0 : index
    %c0_70 = arith.constant 0 : index
    %67 = vector.load %arg6[%c0_69, %c0_70] : memref<1x512xf32, #tpu.memory_space<vmem>>, vector<1x512xf32>
    %68 = vector.broadcast %67 : vector<1x512xf32> to vector<8x512xf32>
    %69 = arith.addf %66, %68 : vector<8x512xf32>
    %cst_71 = arith.constant 0.000000e+00 : f32
    %70 = vector.broadcast %cst_71 : f32 to vector<8x512xf32>
    %71 = arith.maximumf %69, %70 : vector<8x512xf32>
    %72 = arith.truncf %71 : vector<8x512xf32> to vector<8x512xbf16>
    %c8_72 = arith.constant 8 : index
    %c0_73 = arith.constant 0 : index
    %73 = vector.load %arg9[%c8_72, %c0_73] : memref<24x512xbf16, #tpu.memory_space<vmem>>, vector<8x512xbf16>
    tpu.vector_store %arg9[%c8_72, %c0_73], %72 {strides = array<i32>} : memref<24x512xbf16, #tpu.memory_space<vmem>>, vector<8x512xbf16>,
    %cst_74 = arith.constant 0.000000e+00 : f32
    %74 = vector.broadcast %cst_74 : f32 to vector<8x512xf32>
    %c6_75 = arith.constant 6 : index
    %c0_76 = arith.constant 0 : index
    %75 = vector.load %arg9[%c6_75, %c0_76] : memref<24x512xbf16, #tpu.memory_space<vmem>>, vector<8x512xbf16>
    %c0_77 = arith.constant 0 : index
    %c0_78 = arith.constant 0 : index
    %c0_79 = arith.constant 0 : index
    %76 = vector.load %arg4[%c0_77, %c0_78, %c0_79] : memref<5x512x512xbf16, #tpu.memory_space<vmem>>, vector<1x512x512xbf16>
    %77 = vector.shape_cast %76 : vector<1x512x512xbf16> to vector<512x512xbf16>
    %cst_80 = arith.constant dense<0.000000e+00> : vector<8x512xf32>
    %78 = tpu.matmul %75, %77, %cst_80 {dimension_numbers = #tpu.dot_dimension_numbers<[1], [0], [0], [1], [0, 0, 1, 1], [], []>} : vector<8x512xbf16>, vector<512x512xbf16>, vector<8x512xf32> -> vector<8x512xf32>
    %79 = arith.addf %74, %78 : vector<8x512xf32>
    %c7_81 = arith.constant 7 : index
    %c0_82 = arith.constant 0 : index
    %80 = vector.load %arg9[%c7_81, %c0_82] : memref<24x512xbf16, #tpu.memory_space<vmem>>, vector<8x512xbf16>
    %c1_83 = arith.constant 1 : index
    %c0_84 = arith.constant 0 : index
    %c0_85 = arith.constant 0 : index
    %81 = vector.load %arg4[%c1_83, %c0_84, %c0_85] : memref<5x512x512xbf16, #tpu.memory_space<vmem>>, vector<1x512x512xbf16>
    %82 = vector.shape_cast %81 : vector<1x512x512xbf16> to vector<512x512xbf16>
    %cst_86 = arith.constant dense<0.000000e+00> : vector<8x512xf32>
    %83 = tpu.matmul %80, %82, %cst_86 {dimension_numbers = #tpu.dot_dimension_numbers<[1], [0], [0], [1], [0, 0, 1, 1], [], []>} : vector<8x512xbf16>, vector<512x512xbf16>, vector<8x512xf32> -> vector<8x512xf32>
    %84 = arith.addf %79, %83 : vector<8x512xf32>
    %c8_87 = arith.constant 8 : index
    %c0_88 = arith.constant 0 : index
    %85 = vector.load %arg9[%c8_87, %c0_88] : memref<24x512xbf16, #tpu.memory_space<vmem>>, vector<8x512xbf16>
    %c2_89 = arith.constant 2 : index
    %c0_90 = arith.constant 0 : index
    %c0_91 = arith.constant 0 : index
    %86 = vector.load %arg4[%c2_89, %c0_90, %c0_91] : memref<5x512x512xbf16, #tpu.memory_space<vmem>>, vector<1x512x512xbf16>
    %87 = vector.shape_cast %86 : vector<1x512x512xbf16> to vector<512x512xbf16>
    %cst_92 = arith.constant dense<0.000000e+00> : vector<8x512xf32>
    %88 = tpu.matmul %85, %87, %cst_92 {dimension_numbers = #tpu.dot_dimension_numbers<[1], [0], [0], [1], [0, 0, 1, 1], [], []>} : vector<8x512xbf16>, vector<512x512xbf16>, vector<8x512xf32> -> vector<8x512xf32>
    %89 = arith.addf %84, %88 : vector<8x512xf32>
    %c9_93 = arith.constant 9 : index
    %c0_94 = arith.constant 0 : index
    %90 = vector.load %arg9[%c9_93, %c0_94] : memref<24x512xbf16, #tpu.memory_space<vmem>>, vector<8x512xbf16>
    %c3_95 = arith.constant 3 : index
    %c0_96 = arith.constant 0 : index
    %c0_97 = arith.constant 0 : index
    %91 = vector.load %arg4[%c3_95, %c0_96, %c0_97] : memref<5x512x512xbf16, #tpu.memory_space<vmem>>, vector<1x512x512xbf16>
    %92 = vector.shape_cast %91 : vector<1x512x512xbf16> to vector<512x512xbf16>
    %cst_98 = arith.constant dense<0.000000e+00> : vector<8x512xf32>
    %93 = tpu.matmul %90, %92, %cst_98 {dimension_numbers = #tpu.dot_dimension_numbers<[1], [0], [0], [1], [0, 0, 1, 1], [], []>} : vector<8x512xbf16>, vector<512x512xbf16>, vector<8x512xf32> -> vector<8x512xf32>
    %94 = arith.addf %89, %93 : vector<8x512xf32>
    %c10_99 = arith.constant 10 : index
    %c0_100 = arith.constant 0 : index
    %95 = vector.load %arg9[%c10_99, %c0_100] : memref<24x512xbf16, #tpu.memory_space<vmem>>, vector<8x512xbf16>
    %c4_101 = arith.constant 4 : index
    %c0_102 = arith.constant 0 : index
    %c0_103 = arith.constant 0 : index
    %96 = vector.load %arg4[%c4_101, %c0_102, %c0_103] : memref<5x512x512xbf16, #tpu.memory_space<vmem>>, vector<1x512x512xbf16>
    %97 = vector.shape_cast %96 : vector<1x512x512xbf16> to vector<512x512xbf16>
    %cst_104 = arith.constant dense<0.000000e+00> : vector<8x512xf32>
    %98 = tpu.matmul %95, %97, %cst_104 {dimension_numbers = #tpu.dot_dimension_numbers<[1], [0], [0], [1], [0, 0, 1, 1], [], []>} : vector<8x512xbf16>, vector<512x512xbf16>, vector<8x512xf32> -> vector<8x512xf32>
    %99 = arith.addf %94, %98 : vector<8x512xf32>
    %c0_105 = arith.constant 0 : index
    %c0_106 = arith.constant 0 : index
    %100 = vector.load %arg7[%c0_105, %c0_106] : memref<1x512xf32, #tpu.memory_space<vmem>>, vector<1x512xf32>
    %101 = vector.broadcast %100 : vector<1x512xf32> to vector<8x512xf32>
    %102 = arith.addf %99, %101 : vector<8x512xf32>
    %cst_107 = arith.constant 0.000000e+00 : f32
    %103 = vector.broadcast %cst_107 : f32 to vector<8x512xf32>
    %104 = arith.maximumf %102, %103 : vector<8x512xf32>
    %c0_108 = arith.constant 0 : index
    %c0_109 = arith.constant 0 : index
    %c0_110 = arith.constant 0 : index
    %105 = vector.load %arg8[%c0_108, %c0_109, %c0_110] : memref<1x8x512xf32, #tpu.memory_space<vmem>>, vector<1x8x512xf32>
    %106 = vector.shape_cast %105 : vector<1x8x512xf32> to vector<8x512xf32>
    %107 = vector.shape_cast %104 : vector<8x512xf32> to vector<1x8x512xf32>
    tpu.vector_store %arg8[%c0_108, %c0_109, %c0_110], %107 {strides = array<i32>} : memref<1x8x512xf32, #tpu.memory_space<vmem>>, vector<1x8x512xf32>,
    return
  }
  func.func @transform_0(%arg0: i32) -> (i32, i32, i32) {
    %c0_i32 = arith.constant 0 : i32
    %c0_i32_0 = arith.constant 0 : i32
    %c0_i32_1 = arith.constant 0 : i32
    return %arg0, %c0_i32, %c0_i32_0 : i32, i32, i32
  }
  func.func @transform_1(%arg0: i32) -> (i32, i32, i32) {
    %c0_i32 = arith.constant 0 : i32
    %c0_i32_0 = arith.constant 0 : i32
    %c0_i32_1 = arith.constant 0 : i32
    %c0_i32_2 = arith.constant 0 : i32
    return %c0_i32, %c0_i32_0, %c0_i32_1 : i32, i32, i32
  }
  func.func @transform_2(%arg0: i32) -> (i32, i32, i32) {
    %c0_i32 = arith.constant 0 : i32
    %c0_i32_0 = arith.constant 0 : i32
    %c0_i32_1 = arith.constant 0 : i32
    %c0_i32_2 = arith.constant 0 : i32
    return %c0_i32, %c0_i32_0, %c0_i32_1 : i32, i32, i32
  }
  func.func @transform_3(%arg0: i32) -> (i32, i32, i32) {
    %c0_i32 = arith.constant 0 : i32
    %c0_i32_0 = arith.constant 0 : i32
    %c0_i32_1 = arith.constant 0 : i32
    %c0_i32_2 = arith.constant 0 : i32
    return %c0_i32, %c0_i32_0, %c0_i32_1 : i32, i32, i32
  }
  func.func @transform_4(%arg0: i32) -> (i32, i32) {
    %c0_i32 = arith.constant 0 : i32
    %c0_i32_0 = arith.constant 0 : i32
    %c0_i32_1 = arith.constant 0 : i32
    return %c0_i32, %c0_i32_0 : i32, i32
  }
  func.func @transform_5(%arg0: i32) -> (i32, i32) {
    %c0_i32 = arith.constant 0 : i32
    %c0_i32_0 = arith.constant 0 : i32
    %c0_i32_1 = arith.constant 0 : i32
    return %c0_i32, %c0_i32_0 : i32, i32
  }
  func.func @transform_6(%arg0: i32) -> (i32, i32) {
    %c0_i32 = arith.constant 0 : i32
    %c0_i32_0 = arith.constant 0 : i32
    %c0_i32_1 = arith.constant 0 : i32
    return %c0_i32, %c0_i32_0 : i32, i32
  }
  func.func @transform_7(%arg0: i32) -> (i32, i32, i32) {
    %c0_i32 = arith.constant 0 : i32
    %c0_i32_0 = arith.constant 0 : i32
    %c0_i32_1 = arith.constant 0 : i32
    return %arg0, %c0_i32, %c0_i32_0 : i32, i32, i32
  }
}

</mosaic_0001>

<bundles_post_ra>
// kernel: tpu_custom_call.1
= control target key start
LH: loop header
LB: loop body
LE: loop exit
PB: predicated region body
PF: predicated region fallthrough
CT: control target
= control target key end

     0   :  { %s16254_s0 = inlined_call_operand.hbm [shape: bf16[2,8,96], index: 0, kind: input, shape index: {}]   ;;  %s16255_s1 = inlined_call_operand.hbm [shape: bf16[5,96,512], index: 1, kind: input, shape index: {}]   ;;  %s16256_s2 = inlined_call_operand.hbm [shape: bf16[5,512,512], index: 2, kind: input, shape index: {}]   ;;  %s16257_s3 = inlined_call_operand.hbm [shape: bf16[5,512,512], index: 3, kind: input, shape index: {}]   ;;  %s16258_s4 = inlined_call_operand.hbm [shape: f32[1,512], index: 4, kind: input, shape index: {}]   ;;  %s16259_s5 = inlined_call_operand.hbm [shape: f32[1,512], index: 5, kind: input, shape index: {}]   ;;  %s16260_s6 = inlined_call_operand.hbm [shape: f32[1,512], index: 6, kind: input, shape index: {}]   ;;  %s16261_s7 = inlined_call_operand.hbm [shape: f32[2,8,512], index: 7, kind: output, shape index: {}]  }
   0x1   :  { %16266 = sst [smem:[#allocation22_spill]] %s16255_s1 }
   0x2   :  { %16267 = sst [smem:[#allocation23_spill]] %s16256_s2 }
   0x3   :  { %12 = vsyncpa [#allocation5], 0 }
   0x4   :  { %14 = vsyncpa [#allocation5 + $0x1], 0 }
   0x5   :  { %15 = vsyncpa [#allocation8], 0 }
   0x6   :  { %16 = vsyncpa [#allocation11], 0 }
   0x7   :  { %17 = vsyncpa [#allocation14], 0 }
   0x8   :  { %18 = vsyncpa [#allocation6], 0 }
   0x9   :  { %20 = vsyncpa [#allocation6 + $0x1], 0  ;;  %s15569_s24 = smov 0   ;;  %s15571_s25 = smov 0  }
   0xa   :  { %s15573_s26 = smov 0   ;;  %s15575_s27 = smov 0  }
   0xb LB: > { %s15518_s28 = smov [#allocation7]   ;;  %s15590_s30 = sadd.s32 4294967295, %s15516_s27   ;;  %s15516_s27 = sphi %s15575_s27, %s16292_s27   ;;  %s15512_s26 = sphi %s15573_s26, %s16291_s26   ;;  %s15508_s25 = sphi %s15571_s25, %s16290_s25   ;;  %s15504_s24 = sphi %s15569_s24, %s16289_s24  }
   0xc   : > { %s221_s29 = sshll.u32 %s15518_s28, 4  ;;  %p11525_p0 = scmp.ge.s32.totalorder %s15516_s27, 1  ;;  %s222_s29 = int_to_ptr.vmem [resolvable:$true] %s221_s29 }
   0xd   : > { %p16262_p1 = scmp.eq.s32.totalorder %s15590_s30, 0  ;;  %p209_p2 = scmp.lt.s32.totalorder %s15516_s27, 3 }
   0xe   : > { %s15519_s9 = smov [#allocation10]   ;;  %s15520_s12 = smov [#allocation13]  }
   0xf   : > { %p15595_p3 = pnand %p11525_p0, %p209_p2  ;;  %s247_s10 = sshll.u32 %s15519_s9, 4  ;;  %s15608_s10 = int_to_ptr.vmem [resolvable:$true] %s247_s10 }
  0x10   : > { %s272_s13 = sshll.u32 %s15520_s12, 4  ;;  %s15267_s15 = scalar_lea.vmem %s222_s29, 15360  ;;  %s15610_s13 = int_to_ptr.vmem [resolvable:$true] %s272_s13 }
  0x11   : > { %s16268_s8 = scalar_select %p15595_p3, 1, 0 }
  0x12   : > { %p13040_p5 = pneg %p15595_p3  ;;  %p15268_p8 = scmp.ne.s32.totalorder %s222_s29, %s15267_s15 }
  0x13   : > { %p15275_p11 = scmp.lt.s32.totalorder %s222_s29, %s222_s29  ;;  %p15276_p12 = scmp.lt.s32.totalorder %s15267_s15, %s15267_s15 }
  0x14   : > { %p15604_p6 = pnand %p13040_p5, %p16262_p1 }
  0x15   : > { %p15277_p13 = por %p15276_p12, %p15275_p11 }
  0x16   : > { %p15614_p7 = pneg %p15604_p6 }
  0x18   : > { %p15270_p9 = pnand %p15268_p8, %p15614_p7 }
  0x1a   : > { %p15271_p10 = pneg %p15270_p9 }
  0x1c   : > { %p15278_p0 = pnand %p15277_p13, %p15271_p10 }
  0x1e   : > { %15281 = shalt.err (!%p15278_p0)
}
  0x1f   : > { %s15521_s16 = smov 256   ;;  %s15522_s17 = smov 16  }
  0x20   : > { %s16271_s1 = sld [smem:[#allocation22_spill]]  ;;  %s15293_s20 = scalar_lea.vmem %s15608_s10, 81920 }
  0x21   : > { %p15294_p2 = scmp.ne.s32.totalorder %s15608_s10, %s15293_s20  ;;  %p15301_p9 = scmp.lt.s32.totalorder %s15608_s10, %s15608_s10 }
  0x22   : > { %p15302_p10 = scmp.lt.s32.totalorder %s15293_s20, %s15293_s20 }
  0x23   : > { %p15296_p5 = pnand %p15294_p2, %p15614_p7 }
  0x24   : > { %p15303_p11 = por %p15302_p10, %p15301_p9 }
  0x25   : > { %p15297_p8 = pneg %p15296_p5 }
  0x26   : > { %13043 = dma.hbm_to_vmem [thread:$0]  (!%p15604_p6), %s16271_s1, 15360, %s222_s29, [#allocation8], %s15521_s16, %s15521_s16, %s15522_s17  }
  0x27   : > { %p15304_p12 = pnand %p15303_p11, %p15297_p8 }
  0x29   : > { %15307 = shalt.err (!%p15304_p12)
}
  0x2a   : > { %13049 = dma.hbm_to_vmem [thread:$0]  (!%p15604_p6), %s16257_s3, 81920, %s15608_s10, [#allocation11], %s15521_s16, %s15521_s16, %s15522_s17  }
  0x2b   : > { %s15319_s23 = scalar_lea.vmem %s15610_s13, 64  ;;  %p15327_p5 = scmp.lt.s32.totalorder %s15610_s13, %s15610_s13 }
  0x2c   : > { %p15320_p13 = scmp.ne.s32.totalorder %s15610_s13, %s15319_s23  ;;  %p15328_p8 = scmp.lt.s32.totalorder %s15319_s23, %s15319_s23 }
  0x2e   : > { %p15322_p0 = pnand %p15320_p13, %p15614_p7  ;;  %p15329_p9 = por %p15328_p8, %p15327_p5 }
  0x30   : > { %p15323_p2 = pneg %p15322_p0 }
  0x32   : > { %p15330_p10 = pnand %p15329_p9, %p15323_p2 }
  0x34   : > { %15333 = shalt.err (!%p15330_p10)
}
  0x35   : > { %13055 = dma.hbm_to_vmem [thread:$0]  (!%p15604_p6), %s16259_s5, 64, %s15610_s13, [#allocation14]  }
  0x36   : > { %s15523_s9 = smov [#allocation9]   ;;  %s15524_s12 = smov [#allocation12]  }
  0x37   : > { %s234_s10 = sshll.u32 %s15523_s9, 4  ;;  %s261_s15 = sshll.u32 %s15524_s12, 4  ;;  %s235_s10 = int_to_ptr.vmem [resolvable:$true] %s234_s10  ;;  %s262_s15 = int_to_ptr.vmem [resolvable:$true] %s261_s15 }
  0x38   : > { %s15345_s18 = scalar_lea.vmem %s235_s10, 81920  ;;  %p15353_p0 = scmp.lt.s32.totalorder %s235_s10, %s235_s10 }
  0x39   : > { %p15346_p11 = scmp.ne.s32.totalorder %s235_s10, %s15345_s18  ;;  %p15354_p2 = scmp.lt.s32.totalorder %s15345_s18, %s15345_s18 }
  0x3b   : > { %p15348_p12 = pnand %p15346_p11, %p15614_p7  ;;  %p15355_p5 = por %p15354_p2, %p15353_p0 }
  0x3d   : > { %p15349_p13 = pneg %p15348_p12 }
  0x3f   : > { %p15356_p8 = pnand %p15355_p5, %p15349_p13 }
  0x41   : > { %15359 = shalt.err (!%p15356_p8)
}
  0x42   : > { %s16272_s2 = sld [smem:[#allocation23_spill]]  ;;  %s15371_s20 = scalar_lea.vmem %s262_s15, 64 }
  0x43   : > { %p15372_p9 = scmp.ne.s32.totalorder %s262_s15, %s15371_s20  ;;  %p15379_p12 = scmp.lt.s32.totalorder %s262_s15, %s262_s15 }
  0x44   : > { %p15380_p0 = scmp.lt.s32.totalorder %s15371_s20, %s15371_s20 }
  0x45   : > { %p15374_p10 = pnand %p15372_p9, %p15614_p7 }
  0x46   : > { %p15381_p13 = por %p15380_p0, %p15379_p12 }
  0x47   : > { %p15375_p11 = pneg %p15374_p10 }
  0x48   : > { %13046 = dma.hbm_to_vmem [thread:$0]  (!%p15604_p6), %s16272_s2, 81920, %s235_s10, [#allocation8], %s15521_s16, %s15521_s16, %s15522_s17  }
  0x49   : > { %p15382_p2 = pnand %p15381_p13, %p15375_p11 }
  0x4b   : > { %15385 = shalt.err (!%p15382_p2)
}
  0x4c   : > { %13052 = dma.hbm_to_vmem [thread:$0]  (!%p15604_p6), %s16258_s4, 64, %s262_s15, [#allocation11]  }
  0x4d   : > { %s15525_s23 = smov [#allocation15]  }
  0x4e   : > { %s283_s16 = sshll.u32 %s15525_s23, 4  ;;  %s284_s16 = int_to_ptr.vmem [resolvable:$true] %s283_s16 }
  0x4f   : > { %s15397_s17 = scalar_lea.vmem %s284_s16, 64  ;;  %p15405_p10 = scmp.lt.s32.totalorder %s284_s16, %s284_s16 }
  0x50   : > { %p15398_p5 = scmp.ne.s32.totalorder %s284_s16, %s15397_s17  ;;  %p15406_p4 = scmp.lt.s32.totalorder %s15397_s17, %s15397_s17 }
  0x52   : > { %p15400_p8 = pnand %p15398_p5, %p15614_p7  ;;  %p15407_p12 = por %p15406_p4, %p15405_p10 }
  0x54   : > { %p15401_p9 = pneg %p15400_p8 }
  0x56   : > { %p15408_p11 = pnand %p15407_p12, %p15401_p9 }
  0x58   : > { %15411 = shalt.err (!%p15408_p11)
}
  0x59   : > { %13058 = dma.hbm_to_vmem [thread:$0]  (!%p15604_p6), %s16260_s6, 64, %s284_s16, [#allocation14]  }
  0x5a   : > { %s11524_s14 = sadd.s32 4294967294, %s15516_s27   ;;  %s15681_s11 = sadd.s32 1, %s15516_s27  }
  0x5b   : > { %s30_s9 = ssub.s32 %s15516_s27, %s15681_s11  ;;  %s33_s10 = sadd.s32 1, %s15512_s26 }
  0x5c   : > { %p31_p4 = scmp.eq.s32.totalorder %s30_s9, 0  ;;  %p40_p7 = scmp.ne.s32.totalorder %s15512_s26, %s15508_s25 }
  0x5d   : > { %p41_p0 = scmp.eq.s32.totalorder %s15516_s27, 0  ;;  %p46_p13 = scmp.ne.s32.totalorder %s15508_s25, %s15504_s24 }
  0x5e   : > { %s15692_s12 = scalar_select %p31_p4, %s15512_s26, %s33_s10  }
  0x5f   : > { %p15694_p2 = por %p41_p0, %p40_p7  ;;  %p15700_p6 = por %p16262_p1, %p46_p13 }
  0x60   : > { %p196_p5 = scmp.eq.s32.totalorder %s15590_s30, 1  ;;  %p202_p8 = scmp.eq.s32.totalorder %s11524_s14, 1 }
  0x61   : > { %s16274_s18 = scalar_select %p15700_p6, 1, 0 }
  0x62   : > { %p13073_p9 = scmp.lt.s32.totalorder %s15516_s27, 2  ;;  %s294_s13 = sand.u32 1, %s15512_s26  }
  0x63   : > { %p15707_p10 = por %p196_p5, %p40_p7  ;;  %p15711_p12 = por %p202_p8, %p46_p13 }
  0x64   : > { %s11533_s21 = sshll.u32 %s294_s13, 2  ;;  %s11534_s22 = sshll.u32 %s15516_s27, 6 }
  0x65   : > { %s16275_s19 = scalar_select %p15707_p10, 1, 0 }
  0x66   : > { %s16276_s20 = scalar_select %p15711_p12, 1, 0 }
  0x67   : > { %s15719_s17 = scalar_lea.hbm %s16254_s0, %s11534_s22  ;;  %s298_s28 = scalar_lea.vmem [#allocation4], %s11533_s21 }
  0x68   : > { %s305_s29 = sshll.u32 %s298_s28, 4  ;;  %p15723_p11 = pnand %p13073_p9, %p15694_p2  ;;  %s306_s29 = int_to_ptr.vmem [resolvable:$true] %s305_s29 }
  0x69   : > { %s295_s9 = scalar_lea.sflag [#allocation5], %s294_s13  ;;  %s15412_s10 = scalar_lea.hbm %s15719_s17, 64 }
  0x6a   : > { %p15413_p4 = scmp.ne.s32.totalorder %s15719_s17, %s15412_s10  ;;  %p15414_p7 = pneg %p15723_p11 }
  0x6b   : > { %s15417_s16 = scalar_lea.hbm %s16254_s0, 128  ;;  %p15418_p5 = scmp.lt.s32.totalorder %s15719_s17, %s16254_s0 }
  0x6c   : > { %p15415_p0 = pnand %p15414_p7, %p15413_p4  ;;  %p15419_p2 = scmp.lt.s32.totalorder %s15417_s16, %s15412_s10 }
  0x6e   : > { %p15416_p13 = pneg %p15415_p0  ;;  %p15420_p8 = por %p15419_p2, %p15418_p5 }
  0x70   : > { %p15421_p9 = pnand %p15420_p8, %p15416_p13 }
  0x72   : > { %15424 = shalt.err (!%p15421_p9)
}
  0x73   : > { %s15425_s15 = scalar_lea.vmem %s306_s29, 64  ;;  %s15526_s13 = smov [#allocation4]  }
  0x74   : > { %p15426_p1 = scmp.ne.s32.totalorder %s306_s29, %s15425_s15  ;;  %s15430_s1 = sshll.u32 %s15526_s13, 4  ;;  %s15431_s1 = int_to_ptr.vmem [resolvable:$false] %s15430_s1 }
  0x75   : > { %s15432_s2 = scalar_lea.vmem %s15431_s1, 128  ;;  %p15433_p4 = scmp.lt.s32.totalorder %s306_s29, %s15431_s1 }
  0x76   : > { %p15428_p12 = pnand %p15426_p1, %p15414_p7  ;;  %p15434_p0 = scmp.lt.s32.totalorder %s15432_s2, %s15425_s15 }
  0x78   : > { %p15429_p10 = pneg %p15428_p12  ;;  %p15435_p6 = por %p15434_p0, %p15433_p4 }
  0x7a   : > { %p15436_p3 = pnand %p15435_p6, %p15429_p10 }
  0x7c   : > { %15439 = shalt.err (!%p15436_p3)
}
  0x7d   : > { %13062 = dma.hbm_to_vmem [thread:$0]  (!%p15723_p11), %s15719_s17, 64, %s306_s29, %s295_s9  }
  0x7e   : > { %p16278_p13 = scmp.ne.s32.totalorder %s16268_s8, 0 }
  0x7f   : > { %s15744_s10 = sand.u32 (!%p16278_p13), 1, %s15508_s25   ;;  %p16279_p1 = scmp.ne.s32.totalorder (!%p16278_p13), %s16274_s18, 0 }
  0x80   : > { %314 = sbr.rel (%p16278_p13) target bundleno = 2060 (0x80c), region = 48  ;;  %s11536_s22 = sshll.u32 (!%p16278_p13), %s15744_s10, 2 }
  0x81   : > { %s317_s23 = scalar_lea.sflag (!%p16278_p13), [#allocation5], %s15744_s10  ;;  %s15748_s1 = scalar_lea.vmem (!%p16278_p13), [#allocation4], %s11536_s22 }
  0x85   : > { %15483 = dma.done.wait (%p16279_p1), %s317_s23, 64  }
  0x86   : > { %15485 = vsyncadd (%p16279_p1), %s317_s23, 4294967232  ;;  %p16280_p3 = scmp.eq.s32.totalorder %s15590_s30, 0 }
  0x88   : > { %15487 = dma.done.wait (%p16280_p3), [#allocation8], 97280   ;;  %p16281_p6 = pmov %p16280_p3 }
  0x89   : > { %p16282_p10 = pmov %p16280_p3 }
  0x8a   : > { %15489 = vsyncadd (%p16281_p6), [#allocation8], 4294870016 }
  0x8b   : > { %15491 = dma.done.wait (%p16282_p10), [#allocation11], 81984   ;;  %p16283_p12 = pmov %p16280_p3 }
  0x8c   : > { %p16284_p11 = pmov %p16280_p3 }
  0x8d   : > { %15493 = vsyncadd (%p16283_p12), [#allocation11], 4294885312 }
  0x8e   : > { %15495 = dma.done.wait (%p16284_p11), [#allocation14], 128   ;;  %p16285_p7 = pmov %p16280_p3 }
  0x8f   : > { %v15527_v0 = vmov 0   ;;  %v13122_v1 = vld [vmem:[#allocation7 + $0x164] ss:$16 sps:$4 sm:$0xff]   ;;  %v13124_v2 = vld [vmem:[#allocation7 + $0x16c] ss:$16 sps:$4 sm:$0xff]   ;;  %vm385_vm0 = vcmask 781312  }
  0x90   : > { %15497 = vsyncadd (%p16285_p7), [#allocation14], 4294967168  ;;  %608 = vmatprep.mubr.bf16.mxu0 %v15527_v0  ;;  %376 = vst [vmem:[#allocation2] sm:$0xff] %v15527_v0  ;;  %649 = vmatprep.mubr.bf16.mxu1 %v15527_v0  ;;  %v13126_v3 = vld [vmem:[#allocation7 + $0x160] ss:$16 sps:$4 sm:$0xff]   ;;  %vm572_vm1 = vcmask 785408  }
  0x91   : > { %377 = vst [vmem:[#allocation2 + $0x8] sm:$0xff] %v15527_v0  ;;  %378 = vst [vmem:[#allocation2 + $0x20] sm:$0xff] %v15527_v0  ;;  %580 = vmatprep.subr.bf16.mxu0 %v13122_v1  ;;  %v13127_v4 = vld [vmem:[#allocation7 + $0x168] ss:$16 sps:$4 sm:$0xff]   ;;  %621 = vmatprep.subr.bf16.mxu1 %v13124_v2  ;;  %v13128_v5 = vld [vmem:[#allocation7 + $0x144] ss:$16 sps:$4 sm:$0xff]  }
  0x92   : > { %379 = vst [vmem:[#allocation2 + $0x28] sm:$0xff] %v15527_v0  ;;  %380 = vst [vmem:[#allocation3 + $0x18] sm:$0xff] %v15527_v0  ;;  %581 = vmatpush1.bf16.msra.mxu0 %v13126_v3  ;;  %622 = vmatpush1.bf16.msra.mxu1 %v13127_v4  ;;  %v13130_v6 = vld [vmem:[#allocation7 + $0x14c] ss:$16 sps:$4 sm:$0xff]   ;;  %v13132_v7 = vld [vmem:[#allocation7 + $0x140] ss:$16 sps:$4 sm:$0xff]  }
  0x93   : > { %381 = vst [vmem:[#allocation3 + $0x20] sm:$0xff] %v15527_v0  ;;  %382 = vst [vmem:[#allocation3 + $0x8] sm:$0xff] %v15527_v0  ;;  %582 = vmatprep.subr.bf16.mxu0 %v13128_v5  ;;  %v13133_v8 = vld [vmem:[#allocation7 + $0x148] ss:$16 sps:$4 sm:$0xff]   ;;  %623 = vmatprep.subr.bf16.mxu1 %v13130_v6  ;;  %v13134_v9 = vld [vmem:[#allocation7 + $0x124] ss:$16 sps:$4 sm:$0xff]  }
  0x94   : > { %383 = vst [vmem:[#allocation3] sm:$0xff] %v15527_v0  ;;  %v13136_v10 = vld [vmem:[#allocation7 + $0x12c] ss:$16 sps:$4 sm:$0xff]   ;;  %v13138_v11 = vld [vmem:[#allocation7 + $0x120] ss:$16 sps:$4 sm:$0xff]   ;;  %s11543_s2 = sshll.u32 %s15744_s10, 5 }
  0x95   : > { %v13139_v12 = vld [vmem:[#allocation7 + $0x128] ss:$16 sps:$4 sm:$0xff]   ;;  %v13140_v13 = vld [vmem:[#allocation7 + $0x104] ss:$16 sps:$4 sm:$0xff]   ;;  %v13142_v14 = vld [vmem:[#allocation7 + $0x10c] ss:$16 sps:$4 sm:$0xff]  }
  0x96   : > { %583 = vmatpush1.bf16.msra.mxu0 %v13132_v7  ;;  %624 = vmatpush1.bf16.msra.mxu1 %v13133_v8  ;;  %v13144_v15 = vld [vmem:[#allocation7 + $0x100] ss:$16 sps:$4 sm:$0xff]   ;;  %v13145_v16 = vld [vmem:[#allocation7 + $0x108] ss:$16 sps:$4 sm:$0xff]   ;;  %v13146_v17 = vld [vmem:[#allocation7 + $0xe4] ss:$16 sps:$4 sm:$0xff]  }
  0x97   : > { %584 = vmatprep.subr.bf16.mxu0 %v13134_v9  ;;  %625 = vmatprep.subr.bf16.mxu1 %v13136_v10  ;;  %v13148_v18 = vld [vmem:[#allocation7 + $0xec] ss:$16 sps:$4 sm:$0xff]   ;;  %v13150_v19 = vld [vmem:[#allocation7 + $0xe0] ss:$16 sps:$4 sm:$0xff]   ;;  %v13151_v20 = vld [vmem:[#allocation7 + $0xe8] ss:$16 sps:$4 sm:$0xff]  }
  0x98   : > { %v384_v21 = vld [vmem:[%s15748_s1] sm:$0xf]  ;;  %v13152_v22 = vld [vmem:[#allocation7 + $0xc4] ss:$16 sps:$4 sm:$0xff]   ;;  %v13156_v24 = vld [vmem:[#allocation7 + $0xc0] ss:$16 sps:$4 sm:$0xff]  }
  0x99   : > { %v13154_v23 = vld [vmem:[#allocation7 + $0xcc] ss:$16 sps:$4 sm:$0xff]   ;;  %386 = vst.msk [vmem:[#allocation2 + $0x10] sm:$0xf] %vm385_vm0, %v384_v21  ;;  %v13157_v25 = vld [vmem:[#allocation7 + $0xc8] ss:$16 sps:$4 sm:$0xff]  }
  0x9a   : > { %585 = vmatpush1.bf16.msra.mxu0 %v13138_v11  ;;  %626 = vmatpush1.bf16.msra.mxu1 %v13139_v12  ;;  %v13161_v26 = vld [vmem:[#allocation7 + $0xa4] ss:$16 sps:$4 sm:$0xff]   ;;  %v13164_v27 = vld [vmem:[#allocation7 + $0xac] ss:$16 sps:$4 sm:$0xff]   ;;  %v15777_v28 = vld [vmem:[#allocation2] sm:$0x8] }
  0x9b   : > { %586 = vmatprep.subr.bf16.mxu0 %v13140_v13  ;;  %627 = vmatprep.subr.bf16.mxu1 %v13142_v14  ;;  %v13159_v35 = vld [vmem:[#allocation7 + $0xa0] ss:$16 sps:$4 sm:$0xff]   ;;  %v13162_v36 = vld [vmem:[#allocation7 + $0xa8] ss:$16 sps:$4 sm:$0xff]   ;;  %v13167_v38 = vld [vmem:[#allocation7 + $0x84] ss:$16 sps:$4 sm:$0xff]  }
  0x9c   : > { %v13170_v39 = vld [vmem:[#allocation7 + $0x8c] ss:$16 sps:$4 sm:$0xff]   ;;  %v13165_v40 = vld [vmem:[#allocation7 + $0x80] ss:$16 sps:$4 sm:$0xff]   ;;  %v13168_v41 = vld [vmem:[#allocation7 + $0x88] ss:$16 sps:$4 sm:$0xff]  }
  0x9d   : > { %v13173_v42 = vld [vmem:[#allocation7 + $0x64] ss:$16 sps:$4 sm:$0xff]   ;;  %v13176_v43 = vld [vmem:[#allocation7 + $0x6c] ss:$16 sps:$4 sm:$0xff]   ;;  %v13171_v44 = vld [vmem:[#allocation7 + $0x60] ss:$16 sps:$4 sm:$0xff]  }
  0x9e   : > { %587 = vmatpush1.bf16.msra.mxu0 %v13144_v15  ;;  %628 = vmatpush1.bf16.msra.mxu1 %v13145_v16  ;;  %v13174_v45 = vld [vmem:[#allocation7 + $0x68] ss:$16 sps:$4 sm:$0xff]   ;;  %v13179_v46 = vld [vmem:[#allocation7 + $0x44] ss:$16 sps:$4 sm:$0xff]   ;;  %v13182_v47 = vld [vmem:[#allocation7 + $0x4c] ss:$16 sps:$4 sm:$0xff]  }
  0x9f   : > { %588 = vmatprep.subr.bf16.mxu0 %v13146_v17  ;;  %629 = vmatprep.subr.bf16.mxu1 %v13148_v18  ;;  %v13177_v48 = vld [vmem:[#allocation7 + $0x40] ss:$16 sps:$4 sm:$0xff]   ;;  %v13180_v49 = vld [vmem:[#allocation7 + $0x48] ss:$16 sps:$4 sm:$0xff]   ;;  %v13185_v50 = vld [vmem:[#allocation7 + $0x24] ss:$16 sps:$4 sm:$0xff]  }
  0xa0   : > { %v15779_v29 = vld [vmem:[#allocation2 + $0x10] sm:$0xf]  ;;  %v13188_v51 = vld [vmem:[#allocation7 + $0x2c] ss:$16 sps:$4 sm:$0xff]   ;;  %v13183_v52 = vld [vmem:[#allocation7 + $0x20] ss:$16 sps:$4 sm:$0xff]  }
  0xa1   : > { %v11544_v30 = vcombine.low %v15777_v28, %v15779_v29  ;;  %v13186_v53 = vld [vmem:[#allocation7 + $0x28] ss:$16 sps:$4 sm:$0xff]   ;;  %v13191_v54 = vld [vmem:[#allocation7 + $0x4] ss:$16 sps:$4 sm:$0xff]   ;;  %v13194_v56 = vld [vmem:[#allocation7 + $0xc] ss:$16 sps:$4 sm:$0xff]  }
  0xa2   : > { %589 = vmatpush1.bf16.msra.mxu0 %v13150_v19  ;;  %630 = vmatpush1.bf16.msra.mxu1 %v13151_v20  ;;  %v388_v55 = vld [vmem:[#allocation2 + $0x10] sm:$0x7]  ;;  %v13189_v57 = vld [vmem:[#allocation7] ss:$16 sps:$4 sm:$0xff]   ;;  %v13198_v60 = vld [vmem:[#allocation7 + $0x224] ss:$16 sps:$4 sm:$0xff]  }
  0xa3   : > { %590 = vmatprep.subr.bf16.mxu0 %v13152_v22  ;;  %631 = vmatprep.subr.bf16.mxu1 %v13154_v23  ;;  %v445_v31 = vshrl.u32 %v11544_v30, 16  ;;  %v448_v32 = vshll.u32 %v11544_v30, 16  ;;  %v11571_v58 = vcombine.low %v15777_v28, %v388_v55  ;;  %v13192_v59 = vld [vmem:[#allocation7 + $0x8] ss:$16 sps:$4 sm:$0xff]   ;;  %v13201_v61 = vld [vmem:[#allocation7 + $0x22c] ss:$16 sps:$4 sm:$0xff]  }
  0xa4   : > { %v13196_v63 = vld [vmem:[#allocation7 + $0x220] ss:$16 sps:$4 sm:$0xff]   ;;  %v13199_v1 = vld [vmem:[#allocation7 + $0x228] ss:$16 sps:$4 sm:$0xff]   ;;  %v13204_v2 = vld [vmem:[#allocation7 + $0x204] ss:$16 sps:$4 sm:$0xff]  }
  0xa5   : > { %v447_v33 = vrot.slane %v445_v31, 3  ;;  %v450_v34 = vrot.slane %v448_v32, 4  ;;  %v661_v62 = vrot.slane %v11571_v58, 3  ;;  %v13207_v3 = vld [vmem:[#allocation7 + $0x20c] ss:$16 sps:$4 sm:$0xff]   ;;  %s374_s8 = scalar_lea.vmem [#allocation16], %s11543_s2 }
  0xa6   : > { %591 = vmatpush1.bf16.msra.mxu0 %v13156_v24  ;;  %632 = vmatpush1.bf16.msra.mxu1 %v13157_v25  ;;  %v13202_v4 = vld [vmem:[#allocation7 + $0x200] ss:$16 sps:$4 sm:$0xff]   ;;  %v13205_v5 = vld [vmem:[#allocation7 + $0x208] ss:$16 sps:$4 sm:$0xff]   ;;  %v13210_v6 = vld [vmem:[#allocation7 + $0x1e4] ss:$16 sps:$4 sm:$0xff]  }
  0xa7   : > { %789 = vmatprep.subr.bf16.mxu0 %v13161_v26  ;;  %830 = vmatprep.subr.bf16.mxu1 %v13164_v27  ;;  %v451_v37 = vor.u32 %v450_v34, %v447_v33  ;;  %v13213_v7 = vld [vmem:[#allocation7 + $0x1ec] ss:$16 sps:$4 sm:$0xff]   ;;  %v13208_v8 = vld [vmem:[#allocation7 + $0x1e0] ss:$16 sps:$4 sm:$0xff]   ;;  %v13211_v9 = vld [vmem:[#allocation7 + $0x1e8] ss:$16 sps:$4 sm:$0xff]  }
  0xa8   : > { %v13216_v10 = vld [vmem:[#allocation7 + $0x1c4] ss:$16 sps:$4 sm:$0xff]   ;;  %v13219_v11 = vld [vmem:[#allocation7 + $0x1cc] ss:$16 sps:$4 sm:$0xff]   ;;  %v13214_v12 = vld [vmem:[#allocation7 + $0x1c0] ss:$16 sps:$4 sm:$0xff]  }
  0xa9   : > { %11569 = vmatmul.mubr.msk.bf16.vlgmr.msra.gmra.mxu0 %vm572_vm1, %v451_v37  ;;  %11570 = vmatmul.mubr.msk.bf16.vlgmr.msra.gmra.mxu1 %vm572_vm1, %v451_v37  ;;  %v13217_v13 = vld [vmem:[#allocation7 + $0x1c8] ss:$16 sps:$4 sm:$0xff]   ;;  %v13222_v14 = vld [vmem:[#allocation7 + $0x1a4] ss:$16 sps:$4 sm:$0xff]   ;;  %v13225_v15 = vld [vmem:[#allocation7 + $0x1ac] ss:$16 sps:$4 sm:$0xff]  }
  0xaa   : > { %790 = vmatpush1.bf16.msra.mxu0 %v13159_v35  ;;  %831 = vmatpush1.bf16.msra.mxu1 %v13162_v36  ;;  %v13220_v16 = vld [vmem:[#allocation7 + $0x1a0] ss:$16 sps:$4 sm:$0xff]   ;;  %v13223_v17 = vld [vmem:[#allocation7 + $0x1a8] ss:$16 sps:$4 sm:$0xff]   ;;  %v13228_v18 = vld [vmem:[#allocation7 + $0x184] ss:$16 sps:$4 sm:$0xff]  }
  0xab   : > { %791 = vmatprep.subr.bf16.mxu0 %v13167_v38  ;;  %832 = vmatprep.subr.bf16.mxu1 %v13170_v39  ;;  %v13231_v19 = vld [vmem:[#allocation7 + $0x18c] ss:$16 sps:$4 sm:$0xff]   ;;  %v13226_v20 = vld [vmem:[#allocation7 + $0x180] ss:$16 sps:$4 sm:$0xff]   ;;  %v13229_v21 = vld [vmem:[#allocation7 + $0x188] ss:$16 sps:$4 sm:$0xff]  }
  0xac   : > { %817 = vmatprep.mubr.bf16.mxu0 %v15527_v0  ;;  %858 = vmatprep.mubr.bf16.mxu1 %v15527_v0  ;;  %v13234_v22 = vld [vmem:[#allocation7 + $0x2e4] ss:$16 sps:$4 sm:$0xff]   ;;  %v13237_v23 = vld [vmem:[#allocation7 + $0x2ec] ss:$16 sps:$4 sm:$0xff]   ;;  %v13232_v24 = vld [vmem:[#allocation7 + $0x2e0] ss:$16 sps:$4 sm:$0xff]  }
  0xad   : > { %v13235_v25 = vld [vmem:[#allocation7 + $0x2e8] ss:$16 sps:$4 sm:$0xff]   ;;  %v13240_v26 = vld [vmem:[#allocation7 + $0x2c4] ss:$16 sps:$4 sm:$0xff]   ;;  %v13243_v27 = vld [vmem:[#allocation7 + $0x2cc] ss:$16 sps:$4 sm:$0xff]  }
  0xae   : > { %792 = vmatpush1.bf16.msra.mxu0 %v13165_v40  ;;  %833 = vmatpush1.bf16.msra.mxu1 %v13168_v41  ;;  %v13238_v28 = vld [vmem:[#allocation7 + $0x2c0] ss:$16 sps:$4 sm:$0xff]   ;;  %v13241_v30 = vld [vmem:[#allocation7 + $0x2c8] ss:$16 sps:$4 sm:$0xff]   ;;  %v13246_v31 = vld [vmem:[#allocation7 + $0x2a4] ss:$16 sps:$4 sm:$0xff]  }
  0xaf   : > { %793 = vmatprep.subr.bf16.mxu0 %v13173_v42  ;;  %834 = vmatprep.subr.bf16.mxu1 %v13176_v43  ;;  %v13249_v32 = vld [vmem:[#allocation7 + $0x2ac] ss:$16 sps:$4 sm:$0xff]   ;;  %v13244_v33 = vld [vmem:[#allocation7 + $0x2a0] ss:$16 sps:$4 sm:$0xff]   ;;  %v13247_v34 = vld [vmem:[#allocation7 + $0x2a8] ss:$16 sps:$4 sm:$0xff]  }
  0xb0   : > { %v1101_v35 = vld [vmem:[#allocation2 + $0x10] sm:$0xf]  ;;  %v15798_v36 = vld [vmem:[#allocation2 + $0x20] sm:$0x1]  ;;  %v13252_v37 = vld [vmem:[#allocation7 + $0x284] ss:$16 sps:$4 sm:$0xff]  }
  0xb1   : > { %v13255_v38 = vld [vmem:[#allocation7 + $0x28c] ss:$16 sps:$4 sm:$0xff]   ;;  %v13253_v39 = vld [vmem:[#allocation7 + $0x288] ss:$16 sps:$4 sm:$0xff]   ;;  %v13258_v40 = vld [vmem:[#allocation7 + $0x264] ss:$16 sps:$4 sm:$0xff]   ;;  %v11624_v42 = vcombine.low %v1101_v35, %v15798_v36 }
  0xb2   : > { %794 = vmatpush1.bf16.msra.mxu0 %v13171_v44  ;;  %835 = vmatpush1.bf16.msra.mxu1 %v13174_v45  ;;  %v13261_v41 = vld [vmem:[#allocation7 + $0x26c] ss:$16 sps:$4 sm:$0xff]   ;;  %v13256_v43 = vld [vmem:[#allocation7 + $0x260] ss:$16 sps:$4 sm:$0xff]   ;;  %v13259_v44 = vld [vmem:[#allocation7 + $0x268] ss:$16 sps:$4 sm:$0xff]  }
  0xb3   : > { %795 = vmatprep.subr.bf16.mxu0 %v13179_v46  ;;  %836 = vmatprep.subr.bf16.mxu1 %v13182_v47  ;;  %v13264_v45 = vld [vmem:[#allocation7 + $0x244] ss:$16 sps:$4 sm:$0xff]   ;;  %v13267_v46 = vld [vmem:[#allocation7 + $0x24c] ss:$16 sps:$4 sm:$0xff]   ;;  %v1136_v47 = vshll.u32 %v11624_v42, 16  ;;  %s13011_s18 = sshll.u32 %s15590_s30, 9 }
  0xb4   : > { %v13272_v55 = vld [vmem:[#allocation7 + $0x3a8] ss:$16 sps:$4 sm:$0xff]   ;;  %v13280_v58 = vld [vmem:[#allocation7 + $0x38c] ss:$16 sps:$4 sm:$0xff]   ;;  %v13330_v35 = vld [vmem:[#allocation9 + $0x460] ss:$16 sps:$4 sm:$0xff]   ;;  %s11395_s9 = scalar_lea.hbm %s16261_s7, %s13011_s18 }
  0xb5   : > { %s11397_s17 = sshll.u32 %s374_s8, 4  ;;  %s11383_s16 = scalar_lea.sflag [#allocation6], %s15744_s10  ;;  %s11398_s17 = int_to_ptr.vmem [resolvable:$true] %s11397_s17 }
  0xb6   : > { %796 = vmatpush1.bf16.msra.mxu0 %v13177_v48  ;;  %837 = vmatpush1.bf16.msra.mxu1 %v13180_v49  ;;  %v13262_v48 = vld [vmem:[#allocation7 + $0x240] ss:$16 sps:$4 sm:$0xff]   ;;  %v13265_v49 = vld [vmem:[#allocation7 + $0x248] ss:$16 sps:$4 sm:$0xff]   ;;  %s15440_s21 = scalar_lea.vmem %s11398_s17, 512  ;;  %p16286_p2 = scmp.ne.s32.totalorder %s16275_s19, 0 }
  0xb7   : > { %797 = vmatprep.subr.bf16.mxu0 %v13185_v50  ;;  %838 = vmatprep.subr.bf16.mxu1 %v13188_v51  ;;  %v1134_v50 = vshrl.u32 %v11624_v42, 16  ;;  %v1138_v51 = vrot.slane %v1136_v47, 1  ;;  %v13342_v42 = vld [vmem:[#allocation9 + $0x420] ss:$16 sps:$4 sm:$0xff]   ;;  %p15441_p5 = scmp.ne.s32.totalorder %s11398_s17, %s15440_s21  ;;  %s15528_s28 = smov [#allocation16]  }
  0xb8   : > { %v13351_v47 = vld [vmem:[#allocation9 + $0x600] ss:$16 sps:$4 sm:$0xff]   ;;  %s15444_s15 = sshll.u32 %s15528_s28, 4  ;;  %s15445_s15 = int_to_ptr.vmem [resolvable:$false] %s15444_s15 }
  0xb9   : > { %p15442_p8 = pnand %p15441_p5, %p16286_p2  ;;  %s15446_s30 = scalar_lea.vmem %s15445_s15, 1024 }
  0xba   : > { %798 = vmatpush1.bf16.msra.mxu0 %v13183_v52  ;;  %839 = vmatpush1.bf16.msra.mxu1 %v13186_v53  ;;  %v13271_v52 = vld [vmem:[#allocation7 + $0x3a4] ss:$16 sps:$4 sm:$0xff]   ;;  %v13274_v53 = vld [vmem:[#allocation7 + $0x3ac] ss:$16 sps:$4 sm:$0xff]   ;;  %p15447_p4 = scmp.lt.s32.totalorder %s11398_s17, %s15445_s15  ;;  %p15448_p0 = scmp.lt.s32.totalorder %s15446_s30, %s15440_s21 }
  0xbb   : > { %799 = vmatprep.subr.bf16.mxu0 %v13191_v54  ;;  %840 = vmatprep.subr.bf16.mxu1 %v13194_v56  ;;  %v13269_v54 = vld [vmem:[#allocation7 + $0x3a0] ss:$16 sps:$4 sm:$0xff]   ;;  %v1139_v56 = vor.u32 %v1138_v51, %v1134_v50  ;;  %p15443_p9 = pneg %p15442_p8 }
  0xbc   : > { %v13354_v50 = vld [vmem:[#allocation9 + $0x5e0] ss:$16 sps:$4 sm:$0xff]   ;;  %p15449_p13 = por %p15448_p0, %p15447_p4 }
  0xbd   : > { %v13357_v51 = vld [vmem:[#allocation9 + $0x7e0] ss:$16 sps:$4 sm:$0xff]  }
  0xbe   : > { %800 = vmatpush1.bf16.msra.mxu0 %v13189_v57  ;;  %841 = vmatpush1.bf16.msra.mxu1 %v13192_v59  ;;  %v13277_v57 = vld [vmem:[#allocation7 + $0x384] ss:$16 sps:$4 sm:$0xff]   ;;  %v13275_v59 = vld [vmem:[#allocation7 + $0x380] ss:$16 sps:$4 sm:$0xff]   ;;  %p15450_p1 = pnand %p15449_p13, %p15443_p9 }
  0xbf   : > { %1019 = vmatprep.subr.bf16.mxu0 %v13198_v60  ;;  %1060 = vmatprep.subr.bf16.mxu1 %v13201_v61  ;;  %v13278_v60 = vld [vmem:[#allocation7 + $0x388] ss:$16 sps:$4 sm:$0xff]   ;;  %v13283_v61 = vld [vmem:[#allocation7 + $0x364] ss:$16 sps:$4 sm:$0xff]  }
  0xc1   : > { %11596 = vmatmul.mubr.msk.bf16.vlgmr.msra.gmra.mxu0 %vm572_vm1, %v661_v62  ;;  %11597 = vmatmul.mubr.msk.bf16.vlgmr.msra.gmra.mxu1 %vm572_vm1, %v661_v62  ;;  %v13286_v62 = vld [vmem:[#allocation7 + $0x36c] ss:$16 sps:$4 sm:$0xff]  }
  0xc2   : > { %1020 = vmatpush1.bf16.msra.mxu0 %v13196_v63  ;;  %1061 = vmatpush1.bf16.msra.mxu1 %v13199_v1  ;;  %v13281_v63 = vld [vmem:[#allocation7 + $0x360] ss:$16 sps:$4 sm:$0xff]   ;;  %v13284_v1 = vld [vmem:[#allocation7 + $0x368] ss:$16 sps:$4 sm:$0xff]  }
  0xc3   : > { %1021 = vmatprep.subr.bf16.mxu0 %v13204_v2  ;;  %1062 = vmatprep.subr.bf16.mxu1 %v13207_v3  ;;  %v13289_v2 = vld [vmem:[#allocation7 + $0x344] ss:$16 sps:$4 sm:$0xff]   ;;  %v13292_v3 = vld [vmem:[#allocation7 + $0x34c] ss:$16 sps:$4 sm:$0xff]  }
  0xc4   : > { %1047 = vmatprep.mubr.bf16.mxu0 %v15527_v0  ;;  %1088 = vmatprep.mubr.bf16.mxu1 %v15527_v0 }
  0xc6   : > { %1022 = vmatpush1.bf16.msra.mxu0 %v13202_v4  ;;  %1063 = vmatpush1.bf16.msra.mxu1 %v13205_v5  ;;  %v13287_v4 = vld [vmem:[#allocation7 + $0x340] ss:$16 sps:$4 sm:$0xff]   ;;  %v13290_v5 = vld [vmem:[#allocation7 + $0x348] ss:$16 sps:$4 sm:$0xff]  }
  0xc7   : > { %1023 = vmatprep.subr.bf16.mxu0 %v13210_v6  ;;  %1064 = vmatprep.subr.bf16.mxu1 %v13213_v7  ;;  %v13295_v6 = vld [vmem:[#allocation7 + $0x324] ss:$16 sps:$4 sm:$0xff]   ;;  %v13298_v7 = vld [vmem:[#allocation7 + $0x32c] ss:$16 sps:$4 sm:$0xff]  }
  0xca   : > { %1024 = vmatpush1.bf16.msra.mxu0 %v13208_v8  ;;  %1065 = vmatpush1.bf16.msra.mxu1 %v13211_v9  ;;  %v13293_v8 = vld [vmem:[#allocation7 + $0x320] ss:$16 sps:$4 sm:$0xff]   ;;  %v13296_v9 = vld [vmem:[#allocation7 + $0x328] ss:$16 sps:$4 sm:$0xff]  }
  0xcb   : > { %1025 = vmatprep.subr.bf16.mxu0 %v13216_v10  ;;  %1066 = vmatprep.subr.bf16.mxu1 %v13219_v11  ;;  %v1349_v10 = vld [vmem:[#allocation2 + $0x10] sm:$0xe]  ;;  %v13301_v11 = vld [vmem:[#allocation7 + $0x304] ss:$16 sps:$4 sm:$0xff]  }
  0xce   : > { %1026 = vmatpush1.bf16.msra.mxu0 %v13214_v12  ;;  %1067 = vmatpush1.bf16.msra.mxu1 %v13217_v13  ;;  %v13304_v12 = vld [vmem:[#allocation7 + $0x30c] ss:$16 sps:$4 sm:$0xff]   ;;  %v13302_v13 = vld [vmem:[#allocation7 + $0x308] ss:$16 sps:$4 sm:$0xff]  }
  0xcf   : > { %1027 = vmatprep.subr.bf16.mxu0 %v13222_v14  ;;  %1068 = vmatprep.subr.bf16.mxu1 %v13225_v15  ;;  %v11651_v14 = vcombine.low %v1349_v10, %v15798_v36  ;;  %v13333_v36 = vld [vmem:[#allocation9 + $0x660] ss:$16 sps:$4 sm:$0xff]   ;;  %v13395_v10 = vld [vmem:[#allocation9 + $0x724] ss:$16 sps:$4 sm:$0xff]  }
  0xd1   : > { %v1378_v15 = vrot.slane %v11651_v14, 1  ;;  %v13399_v14 = vld [vmem:[#allocation9 + $0x700] ss:$16 sps:$4 sm:$0xff]  }
  0xd2   : > { %1028 = vmatpush1.bf16.msra.mxu0 %v13220_v16  ;;  %1069 = vmatpush1.bf16.msra.mxu1 %v13223_v17  ;;  %v13308_v16 = vld [vmem:[#allocation9 + $0x4e4] ss:$16 sps:$4 sm:$0xff]  }
  0xd3   : > { %1029 = vmatprep.subr.bf16.mxu0 %v13228_v18  ;;  %1070 = vmatprep.subr.bf16.mxu1 %v13231_v19  ;;  %v13311_v17 = vld [vmem:[#allocation9 + $0x6e4] ss:$16 sps:$4 sm:$0xff]   ;;  %v13306_v18 = vld [vmem:[#allocation9 + $0x4e0] ss:$16 sps:$4 sm:$0xff]  }
  0xd4   : > { %v13309_v19 = vld [vmem:[#allocation9 + $0x6e0] ss:$16 sps:$4 sm:$0xff]  }
  0xd6   : > { %1030 = vmatpush1.bf16.msra.mxu0 %v13226_v20  ;;  %1071 = vmatpush1.bf16.msra.mxu1 %v13229_v21  ;;  %v13314_v20 = vld [vmem:[#allocation9 + $0x4c4] ss:$16 sps:$4 sm:$0xff]  }
  0xd7   : > { %1267 = vmatprep.subr.bf16.mxu0 %v13234_v22  ;;  %1308 = vmatprep.subr.bf16.mxu1 %v13237_v23  ;;  %v13317_v21 = vld [vmem:[#allocation9 + $0x6c4] ss:$16 sps:$4 sm:$0xff]   ;;  %v13312_v22 = vld [vmem:[#allocation9 + $0x4c0] ss:$16 sps:$4 sm:$0xff]  }
  0xd8   : > { %v13315_v23 = vld [vmem:[#allocation9 + $0x6c0] ss:$16 sps:$4 sm:$0xff]  }
  0xd9   : > { %11622 = vmatmul.mubr.msk.bf16.vlgmr.msra.gmra.mxu0 %vm572_vm1, %v15779_v29  ;;  %11623 = vmatmul.mubr.msk.bf16.vlgmr.msra.gmra.mxu1 %vm572_vm1, %v15779_v29  ;;  %v13250_v29 = vld [vmem:[#allocation7 + $0x280] ss:$16 sps:$4 sm:$0xff]  }
  0xda   : > { %1268 = vmatpush1.bf16.msra.mxu0 %v13232_v24  ;;  %1309 = vmatpush1.bf16.msra.mxu1 %v13235_v25  ;;  %v13320_v24 = vld [vmem:[#allocation9 + $0x4a4] ss:$16 sps:$4 sm:$0xff]  }
  0xdb   : > { %1269 = vmatprep.subr.bf16.mxu0 %v13240_v26  ;;  %1310 = vmatprep.subr.bf16.mxu1 %v13243_v27  ;;  %v13323_v25 = vld [vmem:[#allocation9 + $0x6a4] ss:$16 sps:$4 sm:$0xff]   ;;  %v13318_v26 = vld [vmem:[#allocation9 + $0x4a0] ss:$16 sps:$4 sm:$0xff]  }
  0xdc   : > { %1295 = vmatprep.mubr.bf16.mxu0 %v15527_v0  ;;  %1336 = vmatprep.mubr.bf16.mxu1 %v15527_v0  ;;  %v13321_v27 = vld [vmem:[#allocation9 + $0x6a0] ss:$16 sps:$4 sm:$0xff]  }
  0xde   : > { %1270 = vmatpush1.bf16.msra.mxu0 %v13238_v28  ;;  %1311 = vmatpush1.bf16.msra.mxu1 %v13241_v30  ;;  %v13326_v28 = vld [vmem:[#allocation9 + $0x484] ss:$16 sps:$4 sm:$0xff]  }
  0xdf   : > { %1271 = vmatprep.subr.bf16.mxu0 %v13246_v31  ;;  %1312 = vmatprep.subr.bf16.mxu1 %v13249_v32  ;;  %v13329_v30 = vld [vmem:[#allocation9 + $0x684] ss:$16 sps:$4 sm:$0xff]   ;;  %v13324_v31 = vld [vmem:[#allocation9 + $0x480] ss:$16 sps:$4 sm:$0xff]  }
  0xe0   : > { %v13327_v32 = vld [vmem:[#allocation9 + $0x680] ss:$16 sps:$4 sm:$0xff]  }
  0xe2   : > { %1272 = vmatpush1.bf16.msra.mxu0 %v13244_v33  ;;  %1313 = vmatpush1.bf16.msra.mxu1 %v13247_v34  ;;  %v13332_v33 = vld [vmem:[#allocation9 + $0x464] ss:$16 sps:$4 sm:$0xff]  }
  0xe3   : > { %1273 = vmatprep.subr.bf16.mxu0 %v13252_v37  ;;  %1314 = vmatprep.subr.bf16.mxu1 %v13255_v38  ;;  %v13335_v34 = vld [vmem:[#allocation9 + $0x664] ss:$16 sps:$4 sm:$0xff]  }
  0xe4   : > { %v13338_v37 = vld [vmem:[#allocation9 + $0x444] ss:$16 sps:$4 sm:$0xff]  }
  0xe5   : > { %v13341_v38 = vld [vmem:[#allocation9 + $0x644] ss:$16 sps:$4 sm:$0xff]  }
  0xe6   : > { %1274 = vmatpush1.bf16.msra.mxu0 %v13250_v29  ;;  %1315 = vmatpush1.bf16.msra.mxu1 %v13253_v39  ;;  %v13336_v29 = vld [vmem:[#allocation9 + $0x440] ss:$16 sps:$4 sm:$0xff]  }
  0xe7   : > { %1275 = vmatprep.subr.bf16.mxu0 %v13258_v40  ;;  %1316 = vmatprep.subr.bf16.mxu1 %v13261_v41  ;;  %v13339_v39 = vld [vmem:[#allocation9 + $0x640] ss:$16 sps:$4 sm:$0xff]   ;;  %v13344_v40 = vld [vmem:[#allocation9 + $0x424] ss:$16 sps:$4 sm:$0xff]  }
  0xe8   : > { %v13347_v41 = vld [vmem:[#allocation9 + $0x624] ss:$16 sps:$4 sm:$0xff]  }
  0xea   : > { %1276 = vmatpush1.bf16.msra.mxu0 %v13256_v43  ;;  %1317 = vmatpush1.bf16.msra.mxu1 %v13259_v44  ;;  %v13345_v43 = vld [vmem:[#allocation9 + $0x620] ss:$16 sps:$4 sm:$0xff]   ;;  %v13350_v44 = vld [vmem:[#allocation9 + $0x404] ss:$16 sps:$4 sm:$0xff]  }
  0xeb   : > { %1277 = vmatprep.subr.bf16.mxu0 %v13264_v45  ;;  %1318 = vmatprep.subr.bf16.mxu1 %v13267_v46  ;;  %v13353_v45 = vld [vmem:[#allocation9 + $0x604] ss:$16 sps:$4 sm:$0xff]   ;;  %v13348_v46 = vld [vmem:[#allocation9 + $0x400] ss:$16 sps:$4 sm:$0xff]  }
  0xee   : > { %1278 = vmatpush1.bf16.msra.mxu0 %v13262_v48  ;;  %1319 = vmatpush1.bf16.msra.mxu1 %v13265_v49  ;;  %v13356_v48 = vld [vmem:[#allocation9 + $0x5e4] ss:$16 sps:$4 sm:$0xff]  }
  0xef   : > { %1506 = vmatprep.subr.bf16.mxu0 %v13271_v52  ;;  %1547 = vmatprep.subr.bf16.mxu1 %v13274_v53  ;;  %v13359_v49 = vld [vmem:[#allocation9 + $0x7e4] ss:$16 sps:$4 sm:$0xff]  }
  0xf0   : > { %v13362_v52 = vld [vmem:[#allocation9 + $0x5c4] ss:$16 sps:$4 sm:$0xff]  }
  0xf1   : > { %11649 = vmatmul.mubr.msk.bf16.vlgmr.msra.gmra.mxu0 %vm572_vm1, %v1139_v56  ;;  %11650 = vmatmul.mubr.msk.bf16.vlgmr.msra.gmra.mxu1 %vm572_vm1, %v1139_v56  ;;  %v13365_v53 = vld [vmem:[#allocation9 + $0x7c4] ss:$16 sps:$4 sm:$0xff]  }
  0xf2   : > { %1507 = vmatpush1.bf16.msra.mxu0 %v13269_v54  ;;  %1548 = vmatpush1.bf16.msra.mxu1 %v13272_v55  ;;  %v13360_v54 = vld [vmem:[#allocation9 + $0x5c0] ss:$16 sps:$4 sm:$0xff]   ;;  %v13368_v56 = vld [vmem:[#allocation9 + $0x5a4] ss:$16 sps:$4 sm:$0xff]  }
  0xf3   : > { %1508 = vmatprep.subr.bf16.mxu0 %v13277_v57  ;;  %1549 = vmatprep.subr.bf16.mxu1 %v13280_v58  ;;  %v13363_v55 = vld [vmem:[#allocation9 + $0x7c0] ss:$16 sps:$4 sm:$0xff]   ;;  %v13371_v57 = vld [vmem:[#allocation9 + $0x7a4] ss:$16 sps:$4 sm:$0xff]  }
  0xf4   : > { %1534 = vmatprep.mubr.bf16.mxu0 %v15527_v0  ;;  %1575 = vmatprep.mubr.bf16.mxu1 %v15527_v0  ;;  %v13299_v0 = vld [vmem:[#allocation7 + $0x300] ss:$16 sps:$4 sm:$0xff]  }
  0xf5   : > { %v13366_v58 = vld [vmem:[#allocation9 + $0x5a0] ss:$16 sps:$4 sm:$0xff]  }
  0xf6   : > { %1509 = vmatpush1.bf16.msra.mxu0 %v13275_v59  ;;  %1550 = vmatpush1.bf16.msra.mxu1 %v13278_v60  ;;  %v13369_v59 = vld [vmem:[#allocation9 + $0x7a0] ss:$16 sps:$4 sm:$0xff]   ;;  %v13374_v60 = vld [vmem:[#allocation9 + $0x584] ss:$16 sps:$4 sm:$0xff]  }
  0xf7   : > { %1510 = vmatprep.subr.bf16.mxu0 %v13283_v61  ;;  %1551 = vmatprep.subr.bf16.mxu1 %v13286_v62  ;;  %v13377_v61 = vld [vmem:[#allocation9 + $0x784] ss:$16 sps:$4 sm:$0xff]   ;;  %v13372_v62 = vld [vmem:[#allocation9 + $0x580] ss:$16 sps:$4 sm:$0xff]  }
  0xfa   : > { %1511 = vmatpush1.bf16.msra.mxu0 %v13281_v63  ;;  %1552 = vmatpush1.bf16.msra.mxu1 %v13284_v1  ;;  %v13375_v63 = vld [vmem:[#allocation9 + $0x780] ss:$16 sps:$4 sm:$0xff]   ;;  %v13380_v1 = vld [vmem:[#allocation9 + $0x564] ss:$16 sps:$4 sm:$0xff]  }
  0xfb   : > { %1512 = vmatprep.subr.bf16.mxu0 %v13289_v2  ;;  %1553 = vmatprep.subr.bf16.mxu1 %v13292_v3  ;;  %v13383_v2 = vld [vmem:[#allocation9 + $0x764] ss:$16 sps:$4 sm:$0xff]   ;;  %v13378_v3 = vld [vmem:[#allocation9 + $0x560] ss:$16 sps:$4 sm:$0xff]  }
  0xfe   : > { %1513 = vmatpush1.bf16.msra.mxu0 %v13287_v4  ;;  %1554 = vmatpush1.bf16.msra.mxu1 %v13290_v5  ;;  %v13381_v4 = vld [vmem:[#allocation9 + $0x760] ss:$16 sps:$4 sm:$0xff]   ;;  %v13386_v5 = vld [vmem:[#allocation9 + $0x544] ss:$16 sps:$4 sm:$0xff]  }
  0xff   : > { %1514 = vmatprep.subr.bf16.mxu0 %v13295_v6  ;;  %1555 = vmatprep.subr.bf16.mxu1 %v13298_v7  ;;  %v13389_v6 = vld [vmem:[#allocation9 + $0x744] ss:$16 sps:$4 sm:$0xff]   ;;  %v13384_v7 = vld [vmem:[#allocation9 + $0x540] ss:$16 sps:$4 sm:$0xff]  }
 0x102   : > { %1515 = vmatpush1.bf16.msra.mxu0 %v13293_v8  ;;  %1556 = vmatpush1.bf16.msra.mxu1 %v13296_v9  ;;  %v13387_v8 = vld [vmem:[#allocation9 + $0x740] ss:$16 sps:$4 sm:$0xff]   ;;  %v13392_v9 = vld [vmem:[#allocation9 + $0x524] ss:$16 sps:$4 sm:$0xff]  }
 0x103   : > { %1516 = vmatprep.subr.bf16.mxu0 %v13301_v11  ;;  %1557 = vmatprep.subr.bf16.mxu1 %v13304_v12  ;;  %v13390_v11 = vld [vmem:[#allocation9 + $0x520] ss:$16 sps:$4 sm:$0xff]  }
 0x104   : > { %v13393_v12 = vld [vmem:[#allocation9 + $0x720] ss:$16 sps:$4 sm:$0xff]  }
 0x106   : > { %1517 = vmatpush1.bf16.msra.mxu0 %v13299_v0  ;;  %1558 = vmatpush1.bf16.msra.mxu1 %v13302_v13  ;;  %v13396_v0 = vld [vmem:[#allocation9 + $0x500] ss:$16 sps:$4 sm:$0xff]   ;;  %v13398_v13 = vld [vmem:[#allocation9 + $0x504] ss:$16 sps:$4 sm:$0xff]  }
 0x107   : > { %2591 = vmatprep.subr.bf16.mxu0 %v13308_v16  ;;  %2632 = vmatprep.subr.bf16.mxu1 %v13311_v17  ;;  %v13404_v16 = vld [vmem:[#allocation9 + $0x4ec] ss:$16 sps:$4 sm:$0xff]  }
 0x108   : > { %v13407_v17 = vld [vmem:[#allocation9 + $0x6ec] ss:$16 sps:$4 sm:$0xff]  }
 0x109   : > { %11676 = vmatmul.mubr.msk.bf16.vlgmr.msra.gmra.mxu0 %vm572_vm1, %v1378_v15  ;;  %11677 = vmatmul.mubr.msk.bf16.vlgmr.msra.gmra.mxu1 %vm572_vm1, %v1378_v15  ;;  %v13401_v15 = vld [vmem:[#allocation9 + $0x704] ss:$16 sps:$4 sm:$0xff]  }
 0x10a   : > { %2592 = vmatpush1.bf16.msra.mxu0 %v13306_v18  ;;  %2633 = vmatpush1.bf16.msra.mxu1 %v13309_v19 }
 0x10b   : > { %2593 = vmatprep.subr.bf16.mxu0 %v13314_v20  ;;  %2634 = vmatprep.subr.bf16.mxu1 %v13317_v21 }
 0x10e   : > { %2594 = vmatpush1.bf16.msra.mxu0 %v13312_v22  ;;  %2635 = vmatpush1.bf16.msra.mxu1 %v13315_v23 }
 0x10f   : > { %2595 = vmatprep.subr.bf16.mxu0 %v13320_v24  ;;  %2636 = vmatprep.subr.bf16.mxu1 %v13323_v25 }
 0x112   : > { %2596 = vmatpush1.bf16.msra.mxu0 %v13318_v26  ;;  %2637 = vmatpush1.bf16.msra.mxu1 %v13321_v27 }
 0x113   : > { %2597 = vmatprep.subr.bf16.mxu0 %v13326_v28  ;;  %2638 = vmatprep.subr.bf16.mxu1 %v13329_v30 }
 0x116   : > { %2598 = vmatpush1.bf16.msra.mxu0 %v13324_v31  ;;  %2639 = vmatpush1.bf16.msra.mxu1 %v13327_v32 }
 0x117   : > { %2599 = vmatprep.subr.bf16.mxu0 %v13332_v33  ;;  %2640 = vmatprep.subr.bf16.mxu1 %v13335_v34 }
 0x11a   : > { %2600 = vmatpush1.bf16.msra.mxu0 %v13330_v35  ;;  %2641 = vmatpush1.bf16.msra.mxu1 %v13333_v36 }
 0x11b   : > { %2601 = vmatprep.subr.bf16.mxu0 %v13338_v37  ;;  %2642 = vmatprep.subr.bf16.mxu1 %v13341_v38 }
 0x11e   : > { %2602 = vmatpush1.bf16.msra.mxu0 %v13336_v29  ;;  %2643 = vmatpush1.bf16.msra.mxu1 %v13339_v39 }
 0x11f   : > { %2603 = vmatprep.subr.bf16.mxu0 %v13344_v40  ;;  %2644 = vmatprep.subr.bf16.mxu1 %v13347_v41 }
 0x122   : > { %2604 = vmatpush1.bf16.msra.mxu0 %v13342_v42  ;;  %2645 = vmatpush1.bf16.msra.mxu1 %v13345_v43 }
 0x123   : > { %2605 = vmatprep.subr.bf16.mxu0 %v13350_v44  ;;  %2646 = vmatprep.subr.bf16.mxu1 %v13353_v45 }
 0x126   : > { %2606 = vmatpush1.bf16.msra.mxu0 %v13348_v46  ;;  %2647 = vmatpush1.bf16.msra.mxu1 %v13351_v47 }
 0x127   : > { %2607 = vmatprep.subr.bf16.mxu0 %v13356_v48  ;;  %2648 = vmatprep.subr.bf16.mxu1 %v13359_v49 }
 0x12a   : > { %2608 = vmatpush2.bf16.msra.mxu0 %v13354_v50  ;;  %2649 = vmatpush2.bf16.msra.mxu1 %v13357_v51 }
 0x12b   : > { %2609 = vmatprep.subr.bf16.mxu0 %v13362_v52  ;;  %2650 = vmatprep.subr.bf16.mxu1 %v13365_v53 }
 0x12e   : > { %2610 = vmatpush2.bf16.msra.mxu0 %v13360_v54  ;;  %2651 = vmatpush2.bf16.msra.mxu1 %v13363_v55  ;;  %v1590_v54 = vlaneseq }
 0x12f   : > { %2611 = vmatprep.subr.bf16.mxu0 %v13368_v56  ;;  %2652 = vmatprep.subr.bf16.mxu1 %v13371_v57 }
 0x130   : > { %v1591_v55 = vshrl.u32 %v1590_v54, 7 }
 0x132   : > { %2612 = vmatpush2.bf16.msra.mxu0 %v13366_v58  ;;  %2653 = vmatpush2.bf16.msra.mxu1 %v13369_v59  ;;  %v15808_v56 = vsub.s32 0, %v1591_v55  ;;  %v15810_v57 = vsub.s32 2, %v1591_v55  ;;  %v1588_v58 = vld [vmem:[#allocation12] sm:$0xf]  ;;  %v15812_v59 = vsub.s32 1, %v1591_v55 }
 0x133   : > { %2613 = vmatprep.subr.bf16.mxu0 %v13374_v60  ;;  %2654 = vmatprep.subr.bf16.mxu1 %v13377_v61  ;;  %v15814_v60 = vsub.s32 3, %v1591_v55 }
 0x136   : > { %2614 = vmatpush2.bf16.msra.mxu0 %v13372_v62  ;;  %2655 = vmatpush2.bf16.msra.mxu1 %v13375_v63  ;;  %v1593_v63 = vrot.slane %v1588_v58, %v15808_v56 }
 0x137   : > { %2615 = vmatprep.subr.bf16.mxu0 %v13380_v1  ;;  %2656 = vmatprep.subr.bf16.mxu1 %v13383_v2  ;;  %v1601_v1 = vrot.slane %v1588_v58, %v15810_v57 }
 0x13a   : > { %2616 = vmatpush2.bf16.msra.mxu0 %v13378_v3  ;;  %2657 = vmatpush2.bf16.msra.mxu1 %v13381_v4 }
 0x13b   : > { %2617 = vmatprep.subr.bf16.mxu0 %v13386_v5  ;;  %2658 = vmatprep.subr.bf16.mxu1 %v13389_v6 }
 0x13e   : > { %2618 = vmatpush2.bf16.msra.mxu0 %v13384_v7  ;;  %2659 = vmatpush2.bf16.msra.mxu1 %v13387_v8  ;;  %v1597_v8 = vrot.slane %v1588_v58, %v15812_v59 }
 0x13f   : > { %2619 = vmatprep.subr.bf16.mxu0 %v13392_v9  ;;  %2660 = vmatprep.subr.bf16.mxu1 %v13395_v10  ;;  %v1605_v9 = vrot.slane %v1588_v58, %v15814_v60  ;;  %v13405_v58 = vld [vmem:[#allocation9 + $0x6e8] ss:$16 sps:$4 sm:$0xff]  }
 0x142   : > { %2620 = vmatpush2.bf16.msra.mxu0 %v13390_v11  ;;  %2661 = vmatpush2.bf16.msra.mxu1 %v13393_v12 }
 0x143   : > { %2621 = vmatprep.subr.bf16.mxu0 %v13398_v13  ;;  %2662 = vmatprep.subr.bf16.mxu1 %v13401_v15 }
 0x146   : > { %2622 = vmatpush2.bf16.msra.mxu0 %v13396_v0  ;;  %2663 = vmatpush2.bf16.msra.mxu1 %v13399_v14 }
 0x147   : > { %2673 = vmatprep.subr.bf16.mxu0 %v13404_v16  ;;  %2714 = vmatprep.subr.bf16.mxu1 %v13407_v17 }
 0x169   : > { %v610_v18 = vpop.f32.mrf.mxu0  ;;  %v651_v19 = vpop.f32.mrf.mxu1 }
 0x16b   : > { %v612_v20 = vpop.f32.mrf.mxu0  ;;  %v653_v21 = vpop.f32.mrf.mxu1 }
 0x16d   : > { %v614_v22 = vpop.f32.mrf.mxu0  ;;  %v655_v23 = vpop.f32.mrf.mxu1 }
 0x16f   : > { %v615_v24 = vpop.f32.mrf.mxu0  ;;  %v656_v25 = vpop.f32.mrf.mxu1 }
 0x170   : > { %v15820_v25 = vld [vmem:[#allocation3 + $0x18] sm:$0x88] }
 0x181   : > { %v819_v26 = vpop.f32.mrf.mxu0  ;;  %v860_v27 = vpop.f32.mrf.mxu1 }
 0x182   : > { %v820_v28 = vadd.f32 %v819_v26, %v610_v18  ;;  %v861_v30 = vadd.f32 %v860_v27, %v651_v19  ;;  %v15822_v26 = vld [vmem:[#allocation3 + $0x20] sm:$0x88] }
 0x183   : > { %v821_v31 = vpop.f32.mrf.mxu0  ;;  %v862_v32 = vpop.f32.mrf.mxu1 }
 0x184   : > { %v822_v33 = vadd.f32 %v821_v31, %v612_v20  ;;  %v863_v34 = vadd.f32 %v862_v32, %v653_v21 }
 0x185   : > { %v823_v35 = vpop.f32.mrf.mxu0  ;;  %v864_v36 = vpop.f32.mrf.mxu1 }
 0x187   : > { %v824_v37 = vpop.f32.mrf.mxu0  ;;  %v865_v38 = vpop.f32.mrf.mxu1 }
 0x199   : > { %v1049_v29 = vpop.f32.mrf.mxu0  ;;  %v1090_v39 = vpop.f32.mrf.mxu1 }
 0x19a   : > { %v1097_v61 = vadd.f32 %v1049_v29, %v820_v28  ;;  %v1099_v62 = vadd.f32 %v1090_v39, %v861_v30 }
 0x19b   : > { %v1051_v40 = vpop.f32.mrf.mxu0  ;;  %v1092_v41 = vpop.f32.mrf.mxu1 }
 0x19c   : > { %v1098_v2 = vadd.f32 %v1051_v40, %v822_v33  ;;  %v1100_v3 = vadd.f32 %v1092_v41, %v863_v34 }
 0x19d   : > { %v1053_v42 = vpop.f32.mrf.mxu0  ;;  %v1094_v43 = vpop.f32.mrf.mxu1 }
 0x19f   : > { %v1054_v44 = vpop.f32.mrf.mxu0  ;;  %v1095_v45 = vpop.f32.mrf.mxu1 }
 0x1b1   : > { %v1297_v46 = vpop.f32.mrf.mxu0  ;;  %v1338_v47 = vpop.f32.mrf.mxu1 }
 0x1b2   : > { %v1345_v4 = vadd.f32 %v1297_v46, %v1097_v61  ;;  %v1347_v5 = vadd.f32 %v1338_v47, %v1099_v62 }
 0x1b3   : > { %v1299_v48 = vpop.f32.mrf.mxu0  ;;  %v1340_v49 = vpop.f32.mrf.mxu1 }
 0x1b4   : > { %v1346_v10 = vadd.f32 %v1299_v48, %v1098_v2  ;;  %v1348_v11 = vadd.f32 %v1340_v49, %v1100_v3  ;;  %v13402_v49 = vld [vmem:[#allocation9 + $0x4e8] ss:$16 sps:$4 sm:$0xff]  }
 0x1b5   : > { %v1301_v50 = vpop.f32.mrf.mxu0  ;;  %v1342_v51 = vpop.f32.mrf.mxu1  ;;  %v13408_v2 = vld [vmem:[#allocation9 + $0x4c8] ss:$16 sps:$4 sm:$0xff]  }
 0x1b6   : > { %v13411_v3 = vld [vmem:[#allocation9 + $0x6c8] ss:$16 sps:$4 sm:$0xff]  }
 0x1b7   : > { %v1302_v52 = vpop.f32.mrf.mxu0  ;;  %v1343_v53 = vpop.f32.mrf.mxu1 }
 0x1c9   : > { %v1536_v6 = vpop.f32.mrf.mxu0  ;;  %v1577_v7 = vpop.f32.mrf.mxu1 }
 0x1ca   : > { %v1584_v12 = vadd.f32 %v1536_v6, %v1345_v4  ;;  %v1586_v0 = vadd.f32 %v1577_v7, %v1347_v5  ;;  %v13416_v4 = vld [vmem:[#allocation9 + $0x4ac] ss:$16 sps:$4 sm:$0xff]   ;;  %v13414_v6 = vld [vmem:[#allocation9 + $0x4a8] ss:$16 sps:$4 sm:$0xff]  }
 0x1cb   : > { %v1538_v13 = vpop.f32.mrf.mxu0  ;;  %v1579_v14 = vpop.f32.mrf.mxu1  ;;  %v13419_v5 = vld [vmem:[#allocation9 + $0x6ac] ss:$16 sps:$4 sm:$0xff]   ;;  %v13417_v7 = vld [vmem:[#allocation9 + $0x6a8] ss:$16 sps:$4 sm:$0xff]  }
 0x1cc   : > { %v1610_v15 = vadd.f32 %v1593_v63, %v1584_v12  ;;  %v1612_v16 = vadd.f32 %v1601_v1, %v1586_v0  ;;  %v1585_v17 = vadd.f32 %v1538_v13, %v1346_v10  ;;  %v1587_v18 = vadd.f32 %v1579_v14, %v1348_v11  ;;  %v13410_v63 = vld [vmem:[#allocation9 + $0x4cc] ss:$16 sps:$4 sm:$0xff]   ;;  %v13420_v10 = vld [vmem:[#allocation9 + $0x488] ss:$16 sps:$4 sm:$0xff]  }
 0x1cd   : > { %v1540_v19 = vpop.f32.mrf.mxu0  ;;  %v1581_v20 = vpop.f32.mrf.mxu1  ;;  %v13413_v1 = vld [vmem:[#allocation9 + $0x6cc] ss:$16 sps:$4 sm:$0xff]   ;;  %v13423_v11 = vld [vmem:[#allocation9 + $0x688] ss:$16 sps:$4 sm:$0xff]  }
 0x1ce   : > { %v1611_v21 = vadd.f32 %v1597_v8, %v1585_v17  ;;  %v1613_v22 = vadd.f32 %v1605_v9, %v1587_v18  ;;  %v1614_v27 = vmax.f32 %v1610_v15, 0.0  ;;  %v1616_v28 = vmax.f32 %v1612_v16, 0.0  ;;  %v13422_v8 = vld [vmem:[#allocation9 + $0x48c] ss:$16 sps:$4 sm:$0xff]   ;;  %v13426_v13 = vld [vmem:[#allocation9 + $0x468] ss:$16 sps:$4 sm:$0xff]  }
 0x1cf   : > { %v1541_v23 = vpop.f32.mrf.mxu0  ;;  %v1582_v24 = vpop.f32.mrf.mxu1  ;;  %v13425_v9 = vld [vmem:[#allocation9 + $0x68c] ss:$16 sps:$4 sm:$0xff]   ;;  %v13429_v14 = vld [vmem:[#allocation9 + $0x668] ss:$16 sps:$4 sm:$0xff]  }
 0x1d0   : > { %v1615_v30 = vmax.f32 %v1611_v21, 0.0  ;;  %v1617_v31 = vmax.f32 %v1613_v22, 0.0  ;;  %v13428_v12 = vld [vmem:[#allocation9 + $0x46c] ss:$16 sps:$4 sm:$0xff]   ;;  %v13432_v17 = vld [vmem:[#allocation9 + $0x448] ss:$16 sps:$4 sm:$0xff]  }
 0x1d1   : > { %v13431_v0 = vld [vmem:[#allocation9 + $0x66c] ss:$16 sps:$4 sm:$0xff]   ;;  %v13435_v18 = vld [vmem:[#allocation9 + $0x648] ss:$16 sps:$4 sm:$0xff]  }
 0x1d2   : > { %v13007_v32 = vpack.c.bf16 %v1615_v30, %v1614_v27  ;;  %v13008_v33 = vpack.c.bf16 %v1617_v31, %v1616_v28  ;;  %v13434_v15 = vld [vmem:[#allocation9 + $0x44c] ss:$16 sps:$4 sm:$0xff]   ;;  %v13438_v21 = vld [vmem:[#allocation9 + $0x428] ss:$16 sps:$4 sm:$0xff]  }
 0x1d3   : > { %v13437_v16 = vld [vmem:[#allocation9 + $0x64c] ss:$16 sps:$4 sm:$0xff]   ;;  %v13441_v22 = vld [vmem:[#allocation9 + $0x628] ss:$16 sps:$4 sm:$0xff]  }
 0x1d4   : > { %1634 = vst [vmem:[#allocation3 + $0x28] sm:$0xff] %v13007_v32  ;;  %1635 = vst [vmem:[#allocation3 + $0x10] sm:$0xff] %v13008_v33  ;;  %v11681_v34 = vcombine.high %v15820_v25, %v13007_v32  ;;  %v11683_v35 = vcombine.high %v15822_v26, %v13008_v33  ;;  %v11680_v36 = vcombine.low %v15820_v25, %v13007_v32  ;;  %v13440_v19 = vld [vmem:[#allocation9 + $0x42c] ss:$16 sps:$4 sm:$0xff]   ;;  %v13444_v27 = vld [vmem:[#allocation9 + $0x408] ss:$16 sps:$4 sm:$0xff]  }
 0x1d5   : > { %v11682_v37 = vcombine.low %v15822_v26, %v13008_v33  ;;  %v13443_v20 = vld [vmem:[#allocation9 + $0x62c] ss:$16 sps:$4 sm:$0xff]   ;;  %v13447_v28 = vld [vmem:[#allocation9 + $0x608] ss:$16 sps:$4 sm:$0xff]  }
 0x1d6   : > { %v1924_v38 = vshrl.u32 %v11681_v34, 16  ;;  %v1927_v29 = vshll.u32 %v11681_v34, 16  ;;  %v1940_v39 = vshrl.u32 %v11683_v35, 16  ;;  %v1943_v40 = vshll.u32 %v11683_v35, 16  ;;  %v13446_v23 = vld [vmem:[#allocation9 + $0x40c] ss:$16 sps:$4 sm:$0xff]  }
 0x1d7   : > { %v1916_v41 = vshrl.u32 %v11680_v36, 16  ;;  %v1919_v42 = vshll.u32 %v11680_v36, 16  ;;  %v1932_v43 = vshrl.u32 %v11682_v37, 16  ;;  %v1935_v44 = vshll.u32 %v11682_v37, 16  ;;  %v13449_v24 = vld [vmem:[#allocation9 + $0x60c] ss:$16 sps:$4 sm:$0xff]  }
 0x1d8   : > { %v1926_v45 = vrot.slane %v1924_v38, 3  ;;  %v1929_v46 = vrot.slane %v1927_v29, 4  ;;  %v1942_v47 = vrot.slane %v1940_v39, 3  ;;  %v1945_v48 = vrot.slane %v1943_v40, 4  ;;  %v13452_v30 = vld [vmem:[#allocation9 + $0x5ec] ss:$16 sps:$4 sm:$0xff]  }
 0x1d9   : > { %v1918_v50 = vrot.slane %v1916_v41, 3  ;;  %v1921_v51 = vrot.slane %v1919_v42, 4  ;;  %v1934_v52 = vrot.slane %v1932_v43, 3  ;;  %v1937_v53 = vrot.slane %v1935_v44, 4  ;;  %v13455_v31 = vld [vmem:[#allocation9 + $0x7ec] ss:$16 sps:$4 sm:$0xff]  }
 0x1da   : > { %v1930_v54 = vor.u32 %v1929_v46, %v1926_v45  ;;  %v1946_v55 = vor.u32 %v1945_v48, %v1942_v47  ;;  %v13450_v32 = vld [vmem:[#allocation9 + $0x5e8] ss:$16 sps:$4 sm:$0xff]   ;;  %v13458_v34 = vld [vmem:[#allocation9 + $0x5cc] ss:$16 sps:$4 sm:$0xff]  }
 0x1db   : > { %v15828_v61 = vor.u32 %v1921_v51, %v1918_v50  ;;  %v15830_v62 = vor.u32 %v1937_v53, %v1934_v52  ;;  %v13453_v33 = vld [vmem:[#allocation9 + $0x7e8] ss:$16 sps:$4 sm:$0xff]   ;;  %v13461_v35 = vld [vmem:[#allocation9 + $0x7cc] ss:$16 sps:$4 sm:$0xff]  }
 0x1dc   : > { %2623 = vmatprep.mubr.bf16.mxu0 %v1930_v54  ;;  %2664 = vmatprep.mubr.bf16.mxu1 %v1946_v55  ;;  %v13456_v36 = vld [vmem:[#allocation9 + $0x5c8] ss:$16 sps:$4 sm:$0xff]   ;;  %v13464_v38 = vld [vmem:[#allocation9 + $0x5ac] ss:$16 sps:$4 sm:$0xff]  }
 0x1dd   : > { %2624 = vmatmul.mubr.bf16.vlgmr.msra.gmra.mxu0 %v15828_v61  ;;  %2665 = vmatmul.mubr.bf16.vlgmr.msra.gmra.mxu1 %v15830_v62  ;;  %v13459_v37 = vld [vmem:[#allocation9 + $0x7c8] ss:$16 sps:$4 sm:$0xff]   ;;  %v13467_v29 = vld [vmem:[#allocation9 + $0x7ac] ss:$16 sps:$4 sm:$0xff]  }
 0x1de   : > { %2674 = vmatpush1.bf16.msra.mxu0 %v13402_v49  ;;  %2715 = vmatpush1.bf16.msra.mxu1 %v13405_v58  ;;  %v13462_v39 = vld [vmem:[#allocation9 + $0x5a8] ss:$16 sps:$4 sm:$0xff]   ;;  %v13470_v41 = vld [vmem:[#allocation9 + $0x58c] ss:$16 sps:$4 sm:$0xff]  }
 0x1df   : > { %2705 = vmatprep.mubr.bf16.mxu0 %v1930_v54  ;;  %2746 = vmatprep.mubr.bf16.mxu1 %v1946_v55  ;;  %v13465_v40 = vld [vmem:[#allocation9 + $0x7a8] ss:$16 sps:$4 sm:$0xff]   ;;  %v13473_v42 = vld [vmem:[#allocation9 + $0x78c] ss:$16 sps:$4 sm:$0xff]  }
 0x1e0   : > { %2675 = vmatprep.subr.bf16.mxu0 %v13410_v63  ;;  %2716 = vmatprep.subr.bf16.mxu1 %v13413_v1  ;;  %v13468_v43 = vld [vmem:[#allocation9 + $0x588] ss:$16 sps:$4 sm:$0xff]   ;;  %v13476_v45 = vld [vmem:[#allocation9 + $0x56c] ss:$16 sps:$4 sm:$0xff]  }
 0x1e1   : > { %v13471_v44 = vld [vmem:[#allocation9 + $0x788] ss:$16 sps:$4 sm:$0xff]   ;;  %v13479_v46 = vld [vmem:[#allocation9 + $0x76c] ss:$16 sps:$4 sm:$0xff]  }
 0x1e2   : > { %2676 = vmatpush1.bf16.msra.mxu0 %v13408_v2  ;;  %2717 = vmatpush1.bf16.msra.mxu1 %v13411_v3  ;;  %v13474_v47 = vld [vmem:[#allocation9 + $0x568] ss:$16 sps:$4 sm:$0xff]   ;;  %v13482_v49 = vld [vmem:[#allocation9 + $0x54c] ss:$16 sps:$4 sm:$0xff]   ;;  %v15834_v2 = vld [vmem:[#allocation3 + $0x28] sm:$0x77] }
 0x1e3   : > { %2677 = vmatprep.subr.bf16.mxu0 %v13416_v4  ;;  %2718 = vmatprep.subr.bf16.mxu1 %v13419_v5  ;;  %v13477_v48 = vld [vmem:[#allocation9 + $0x768] ss:$16 sps:$4 sm:$0xff]   ;;  %v13485_v50 = vld [vmem:[#allocation9 + $0x74c] ss:$16 sps:$4 sm:$0xff]  }
 0x1e4   : > { %v13480_v51 = vld [vmem:[#allocation9 + $0x548] ss:$16 sps:$4 sm:$0xff]   ;;  %v13488_v53 = vld [vmem:[#allocation9 + $0x52c] ss:$16 sps:$4 sm:$0xff]  }
 0x1e5   : > { %v13483_v52 = vld [vmem:[#allocation9 + $0x748] ss:$16 sps:$4 sm:$0xff]   ;;  %v13491_v54 = vld [vmem:[#allocation9 + $0x72c] ss:$16 sps:$4 sm:$0xff]  }
 0x1e6   : > { %2678 = vmatpush1.bf16.msra.mxu0 %v13414_v6  ;;  %2719 = vmatpush1.bf16.msra.mxu1 %v13417_v7  ;;  %v13486_v55 = vld [vmem:[#allocation9 + $0x528] ss:$16 sps:$4 sm:$0xff]   ;;  %v13494_v63 = vld [vmem:[#allocation9 + $0x50c] ss:$16 sps:$4 sm:$0xff]   ;;  %v13500_v6 = vld [vmem:[#allocation9 + $0xe4] ss:$16 sps:$4 sm:$0xff]  }
 0x1e7   : > { %2679 = vmatprep.subr.bf16.mxu0 %v13422_v8  ;;  %2720 = vmatprep.subr.bf16.mxu1 %v13425_v9  ;;  %v13489_v58 = vld [vmem:[#allocation9 + $0x728] ss:$16 sps:$4 sm:$0xff]   ;;  %v13497_v1 = vld [vmem:[#allocation9 + $0x70c] ss:$16 sps:$4 sm:$0xff]   ;;  %v13503_v7 = vld [vmem:[#allocation9 + $0x2e4] ss:$16 sps:$4 sm:$0xff]   ;;  %v11813_v9 = vcombine.high %v15820_v25, %v15834_v2 }
 0x1e8   : > { %v13492_v3 = vld [vmem:[#allocation9 + $0x508] ss:$16 sps:$4 sm:$0xff]   ;;  %v13498_v8 = vld [vmem:[#allocation9 + $0xe0] ss:$16 sps:$4 sm:$0xff]  }
 0x1e9   : > { %v13495_v4 = vld [vmem:[#allocation9 + $0x708] ss:$16 sps:$4 sm:$0xff]   ;;  %v13511_v25 = vld [vmem:[#allocation9 + $0x2c0] ss:$16 sps:$4 sm:$0xff]  }
 0x1ea   : > { %2680 = vmatpush1.bf16.msra.mxu0 %v13420_v10  ;;  %2721 = vmatpush1.bf16.msra.mxu1 %v13423_v11  ;;  %v15836_v5 = vld [vmem:[#allocation3 + $0x10] sm:$0x77]  ;;  %v13501_v10 = vld [vmem:[#allocation9 + $0x2e0] ss:$16 sps:$4 sm:$0xff]  }
 0x1eb   : > { %2681 = vmatprep.subr.bf16.mxu0 %v13428_v12  ;;  %2722 = vmatprep.subr.bf16.mxu1 %v13431_v0  ;;  %v11815_v11 = vcombine.high %v15822_v26, %v15836_v5  ;;  %v13510_v12 = vld [vmem:[#allocation9 + $0xc4] ss:$16 sps:$4 sm:$0xff]  }
 0x1ec   : > { %v13513_v0 = vld [vmem:[#allocation9 + $0x2c4] ss:$16 sps:$4 sm:$0xff]  }
 0x1ed   : > { %v13516_v26 = vld [vmem:[#allocation9 + $0xa4] ss:$16 sps:$4 sm:$0xff]  }
 0x1ee   : > { %2682 = vmatpush1.bf16.msra.mxu0 %v13426_v13  ;;  %2723 = vmatpush1.bf16.msra.mxu1 %v13429_v14  ;;  %v15842_v13 = vrot.slane %v11813_v9, 3  ;;  %v15846_v14 = vrot.slane %v11815_v11, 3  ;;  %v13586_v9 = vld [vmem:[#allocation9 + $0x120] ss:$16 sps:$4 sm:$0xff]  }
 0x1ef   : > { %2683 = vmatprep.subr.bf16.mxu0 %v13434_v15  ;;  %2724 = vmatprep.subr.bf16.mxu1 %v13437_v16  ;;  %v13508_v15 = vld [vmem:[#allocation9 + $0xc0] ss:$16 sps:$4 sm:$0xff]   ;;  %v13519_v16 = vld [vmem:[#allocation9 + $0x2a4] ss:$16 sps:$4 sm:$0xff]  }
 0x1f0   : > { %v13589_v11 = vld [vmem:[#allocation9 + $0x320] ss:$16 sps:$4 sm:$0xff]  }
 0x1f2   : > { %2684 = vmatpush1.bf16.msra.mxu0 %v13432_v17  ;;  %2725 = vmatpush1.bf16.msra.mxu1 %v13435_v18  ;;  %v13514_v17 = vld [vmem:[#allocation9 + $0xa0] ss:$16 sps:$4 sm:$0xff]  }
 0x1f3   : > { %2685 = vmatprep.subr.bf16.mxu0 %v13440_v19  ;;  %2726 = vmatprep.subr.bf16.mxu1 %v13443_v20  ;;  %v13520_v18 = vld [vmem:[#allocation9 + $0x80] ss:$16 sps:$4 sm:$0xff]   ;;  %v13525_v19 = vld [vmem:[#allocation9 + $0x284] ss:$16 sps:$4 sm:$0xff]  }
 0x1f4   : > { %v13523_v20 = vld [vmem:[#allocation9 + $0x280] ss:$16 sps:$4 sm:$0xff]  }
 0x1f6   : > { %2686 = vmatpush1.bf16.msra.mxu0 %v13438_v21  ;;  %2727 = vmatpush1.bf16.msra.mxu1 %v13441_v22  ;;  %v13528_v21 = vld [vmem:[#allocation9 + $0x64] ss:$16 sps:$4 sm:$0xff]   ;;  %v13526_v22 = vld [vmem:[#allocation9 + $0x60] ss:$16 sps:$4 sm:$0xff]  }
 0x1f7   : > { %2687 = vmatprep.subr.bf16.mxu0 %v13446_v23  ;;  %2728 = vmatprep.subr.bf16.mxu1 %v13449_v24  ;;  %v13531_v23 = vld [vmem:[#allocation9 + $0x264] ss:$16 sps:$4 sm:$0xff]   ;;  %v13529_v24 = vld [vmem:[#allocation9 + $0x260] ss:$16 sps:$4 sm:$0xff]  }
 0x1fa   : > { %2688 = vmatpush1.bf16.msra.mxu0 %v13444_v27  ;;  %2729 = vmatpush1.bf16.msra.mxu1 %v13447_v28  ;;  %v13534_v27 = vld [vmem:[#allocation9 + $0x44] ss:$16 sps:$4 sm:$0xff]   ;;  %v13532_v28 = vld [vmem:[#allocation9 + $0x40] ss:$16 sps:$4 sm:$0xff]  }
 0x1fb   : > { %2689 = vmatprep.subr.bf16.mxu0 %v13452_v30  ;;  %2730 = vmatprep.subr.bf16.mxu1 %v13455_v31  ;;  %v13537_v30 = vld [vmem:[#allocation9 + $0x244] ss:$16 sps:$4 sm:$0xff]   ;;  %v13535_v31 = vld [vmem:[#allocation9 + $0x240] ss:$16 sps:$4 sm:$0xff]  }
 0x1fe   : > { %2690 = vmatpush2.bf16.msra.mxu0 %v13450_v32  ;;  %2731 = vmatpush2.bf16.msra.mxu1 %v13453_v33  ;;  %v13540_v32 = vld [vmem:[#allocation9 + $0x24] ss:$16 sps:$4 sm:$0xff]   ;;  %v13538_v33 = vld [vmem:[#allocation9 + $0x20] ss:$16 sps:$4 sm:$0xff]  }
 0x1ff   : > { %2691 = vmatprep.subr.bf16.mxu0 %v13458_v34  ;;  %2732 = vmatprep.subr.bf16.mxu1 %v13461_v35  ;;  %v13543_v34 = vld [vmem:[#allocation9 + $0x224] ss:$16 sps:$4 sm:$0xff]   ;;  %v13541_v35 = vld [vmem:[#allocation9 + $0x220] ss:$16 sps:$4 sm:$0xff]  }
 0x202   : > { %2692 = vmatpush2.bf16.msra.mxu0 %v13456_v36  ;;  %2733 = vmatpush2.bf16.msra.mxu1 %v13459_v37  ;;  %v13546_v36 = vld [vmem:[#allocation9 + $0x4] ss:$16 sps:$4 sm:$0xff]   ;;  %v13544_v37 = vld [vmem:[#allocation9] ss:$16 sps:$4 sm:$0xff]  }
 0x203   : > { %2693 = vmatprep.subr.bf16.mxu0 %v13464_v38  ;;  %2734 = vmatprep.subr.bf16.mxu1 %v13467_v29  ;;  %v13549_v38 = vld [vmem:[#allocation9 + $0x204] ss:$16 sps:$4 sm:$0xff]   ;;  %v13547_v29 = vld [vmem:[#allocation9 + $0x200] ss:$16 sps:$4 sm:$0xff]  }
 0x206   : > { %2694 = vmatpush2.bf16.msra.mxu0 %v13462_v39  ;;  %2735 = vmatpush2.bf16.msra.mxu1 %v13465_v40  ;;  %v13552_v39 = vld [vmem:[#allocation9 + $0x1e4] ss:$16 sps:$4 sm:$0xff]   ;;  %v13550_v40 = vld [vmem:[#allocation9 + $0x1e0] ss:$16 sps:$4 sm:$0xff]  }
 0x207   : > { %2695 = vmatprep.subr.bf16.mxu0 %v13470_v41  ;;  %2736 = vmatprep.subr.bf16.mxu1 %v13473_v42  ;;  %v13555_v41 = vld [vmem:[#allocation9 + $0x3e4] ss:$16 sps:$4 sm:$0xff]   ;;  %v13553_v42 = vld [vmem:[#allocation9 + $0x3e0] ss:$16 sps:$4 sm:$0xff]  }
 0x20a   : > { %2696 = vmatpush2.bf16.msra.mxu0 %v13468_v43  ;;  %2737 = vmatpush2.bf16.msra.mxu1 %v13471_v44  ;;  %v13558_v43 = vld [vmem:[#allocation9 + $0x1c4] ss:$16 sps:$4 sm:$0xff]   ;;  %v13556_v44 = vld [vmem:[#allocation9 + $0x1c0] ss:$16 sps:$4 sm:$0xff]  }
 0x20b   : > { %2697 = vmatprep.subr.bf16.mxu0 %v13476_v45  ;;  %2738 = vmatprep.subr.bf16.mxu1 %v13479_v46  ;;  %v13561_v45 = vld [vmem:[#allocation9 + $0x3c4] ss:$16 sps:$4 sm:$0xff]   ;;  %v13559_v46 = vld [vmem:[#allocation9 + $0x3c0] ss:$16 sps:$4 sm:$0xff]  }
 0x20e   : > { %2698 = vmatpush2.bf16.msra.mxu0 %v13474_v47  ;;  %2739 = vmatpush2.bf16.msra.mxu1 %v13477_v48  ;;  %v13564_v47 = vld [vmem:[#allocation9 + $0x1a4] ss:$16 sps:$4 sm:$0xff]   ;;  %v13562_v48 = vld [vmem:[#allocation9 + $0x1a0] ss:$16 sps:$4 sm:$0xff]  }
 0x20f   : > { %2699 = vmatprep.subr.bf16.mxu0 %v13482_v49  ;;  %2740 = vmatprep.subr.bf16.mxu1 %v13485_v50  ;;  %v13567_v49 = vld [vmem:[#allocation9 + $0x3a4] ss:$16 sps:$4 sm:$0xff]   ;;  %v13565_v50 = vld [vmem:[#allocation9 + $0x3a0] ss:$16 sps:$4 sm:$0xff]  }
 0x212   : > { %2700 = vmatpush2.bf16.msra.mxu0 %v13480_v51  ;;  %2741 = vmatpush2.bf16.msra.mxu1 %v13483_v52  ;;  %v13570_v51 = vld [vmem:[#allocation9 + $0x184] ss:$16 sps:$4 sm:$0xff]   ;;  %v13568_v52 = vld [vmem:[#allocation9 + $0x180] ss:$16 sps:$4 sm:$0xff]  }
 0x213   : > { %2701 = vmatprep.subr.bf16.mxu0 %v13488_v53  ;;  %2742 = vmatprep.subr.bf16.mxu1 %v13491_v54  ;;  %v13573_v53 = vld [vmem:[#allocation9 + $0x384] ss:$16 sps:$4 sm:$0xff]   ;;  %v13571_v54 = vld [vmem:[#allocation9 + $0x380] ss:$16 sps:$4 sm:$0xff]  }
 0x216   : > { %2702 = vmatpush2.bf16.msra.mxu0 %v13486_v55  ;;  %2743 = vmatpush2.bf16.msra.mxu1 %v13489_v58  ;;  %v13576_v55 = vld [vmem:[#allocation9 + $0x164] ss:$16 sps:$4 sm:$0xff]   ;;  %v13574_v58 = vld [vmem:[#allocation9 + $0x160] ss:$16 sps:$4 sm:$0xff]  }
 0x217   : > { %2703 = vmatprep.subr.bf16.mxu0 %v13494_v63  ;;  %2744 = vmatprep.subr.bf16.mxu1 %v13497_v1  ;;  %v13579_v63 = vld [vmem:[#allocation9 + $0x364] ss:$16 sps:$4 sm:$0xff]   ;;  %v13577_v1 = vld [vmem:[#allocation9 + $0x360] ss:$16 sps:$4 sm:$0xff]  }
 0x21a   : > { %2704 = vmatpush2.bf16.msra.mxu0 %v13492_v3  ;;  %2745 = vmatpush2.bf16.msra.mxu1 %v13495_v4  ;;  %v13582_v3 = vld [vmem:[#allocation9 + $0x144] ss:$16 sps:$4 sm:$0xff]   ;;  %v13580_v4 = vld [vmem:[#allocation9 + $0x140] ss:$16 sps:$4 sm:$0xff]  }
 0x21b   : > { %3413 = vmatprep.subr.bf16.mxu0 %v13500_v6  ;;  %3454 = vmatprep.subr.bf16.mxu1 %v13503_v7  ;;  %v13585_v6 = vld [vmem:[#allocation9 + $0x344] ss:$16 sps:$4 sm:$0xff]   ;;  %v13583_v7 = vld [vmem:[#allocation9 + $0x340] ss:$16 sps:$4 sm:$0xff]  }
 0x21d   : > { %2706 = vmatmul.mubr.bf16.vlgmr.msra.gmra.mxu0 %v15828_v61  ;;  %2747 = vmatmul.mubr.bf16.vlgmr.msra.gmra.mxu1 %v15830_v62  ;;  %v13517_v61 = vld [vmem:[#allocation9 + $0x2a0] ss:$16 sps:$4 sm:$0xff]   ;;  %v13522_v62 = vld [vmem:[#allocation9 + $0x84] ss:$16 sps:$4 sm:$0xff]  }
 0x21e   : > { %3414 = vmatpush1.bf16.msra.mxu0 %v13498_v8  ;;  %3445 = vmatprep.mubr.bf16.mxu0 %v15842_v13  ;;  %v13588_v8 = vld [vmem:[#allocation9 + $0x124] ss:$16 sps:$4 sm:$0xff]  }
 0x21f   : > { %3455 = vmatpush1.bf16.msra.mxu1 %v13501_v10  ;;  %3486 = vmatprep.mubr.bf16.mxu1 %v15846_v14  ;;  %v13591_v10 = vld [vmem:[#allocation9 + $0x324] ss:$16 sps:$4 sm:$0xff]  }
 0x220   : > { %3415 = vmatprep.subr.bf16.mxu0 %v13510_v12  ;;  %3456 = vmatprep.subr.bf16.mxu1 %v13513_v0  ;;  %v13594_v12 = vld [vmem:[#allocation9 + $0x104] ss:$16 sps:$4 sm:$0xff]   ;;  %v13592_v0 = vld [vmem:[#allocation9 + $0x100] ss:$16 sps:$4 sm:$0xff]  }
 0x222   : > { %3416 = vmatpush1.bf16.msra.mxu0 %v13508_v15  ;;  %v13597_v15 = vld [vmem:[#allocation9 + $0x304] ss:$16 sps:$4 sm:$0xff]  }
 0x223   : > { %3457 = vmatpush1.bf16.msra.mxu1 %v13511_v25  ;;  %3417 = vmatprep.subr.bf16.mxu0 %v13516_v26  ;;  %v15246_v25 = vld [vmem:[#allocation3 + $0x18] sm:$0x88] }
 0x224   : > { %3458 = vmatprep.subr.bf16.mxu1 %v13519_v16  ;;  %v11812_v26 = vcombine.low %v15246_v25, %v15834_v2  ;;  %v13595_v16 = vld [vmem:[#allocation9 + $0x300] ss:$16 sps:$4 sm:$0xff]   ;;  %v13604_v2 = vld [vmem:[#allocation9 + $0xc8] ss:$16 sps:$4 sm:$0xff]  }
 0x225   : > { %v13676_v25 = vld [vmem:[#allocation9 + $0x148] ss:$16 sps:$4 sm:$0xff]  }
 0x226   : > { %3418 = vmatpush1.bf16.msra.mxu0 %v13514_v17  ;;  %v13600_v17 = vld [vmem:[#allocation9 + $0xec] ss:$16 sps:$4 sm:$0xff]  }
 0x227   : > { %3459 = vmatpush1.bf16.msra.mxu1 %v13517_v61  ;;  %3419 = vmatprep.subr.bf16.mxu0 %v13522_v62  ;;  %v13603_v61 = vld [vmem:[#allocation9 + $0x2ec] ss:$16 sps:$4 sm:$0xff]  }
 0x228   : > { %3460 = vmatprep.subr.bf16.mxu1 %v13525_v19  ;;  %v15247_v62 = vld [vmem:[#allocation3 + $0x20] sm:$0x88] }
 0x229   : > { %v13598_v19 = vld [vmem:[#allocation9 + $0xe8] ss:$16 sps:$4 sm:$0xff]  }
 0x22a   : > { %3420 = vmatpush1.bf16.msra.mxu0 %v13520_v18  ;;  %v11814_v18 = vcombine.low %v15247_v62, %v15836_v5  ;;  %v13612_v5 = vld [vmem:[#allocation9 + $0xac] ss:$16 sps:$4 sm:$0xff]  }
 0x22b   : > { %3461 = vmatpush1.bf16.msra.mxu1 %v13523_v20  ;;  %3421 = vmatprep.subr.bf16.mxu0 %v13528_v21  ;;  %v13601_v20 = vld [vmem:[#allocation9 + $0x2e8] ss:$16 sps:$4 sm:$0xff]   ;;  %v13606_v21 = vld [vmem:[#allocation9 + $0xcc] ss:$16 sps:$4 sm:$0xff]  }
 0x22c   : > { %3462 = vmatprep.subr.bf16.mxu1 %v13531_v23  ;;  %v15854_v23 = vrot.slane %v11814_v18, 3  ;;  %v13687_v62 = vld [vmem:[#allocation9 + $0x32c] ss:$16 sps:$4 sm:$0xff]   ;;  %v13685_v18 = vld [vmem:[#allocation9 + $0x328] ss:$16 sps:$4 sm:$0xff]  }
 0x22e   : > { %3422 = vmatpush1.bf16.msra.mxu0 %v13526_v22  ;;  %v15852_v22 = vrot.slane %v11812_v26, 3  ;;  %v13681_v26 = vld [vmem:[#allocation9 + $0x34c] ss:$16 sps:$4 sm:$0xff]  }
 0x22f   : > { %3463 = vmatpush1.bf16.msra.mxu1 %v13529_v24  ;;  %3423 = vmatprep.subr.bf16.mxu0 %v13534_v27  ;;  %v13607_v24 = vld [vmem:[#allocation9 + $0x2c8] ss:$16 sps:$4 sm:$0xff]   ;;  %v13609_v27 = vld [vmem:[#allocation9 + $0x2cc] ss:$16 sps:$4 sm:$0xff]  }
 0x230   : > { %3464 = vmatprep.subr.bf16.mxu1 %v13537_v30  ;;  %v13610_v30 = vld [vmem:[#allocation9 + $0xa8] ss:$16 sps:$4 sm:$0xff]  }
 0x232   : > { %3424 = vmatpush1.bf16.msra.mxu0 %v13532_v28  ;;  %v13615_v28 = vld [vmem:[#allocation9 + $0x2ac] ss:$16 sps:$4 sm:$0xff]  }
 0x233   : > { %3465 = vmatpush1.bf16.msra.mxu1 %v13535_v31  ;;  %3425 = vmatprep.subr.bf16.mxu0 %v13540_v32  ;;  %v13613_v31 = vld [vmem:[#allocation9 + $0x2a8] ss:$16 sps:$4 sm:$0xff]   ;;  %v13618_v32 = vld [vmem:[#allocation9 + $0x8c] ss:$16 sps:$4 sm:$0xff]  }
 0x234   : > { %3466 = vmatprep.subr.bf16.mxu1 %v13543_v34  ;;  %v13621_v34 = vld [vmem:[#allocation9 + $0x28c] ss:$16 sps:$4 sm:$0xff]  }
 0x236   : > { %3426 = vmatpush1.bf16.msra.mxu0 %v13538_v33  ;;  %v13616_v33 = vld [vmem:[#allocation9 + $0x88] ss:$16 sps:$4 sm:$0xff]  }
 0x237   : > { %3467 = vmatpush1.bf16.msra.mxu1 %v13541_v35  ;;  %3427 = vmatprep.subr.bf16.mxu0 %v13546_v36  ;;  %v13619_v35 = vld [vmem:[#allocation9 + $0x288] ss:$16 sps:$4 sm:$0xff]   ;;  %v13624_v36 = vld [vmem:[#allocation9 + $0x6c] ss:$16 sps:$4 sm:$0xff]  }
 0x238   : > { %3468 = vmatprep.subr.bf16.mxu1 %v13549_v38  ;;  %v13630_v38 = vld [vmem:[#allocation9 + $0x4c] ss:$16 sps:$4 sm:$0xff]  }
 0x23a   : > { %3428 = vmatpush1.bf16.msra.mxu0 %v13544_v37  ;;  %v13627_v37 = vld [vmem:[#allocation9 + $0x26c] ss:$16 sps:$4 sm:$0xff]  }
 0x23b   : > { %3469 = vmatpush1.bf16.msra.mxu1 %v13547_v29  ;;  %3429 = vmatprep.subr.bf16.mxu0 %v13552_v39  ;;  %v13628_v29 = vld [vmem:[#allocation9 + $0x48] ss:$16 sps:$4 sm:$0xff]   ;;  %v13633_v39 = vld [vmem:[#allocation9 + $0x24c] ss:$16 sps:$4 sm:$0xff]  }
 0x23c   : > { %3470 = vmatprep.subr.bf16.mxu1 %v13555_v41  ;;  %v13636_v41 = vld [vmem:[#allocation9 + $0x2c] ss:$16 sps:$4 sm:$0xff]  }
 0x23e   : > { %3430 = vmatpush2.bf16.msra.mxu0 %v13550_v40  ;;  %v13631_v40 = vld [vmem:[#allocation9 + $0x248] ss:$16 sps:$4 sm:$0xff]  }
 0x23f   : > { %3471 = vmatpush2.bf16.msra.mxu1 %v13553_v42  ;;  %3431 = vmatprep.subr.bf16.mxu0 %v13558_v43  ;;  %v13634_v42 = vld [vmem:[#allocation9 + $0x28] ss:$16 sps:$4 sm:$0xff]   ;;  %v13639_v43 = vld [vmem:[#allocation9 + $0x22c] ss:$16 sps:$4 sm:$0xff]  }
 0x240   : > { %3472 = vmatprep.subr.bf16.mxu1 %v13561_v45  ;;  %v13642_v45 = vld [vmem:[#allocation9 + $0xc] ss:$16 sps:$4 sm:$0xff]  }
 0x242   : > { %3432 = vmatpush2.bf16.msra.mxu0 %v13556_v44  ;;  %v13637_v44 = vld [vmem:[#allocation9 + $0x228] ss:$16 sps:$4 sm:$0xff]  }
 0x243   : > { %3473 = vmatpush2.bf16.msra.mxu1 %v13559_v46  ;;  %3433 = vmatprep.subr.bf16.mxu0 %v13564_v47  ;;  %v13640_v46 = vld [vmem:[#allocation9 + $0x8] ss:$16 sps:$4 sm:$0xff]   ;;  %v13645_v47 = vld [vmem:[#allocation9 + $0x20c] ss:$16 sps:$4 sm:$0xff]  }
 0x244   : > { %3474 = vmatprep.subr.bf16.mxu1 %v13567_v49  ;;  %v13648_v49 = vld [vmem:[#allocation9 + $0x1ec] ss:$16 sps:$4 sm:$0xff]  }
 0x246   : > { %3434 = vmatpush2.bf16.msra.mxu0 %v13562_v48  ;;  %v13643_v48 = vld [vmem:[#allocation9 + $0x208] ss:$16 sps:$4 sm:$0xff]  }
 0x247   : > { %3475 = vmatpush2.bf16.msra.mxu1 %v13565_v50  ;;  %3435 = vmatprep.subr.bf16.mxu0 %v13570_v51  ;;  %v13646_v50 = vld [vmem:[#allocation9 + $0x1e8] ss:$16 sps:$4 sm:$0xff]   ;;  %v13651_v51 = vld [vmem:[#allocation9 + $0x3ec] ss:$16 sps:$4 sm:$0xff]  }
 0x248   : > { %3476 = vmatprep.subr.bf16.mxu1 %v13573_v53  ;;  %v13654_v53 = vld [vmem:[#allocation9 + $0x1cc] ss:$16 sps:$4 sm:$0xff]  }
 0x24a   : > { %3436 = vmatpush2.bf16.msra.mxu0 %v13568_v52  ;;  %v13649_v52 = vld [vmem:[#allocation9 + $0x3e8] ss:$16 sps:$4 sm:$0xff]  }
 0x24b   : > { %3477 = vmatpush2.bf16.msra.mxu1 %v13571_v54  ;;  %3437 = vmatprep.subr.bf16.mxu0 %v13576_v55  ;;  %v13652_v54 = vld [vmem:[#allocation9 + $0x1c8] ss:$16 sps:$4 sm:$0xff]   ;;  %v13657_v55 = vld [vmem:[#allocation9 + $0x3cc] ss:$16 sps:$4 sm:$0xff]  }
 0x24c   : > { %3478 = vmatprep.subr.bf16.mxu1 %v13579_v63  ;;  %v13660_v63 = vld [vmem:[#allocation9 + $0x1ac] ss:$16 sps:$4 sm:$0xff]  }
 0x24e   : > { %3438 = vmatpush2.bf16.msra.mxu0 %v13574_v58  ;;  %v13655_v58 = vld [vmem:[#allocation9 + $0x3c8] ss:$16 sps:$4 sm:$0xff]  }
 0x24f   : > { %3479 = vmatpush2.bf16.msra.mxu1 %v13577_v1  ;;  %3439 = vmatprep.subr.bf16.mxu0 %v13582_v3  ;;  %v13658_v1 = vld [vmem:[#allocation9 + $0x1a8] ss:$16 sps:$4 sm:$0xff]   ;;  %v13663_v3 = vld [vmem:[#allocation9 + $0x3ac] ss:$16 sps:$4 sm:$0xff]  }
 0x250   : > { %3480 = vmatprep.subr.bf16.mxu1 %v13585_v6  ;;  %v13666_v6 = vld [vmem:[#allocation9 + $0x18c] ss:$16 sps:$4 sm:$0xff]  }
 0x252   : > { %3440 = vmatpush2.bf16.msra.mxu0 %v13580_v4  ;;  %v13661_v4 = vld [vmem:[#allocation9 + $0x3a8] ss:$16 sps:$4 sm:$0xff]  }
 0x253   : > { %3481 = vmatpush2.bf16.msra.mxu1 %v13583_v7  ;;  %3441 = vmatprep.subr.bf16.mxu0 %v13588_v8  ;;  %v13664_v7 = vld [vmem:[#allocation9 + $0x188] ss:$16 sps:$4 sm:$0xff]   ;;  %v13669_v8 = vld [vmem:[#allocation9 + $0x38c] ss:$16 sps:$4 sm:$0xff]  }
 0x254   : > { %3482 = vmatprep.subr.bf16.mxu1 %v13591_v10  ;;  %v13672_v10 = vld [vmem:[#allocation9 + $0x16c] ss:$16 sps:$4 sm:$0xff]  }
 0x256   : > { %3442 = vmatpush2.bf16.msra.mxu0 %v13586_v9  ;;  %v13667_v9 = vld [vmem:[#allocation9 + $0x388] ss:$16 sps:$4 sm:$0xff]  }
 0x257   : > { %3483 = vmatpush2.bf16.msra.mxu1 %v13589_v11  ;;  %3443 = vmatprep.subr.bf16.mxu0 %v13594_v12  ;;  %v13670_v11 = vld [vmem:[#allocation9 + $0x168] ss:$16 sps:$4 sm:$0xff]   ;;  %v13675_v12 = vld [vmem:[#allocation9 + $0x36c] ss:$16 sps:$4 sm:$0xff]  }
 0x258   : > { %3484 = vmatprep.subr.bf16.mxu1 %v13597_v15  ;;  %v13678_v15 = vld [vmem:[#allocation9 + $0x14c] ss:$16 sps:$4 sm:$0xff]  }
 0x25a   : > { %3444 = vmatpush2.bf16.msra.mxu0 %v13592_v0  ;;  %v13673_v0 = vld [vmem:[#allocation9 + $0x368] ss:$16 sps:$4 sm:$0xff]  }
 0x25b   : > { %3485 = vmatpush2.bf16.msra.mxu1 %v13595_v16  ;;  %3495 = vmatprep.subr.bf16.mxu0 %v13600_v17  ;;  %v13679_v16 = vld [vmem:[#allocation9 + $0x348] ss:$16 sps:$4 sm:$0xff]   ;;  %v13684_v17 = vld [vmem:[#allocation9 + $0x12c] ss:$16 sps:$4 sm:$0xff]  }
 0x25c   : > { %3536 = vmatprep.subr.bf16.mxu1 %v13603_v61  ;;  %v13682_v61 = vld [vmem:[#allocation9 + $0x128] ss:$16 sps:$4 sm:$0xff]  }
 0x25d   : > { %3446 = vmatmul.mubr.bf16.vlgmr.msra.gmra.mxu0 %v15852_v22 }
 0x25e   : > { %3487 = vmatmul.mubr.bf16.vlgmr.msra.gmra.mxu1 %v15854_v23  ;;  %3496 = vmatpush1.bf16.msra.mxu0 %v13598_v19  ;;  %v13690_v19 = vld [vmem:[#allocation9 + $0x10c] ss:$16 sps:$4 sm:$0xff]  }
 0x25f   : > { %3527 = vmatprep.mubr.bf16.mxu0 %v15842_v13  ;;  %3537 = vmatpush1.bf16.msra.mxu1 %v13601_v20  ;;  %v13622_v13 = vld [vmem:[#allocation9 + $0x68] ss:$16 sps:$4 sm:$0xff]  }
 0x260   : > { %3568 = vmatprep.mubr.bf16.mxu1 %v15846_v14  ;;  %3497 = vmatprep.subr.bf16.mxu0 %v13606_v21  ;;  %v13625_v14 = vld [vmem:[#allocation9 + $0x268] ss:$16 sps:$4 sm:$0xff]   ;;  %v13693_v21 = vld [vmem:[#allocation9 + $0x30c] ss:$16 sps:$4 sm:$0xff]  }
 0x261   : > { %3538 = vmatprep.subr.bf16.mxu1 %v13609_v27  ;;  %v13688_v20 = vld [vmem:[#allocation9 + $0x108] ss:$16 sps:$4 sm:$0xff]   ;;  %v13699_v27 = vld [vmem:[#allocation9 + $0xae4] ss:$16 sps:$4 sm:$0xff]  }
 0x262   : > { %3498 = vmatpush1.bf16.msra.mxu0 %v13604_v2  ;;  %v13691_v2 = vld [vmem:[#allocation9 + $0x308] ss:$16 sps:$4 sm:$0xff]  }
 0x263   : > { %3539 = vmatpush1.bf16.msra.mxu1 %v13607_v24  ;;  %3499 = vmatprep.subr.bf16.mxu0 %v13612_v5  ;;  %v13696_v24 = vld [vmem:[#allocation9 + $0x8e4] ss:$16 sps:$4 sm:$0xff]   ;;  %v13694_v5 = vld [vmem:[#allocation9 + $0x8e0] ss:$16 sps:$4 sm:$0xff]  }
 0x264   : > { %3540 = vmatprep.subr.bf16.mxu1 %v13615_v28  ;;  %v13697_v28 = vld [vmem:[#allocation9 + $0xae0] ss:$16 sps:$4 sm:$0xff]  }
 0x266   : > { %3500 = vmatpush1.bf16.msra.mxu0 %v13610_v30  ;;  %v13702_v30 = vld [vmem:[#allocation9 + $0x8c4] ss:$16 sps:$4 sm:$0xff]  }
 0x267   : > { %3541 = vmatpush1.bf16.msra.mxu1 %v13613_v31  ;;  %3501 = vmatprep.subr.bf16.mxu0 %v13618_v32  ;;  %v13700_v31 = vld [vmem:[#allocation9 + $0x8c0] ss:$16 sps:$4 sm:$0xff]  }
 0x268   : > { %3542 = vmatprep.subr.bf16.mxu1 %v13621_v34  ;;  %v15861_v34 = vld [vmem:[#allocation3 + $0x28] sm:$0xff] }
 0x26a   : > { %3502 = vmatpush1.bf16.msra.mxu0 %v13616_v33 }
 0x26b   : > { %3543 = vmatpush1.bf16.msra.mxu1 %v13619_v35  ;;  %3503 = vmatprep.subr.bf16.mxu0 %v13624_v36  ;;  %v15865_v35 = vcombine.high %v15861_v34, %v15861_v34  ;;  %v13703_v36 = vld [vmem:[#allocation9 + $0xac0] ss:$16 sps:$4 sm:$0xff]  }
 0x26c   : > { %3544 = vmatprep.subr.bf16.mxu1 %v13627_v37 }
 0x26e   : > { %3504 = vmatpush1.bf16.msra.mxu0 %v13622_v13  ;;  %v13705_v13 = vld [vmem:[#allocation9 + $0xac4] ss:$16 sps:$4 sm:$0xff]  }
 0x26f   : > { %3545 = vmatpush1.bf16.msra.mxu1 %v13625_v14  ;;  %3505 = vmatprep.subr.bf16.mxu0 %v13630_v38  ;;  %v15870_v14 = vld [vmem:[#allocation3 + $0x10] sm:$0xff]  ;;  %v13708_v38 = vld [vmem:[#allocation9 + $0x8a4] ss:$16 sps:$4 sm:$0xff]  }
 0x270   : > { %3546 = vmatprep.subr.bf16.mxu1 %v13633_v39 }
 0x272   : > { %3506 = vmatpush1.bf16.msra.mxu0 %v13628_v29  ;;  %v13711_v29 = vld [vmem:[#allocation9 + $0xaa4] ss:$16 sps:$4 sm:$0xff]  }
 0x273   : > { %3547 = vmatpush1.bf16.msra.mxu1 %v13631_v40  ;;  %3507 = vmatprep.subr.bf16.mxu0 %v13636_v41 }
 0x274   : > { %3548 = vmatprep.subr.bf16.mxu1 %v13639_v43  ;;  %v13706_v43 = vld [vmem:[#allocation9 + $0x8a0] ss:$16 sps:$4 sm:$0xff]  }
 0x276   : > { %3508 = vmatpush1.bf16.msra.mxu0 %v13634_v42 }
 0x277   : > { %3549 = vmatpush1.bf16.msra.mxu1 %v13637_v44  ;;  %3509 = vmatprep.subr.bf16.mxu0 %v13642_v45  ;;  %v13709_v44 = vld [vmem:[#allocation9 + $0xaa0] ss:$16 sps:$4 sm:$0xff]  }
 0x278   : > { %3550 = vmatprep.subr.bf16.mxu1 %v13645_v47  ;;  %v13714_v47 = vld [vmem:[#allocation9 + $0x884] ss:$16 sps:$4 sm:$0xff]  }
 0x27a   : > { %3510 = vmatpush1.bf16.msra.mxu0 %v13640_v46 }
 0x27b   : > { %3551 = vmatpush1.bf16.msra.mxu1 %v13643_v48  ;;  %3511 = vmatprep.subr.bf16.mxu0 %v13648_v49  ;;  %v13717_v48 = vld [vmem:[#allocation9 + $0xa84] ss:$16 sps:$4 sm:$0xff]   ;;  %v13712_v49 = vld [vmem:[#allocation9 + $0x880] ss:$16 sps:$4 sm:$0xff]  }
 0x27c   : > { %3552 = vmatprep.subr.bf16.mxu1 %v13651_v51  ;;  %v13720_v51 = vld [vmem:[#allocation9 + $0x864] ss:$16 sps:$4 sm:$0xff]  }
 0x27e   : > { %3512 = vmatpush2.bf16.msra.mxu0 %v13646_v50  ;;  %v13715_v50 = vld [vmem:[#allocation9 + $0xa80] ss:$16 sps:$4 sm:$0xff]  }
 0x27f   : > { %3553 = vmatpush2.bf16.msra.mxu1 %v13649_v52  ;;  %3513 = vmatprep.subr.bf16.mxu0 %v13654_v53  ;;  %v13718_v52 = vld [vmem:[#allocation9 + $0x860] ss:$16 sps:$4 sm:$0xff]   ;;  %v13723_v53 = vld [vmem:[#allocation9 + $0xa64] ss:$16 sps:$4 sm:$0xff]  }
 0x280   : > { %3554 = vmatprep.subr.bf16.mxu1 %v13657_v55  ;;  %v13726_v55 = vld [vmem:[#allocation9 + $0x844] ss:$16 sps:$4 sm:$0xff]  }
 0x282   : > { %3514 = vmatpush2.bf16.msra.mxu0 %v13652_v54  ;;  %v13721_v54 = vld [vmem:[#allocation9 + $0xa60] ss:$16 sps:$4 sm:$0xff]  }
 0x283   : > { %3555 = vmatpush2.bf16.msra.mxu1 %v13655_v58  ;;  %3515 = vmatprep.subr.bf16.mxu0 %v13660_v63  ;;  %v13724_v58 = vld [vmem:[#allocation9 + $0x840] ss:$16 sps:$4 sm:$0xff]   ;;  %v13729_v63 = vld [vmem:[#allocation9 + $0xa44] ss:$16 sps:$4 sm:$0xff]  }
 0x284   : > { %3556 = vmatprep.subr.bf16.mxu1 %v13663_v3  ;;  %v13732_v3 = vld [vmem:[#allocation9 + $0x824] ss:$16 sps:$4 sm:$0xff]  }
 0x286   : > { %3516 = vmatpush2.bf16.msra.mxu0 %v13658_v1  ;;  %v13727_v1 = vld [vmem:[#allocation9 + $0xa40] ss:$16 sps:$4 sm:$0xff]  }
 0x287   : > { %3557 = vmatpush2.bf16.msra.mxu1 %v13661_v4  ;;  %3517 = vmatprep.subr.bf16.mxu0 %v13666_v6  ;;  %v13730_v4 = vld [vmem:[#allocation9 + $0x820] ss:$16 sps:$4 sm:$0xff]   ;;  %v13735_v6 = vld [vmem:[#allocation9 + $0xa24] ss:$16 sps:$4 sm:$0xff]  }
 0x288   : > { %3558 = vmatprep.subr.bf16.mxu1 %v13669_v8  ;;  %v13738_v8 = vld [vmem:[#allocation9 + $0x804] ss:$16 sps:$4 sm:$0xff]  }
 0x28a   : > { %3518 = vmatpush2.bf16.msra.mxu0 %v13664_v7  ;;  %v13733_v7 = vld [vmem:[#allocation9 + $0xa20] ss:$16 sps:$4 sm:$0xff]  }
 0x28b   : > { %3559 = vmatpush2.bf16.msra.mxu1 %v13667_v9  ;;  %3519 = vmatprep.subr.bf16.mxu0 %v13672_v10  ;;  %v13736_v9 = vld [vmem:[#allocation9 + $0x800] ss:$16 sps:$4 sm:$0xff]   ;;  %v13741_v10 = vld [vmem:[#allocation9 + $0xa04] ss:$16 sps:$4 sm:$0xff]  }
 0x28c   : > { %3560 = vmatprep.subr.bf16.mxu1 %v13675_v12  ;;  %v13744_v12 = vld [vmem:[#allocation9 + $0x9e4] ss:$16 sps:$4 sm:$0xff]  }
 0x28e   : > { %3520 = vmatpush2.bf16.msra.mxu0 %v13670_v11  ;;  %v13739_v11 = vld [vmem:[#allocation9 + $0xa00] ss:$16 sps:$4 sm:$0xff]  }
 0x28f   : > { %3561 = vmatpush2.bf16.msra.mxu1 %v13673_v0  ;;  %3521 = vmatprep.subr.bf16.mxu0 %v13678_v15  ;;  %v13742_v0 = vld [vmem:[#allocation9 + $0x9e0] ss:$16 sps:$4 sm:$0xff]   ;;  %v13747_v15 = vld [vmem:[#allocation9 + $0xbe4] ss:$16 sps:$4 sm:$0xff]  }
 0x290   : > { %3562 = vmatprep.subr.bf16.mxu1 %v13681_v26  ;;  %v13750_v26 = vld [vmem:[#allocation9 + $0x9c4] ss:$16 sps:$4 sm:$0xff]  }
 0x292   : > { %3522 = vmatpush2.bf16.msra.mxu0 %v13676_v25  ;;  %v13745_v25 = vld [vmem:[#allocation9 + $0xbe0] ss:$16 sps:$4 sm:$0xff]  }
 0x293   : > { %3563 = vmatpush2.bf16.msra.mxu1 %v13679_v16  ;;  %3523 = vmatprep.subr.bf16.mxu0 %v13684_v17  ;;  %v13748_v16 = vld [vmem:[#allocation9 + $0x9c0] ss:$16 sps:$4 sm:$0xff]   ;;  %v13753_v17 = vld [vmem:[#allocation9 + $0xbc4] ss:$16 sps:$4 sm:$0xff]  }
 0x294   : > { %3564 = vmatprep.subr.bf16.mxu1 %v13687_v62  ;;  %v13756_v62 = vld [vmem:[#allocation9 + $0x9a4] ss:$16 sps:$4 sm:$0xff]  }
 0x296   : > { %3524 = vmatpush2.bf16.msra.mxu0 %v13682_v61  ;;  %v13751_v61 = vld [vmem:[#allocation9 + $0xbc0] ss:$16 sps:$4 sm:$0xff]  }
 0x297   : > { %3565 = vmatpush2.bf16.msra.mxu1 %v13685_v18  ;;  %3525 = vmatprep.subr.bf16.mxu0 %v13690_v19  ;;  %v13754_v18 = vld [vmem:[#allocation9 + $0x9a0] ss:$16 sps:$4 sm:$0xff]   ;;  %v13759_v19 = vld [vmem:[#allocation9 + $0xba4] ss:$16 sps:$4 sm:$0xff]  }
 0x298   : > { %3566 = vmatprep.subr.bf16.mxu1 %v13693_v21  ;;  %v13762_v21 = vld [vmem:[#allocation9 + $0x984] ss:$16 sps:$4 sm:$0xff]  }
 0x29a   : > { %3526 = vmatpush2.bf16.msra.mxu0 %v13688_v20  ;;  %v13757_v20 = vld [vmem:[#allocation9 + $0xba0] ss:$16 sps:$4 sm:$0xff]  }
 0x29b   : > { %3567 = vmatpush2.bf16.msra.mxu1 %v13691_v2  ;;  %4354 = vmatprep.subr.bf16.mxu0 %v13696_v24  ;;  %v13760_v2 = vld [vmem:[#allocation9 + $0x980] ss:$16 sps:$4 sm:$0xff]   ;;  %v13765_v24 = vld [vmem:[#allocation9 + $0xb84] ss:$16 sps:$4 sm:$0xff]  }
 0x29c   : > { %4395 = vmatprep.subr.bf16.mxu1 %v13699_v27  ;;  %v13763_v27 = vld [vmem:[#allocation9 + $0xb80] ss:$16 sps:$4 sm:$0xff]  }
 0x29d   : > { %3528 = vmatmul.mubr.bf16.vlgmr.msra.gmra.mxu0 %v15852_v22  ;;  %v2625_v32 = vpop.f32.mrf.mxu0  ;;  %v2666_v33 = vpop.f32.mrf.mxu1  ;;  %v15874_v22 = vcombine.high %v15870_v14, %v15870_v14 }
 0x29e   : > { %3569 = vmatmul.mubr.bf16.vlgmr.msra.gmra.mxu1 %v15854_v23  ;;  %v15868_v37 = vadd.f32 %v2666_v33, %v2625_v32  ;;  %4355 = vmatpush1.bf16.msra.mxu0 %v13694_v5  ;;  %v13768_v5 = vld [vmem:[#allocation9 + $0x964] ss:$16 sps:$4 sm:$0xff]   ;;  %v13772_v33 = vld [vmem:[#allocation9 + $0x940] ss:$16 sps:$4 sm:$0xff]  }
 0x29f   : > { %4386 = vmatprep.mubr.bf16.mxu0 %v15865_v35  ;;  %4396 = vmatpush1.bf16.msra.mxu1 %v13697_v28  ;;  %v2627_v39 = vpop.f32.mrf.mxu0  ;;  %v2668_v40 = vpop.f32.mrf.mxu1  ;;  %v13766_v28 = vld [vmem:[#allocation9 + $0x960] ss:$16 sps:$4 sm:$0xff]   ;;  %v13774_v32 = vld [vmem:[#allocation9 + $0x944] ss:$16 sps:$4 sm:$0xff]  }
 0x2a0   : > { %4427 = vmatprep.mubr.bf16.mxu1 %v15874_v22  ;;  %v15878_v41 = vadd.f32 %v2668_v40, %v2627_v39  ;;  %4356 = vmatprep.subr.bf16.mxu0 %v13702_v30  ;;  %v13771_v30 = vld [vmem:[#allocation9 + $0xb64] ss:$16 sps:$4 sm:$0xff]   ;;  %v13781_v40 = vld [vmem:[#allocation9 + $0xb20] ss:$16 sps:$4 sm:$0xff]  }
 0x2a1   : > { %4397 = vmatprep.subr.bf16.mxu1 %v13705_v13  ;;  %v2629_v23 = vpop.f32.mrf.mxu0  ;;  %v2670_v42 = vpop.f32.mrf.mxu1  ;;  %v13775_v13 = vld [vmem:[#allocation9 + $0xb40] ss:$16 sps:$4 sm:$0xff]   ;;  %v13783_v39 = vld [vmem:[#allocation9 + $0xb24] ss:$16 sps:$4 sm:$0xff]  }
 0x2a2   : > { %4357 = vmatpush1.bf16.msra.mxu0 %v13700_v31  ;;  %v13769_v31 = vld [vmem:[#allocation9 + $0xb60] ss:$16 sps:$4 sm:$0xff]   ;;  %v13786_v23 = vld [vmem:[#allocation9 + $0x904] ss:$16 sps:$4 sm:$0xff]  }
 0x2a3   : > { %4398 = vmatpush1.bf16.msra.mxu1 %v13703_v36  ;;  %v2630_v45 = vpop.f32.mrf.mxu0  ;;  %v2671_v46 = vpop.f32.mrf.mxu1  ;;  %4358 = vmatprep.subr.bf16.mxu0 %v13708_v38  ;;  %v13777_v36 = vld [vmem:[#allocation9 + $0xb44] ss:$16 sps:$4 sm:$0xff]   ;;  %v13784_v42 = vld [vmem:[#allocation9 + $0x900] ss:$16 sps:$4 sm:$0xff]  }
 0x2a4   : > { %4399 = vmatprep.subr.bf16.mxu1 %v13711_v29  ;;  %v13780_v38 = vld [vmem:[#allocation9 + $0x924] ss:$16 sps:$4 sm:$0xff]   ;;  %v13778_v29 = vld [vmem:[#allocation9 + $0x920] ss:$16 sps:$4 sm:$0xff]   ;;  %v13792_v45 = vld [vmem:[#allocation9 + $0x8ec] ss:$16 sps:$4 sm:$0xff]  }
 0x2a5   : > { %v13795_v46 = vld [vmem:[#allocation9 + $0xaec] ss:$16 sps:$4 sm:$0xff]  }
 0x2a6   : > { %4359 = vmatpush1.bf16.msra.mxu0 %v13706_v43  ;;  %v13789_v43 = vld [vmem:[#allocation9 + $0xb04] ss:$16 sps:$4 sm:$0xff]  }
 0x2a7   : > { %4400 = vmatpush1.bf16.msra.mxu1 %v13709_v44  ;;  %4360 = vmatprep.subr.bf16.mxu0 %v13714_v47  ;;  %v13787_v44 = vld [vmem:[#allocation9 + $0xb00] ss:$16 sps:$4 sm:$0xff]   ;;  %v13790_v47 = vld [vmem:[#allocation9 + $0x8e8] ss:$16 sps:$4 sm:$0xff]  }
 0x2a8   : > { %4401 = vmatprep.subr.bf16.mxu1 %v13717_v48  ;;  %v13793_v48 = vld [vmem:[#allocation9 + $0xae8] ss:$16 sps:$4 sm:$0xff]  }
 0x2aa   : > { %4361 = vmatpush1.bf16.msra.mxu0 %v13712_v49  ;;  %v13798_v49 = vld [vmem:[#allocation9 + $0x8cc] ss:$16 sps:$4 sm:$0xff]  }
 0x2ab   : > { %4402 = vmatpush1.bf16.msra.mxu1 %v13715_v50  ;;  %4362 = vmatprep.subr.bf16.mxu0 %v13720_v51  ;;  %v15882_v50 = vcombine.low %v15861_v34, %v15861_v34  ;;  %v13801_v51 = vld [vmem:[#allocation9 + $0xacc] ss:$16 sps:$4 sm:$0xff]  }
 0x2ac   : > { %4403 = vmatprep.subr.bf16.mxu1 %v13723_v53 }
 0x2ae   : > { %4363 = vmatpush1.bf16.msra.mxu0 %v13718_v52  ;;  %v15886_v52 = vcombine.low %v15870_v14, %v15870_v14  ;;  %v13807_v14 = vld [vmem:[#allocation9 + $0xaac] ss:$16 sps:$4 sm:$0xff]  }
 0x2af   : > { %4404 = vmatpush1.bf16.msra.mxu1 %v13721_v54  ;;  %4364 = vmatprep.subr.bf16.mxu0 %v13726_v55 }
 0x2b0   : > { %4405 = vmatprep.subr.bf16.mxu1 %v13729_v63  ;;  %v13799_v63 = vld [vmem:[#allocation9 + $0xac8] ss:$16 sps:$4 sm:$0xff]  }
 0x2b2   : > { %4365 = vmatpush1.bf16.msra.mxu0 %v13724_v58  ;;  %v13796_v58 = vld [vmem:[#allocation9 + $0x8c8] ss:$16 sps:$4 sm:$0xff]  }
 0x2b3   : > { %4406 = vmatpush1.bf16.msra.mxu1 %v13727_v1  ;;  %4366 = vmatprep.subr.bf16.mxu0 %v13732_v3  ;;  %v13804_v3 = vld [vmem:[#allocation9 + $0x8ac] ss:$16 sps:$4 sm:$0xff]  }
 0x2b4   : > { %4407 = vmatprep.subr.bf16.mxu1 %v13735_v6 }
 0x2b6   : > { %4367 = vmatpush1.bf16.msra.mxu0 %v13730_v4 }
 0x2b7   : > { %4408 = vmatpush1.bf16.msra.mxu1 %v13733_v7  ;;  %4368 = vmatprep.subr.bf16.mxu0 %v13738_v8  ;;  %v13802_v8 = vld [vmem:[#allocation9 + $0x8a8] ss:$16 sps:$4 sm:$0xff]  }
 0x2b8   : > { %4409 = vmatprep.subr.bf16.mxu1 %v13741_v10 }
 0x2ba   : > { %4369 = vmatpush1.bf16.msra.mxu0 %v13736_v9  ;;  %v13805_v9 = vld [vmem:[#allocation9 + $0xaa8] ss:$16 sps:$4 sm:$0xff]  }
 0x2bb   : > { %4410 = vmatpush1.bf16.msra.mxu1 %v13739_v11  ;;  %4370 = vmatprep.subr.bf16.mxu0 %v13744_v12  ;;  %v13813_v12 = vld [vmem:[#allocation9 + $0xa8c] ss:$16 sps:$4 sm:$0xff]  }
 0x2bc   : > { %4411 = vmatprep.subr.bf16.mxu1 %v13747_v15  ;;  %v13816_v15 = vld [vmem:[#allocation9 + $0x86c] ss:$16 sps:$4 sm:$0xff]  }
 0x2be   : > { %4371 = vmatpush2.bf16.msra.mxu0 %v13742_v0  ;;  %v13808_v0 = vld [vmem:[#allocation9 + $0x888] ss:$16 sps:$4 sm:$0xff]  }
 0x2bf   : > { %4412 = vmatpush2.bf16.msra.mxu1 %v13745_v25  ;;  %4372 = vmatprep.subr.bf16.mxu0 %v13750_v26  ;;  %v13814_v25 = vld [vmem:[#allocation9 + $0x868] ss:$16 sps:$4 sm:$0xff]   ;;  %v13819_v26 = vld [vmem:[#allocation9 + $0xa6c] ss:$16 sps:$4 sm:$0xff]  }
 0x2c0   : > { %4413 = vmatprep.subr.bf16.mxu1 %v13753_v17  ;;  %v13822_v17 = vld [vmem:[#allocation9 + $0x84c] ss:$16 sps:$4 sm:$0xff]  }
 0x2c2   : > { %4373 = vmatpush2.bf16.msra.mxu0 %v13748_v16  ;;  %v13817_v16 = vld [vmem:[#allocation9 + $0xa68] ss:$16 sps:$4 sm:$0xff]  }
 0x2c3   : > { %4414 = vmatpush2.bf16.msra.mxu1 %v13751_v61  ;;  %4374 = vmatprep.subr.bf16.mxu0 %v13756_v62  ;;  %v13820_v61 = vld [vmem:[#allocation9 + $0x848] ss:$16 sps:$4 sm:$0xff]   ;;  %v13825_v62 = vld [vmem:[#allocation9 + $0xa4c] ss:$16 sps:$4 sm:$0xff]  }
 0x2c4   : > { %4415 = vmatprep.subr.bf16.mxu1 %v13759_v19  ;;  %v13828_v19 = vld [vmem:[#allocation9 + $0x82c] ss:$16 sps:$4 sm:$0xff]  }
 0x2c6   : > { %4375 = vmatpush2.bf16.msra.mxu0 %v13754_v18  ;;  %v13823_v18 = vld [vmem:[#allocation9 + $0xa48] ss:$16 sps:$4 sm:$0xff]  }
 0x2c7   : > { %4416 = vmatpush2.bf16.msra.mxu1 %v13757_v20  ;;  %4376 = vmatprep.subr.bf16.mxu0 %v13762_v21  ;;  %v13826_v20 = vld [vmem:[#allocation9 + $0x828] ss:$16 sps:$4 sm:$0xff]   ;;  %v13831_v21 = vld [vmem:[#allocation9 + $0xa2c] ss:$16 sps:$4 sm:$0xff]  }
 0x2c8   : > { %4417 = vmatprep.subr.bf16.mxu1 %v13765_v24  ;;  %v13834_v24 = vld [vmem:[#allocation9 + $0x80c] ss:$16 sps:$4 sm:$0xff]  }
 0x2ca   : > { %4377 = vmatpush2.bf16.msra.mxu0 %v13760_v2  ;;  %v13829_v2 = vld [vmem:[#allocation9 + $0xa28] ss:$16 sps:$4 sm:$0xff]  }
 0x2cb   : > { %4418 = vmatpush2.bf16.msra.mxu1 %v13763_v27  ;;  %4378 = vmatprep.subr.bf16.mxu0 %v13768_v5  ;;  %v13832_v27 = vld [vmem:[#allocation9 + $0x808] ss:$16 sps:$4 sm:$0xff]   ;;  %v13837_v5 = vld [vmem:[#allocation9 + $0xa0c] ss:$16 sps:$4 sm:$0xff]  }
 0x2cc   : > { %4419 = vmatprep.subr.bf16.mxu1 %v13771_v30  ;;  %v13840_v30 = vld [vmem:[#allocation9 + $0x9ec] ss:$16 sps:$4 sm:$0xff]  }
 0x2ce   : > { %4379 = vmatpush2.bf16.msra.mxu0 %v13766_v28  ;;  %v13835_v28 = vld [vmem:[#allocation9 + $0xa08] ss:$16 sps:$4 sm:$0xff]  }
 0x2cf   : > { %4420 = vmatpush2.bf16.msra.mxu1 %v13769_v31  ;;  %4380 = vmatprep.subr.bf16.mxu0 %v13774_v32  ;;  %v13838_v31 = vld [vmem:[#allocation9 + $0x9e8] ss:$16 sps:$4 sm:$0xff]   ;;  %v13843_v32 = vld [vmem:[#allocation9 + $0xbec] ss:$16 sps:$4 sm:$0xff]  }
 0x2d0   : > { %4421 = vmatprep.subr.bf16.mxu1 %v13777_v36  ;;  %v13846_v36 = vld [vmem:[#allocation9 + $0x9cc] ss:$16 sps:$4 sm:$0xff]  }
 0x2d2   : > { %4381 = vmatpush2.bf16.msra.mxu0 %v13772_v33  ;;  %v13841_v33 = vld [vmem:[#allocation9 + $0xbe8] ss:$16 sps:$4 sm:$0xff]  }
 0x2d3   : > { %4422 = vmatpush2.bf16.msra.mxu1 %v13775_v13  ;;  %4382 = vmatprep.subr.bf16.mxu0 %v13780_v38  ;;  %v13844_v13 = vld [vmem:[#allocation9 + $0x9c8] ss:$16 sps:$4 sm:$0xff]   ;;  %v13849_v38 = vld [vmem:[#allocation9 + $0xbcc] ss:$16 sps:$4 sm:$0xff]  }
 0x2d4   : > { %4423 = vmatprep.subr.bf16.mxu1 %v13783_v39  ;;  %v13852_v39 = vld [vmem:[#allocation9 + $0x9ac] ss:$16 sps:$4 sm:$0xff]  }
 0x2d6   : > { %4383 = vmatpush2.bf16.msra.mxu0 %v13778_v29  ;;  %v13847_v29 = vld [vmem:[#allocation9 + $0xbc8] ss:$16 sps:$4 sm:$0xff]  }
 0x2d7   : > { %4424 = vmatpush2.bf16.msra.mxu1 %v13781_v40  ;;  %4384 = vmatprep.subr.bf16.mxu0 %v13786_v23  ;;  %v13850_v40 = vld [vmem:[#allocation9 + $0x9a8] ss:$16 sps:$4 sm:$0xff]   ;;  %v13855_v23 = vld [vmem:[#allocation9 + $0xbac] ss:$16 sps:$4 sm:$0xff]  }
 0x2d8   : > { %4425 = vmatprep.subr.bf16.mxu1 %v13789_v43  ;;  %v13858_v43 = vld [vmem:[#allocation9 + $0x98c] ss:$16 sps:$4 sm:$0xff]  }
 0x2da   : > { %4385 = vmatpush2.bf16.msra.mxu0 %v13784_v42  ;;  %v13853_v42 = vld [vmem:[#allocation9 + $0xba8] ss:$16 sps:$4 sm:$0xff]  }
 0x2db   : > { %4426 = vmatpush2.bf16.msra.mxu1 %v13787_v44  ;;  %4436 = vmatprep.subr.bf16.mxu0 %v13792_v45  ;;  %v13856_v44 = vld [vmem:[#allocation9 + $0x988] ss:$16 sps:$4 sm:$0xff]   ;;  %v13861_v45 = vld [vmem:[#allocation9 + $0xb8c] ss:$16 sps:$4 sm:$0xff]  }
 0x2dc   : > { %4477 = vmatprep.subr.bf16.mxu1 %v13795_v46  ;;  %v13859_v46 = vld [vmem:[#allocation9 + $0xb88] ss:$16 sps:$4 sm:$0xff]  }
 0x2dd   : > { %v2707_v53 = vpop.f32.mrf.mxu0  ;;  %v2748_v54 = vpop.f32.mrf.mxu1  ;;  %4387 = vmatmul.mubr.bf16.vlgmr.msra.gmra.mxu0 %v15882_v50 }
 0x2de   : > { %v15889_v55 = vadd.f32 %v2748_v54, %v2707_v53  ;;  %4428 = vmatmul.mubr.bf16.vlgmr.msra.gmra.mxu1 %v15886_v52  ;;  %4437 = vmatpush1.bf16.msra.mxu0 %v13790_v47  ;;  %v13864_v47 = vld [vmem:[#allocation9 + $0x96c] ss:$16 sps:$4 sm:$0xff]   ;;  %v13868_v54 = vld [vmem:[#allocation9 + $0x948] ss:$16 sps:$4 sm:$0xff]  }
 0x2df   : > { %4468 = vmatprep.mubr.bf16.mxu0 %v15865_v35  ;;  %4478 = vmatpush1.bf16.msra.mxu1 %v13793_v48  ;;  %v2709_v34 = vpop.f32.mrf.mxu0  ;;  %v2750_v1 = vpop.f32.mrf.mxu1  ;;  %v13810_v35 = vld [vmem:[#allocation9 + $0x88c] ss:$16 sps:$4 sm:$0xff]   ;;  %v13862_v48 = vld [vmem:[#allocation9 + $0x968] ss:$16 sps:$4 sm:$0xff]  }
 0x2e0   : > { %4509 = vmatprep.mubr.bf16.mxu1 %v15874_v22  ;;  %v15894_v4 = vadd.f32 %v2750_v1, %v2709_v34  ;;  %4438 = vmatprep.subr.bf16.mxu0 %v13798_v49  ;;  %v13811_v22 = vld [vmem:[#allocation9 + $0xa88] ss:$16 sps:$4 sm:$0xff]   ;;  %v13867_v49 = vld [vmem:[#allocation9 + $0xb6c] ss:$16 sps:$4 sm:$0xff]   ;;  %v15898_v34 = vld [vmem:[#allocation3 + $0x8] sm:$0x11] }
 0x2e1   : > { %v2711_v6 = vpop.f32.mrf.mxu0  ;;  %v2752_v7 = vpop.f32.mrf.mxu1  ;;  %4479 = vmatprep.subr.bf16.mxu1 %v13801_v51  ;;  %v13865_v51 = vld [vmem:[#allocation9 + $0xb68] ss:$16 sps:$4 sm:$0xff]   ;;  %v13870_v53 = vld [vmem:[#allocation9 + $0x94c] ss:$16 sps:$4 sm:$0xff]  }
 0x2e2   : > { %4439 = vmatpush1.bf16.msra.mxu0 %v13796_v58  ;;  %v13873_v58 = vld [vmem:[#allocation9 + $0xb4c] ss:$16 sps:$4 sm:$0xff]   ;;  %v13874_v7 = vld [vmem:[#allocation9 + $0x928] ss:$16 sps:$4 sm:$0xff]  }
 0x2e3   : > { %4480 = vmatpush1.bf16.msra.mxu1 %v13799_v63  ;;  %v2712_v10 = vpop.f32.mrf.mxu0  ;;  %v2753_v11 = vpop.f32.mrf.mxu1  ;;  %4440 = vmatprep.subr.bf16.mxu0 %v13804_v3  ;;  %v15896_v63 = vld [vmem:[#allocation3 + $0x28] sm:$0xff]  ;;  %v15900_v1 = vld [vmem:[#allocation3] sm:$0x11]  ;;  %v15902_v6 = vld [vmem:[#allocation3 + $0x10] sm:$0xff] }
 0x2e4   : > { %4481 = vmatprep.subr.bf16.mxu1 %v13807_v14  ;;  %v13871_v3 = vld [vmem:[#allocation9 + $0xb48] ss:$16 sps:$4 sm:$0xff]   ;;  %v13876_v14 = vld [vmem:[#allocation9 + $0x92c] ss:$16 sps:$4 sm:$0xff]   ;;  %v12079_v10 = vcombine.high %v15902_v6, %v15900_v1 }
 0x2e5   : > { %v13877_v11 = vld [vmem:[#allocation9 + $0xb28] ss:$16 sps:$4 sm:$0xff]  }
 0x2e6   : > { %4441 = vmatpush1.bf16.msra.mxu0 %v13802_v8  ;;  %v13879_v8 = vld [vmem:[#allocation9 + $0xb2c] ss:$16 sps:$4 sm:$0xff]  }
 0x2e7   : > { %4482 = vmatpush1.bf16.msra.mxu1 %v13805_v9  ;;  %4442 = vmatprep.subr.bf16.mxu0 %v13810_v35  ;;  %v12077_v9 = vcombine.high %v15896_v63, %v15898_v34  ;;  %v13882_v35 = vld [vmem:[#allocation9 + $0x90c] ss:$16 sps:$4 sm:$0xff]  }
 0x2e8   : > { %4483 = vmatprep.subr.bf16.mxu1 %v13813_v12  ;;  %v13880_v12 = vld [vmem:[#allocation9 + $0x908] ss:$16 sps:$4 sm:$0xff]  }
 0x2ea   : > { %4443 = vmatpush1.bf16.msra.mxu0 %v13808_v0  ;;  %v13885_v0 = vld [vmem:[#allocation9 + $0xb0c] ss:$16 sps:$4 sm:$0xff]  }
 0x2eb   : > { %4484 = vmatpush1.bf16.msra.mxu1 %v13811_v22  ;;  %4444 = vmatprep.subr.bf16.mxu0 %v13816_v15  ;;  %v4681_v22 = vshll.u32 %v12077_v9, 16  ;;  %v4695_v15 = vshll.u32 %v12079_v10, 16 }
 0x2ec   : > { %4485 = vmatprep.subr.bf16.mxu1 %v13819_v26  ;;  %v13888_v26 = vld [vmem:[#allocation9 + $0xce4] ss:$16 sps:$4 sm:$0xff]  }
 0x2ee   : > { %4445 = vmatpush1.bf16.msra.mxu0 %v13814_v25  ;;  %v13883_v25 = vld [vmem:[#allocation9 + $0xb08] ss:$16 sps:$4 sm:$0xff]  }
 0x2ef   : > { %4486 = vmatpush1.bf16.msra.mxu1 %v13817_v16  ;;  %4446 = vmatprep.subr.bf16.mxu0 %v13822_v17  ;;  %v13891_v16 = vld [vmem:[#allocation9 + $0xee4] ss:$16 sps:$4 sm:$0xff]   ;;  %v13886_v17 = vld [vmem:[#allocation9 + $0xce0] ss:$16 sps:$4 sm:$0xff]  }
 0x2f0   : > { %4487 = vmatprep.subr.bf16.mxu1 %v13825_v62  ;;  %v4683_v62 = vrot.slane %v4681_v22, 1  ;;  %v13936_v22 = vld [vmem:[#allocation9 + $0xde0] ss:$16 sps:$4 sm:$0xff]  }
 0x2f2   : > { %4447 = vmatpush1.bf16.msra.mxu0 %v13820_v61  ;;  %v13889_v61 = vld [vmem:[#allocation9 + $0xee0] ss:$16 sps:$4 sm:$0xff]  }
 0x2f3   : > { %4488 = vmatpush1.bf16.msra.mxu1 %v13823_v18  ;;  %4448 = vmatprep.subr.bf16.mxu0 %v13828_v19  ;;  %v4697_v18 = vrot.slane %v4695_v15, 1  ;;  %v13896_v19 = vld [vmem:[#allocation9 + $0xcc4] ss:$16 sps:$4 sm:$0xff]  }
 0x2f4   : > { %4489 = vmatprep.subr.bf16.mxu1 %v13831_v21  ;;  %v13899_v21 = vld [vmem:[#allocation9 + $0xec4] ss:$16 sps:$4 sm:$0xff]  }
 0x2f5   : > { %v13941_v15 = vld [vmem:[#allocation9 + $0xfe4] ss:$16 sps:$4 sm:$0xff]  }
 0x2f6   : > { %4449 = vmatpush1.bf16.msra.mxu0 %v13826_v20  ;;  %v4679_v20 = vshrl.u32 %v12077_v9, 16  ;;  %v13927_v9 = vld [vmem:[#allocation9 + $0xe20] ss:$16 sps:$4 sm:$0xff]  }
 0x2f7   : > { %4490 = vmatpush1.bf16.msra.mxu1 %v13829_v2  ;;  %4450 = vmatprep.subr.bf16.mxu0 %v13834_v24  ;;  %v4693_v2 = vshrl.u32 %v12079_v10, 16  ;;  %v13932_v10 = vld [vmem:[#allocation9 + $0xc04] ss:$16 sps:$4 sm:$0xff]  }
 0x2f8   : > { %4491 = vmatprep.subr.bf16.mxu1 %v13837_v5 }
 0x2fa   : > { %4451 = vmatpush1.bf16.msra.mxu0 %v13832_v27  ;;  %v15909_v27 = vor.u32 %v4683_v62, %v4679_v20  ;;  %v13950_v62 = vld [vmem:[#allocation9 + $0xda4] ss:$16 sps:$4 sm:$0xff]   ;;  %v13951_v20 = vld [vmem:[#allocation9 + $0xfa0] ss:$16 sps:$4 sm:$0xff]  }
 0x2fb   : > { %4492 = vmatpush1.bf16.msra.mxu1 %v13835_v28  ;;  %4452 = vmatprep.subr.bf16.mxu0 %v13840_v30  ;;  %v15913_v30 = vor.u32 %v4697_v18, %v4693_v2  ;;  %v13948_v18 = vld [vmem:[#allocation9 + $0xda0] ss:$16 sps:$4 sm:$0xff]  }
 0x2fc   : > { %4493 = vmatprep.subr.bf16.mxu1 %v13843_v32  ;;  %v13897_v32 = vld [vmem:[#allocation9 + $0xec0] ss:$16 sps:$4 sm:$0xff]  }
 0x2fd   : > { %v13954_v2 = vld [vmem:[#allocation9 + $0xd80] ss:$16 sps:$4 sm:$0xff]  }
 0x2fe   : > { %4453 = vmatpush2.bf16.msra.mxu0 %v13838_v31  ;;  %v13894_v31 = vld [vmem:[#allocation9 + $0xcc0] ss:$16 sps:$4 sm:$0xff]  }
 0x2ff   : > { %4494 = vmatpush2.bf16.msra.mxu1 %v13841_v33  ;;  %4454 = vmatprep.subr.bf16.mxu0 %v13846_v36  ;;  %v13902_v36 = vld [vmem:[#allocation9 + $0xca4] ss:$16 sps:$4 sm:$0xff]  }
 0x300   : > { %4495 = vmatprep.subr.bf16.mxu1 %v13849_v38 }
 0x302   : > { %4455 = vmatpush2.bf16.msra.mxu0 %v13844_v13  ;;  %v13905_v13 = vld [vmem:[#allocation9 + $0xea4] ss:$16 sps:$4 sm:$0xff]  }
 0x303   : > { %4496 = vmatpush2.bf16.msra.mxu1 %v13847_v29  ;;  %4456 = vmatprep.subr.bf16.mxu0 %v13852_v39 }
 0x304   : > { %4497 = vmatprep.subr.bf16.mxu1 %v13855_v23 }
 0x306   : > { %4457 = vmatpush2.bf16.msra.mxu0 %v13850_v40 }
 0x307   : > { %4498 = vmatpush2.bf16.msra.mxu1 %v13853_v42  ;;  %4458 = vmatprep.subr.bf16.mxu0 %v13858_v43  ;;  %v13903_v42 = vld [vmem:[#allocation9 + $0xea0] ss:$16 sps:$4 sm:$0xff]   ;;  %v13908_v43 = vld [vmem:[#allocation9 + $0xc84] ss:$16 sps:$4 sm:$0xff]  }
 0x308   : > { %4499 = vmatprep.subr.bf16.mxu1 %v13861_v45  ;;  %v13911_v45 = vld [vmem:[#allocation9 + $0xe84] ss:$16 sps:$4 sm:$0xff]  }
 0x30a   : > { %4459 = vmatpush2.bf16.msra.mxu0 %v13856_v44 }
 0x30b   : > { %4500 = vmatpush2.bf16.msra.mxu1 %v13859_v46  ;;  %4460 = vmatprep.subr.bf16.mxu0 %v13864_v47  ;;  %v13906_v46 = vld [vmem:[#allocation9 + $0xc80] ss:$16 sps:$4 sm:$0xff]   ;;  %v13914_v47 = vld [vmem:[#allocation9 + $0xc64] ss:$16 sps:$4 sm:$0xff]  }
 0x30c   : > { %4501 = vmatprep.subr.bf16.mxu1 %v13867_v49  ;;  %v13917_v49 = vld [vmem:[#allocation9 + $0xe64] ss:$16 sps:$4 sm:$0xff]  }
 0x30e   : > { %4461 = vmatpush2.bf16.msra.mxu0 %v13862_v48  ;;  %v13912_v48 = vld [vmem:[#allocation9 + $0xc60] ss:$16 sps:$4 sm:$0xff]  }
 0x30f   : > { %4502 = vmatpush2.bf16.msra.mxu1 %v13865_v51  ;;  %4462 = vmatprep.subr.bf16.mxu0 %v13870_v53  ;;  %v13915_v51 = vld [vmem:[#allocation9 + $0xe60] ss:$16 sps:$4 sm:$0xff]   ;;  %v13920_v53 = vld [vmem:[#allocation9 + $0xc44] ss:$16 sps:$4 sm:$0xff]  }
 0x310   : > { %4503 = vmatprep.subr.bf16.mxu1 %v13873_v58  ;;  %v13923_v58 = vld [vmem:[#allocation9 + $0xe44] ss:$16 sps:$4 sm:$0xff]  }
 0x312   : > { %4463 = vmatpush2.bf16.msra.mxu0 %v13868_v54  ;;  %v13918_v54 = vld [vmem:[#allocation9 + $0xc40] ss:$16 sps:$4 sm:$0xff]  }
 0x313   : > { %4504 = vmatpush2.bf16.msra.mxu1 %v13871_v3  ;;  %4464 = vmatprep.subr.bf16.mxu0 %v13876_v14  ;;  %v13921_v3 = vld [vmem:[#allocation9 + $0xe40] ss:$16 sps:$4 sm:$0xff]   ;;  %v13926_v14 = vld [vmem:[#allocation9 + $0xc24] ss:$16 sps:$4 sm:$0xff]  }
 0x314   : > { %4505 = vmatprep.subr.bf16.mxu1 %v13879_v8  ;;  %v13929_v8 = vld [vmem:[#allocation9 + $0xe24] ss:$16 sps:$4 sm:$0xff]  }
 0x316   : > { %4465 = vmatpush2.bf16.msra.mxu0 %v13874_v7  ;;  %v13924_v7 = vld [vmem:[#allocation9 + $0xc20] ss:$16 sps:$4 sm:$0xff]  }
 0x317   : > { %4506 = vmatpush2.bf16.msra.mxu1 %v13877_v11  ;;  %4466 = vmatprep.subr.bf16.mxu0 %v13882_v35  ;;  %v13930_v11 = vld [vmem:[#allocation9 + $0xc00] ss:$16 sps:$4 sm:$0xff]   ;;  %v13935_v35 = vld [vmem:[#allocation9 + $0xe04] ss:$16 sps:$4 sm:$0xff]  }
 0x318   : > { %4507 = vmatprep.subr.bf16.mxu1 %v13885_v0  ;;  %v13938_v0 = vld [vmem:[#allocation9 + $0xde4] ss:$16 sps:$4 sm:$0xff]  }
 0x31a   : > { %4467 = vmatpush2.bf16.msra.mxu0 %v13880_v12  ;;  %v13933_v12 = vld [vmem:[#allocation9 + $0xe00] ss:$16 sps:$4 sm:$0xff]  }
 0x31b   : > { %4508 = vmatpush2.bf16.msra.mxu1 %v13883_v25  ;;  %5343 = vmatprep.subr.bf16.mxu0 %v13888_v26  ;;  %v13939_v25 = vld [vmem:[#allocation9 + $0xfe0] ss:$16 sps:$4 sm:$0xff]   ;;  %v13944_v26 = vld [vmem:[#allocation9 + $0xdc4] ss:$16 sps:$4 sm:$0xff]  }
 0x31c   : > { %5384 = vmatprep.subr.bf16.mxu1 %v13891_v16  ;;  %v13942_v16 = vld [vmem:[#allocation9 + $0xdc0] ss:$16 sps:$4 sm:$0xff]  }
 0x31d   : > { %v3447_v24 = vpop.f32.mrf.mxu0  ;;  %4469 = vmatmul.mubr.bf16.vlgmr.msra.gmra.mxu0 %v15882_v50 }
 0x31e   : > { %v3448_v5 = vadd.f32 %v3447_v24, %v15868_v37  ;;  %v3488_v28 = vpop.f32.mrf.mxu1  ;;  %4510 = vmatmul.mubr.bf16.vlgmr.msra.gmra.mxu1 %v15886_v52  ;;  %5344 = vmatpush1.bf16.msra.mxu0 %v13886_v17  ;;  %v13900_v52 = vld [vmem:[#allocation9 + $0xca0] ss:$16 sps:$4 sm:$0xff]   ;;  %v13947_v17 = vld [vmem:[#allocation9 + $0xfc4] ss:$16 sps:$4 sm:$0xff]  }
 0x31f   : > { %5375 = vmatprep.mubr.bf16.mxu0 %v15909_v27  ;;  %5385 = vmatpush1.bf16.msra.mxu1 %v13889_v61  ;;  %v3449_v33 = vpop.f32.mrf.mxu0  ;;  %v13945_v61 = vld [vmem:[#allocation9 + $0xfc0] ss:$16 sps:$4 sm:$0xff]   ;;  %v13959_v24 = vld [vmem:[#allocation9 + $0xf84] ss:$16 sps:$4 sm:$0xff]  }
 0x320   : > { %v15916_v38 = vadd.f32 %v3488_v28, %v3448_v5  ;;  %5416 = vmatprep.mubr.bf16.mxu1 %v15913_v30  ;;  %v3450_v37 = vadd.f32 %v3449_v33, %v15878_v41  ;;  %v3490_v50 = vpop.f32.mrf.mxu1  ;;  %5345 = vmatprep.subr.bf16.mxu0 %v13896_v19  ;;  %v13909_v41 = vld [vmem:[#allocation9 + $0xe80] ss:$16 sps:$4 sm:$0xff]   ;;  %v13953_v19 = vld [vmem:[#allocation9 + $0xfa4] ss:$16 sps:$4 sm:$0xff]  }
 0x321   : > { %v3451_v29 = vpop.f32.mrf.mxu0  ;;  %5386 = vmatprep.subr.bf16.mxu1 %v13899_v21  ;;  %v13956_v21 = vld [vmem:[#allocation9 + $0xd84] ss:$16 sps:$4 sm:$0xff]   ;;  %v13957_v5 = vld [vmem:[#allocation9 + $0xf80] ss:$16 sps:$4 sm:$0xff]  }
 0x322   : > { %v15920_v39 = vadd.f32 %v3490_v50, %v3450_v37  ;;  %v3492_v40 = vpop.f32.mrf.mxu1  ;;  %5346 = vmatpush1.bf16.msra.mxu0 %v13894_v31  ;;  %v13962_v28 = vld [vmem:[#allocation9 + $0xd64] ss:$16 sps:$4 sm:$0xff]   ;;  %v13963_v33 = vld [vmem:[#allocation9 + $0xf60] ss:$16 sps:$4 sm:$0xff]   ;;  %v12076_v50 = vcombine.low %v15896_v63, %v15898_v34 }
 0x323   : > { %5387 = vmatpush1.bf16.msra.mxu1 %v13897_v32  ;;  %v3452_v23 = vpop.f32.mrf.mxu0  ;;  %5347 = vmatprep.subr.bf16.mxu0 %v13902_v36  ;;  %v13965_v31 = vld [vmem:[#allocation9 + $0xf64] ss:$16 sps:$4 sm:$0xff]   ;;  %v13960_v32 = vld [vmem:[#allocation9 + $0xd60] ss:$16 sps:$4 sm:$0xff]   ;;  %v12078_v40 = vcombine.low %v15902_v6, %v15900_v1 }
 0x324   : > { %v3493_v44 = vpop.f32.mrf.mxu1  ;;  %5388 = vmatprep.subr.bf16.mxu1 %v13905_v13  ;;  %v13968_v36 = vld [vmem:[#allocation9 + $0xd44] ss:$16 sps:$4 sm:$0xff]   ;;  %v13966_v37 = vld [vmem:[#allocation9 + $0xd40] ss:$16 sps:$4 sm:$0xff]  }
 0x325   : > { %v13971_v13 = vld [vmem:[#allocation9 + $0xf44] ss:$16 sps:$4 sm:$0xff]   ;;  %v13978_v63 = vld [vmem:[#allocation9 + $0xd00] ss:$16 sps:$4 sm:$0xff]  }
 0x326   : > { %5348 = vmatpush1.bf16.msra.mxu0 %v13900_v52  ;;  %v13969_v52 = vld [vmem:[#allocation9 + $0xf40] ss:$16 sps:$4 sm:$0xff]   ;;  %v13974_v29 = vld [vmem:[#allocation9 + $0xd24] ss:$16 sps:$4 sm:$0xff]  }
 0x327   : > { %5389 = vmatpush1.bf16.msra.mxu1 %v13903_v42  ;;  %5349 = vmatprep.subr.bf16.mxu0 %v13908_v43  ;;  %v13977_v23 = vld [vmem:[#allocation9 + $0xf24] ss:$16 sps:$4 sm:$0xff]   ;;  %v13972_v42 = vld [vmem:[#allocation9 + $0xd20] ss:$16 sps:$4 sm:$0xff]  }
 0x328   : > { %5390 = vmatprep.subr.bf16.mxu1 %v13911_v45  ;;  %v13975_v43 = vld [vmem:[#allocation9 + $0xf20] ss:$16 sps:$4 sm:$0xff]   ;;  %v13980_v44 = vld [vmem:[#allocation9 + $0xd04] ss:$16 sps:$4 sm:$0xff]   ;;  %v4674_v45 = vshll.u32 %v12076_v50, 16 }
 0x32a   : > { %5350 = vmatpush1.bf16.msra.mxu0 %v13906_v46  ;;  %v13983_v46 = vld [vmem:[#allocation9 + $0xf04] ss:$16 sps:$4 sm:$0xff]  }
 0x32b   : > { %5391 = vmatpush1.bf16.msra.mxu1 %v13909_v41  ;;  %5351 = vmatprep.subr.bf16.mxu0 %v13914_v47  ;;  %v4688_v41 = vshll.u32 %v12078_v40, 16  ;;  %v13981_v47 = vld [vmem:[#allocation9 + $0xf00] ss:$16 sps:$4 sm:$0xff]  }
 0x32c   : > { %5392 = vmatprep.subr.bf16.mxu1 %v13917_v49  ;;  %v13986_v49 = vld [vmem:[#allocation9 + $0xcec] ss:$16 sps:$4 sm:$0xff]  }
 0x32d   : > { %v4690_v6 = vrot.slane %v4688_v41, 1  ;;  %v14035_v41 = vld [vmem:[#allocation9 + $0xfe8] ss:$16 sps:$4 sm:$0xff]  }
 0x32e   : > { %5352 = vmatpush1.bf16.msra.mxu0 %v13912_v48  ;;  %v4676_v48 = vrot.slane %v4674_v45, 1  ;;  %v14037_v45 = vld [vmem:[#allocation9 + $0xfec] ss:$16 sps:$4 sm:$0xff]  }
 0x32f   : > { %5393 = vmatpush1.bf16.msra.mxu1 %v13915_v51  ;;  %5353 = vmatprep.subr.bf16.mxu0 %v13920_v53  ;;  %v13989_v51 = vld [vmem:[#allocation9 + $0xeec] ss:$16 sps:$4 sm:$0xff]   ;;  %v4672_v53 = vshrl.u32 %v12076_v50, 16 }
 0x330   : > { %5394 = vmatprep.subr.bf16.mxu1 %v13923_v58  ;;  %v13984_v58 = vld [vmem:[#allocation9 + $0xce8] ss:$16 sps:$4 sm:$0xff]   ;;  %v14025_v50 = vld [vmem:[#allocation9 + $0xe2c] ss:$16 sps:$4 sm:$0xff]  }
 0x332   : > { %5354 = vmatpush1.bf16.msra.mxu0 %v13918_v54  ;;  %v4686_v54 = vshrl.u32 %v12078_v40, 16  ;;  %v14028_v40 = vld [vmem:[#allocation9 + $0xc0c] ss:$16 sps:$4 sm:$0xff]  }
 0x333   : > { %5395 = vmatpush1.bf16.msra.mxu1 %v13921_v3  ;;  %5355 = vmatprep.subr.bf16.mxu0 %v13926_v14  ;;  %v15926_v3 = vor.u32 %v4676_v48, %v4672_v53  ;;  %v13987_v14 = vld [vmem:[#allocation9 + $0xee8] ss:$16 sps:$4 sm:$0xff]  }
 0x334   : > { %5396 = vmatprep.subr.bf16.mxu1 %v13929_v8  ;;  %v13992_v8 = vld [vmem:[#allocation9 + $0xccc] ss:$16 sps:$4 sm:$0xff]   ;;  %v14038_v48 = vld [vmem:[#allocation9 + $0xdc8] ss:$16 sps:$4 sm:$0xff]  }
 0x335   : > { %v14044_v53 = vld [vmem:[#allocation9 + $0xda8] ss:$16 sps:$4 sm:$0xff]  }
 0x336   : > { %5356 = vmatpush1.bf16.msra.mxu0 %v13924_v7  ;;  %v15928_v7 = vor.u32 %v4690_v6, %v4686_v54  ;;  %v14046_v6 = vld [vmem:[#allocation9 + $0xdac] ss:$16 sps:$4 sm:$0xff]   ;;  %v14047_v54 = vld [vmem:[#allocation9 + $0xfa8] ss:$16 sps:$4 sm:$0xff]  }
 0x337   : > { %5397 = vmatpush1.bf16.msra.mxu1 %v13927_v9  ;;  %5357 = vmatprep.subr.bf16.mxu0 %v13932_v10  ;;  %v13995_v10 = vld [vmem:[#allocation9 + $0xecc] ss:$16 sps:$4 sm:$0xff]  }
 0x338   : > { %5398 = vmatprep.subr.bf16.mxu1 %v13935_v35 }
 0x33a   : > { %5358 = vmatpush1.bf16.msra.mxu0 %v13930_v11 }
 0x33b   : > { %5399 = vmatpush1.bf16.msra.mxu1 %v13933_v12  ;;  %5359 = vmatprep.subr.bf16.mxu0 %v13938_v0  ;;  %v13990_v12 = vld [vmem:[#allocation9 + $0xcc8] ss:$16 sps:$4 sm:$0xff]  }
 0x33c   : > { %5400 = vmatprep.subr.bf16.mxu1 %v13941_v15  ;;  %v13998_v15 = vld [vmem:[#allocation9 + $0xcac] ss:$16 sps:$4 sm:$0xff]  }
 0x33e   : > { %5360 = vmatpush2.bf16.msra.mxu0 %v13936_v22  ;;  %v13993_v22 = vld [vmem:[#allocation9 + $0xec8] ss:$16 sps:$4 sm:$0xff]  }
 0x33f   : > { %5401 = vmatpush2.bf16.msra.mxu1 %v13939_v25  ;;  %5361 = vmatprep.subr.bf16.mxu0 %v13944_v26 }
 0x340   : > { %5402 = vmatprep.subr.bf16.mxu1 %v13947_v17 }
 0x342   : > { %5362 = vmatpush2.bf16.msra.mxu0 %v13942_v16 }
 0x343   : > { %5403 = vmatpush2.bf16.msra.mxu1 %v13945_v61  ;;  %5363 = vmatprep.subr.bf16.mxu0 %v13950_v62 }
 0x344   : > { %5404 = vmatprep.subr.bf16.mxu1 %v13953_v19  ;;  %v13999_v19 = vld [vmem:[#allocation9 + $0xea8] ss:$16 sps:$4 sm:$0xff]  }
 0x346   : > { %5364 = vmatpush2.bf16.msra.mxu0 %v13948_v18 }
 0x347   : > { %5405 = vmatpush2.bf16.msra.mxu1 %v13951_v20  ;;  %5365 = vmatprep.subr.bf16.mxu0 %v13956_v21  ;;  %v14004_v20 = vld [vmem:[#allocation9 + $0xc8c] ss:$16 sps:$4 sm:$0xff]  }
 0x348   : > { %5406 = vmatprep.subr.bf16.mxu1 %v13959_v24  ;;  %v14010_v24 = vld [vmem:[#allocation9 + $0xc6c] ss:$16 sps:$4 sm:$0xff]  }
 0x34a   : > { %5366 = vmatpush2.bf16.msra.mxu0 %v13954_v2  ;;  %v14005_v2 = vld [vmem:[#allocation9 + $0xe88] ss:$16 sps:$4 sm:$0xff]  }
 0x34b   : > { %5407 = vmatpush2.bf16.msra.mxu1 %v13957_v5  ;;  %5367 = vmatprep.subr.bf16.mxu0 %v13962_v28  ;;  %v14013_v5 = vld [vmem:[#allocation9 + $0xe6c] ss:$16 sps:$4 sm:$0xff]   ;;  %v14008_v28 = vld [vmem:[#allocation9 + $0xc68] ss:$16 sps:$4 sm:$0xff]  }
 0x34c   : > { %5408 = vmatprep.subr.bf16.mxu1 %v13965_v31  ;;  %v14011_v31 = vld [vmem:[#allocation9 + $0xe68] ss:$16 sps:$4 sm:$0xff]  }
 0x34e   : > { %5368 = vmatpush2.bf16.msra.mxu0 %v13960_v32  ;;  %v14016_v32 = vld [vmem:[#allocation9 + $0xc4c] ss:$16 sps:$4 sm:$0xff]  }
 0x34f   : > { %5409 = vmatpush2.bf16.msra.mxu1 %v13963_v33  ;;  %5369 = vmatprep.subr.bf16.mxu0 %v13968_v36  ;;  %v14019_v33 = vld [vmem:[#allocation9 + $0xe4c] ss:$16 sps:$4 sm:$0xff]   ;;  %v14014_v36 = vld [vmem:[#allocation9 + $0xc48] ss:$16 sps:$4 sm:$0xff]  }
 0x350   : > { %5410 = vmatprep.subr.bf16.mxu1 %v13971_v13  ;;  %v14017_v13 = vld [vmem:[#allocation9 + $0xe48] ss:$16 sps:$4 sm:$0xff]  }
 0x352   : > { %5370 = vmatpush2.bf16.msra.mxu0 %v13966_v37  ;;  %v14022_v37 = vld [vmem:[#allocation9 + $0xc2c] ss:$16 sps:$4 sm:$0xff]  }
 0x353   : > { %5411 = vmatpush2.bf16.msra.mxu1 %v13969_v52  ;;  %5371 = vmatprep.subr.bf16.mxu0 %v13974_v29  ;;  %v14020_v52 = vld [vmem:[#allocation9 + $0xc28] ss:$16 sps:$4 sm:$0xff]  }
 0x354   : > { %5412 = vmatprep.subr.bf16.mxu1 %v13977_v23  ;;  %v14023_v29 = vld [vmem:[#allocation9 + $0xe28] ss:$16 sps:$4 sm:$0xff]   ;;  %v14031_v23 = vld [vmem:[#allocation9 + $0xe0c] ss:$16 sps:$4 sm:$0xff]  }
 0x356   : > { %5372 = vmatpush2.bf16.msra.mxu0 %v13972_v42  ;;  %v14026_v42 = vld [vmem:[#allocation9 + $0xc08] ss:$16 sps:$4 sm:$0xff]  }
 0x357   : > { %5413 = vmatpush2.bf16.msra.mxu1 %v13975_v43  ;;  %5373 = vmatprep.subr.bf16.mxu0 %v13980_v44  ;;  %v14029_v43 = vld [vmem:[#allocation9 + $0xe08] ss:$16 sps:$4 sm:$0xff]   ;;  %v14034_v44 = vld [vmem:[#allocation9 + $0xdec] ss:$16 sps:$4 sm:$0xff]  }
 0x358   : > { %5414 = vmatprep.subr.bf16.mxu1 %v13983_v46  ;;  %v14032_v46 = vld [vmem:[#allocation9 + $0xde8] ss:$16 sps:$4 sm:$0xff]  }
 0x35a   : > { %5374 = vmatpush2.bf16.msra.mxu0 %v13978_v63  ;;  %v14040_v63 = vld [vmem:[#allocation9 + $0xdcc] ss:$16 sps:$4 sm:$0xff]  }
 0x35b   : > { %5415 = vmatpush2.bf16.msra.mxu1 %v13981_v47  ;;  %5425 = vmatprep.subr.bf16.mxu0 %v13986_v49  ;;  %v14043_v47 = vld [vmem:[#allocation9 + $0xfcc] ss:$16 sps:$4 sm:$0xff]   ;;  %v14041_v49 = vld [vmem:[#allocation9 + $0xfc8] ss:$16 sps:$4 sm:$0xff]  }
 0x35c   : > { %5466 = vmatprep.subr.bf16.mxu1 %v13989_v51  ;;  %v14049_v51 = vld [vmem:[#allocation9 + $0xfac] ss:$16 sps:$4 sm:$0xff]  }
 0x35d   : > { %v3529_v9 = vpop.f32.mrf.mxu0  ;;  %5376 = vmatmul.mubr.bf16.vlgmr.msra.gmra.mxu0 %v15926_v3 }
 0x35e   : > { %v3530_v11 = vadd.f32 %v3529_v9, %v15889_v55  ;;  %v3570_v35 = vpop.f32.mrf.mxu1  ;;  %5417 = vmatmul.mubr.bf16.vlgmr.msra.gmra.mxu1 %v15928_v7  ;;  %5426 = vmatpush1.bf16.msra.mxu0 %v13984_v58  ;;  %v14001_v55 = vld [vmem:[#allocation9 + $0xeac] ss:$16 sps:$4 sm:$0xff]   ;;  %v14053_v9 = vld [vmem:[#allocation9 + $0xf88] ss:$16 sps:$4 sm:$0xff]  }
 0x35f   : > { %5457 = vmatprep.mubr.bf16.mxu0 %v15909_v27  ;;  %5467 = vmatpush1.bf16.msra.mxu1 %v13987_v14  ;;  %v3531_v0 = vpop.f32.mrf.mxu0  ;;  %v13996_v27 = vld [vmem:[#allocation9 + $0xca8] ss:$16 sps:$4 sm:$0xff]   ;;  %v14052_v58 = vld [vmem:[#allocation9 + $0xd8c] ss:$16 sps:$4 sm:$0xff]  }
 0x360   : > { %v15934_v25 = vadd.f32 %v3570_v35, %v3530_v11  ;;  %5498 = vmatprep.mubr.bf16.mxu1 %v15913_v30  ;;  %v3532_v26 = vadd.f32 %v3531_v0, %v15894_v4  ;;  %v3572_v16 = vpop.f32.mrf.mxu1  ;;  %5427 = vmatprep.subr.bf16.mxu0 %v13992_v8  ;;  %v14007_v30 = vld [vmem:[#allocation9 + $0xe8c] ss:$16 sps:$4 sm:$0xff]   ;;  %v14002_v4 = vld [vmem:[#allocation9 + $0xc88] ss:$16 sps:$4 sm:$0xff]  }
 0x361   : > { %v3533_v17 = vpop.f32.mrf.mxu0  ;;  %5468 = vmatprep.subr.bf16.mxu1 %v13995_v10  ;;  %v14055_v14 = vld [vmem:[#allocation9 + $0xf8c] ss:$16 sps:$4 sm:$0xff]   ;;  %v14050_v8 = vld [vmem:[#allocation9 + $0xd88] ss:$16 sps:$4 sm:$0xff]  }
 0x362   : > { %v15938_v61 = vadd.f32 %v3572_v16, %v3532_v26  ;;  %v3574_v62 = vpop.f32.mrf.mxu1  ;;  %5428 = vmatpush1.bf16.msra.mxu0 %v13990_v12  ;;  %v14058_v10 = vld [vmem:[#allocation9 + $0xd6c] ss:$16 sps:$4 sm:$0xff]   ;;  %v14056_v35 = vld [vmem:[#allocation9 + $0xd68] ss:$16 sps:$4 sm:$0xff]  }
 0x363   : > { %5469 = vmatpush1.bf16.msra.mxu1 %v13993_v22  ;;  %v3534_v18 = vpop.f32.mrf.mxu0  ;;  %5429 = vmatprep.subr.bf16.mxu0 %v13998_v15  ;;  %v14061_v11 = vld [vmem:[#allocation9 + $0xf6c] ss:$16 sps:$4 sm:$0xff]   ;;  %v14059_v12 = vld [vmem:[#allocation9 + $0xf68] ss:$16 sps:$4 sm:$0xff]  }
 0x364   : > { %v3575_v21 = vpop.f32.mrf.mxu1  ;;  %5470 = vmatprep.subr.bf16.mxu1 %v14001_v55  ;;  %v14064_v0 = vld [vmem:[#allocation9 + $0xd4c] ss:$16 sps:$4 sm:$0xff]   ;;  %v14062_v15 = vld [vmem:[#allocation9 + $0xd48] ss:$16 sps:$4 sm:$0xff]  }
 0x365   : > { %v14067_v22 = vld [vmem:[#allocation9 + $0xf4c] ss:$16 sps:$4 sm:$0xff]   ;;  %v14065_v26 = vld [vmem:[#allocation9 + $0xf48] ss:$16 sps:$4 sm:$0xff]  }
 0x366   : > { %5430 = vmatpush1.bf16.msra.mxu0 %v13996_v27  ;;  %v14070_v16 = vld [vmem:[#allocation9 + $0xd2c] ss:$16 sps:$4 sm:$0xff]   ;;  %v14068_v17 = vld [vmem:[#allocation9 + $0xd28] ss:$16 sps:$4 sm:$0xff]  }
 0x367   : > { %5471 = vmatpush1.bf16.msra.mxu1 %v13999_v19  ;;  %5431 = vmatprep.subr.bf16.mxu0 %v14004_v20  ;;  %v14073_v55 = vld [vmem:[#allocation9 + $0xf2c] ss:$16 sps:$4 sm:$0xff]   ;;  %v14071_v62 = vld [vmem:[#allocation9 + $0xf28] ss:$16 sps:$4 sm:$0xff]   ;;  %v15940_v20 = vld [vmem:[#allocation3 + $0x28] sm:$0xee] }
 0x368   : > { %5472 = vmatprep.subr.bf16.mxu1 %v14007_v30  ;;  %v14076_v27 = vld [vmem:[#allocation9 + $0xd0c] ss:$16 sps:$4 sm:$0xff]   ;;  %v14074_v19 = vld [vmem:[#allocation9 + $0xd08] ss:$16 sps:$4 sm:$0xff]   ;;  %v14082_v30 = vld [vmem:[#allocation9 + $0x10e4] ss:$16 sps:$4 sm:$0xff]  }
 0x369   : > { %v14079_v18 = vld [vmem:[#allocation9 + $0xf0c] ss:$16 sps:$4 sm:$0xff]   ;;  %v14077_v21 = vld [vmem:[#allocation9 + $0xf08] ss:$16 sps:$4 sm:$0xff]  }
 0x36a   : > { %5432 = vmatpush1.bf16.msra.mxu0 %v14002_v4  ;;  %v15942_v4 = vld [vmem:[#allocation3 + $0x10] sm:$0xee] }
 0x36b   : > { %5473 = vmatpush1.bf16.msra.mxu1 %v14005_v2  ;;  %5433 = vmatprep.subr.bf16.mxu0 %v14010_v24  ;;  %v14085_v2 = vld [vmem:[#allocation9 + $0x12e4] ss:$16 sps:$4 sm:$0xff]   ;;  %v12209_v24 = vcombine.high %v15940_v20, %v15898_v34 }
 0x36c   : > { %5474 = vmatprep.subr.bf16.mxu1 %v14013_v5  ;;  %v14080_v5 = vld [vmem:[#allocation9 + $0x10e0] ss:$16 sps:$4 sm:$0xff]  }
 0x36e   : > { %5434 = vmatpush1.bf16.msra.mxu0 %v14008_v28  ;;  %v12211_v28 = vcombine.high %v15942_v4, %v15900_v1 }
 0x36f   : > { %5475 = vmatpush1.bf16.msra.mxu1 %v14011_v31  ;;  %5435 = vmatprep.subr.bf16.mxu0 %v14016_v32  ;;  %v14083_v31 = vld [vmem:[#allocation9 + $0x12e0] ss:$16 sps:$4 sm:$0xff]   ;;  %v14090_v32 = vld [vmem:[#allocation9 + $0x10c4] ss:$16 sps:$4 sm:$0xff]  }
 0x370   : > { %5476 = vmatprep.subr.bf16.mxu1 %v14019_v33  ;;  %v15952_v34 = vrot.slane %v12211_v28, 1  ;;  %v14150_v28 = vld [vmem:[#allocation9 + $0x1184] ss:$16 sps:$4 sm:$0xff]  }
 0x372   : > { %5436 = vmatpush1.bf16.msra.mxu0 %v14014_v36  ;;  %v15949_v36 = vrot.slane %v12209_v24, 1  ;;  %v14142_v24 = vld [vmem:[#allocation9 + $0x11a0] ss:$16 sps:$4 sm:$0xff]  }
 0x373   : > { %5477 = vmatpush1.bf16.msra.mxu1 %v14017_v13  ;;  %5437 = vmatprep.subr.bf16.mxu0 %v14022_v37  ;;  %v14093_v13 = vld [vmem:[#allocation9 + $0x12c4] ss:$16 sps:$4 sm:$0xff]  }
 0x374   : > { %5478 = vmatprep.subr.bf16.mxu1 %v14025_v50  ;;  %v14088_v50 = vld [vmem:[#allocation9 + $0x10c0] ss:$16 sps:$4 sm:$0xff]  }
 0x376   : > { %5438 = vmatpush1.bf16.msra.mxu0 %v14020_v52 }
 0x377   : > { %5479 = vmatpush1.bf16.msra.mxu1 %v14023_v29  ;;  %5439 = vmatprep.subr.bf16.mxu0 %v14028_v40  ;;  %v14091_v29 = vld [vmem:[#allocation9 + $0x12c0] ss:$16 sps:$4 sm:$0xff]   ;;  %v14096_v40 = vld [vmem:[#allocation9 + $0x10a4] ss:$16 sps:$4 sm:$0xff]  }
 0x378   : > { %5480 = vmatprep.subr.bf16.mxu1 %v14031_v23  ;;  %v14099_v23 = vld [vmem:[#allocation9 + $0x12a4] ss:$16 sps:$4 sm:$0xff]  }
 0x37a   : > { %5440 = vmatpush1.bf16.msra.mxu0 %v14026_v42 }
 0x37b   : > { %5481 = vmatpush1.bf16.msra.mxu1 %v14029_v43  ;;  %5441 = vmatprep.subr.bf16.mxu0 %v14034_v44 }
 0x37c   : > { %5482 = vmatprep.subr.bf16.mxu1 %v14037_v45  ;;  %v14094_v45 = vld [vmem:[#allocation9 + $0x10a0] ss:$16 sps:$4 sm:$0xff]  }
 0x37e   : > { %5442 = vmatpush2.bf16.msra.mxu0 %v14032_v46 }
 0x37f   : > { %5483 = vmatpush2.bf16.msra.mxu1 %v14035_v41  ;;  %5443 = vmatprep.subr.bf16.mxu0 %v14040_v63  ;;  %v14097_v63 = vld [vmem:[#allocation9 + $0x12a0] ss:$16 sps:$4 sm:$0xff]  }
 0x380   : > { %5484 = vmatprep.subr.bf16.mxu1 %v14043_v47  ;;  %v14102_v47 = vld [vmem:[#allocation9 + $0x1084] ss:$16 sps:$4 sm:$0xff]  }
 0x382   : > { %5444 = vmatpush2.bf16.msra.mxu0 %v14038_v48 }
 0x383   : > { %5485 = vmatpush2.bf16.msra.mxu1 %v14041_v49  ;;  %5445 = vmatprep.subr.bf16.mxu0 %v14046_v6  ;;  %v14105_v49 = vld [vmem:[#allocation9 + $0x1284] ss:$16 sps:$4 sm:$0xff]   ;;  %v14103_v6 = vld [vmem:[#allocation9 + $0x1280] ss:$16 sps:$4 sm:$0xff]  }
 0x384   : > { %5486 = vmatprep.subr.bf16.mxu1 %v14049_v51  ;;  %v14108_v51 = vld [vmem:[#allocation9 + $0x1064] ss:$16 sps:$4 sm:$0xff]  }
 0x386   : > { %5446 = vmatpush2.bf16.msra.mxu0 %v14044_v53  ;;  %v14111_v53 = vld [vmem:[#allocation9 + $0x1264] ss:$16 sps:$4 sm:$0xff]  }
 0x387   : > { %5487 = vmatpush2.bf16.msra.mxu1 %v14047_v54  ;;  %5447 = vmatprep.subr.bf16.mxu0 %v14052_v58  ;;  %v14106_v54 = vld [vmem:[#allocation9 + $0x1060] ss:$16 sps:$4 sm:$0xff]   ;;  %v14114_v58 = vld [vmem:[#allocation9 + $0x1044] ss:$16 sps:$4 sm:$0xff]  }
 0x388   : > { %5488 = vmatprep.subr.bf16.mxu1 %v14055_v14  ;;  %v14117_v14 = vld [vmem:[#allocation9 + $0x1244] ss:$16 sps:$4 sm:$0xff]  }
 0x38a   : > { %5448 = vmatpush2.bf16.msra.mxu0 %v14050_v8  ;;  %v14112_v8 = vld [vmem:[#allocation9 + $0x1040] ss:$16 sps:$4 sm:$0xff]  }
 0x38b   : > { %5489 = vmatpush2.bf16.msra.mxu1 %v14053_v9  ;;  %5449 = vmatprep.subr.bf16.mxu0 %v14058_v10  ;;  %v14115_v9 = vld [vmem:[#allocation9 + $0x1240] ss:$16 sps:$4 sm:$0xff]   ;;  %v14120_v10 = vld [vmem:[#allocation9 + $0x1024] ss:$16 sps:$4 sm:$0xff]  }
 0x38c   : > { %5490 = vmatprep.subr.bf16.mxu1 %v14061_v11  ;;  %v14123_v11 = vld [vmem:[#allocation9 + $0x1224] ss:$16 sps:$4 sm:$0xff]  }
 0x38e   : > { %5450 = vmatpush2.bf16.msra.mxu0 %v14056_v35  ;;  %v14118_v35 = vld [vmem:[#allocation9 + $0x1020] ss:$16 sps:$4 sm:$0xff]  }
 0x38f   : > { %5491 = vmatpush2.bf16.msra.mxu1 %v14059_v12  ;;  %5451 = vmatprep.subr.bf16.mxu0 %v14064_v0  ;;  %v14121_v12 = vld [vmem:[#allocation9 + $0x1220] ss:$16 sps:$4 sm:$0xff]   ;;  %v14126_v0 = vld [vmem:[#allocation9 + $0x1004] ss:$16 sps:$4 sm:$0xff]  }
 0x390   : > { %5492 = vmatprep.subr.bf16.mxu1 %v14067_v22  ;;  %v14129_v22 = vld [vmem:[#allocation9 + $0x1204] ss:$16 sps:$4 sm:$0xff]  }
 0x392   : > { %5452 = vmatpush2.bf16.msra.mxu0 %v14062_v15  ;;  %v14124_v15 = vld [vmem:[#allocation9 + $0x1000] ss:$16 sps:$4 sm:$0xff]  }
 0x393   : > { %5493 = vmatpush2.bf16.msra.mxu1 %v14065_v26  ;;  %5453 = vmatprep.subr.bf16.mxu0 %v14070_v16  ;;  %v14127_v26 = vld [vmem:[#allocation9 + $0x1200] ss:$16 sps:$4 sm:$0xff]   ;;  %v14132_v16 = vld [vmem:[#allocation9 + $0x11e4] ss:$16 sps:$4 sm:$0xff]  }
 0x394   : > { %5494 = vmatprep.subr.bf16.mxu1 %v14073_v55  ;;  %v14135_v55 = vld [vmem:[#allocation9 + $0x13e4] ss:$16 sps:$4 sm:$0xff]  }
 0x396   : > { %5454 = vmatpush2.bf16.msra.mxu0 %v14068_v17  ;;  %v14130_v17 = vld [vmem:[#allocation9 + $0x11e0] ss:$16 sps:$4 sm:$0xff]  }
 0x397   : > { %5495 = vmatpush2.bf16.msra.mxu1 %v14071_v62  ;;  %5455 = vmatprep.subr.bf16.mxu0 %v14076_v27  ;;  %v14133_v62 = vld [vmem:[#allocation9 + $0x13e0] ss:$16 sps:$4 sm:$0xff]   ;;  %v14138_v27 = vld [vmem:[#allocation9 + $0x11c4] ss:$16 sps:$4 sm:$0xff]  }
 0x398   : > { %5496 = vmatprep.subr.bf16.mxu1 %v14079_v18  ;;  %v14141_v18 = vld [vmem:[#allocation9 + $0x13c4] ss:$16 sps:$4 sm:$0xff]  }
 0x39a   : > { %5456 = vmatpush2.bf16.msra.mxu0 %v14074_v19  ;;  %v14136_v19 = vld [vmem:[#allocation9 + $0x11c0] ss:$16 sps:$4 sm:$0xff]  }
 0x39b   : > { %5497 = vmatpush2.bf16.msra.mxu1 %v14077_v21  ;;  %6300 = vmatprep.subr.bf16.mxu0 %v14082_v30  ;;  %v14139_v21 = vld [vmem:[#allocation9 + $0x13c0] ss:$16 sps:$4 sm:$0xff]   ;;  %v14144_v30 = vld [vmem:[#allocation9 + $0x11a4] ss:$16 sps:$4 sm:$0xff]  }
 0x39c   : > { %6341 = vmatprep.subr.bf16.mxu1 %v14085_v2  ;;  %v14147_v2 = vld [vmem:[#allocation9 + $0x13a4] ss:$16 sps:$4 sm:$0xff]  }
 0x39d   : > { %v4388_v33 = vpop.f32.mrf.mxu0  ;;  %5458 = vmatmul.mubr.bf16.vlgmr.msra.gmra.mxu0 %v15926_v3 }
 0x39e   : > { %v4429_v37 = vpop.f32.mrf.mxu1  ;;  %5499 = vmatmul.mubr.bf16.vlgmr.msra.gmra.mxu1 %v15928_v7  ;;  %6301 = vmatpush1.bf16.msra.mxu0 %v14080_v5  ;;  %v14145_v5 = vld [vmem:[#allocation9 + $0x13a0] ss:$16 sps:$4 sm:$0xff]  }
 0x39f   : > { %v4430_v52 = vadd.f32 %v4429_v37, %v4388_v33  ;;  %6332 = vmatprep.mubr.bf16.mxu0 %v15949_v36  ;;  %6342 = vmatpush1.bf16.msra.mxu1 %v14083_v31  ;;  %v4390_v1 = vpop.f32.mrf.mxu0  ;;  %v14153_v31 = vld [vmem:[#allocation9 + $0x1384] ss:$16 sps:$4 sm:$0xff]   ;;  %v14151_v33 = vld [vmem:[#allocation9 + $0x1380] ss:$16 sps:$4 sm:$0xff]  }
 0x3a0   : > { %6373 = vmatprep.mubr.bf16.mxu1 %v15952_v34  ;;  %v4431_v3 = vpop.f32.mrf.mxu1  ;;  %6302 = vmatprep.subr.bf16.mxu0 %v14090_v32  ;;  %v14148_v32 = vld [vmem:[#allocation9 + $0x1180] ss:$16 sps:$4 sm:$0xff]   ;;  %v14159_v37 = vld [vmem:[#allocation9 + $0x1364] ss:$16 sps:$4 sm:$0xff]  }
 0x3a1   : > { %v15957_v42 = vadd.f32 %v4430_v52, %v15916_v38  ;;  %v4432_v7 = vadd.f32 %v4431_v3, %v4390_v1  ;;  %v4392_v43 = vpop.f32.mrf.mxu0  ;;  %6343 = vmatprep.subr.bf16.mxu1 %v14093_v13  ;;  %v14100_v38 = vld [vmem:[#allocation9 + $0x1080] ss:$16 sps:$4 sm:$0xff]   ;;  %v14156_v13 = vld [vmem:[#allocation9 + $0x1164] ss:$16 sps:$4 sm:$0xff]  }
 0x3a2   : > { %v4433_v44 = vpop.f32.mrf.mxu1  ;;  %6303 = vmatpush1.bf16.msra.mxu0 %v14088_v50  ;;  %v14154_v50 = vld [vmem:[#allocation9 + $0x1160] ss:$16 sps:$4 sm:$0xff]   ;;  %v14162_v1 = vld [vmem:[#allocation9 + $0x1144] ss:$16 sps:$4 sm:$0xff]  }
 0x3a3   : > { %v15960_v46 = vadd.f32 %v4432_v7, %v15920_v39  ;;  %6344 = vmatpush1.bf16.msra.mxu1 %v14091_v29  ;;  %v4393_v41 = vpop.f32.mrf.mxu0  ;;  %6304 = vmatprep.subr.bf16.mxu0 %v14096_v40  ;;  %v14109_v39 = vld [vmem:[#allocation9 + $0x1260] ss:$16 sps:$4 sm:$0xff]   ;;  %v14165_v29 = vld [vmem:[#allocation9 + $0x1344] ss:$16 sps:$4 sm:$0xff]  }
 0x3a4   : > { %v4434_v48 = vpop.f32.mrf.mxu1  ;;  %6345 = vmatprep.subr.bf16.mxu1 %v14099_v23  ;;  %v14157_v52 = vld [vmem:[#allocation9 + $0x1360] ss:$16 sps:$4 sm:$0xff]   ;;  %v14168_v23 = vld [vmem:[#allocation9 + $0x1124] ss:$16 sps:$4 sm:$0xff]  }
 0x3a5   : > { %v14160_v40 = vld [vmem:[#allocation9 + $0x1140] ss:$16 sps:$4 sm:$0xff]   ;;  %v14171_v7 = vld [vmem:[#allocation9 + $0x1324] ss:$16 sps:$4 sm:$0xff]  }
 0x3a6   : > { %6305 = vmatpush1.bf16.msra.mxu0 %v14094_v45  ;;  %v14163_v3 = vld [vmem:[#allocation9 + $0x1340] ss:$16 sps:$4 sm:$0xff]   ;;  %v14174_v45 = vld [vmem:[#allocation9 + $0x1104] ss:$16 sps:$4 sm:$0xff]  }
 0x3a7   : > { %6346 = vmatpush1.bf16.msra.mxu1 %v14097_v63  ;;  %6306 = vmatprep.subr.bf16.mxu0 %v14102_v47  ;;  %v14166_v43 = vld [vmem:[#allocation9 + $0x1120] ss:$16 sps:$4 sm:$0xff]   ;;  %v14177_v41 = vld [vmem:[#allocation9 + $0x1304] ss:$16 sps:$4 sm:$0xff]  }
 0x3a8   : > { %6347 = vmatprep.subr.bf16.mxu1 %v14105_v49  ;;  %v14169_v44 = vld [vmem:[#allocation9 + $0x1320] ss:$16 sps:$4 sm:$0xff]  }
 0x3a9   : > { %v14172_v63 = vld [vmem:[#allocation9 + $0x1100] ss:$16 sps:$4 sm:$0xff]  }
 0x3aa   : > { %6307 = vmatpush1.bf16.msra.mxu0 %v14100_v38  ;;  %v15250_v47 = vld [vmem:[#allocation3 + $0x8] sm:$0x11]  ;;  %v14180_v38 = vld [vmem:[#allocation9 + $0x10ec] ss:$16 sps:$4 sm:$0xff]  }
 0x3ab   : > { %6348 = vmatpush1.bf16.msra.mxu1 %v14103_v6  ;;  %6308 = vmatprep.subr.bf16.mxu0 %v14108_v51  ;;  %v12208_v48 = vcombine.low %v15940_v20, %v15250_v47  ;;  %v14175_v49 = vld [vmem:[#allocation9 + $0x1300] ss:$16 sps:$4 sm:$0xff]   ;;  %v15251_v6 = vld [vmem:[#allocation3] sm:$0x11] }
 0x3ac   : > { %6349 = vmatprep.subr.bf16.mxu1 %v14111_v53  ;;  %v12210_v51 = vcombine.low %v15942_v4, %v15251_v6  ;;  %v14183_v53 = vld [vmem:[#allocation9 + $0x12ec] ss:$16 sps:$4 sm:$0xff]   ;;  %v14184_v4 = vld [vmem:[#allocation9 + $0x10c8] ss:$16 sps:$4 sm:$0xff]  }
 0x3ad   : > { %v14186_v20 = vld [vmem:[#allocation9 + $0x10cc] ss:$16 sps:$4 sm:$0xff]   ;;  %v14235_v47 = vld [vmem:[#allocation9 + $0x13c8] ss:$16 sps:$4 sm:$0xff]  }
 0x3ae   : > { %6309 = vmatpush1.bf16.msra.mxu0 %v14106_v54  ;;  %v14178_v54 = vld [vmem:[#allocation9 + $0x10e8] ss:$16 sps:$4 sm:$0xff]  }
 0x3af   : > { %6350 = vmatpush1.bf16.msra.mxu1 %v14109_v39  ;;  %6310 = vmatprep.subr.bf16.mxu0 %v14114_v58  ;;  %v15964_v39 = vrot.slane %v12208_v48, 1  ;;  %v14181_v58 = vld [vmem:[#allocation9 + $0x12e8] ss:$16 sps:$4 sm:$0xff]   ;;  %v14240_v48 = vld [vmem:[#allocation9 + $0x11ac] ss:$16 sps:$4 sm:$0xff]  }
 0x3b0   : > { %6351 = vmatprep.subr.bf16.mxu1 %v14117_v14  ;;  %v15966_v14 = vrot.slane %v12210_v51, 1  ;;  %v14241_v6 = vld [vmem:[#allocation9 + $0x13a8] ss:$16 sps:$4 sm:$0xff]   ;;  %v14246_v51 = vld [vmem:[#allocation9 + $0x118c] ss:$16 sps:$4 sm:$0xff]  }
 0x3b2   : > { %6311 = vmatpush1.bf16.msra.mxu0 %v14112_v8 }
 0x3b3   : > { %6352 = vmatpush1.bf16.msra.mxu1 %v14115_v9  ;;  %6312 = vmatprep.subr.bf16.mxu0 %v14120_v10  ;;  %v14189_v9 = vld [vmem:[#allocation9 + $0x12cc] ss:$16 sps:$4 sm:$0xff]  }
 0x3b4   : > { %6353 = vmatprep.subr.bf16.mxu1 %v14123_v11 }
 0x3b6   : > { %6313 = vmatpush1.bf16.msra.mxu0 %v14118_v35 }
 0x3b7   : > { %6354 = vmatpush1.bf16.msra.mxu1 %v14121_v12  ;;  %6314 = vmatprep.subr.bf16.mxu0 %v14126_v0  ;;  %v14187_v12 = vld [vmem:[#allocation9 + $0x12c8] ss:$16 sps:$4 sm:$0xff]   ;;  %v14192_v0 = vld [vmem:[#allocation9 + $0x10ac] ss:$16 sps:$4 sm:$0xff]  }
 0x3b8   : > { %6355 = vmatprep.subr.bf16.mxu1 %v14129_v22 }
 0x3ba   : > { %6315 = vmatpush1.bf16.msra.mxu0 %v14124_v15  ;;  %v14195_v15 = vld [vmem:[#allocation9 + $0x12ac] ss:$16 sps:$4 sm:$0xff]  }
 0x3bb   : > { %6356 = vmatpush1.bf16.msra.mxu1 %v14127_v26  ;;  %6316 = vmatprep.subr.bf16.mxu0 %v14132_v16 }
 0x3bc   : > { %6357 = vmatprep.subr.bf16.mxu1 %v14135_v55 }
 0x3be   : > { %6317 = vmatpush2.bf16.msra.mxu0 %v14130_v17 }
 0x3bf   : > { %6358 = vmatpush2.bf16.msra.mxu1 %v14133_v62  ;;  %6318 = vmatprep.subr.bf16.mxu0 %v14138_v27  ;;  %v14190_v62 = vld [vmem:[#allocation9 + $0x10a8] ss:$16 sps:$4 sm:$0xff]  }
 0x3c0   : > { %6359 = vmatprep.subr.bf16.mxu1 %v14141_v18  ;;  %v14193_v18 = vld [vmem:[#allocation9 + $0x12a8] ss:$16 sps:$4 sm:$0xff]  }
 0x3c2   : > { %6319 = vmatpush2.bf16.msra.mxu0 %v14136_v19 }
 0x3c3   : > { %6360 = vmatpush2.bf16.msra.mxu1 %v14139_v21  ;;  %6320 = vmatprep.subr.bf16.mxu0 %v14144_v30  ;;  %v14201_v21 = vld [vmem:[#allocation9 + $0x128c] ss:$16 sps:$4 sm:$0xff]   ;;  %v14199_v30 = vld [vmem:[#allocation9 + $0x1288] ss:$16 sps:$4 sm:$0xff]  }
 0x3c4   : > { %6361 = vmatprep.subr.bf16.mxu1 %v14147_v2  ;;  %v14204_v2 = vld [vmem:[#allocation9 + $0x106c] ss:$16 sps:$4 sm:$0xff]  }
 0x3c6   : > { %6321 = vmatpush2.bf16.msra.mxu0 %v14142_v24  ;;  %v14207_v24 = vld [vmem:[#allocation9 + $0x126c] ss:$16 sps:$4 sm:$0xff]  }
 0x3c7   : > { %6362 = vmatpush2.bf16.msra.mxu1 %v14145_v5  ;;  %6322 = vmatprep.subr.bf16.mxu0 %v14150_v28  ;;  %v14202_v5 = vld [vmem:[#allocation9 + $0x1068] ss:$16 sps:$4 sm:$0xff]   ;;  %v14210_v28 = vld [vmem:[#allocation9 + $0x104c] ss:$16 sps:$4 sm:$0xff]  }
 0x3c8   : > { %6363 = vmatprep.subr.bf16.mxu1 %v14153_v31  ;;  %v14213_v31 = vld [vmem:[#allocation9 + $0x124c] ss:$16 sps:$4 sm:$0xff]  }
 0x3ca   : > { %6323 = vmatpush2.bf16.msra.mxu0 %v14148_v32  ;;  %v14208_v32 = vld [vmem:[#allocation9 + $0x1048] ss:$16 sps:$4 sm:$0xff]  }
 0x3cb   : > { %6364 = vmatpush2.bf16.msra.mxu1 %v14151_v33  ;;  %6324 = vmatprep.subr.bf16.mxu0 %v14156_v13  ;;  %v14211_v33 = vld [vmem:[#allocation9 + $0x1248] ss:$16 sps:$4 sm:$0xff]   ;;  %v14216_v13 = vld [vmem:[#allocation9 + $0x102c] ss:$16 sps:$4 sm:$0xff]  }
 0x3cc   : > { %6365 = vmatprep.subr.bf16.mxu1 %v14159_v37  ;;  %v14219_v37 = vld [vmem:[#allocation9 + $0x122c] ss:$16 sps:$4 sm:$0xff]  }
 0x3ce   : > { %6325 = vmatpush2.bf16.msra.mxu0 %v14154_v50  ;;  %v14214_v50 = vld [vmem:[#allocation9 + $0x1028] ss:$16 sps:$4 sm:$0xff]  }
 0x3cf   : > { %6366 = vmatpush2.bf16.msra.mxu1 %v14157_v52  ;;  %6326 = vmatprep.subr.bf16.mxu0 %v14162_v1  ;;  %v14217_v52 = vld [vmem:[#allocation9 + $0x1228] ss:$16 sps:$4 sm:$0xff]   ;;  %v14222_v1 = vld [vmem:[#allocation9 + $0x100c] ss:$16 sps:$4 sm:$0xff]  }
 0x3d0   : > { %6367 = vmatprep.subr.bf16.mxu1 %v14165_v29  ;;  %v14225_v29 = vld [vmem:[#allocation9 + $0x120c] ss:$16 sps:$4 sm:$0xff]  }
 0x3d2   : > { %6327 = vmatpush2.bf16.msra.mxu0 %v14160_v40  ;;  %v14220_v40 = vld [vmem:[#allocation9 + $0x1008] ss:$16 sps:$4 sm:$0xff]  }
 0x3d3   : > { %6368 = vmatpush2.bf16.msra.mxu1 %v14163_v3  ;;  %6328 = vmatprep.subr.bf16.mxu0 %v14168_v23  ;;  %v14223_v3 = vld [vmem:[#allocation9 + $0x1208] ss:$16 sps:$4 sm:$0xff]   ;;  %v14228_v23 = vld [vmem:[#allocation9 + $0x11ec] ss:$16 sps:$4 sm:$0xff]  }
 0x3d4   : > { %6369 = vmatprep.subr.bf16.mxu1 %v14171_v7  ;;  %v14231_v7 = vld [vmem:[#allocation9 + $0x13ec] ss:$16 sps:$4 sm:$0xff]  }
 0x3d6   : > { %6329 = vmatpush2.bf16.msra.mxu0 %v14166_v43  ;;  %v14226_v43 = vld [vmem:[#allocation9 + $0x11e8] ss:$16 sps:$4 sm:$0xff]  }
 0x3d7   : > { %6370 = vmatpush2.bf16.msra.mxu1 %v14169_v44  ;;  %6330 = vmatprep.subr.bf16.mxu0 %v14174_v45  ;;  %v14229_v44 = vld [vmem:[#allocation9 + $0x13e8] ss:$16 sps:$4 sm:$0xff]   ;;  %v14234_v45 = vld [vmem:[#allocation9 + $0x11cc] ss:$16 sps:$4 sm:$0xff]  }
 0x3d8   : > { %6371 = vmatprep.subr.bf16.mxu1 %v14177_v41  ;;  %v14237_v41 = vld [vmem:[#allocation9 + $0x13cc] ss:$16 sps:$4 sm:$0xff]  }
 0x3da   : > { %6331 = vmatpush2.bf16.msra.mxu0 %v14172_v63  ;;  %v14232_v63 = vld [vmem:[#allocation9 + $0x11c8] ss:$16 sps:$4 sm:$0xff]  }
 0x3db   : > { %6372 = vmatpush2.bf16.msra.mxu1 %v14175_v49  ;;  %6382 = vmatprep.subr.bf16.mxu0 %v14180_v38  ;;  %v14243_v49 = vld [vmem:[#allocation9 + $0x13ac] ss:$16 sps:$4 sm:$0xff]   ;;  %v14238_v38 = vld [vmem:[#allocation9 + $0x11a8] ss:$16 sps:$4 sm:$0xff]  }
 0x3dc   : > { %6423 = vmatprep.subr.bf16.mxu1 %v14183_v53  ;;  %v14249_v53 = vld [vmem:[#allocation9 + $0x138c] ss:$16 sps:$4 sm:$0xff]  }
 0x3dd   : > { %v4470_v8 = vpop.f32.mrf.mxu0  ;;  %6333 = vmatmul.mubr.bf16.vlgmr.msra.gmra.mxu0 %v15964_v39 }
 0x3de   : > { %v4511_v10 = vpop.f32.mrf.mxu1  ;;  %6374 = vmatmul.mubr.bf16.vlgmr.msra.gmra.mxu1 %v15966_v14  ;;  %6383 = vmatpush1.bf16.msra.mxu0 %v14178_v54  ;;  %v14244_v54 = vld [vmem:[#allocation9 + $0x1188] ss:$16 sps:$4 sm:$0xff]  }
 0x3df   : > { %v4512_v11 = vadd.f32 %v4511_v10, %v4470_v8  ;;  %6414 = vmatprep.mubr.bf16.mxu0 %v15949_v36  ;;  %6424 = vmatpush1.bf16.msra.mxu1 %v14181_v58  ;;  %v4472_v35 = vpop.f32.mrf.mxu0  ;;  %v14247_v58 = vld [vmem:[#allocation9 + $0x1388] ss:$16 sps:$4 sm:$0xff]   ;;  %v14255_v8 = vld [vmem:[#allocation9 + $0x136c] ss:$16 sps:$4 sm:$0xff]  }
 0x3e0   : > { %6455 = vmatprep.mubr.bf16.mxu1 %v15952_v34  ;;  %v4513_v22 = vpop.f32.mrf.mxu1  ;;  %6384 = vmatprep.subr.bf16.mxu0 %v14186_v20  ;;  %v14198_v34 = vld [vmem:[#allocation9 + $0x108c] ss:$16 sps:$4 sm:$0xff]   ;;  %v14253_v10 = vld [vmem:[#allocation9 + $0x1368] ss:$16 sps:$4 sm:$0xff]  }
 0x3e1   : > { %v15973_v26 = vadd.f32 %v4512_v11, %v15934_v25  ;;  %v4514_v16 = vadd.f32 %v4513_v22, %v4472_v35  ;;  %v4474_v55 = vpop.f32.mrf.mxu0  ;;  %6425 = vmatprep.subr.bf16.mxu1 %v14189_v9  ;;  %v14196_v25 = vld [vmem:[#allocation9 + $0x1088] ss:$16 sps:$4 sm:$0xff]   ;;  %v14252_v20 = vld [vmem:[#allocation9 + $0x116c] ss:$16 sps:$4 sm:$0xff]  }
 0x3e2   : > { %v4515_v17 = vpop.f32.mrf.mxu1  ;;  %6385 = vmatpush1.bf16.msra.mxu0 %v14184_v4  ;;  %v14250_v9 = vld [vmem:[#allocation9 + $0x1168] ss:$16 sps:$4 sm:$0xff]   ;;  %v14258_v4 = vld [vmem:[#allocation9 + $0x114c] ss:$16 sps:$4 sm:$0xff]  }
 0x3e3   : > { %v15976_v36 = vadd.f32 %v4514_v16, %v15938_v61  ;;  %6426 = vmatpush1.bf16.msra.mxu1 %v14187_v12  ;;  %v4475_v27 = vpop.f32.mrf.mxu0  ;;  %6386 = vmatprep.subr.bf16.mxu0 %v14192_v0  ;;  %v14205_v61 = vld [vmem:[#allocation9 + $0x1268] ss:$16 sps:$4 sm:$0xff]   ;;  %v14261_v11 = vld [vmem:[#allocation9 + $0x134c] ss:$16 sps:$4 sm:$0xff]  }
 0x3e4   : > { %v4516_v19 = vpop.f32.mrf.mxu1  ;;  %6427 = vmatprep.subr.bf16.mxu1 %v14195_v15  ;;  %v14256_v35 = vld [vmem:[#allocation9 + $0x1148] ss:$16 sps:$4 sm:$0xff]   ;;  %v14264_v0 = vld [vmem:[#allocation9 + $0x112c] ss:$16 sps:$4 sm:$0xff]  }
 0x3e5   : > { %v14259_v12 = vld [vmem:[#allocation9 + $0x1348] ss:$16 sps:$4 sm:$0xff]   ;;  %v14267_v22 = vld [vmem:[#allocation9 + $0x132c] ss:$16 sps:$4 sm:$0xff]   ;;  %v14279_v19 = vld [vmem:[#allocation10 + $0x4c4] ss:$16 sps:$4 sm:$0xff]  }
 0x3e6   : > { %6387 = vmatpush1.bf16.msra.mxu0 %v14190_v62  ;;  %v14262_v15 = vld [vmem:[#allocation9 + $0x1128] ss:$16 sps:$4 sm:$0xff]   ;;  %v14270_v55 = vld [vmem:[#allocation9 + $0x110c] ss:$16 sps:$4 sm:$0xff]  }
 0x3e7   : > { %6428 = vmatpush1.bf16.msra.mxu1 %v14193_v18  ;;  %6388 = vmatprep.subr.bf16.mxu0 %v14198_v34  ;;  %v14265_v16 = vld [vmem:[#allocation9 + $0x1328] ss:$16 sps:$4 sm:$0xff]   ;;  %v14273_v17 = vld [vmem:[#allocation9 + $0x130c] ss:$16 sps:$4 sm:$0xff]   ;;  %v14276_v18 = vld [vmem:[#allocation10 + $0x4e4] ss:$16 sps:$4 sm:$0xff]  }
 0x3e8   : > { %6429 = vmatprep.subr.bf16.mxu1 %v14201_v21  ;;  %v14268_v62 = vld [vmem:[#allocation9 + $0x1108] ss:$16 sps:$4 sm:$0xff]   ;;  %v14274_v34 = vld [vmem:[#allocation10 + $0x4e0] ss:$16 sps:$4 sm:$0xff]  }
 0x3e9   : > { %v14271_v27 = vld [vmem:[#allocation9 + $0x1308] ss:$16 sps:$4 sm:$0xff]  }
 0x3ea   : > { %6389 = vmatpush1.bf16.msra.mxu0 %v14196_v25 }
 0x3eb   : > { %6430 = vmatpush1.bf16.msra.mxu1 %v14199_v30  ;;  %6390 = vmatprep.subr.bf16.mxu0 %v14204_v2  ;;  %v14277_v30 = vld [vmem:[#allocation10 + $0x4c0] ss:$16 sps:$4 sm:$0xff]  }
 0x3ec   : > { %6431 = vmatprep.subr.bf16.mxu1 %v14207_v24 }
 0x3ee   : > { %6391 = vmatpush1.bf16.msra.mxu0 %v14202_v5  ;;  %v14282_v5 = vld [vmem:[#allocation10 + $0x4a4] ss:$16 sps:$4 sm:$0xff]  }
 0x3ef   : > { %6432 = vmatpush1.bf16.msra.mxu1 %v14205_v61  ;;  %6392 = vmatprep.subr.bf16.mxu0 %v14210_v28 }
 0x3f0   : > { %6433 = vmatprep.subr.bf16.mxu1 %v14213_v31 }
 0x3f2   : > { %6393 = vmatpush1.bf16.msra.mxu0 %v14208_v32 }
 0x3f3   : > { %6434 = vmatpush1.bf16.msra.mxu1 %v14211_v33  ;;  %6394 = vmatprep.subr.bf16.mxu0 %v14216_v13  ;;  %v14280_v13 = vld [vmem:[#allocation10 + $0x4a0] ss:$16 sps:$4 sm:$0xff]  }
 0x3f4   : > { %6435 = vmatprep.subr.bf16.mxu1 %v14219_v37 }
 0x3f6   : > { %6395 = vmatpush1.bf16.msra.mxu0 %v14214_v50 }
 0x3f7   : > { %6436 = vmatpush1.bf16.msra.mxu1 %v14217_v52  ;;  %6396 = vmatprep.subr.bf16.mxu0 %v14222_v1  ;;  %v14283_v52 = vld [vmem:[#allocation10 + $0x480] ss:$16 sps:$4 sm:$0xff]   ;;  %v14288_v1 = vld [vmem:[#allocation10 + $0x464] ss:$16 sps:$4 sm:$0xff]  }
 0x3f8   : > { %6437 = vmatprep.subr.bf16.mxu1 %v14225_v29  ;;  %v14286_v29 = vld [vmem:[#allocation10 + $0x460] ss:$16 sps:$4 sm:$0xff]  }
 0x3fa   : > { %6397 = vmatpush1.bf16.msra.mxu0 %v14220_v40  ;;  %v14289_v40 = vld [vmem:[#allocation10 + $0x440] ss:$16 sps:$4 sm:$0xff]  }
 0x3fb   : > { %6438 = vmatpush1.bf16.msra.mxu1 %v14223_v3  ;;  %6398 = vmatprep.subr.bf16.mxu0 %v14228_v23  ;;  %v14294_v3 = vld [vmem:[#allocation10 + $0x424] ss:$16 sps:$4 sm:$0xff]   ;;  %v14292_v23 = vld [vmem:[#allocation10 + $0x420] ss:$16 sps:$4 sm:$0xff]  }
 0x3fc   : > { %6439 = vmatprep.subr.bf16.mxu1 %v14231_v7  ;;  %v14322_v7 = vld [vmem:[#allocation10 + $0x6e0] ss:$16 sps:$4 sm:$0xff]  }
 0x3fe   : > { %6399 = vmatpush2.bf16.msra.mxu0 %v14226_v43  ;;  %v14324_v43 = vld [vmem:[#allocation10 + $0x6e4] ss:$16 sps:$4 sm:$0xff]  }
 0x3ff   : > { %6440 = vmatpush2.bf16.msra.mxu1 %v14229_v44  ;;  %6400 = vmatprep.subr.bf16.mxu0 %v14234_v45  ;;  %v14330_v44 = vld [vmem:[#allocation10 + $0x6c4] ss:$16 sps:$4 sm:$0xff]   ;;  %v14295_v45 = vld [vmem:[#allocation10 + $0x400] ss:$16 sps:$4 sm:$0xff]  }
 0x400   : > { %6441 = vmatprep.subr.bf16.mxu1 %v14237_v41  ;;  %v14328_v41 = vld [vmem:[#allocation10 + $0x6c0] ss:$16 sps:$4 sm:$0xff]  }
 0x402   : > { %6401 = vmatpush2.bf16.msra.mxu0 %v14232_v63  ;;  %v14300_v63 = vld [vmem:[#allocation10 + $0x5e4] ss:$16 sps:$4 sm:$0xff]  }
 0x403   : > { %6442 = vmatpush2.bf16.msra.mxu1 %v14235_v47  ;;  %6402 = vmatprep.subr.bf16.mxu0 %v14240_v48  ;;  %v14336_v47 = vld [vmem:[#allocation10 + $0x6a4] ss:$16 sps:$4 sm:$0xff]   ;;  %v14298_v48 = vld [vmem:[#allocation10 + $0x5e0] ss:$16 sps:$4 sm:$0xff]  }
 0x404   : > { %6443 = vmatprep.subr.bf16.mxu1 %v14243_v49  ;;  %v14334_v49 = vld [vmem:[#allocation10 + $0x6a0] ss:$16 sps:$4 sm:$0xff]  }
 0x406   : > { %6403 = vmatpush2.bf16.msra.mxu0 %v14238_v38  ;;  %v14303_v38 = vld [vmem:[#allocation10 + $0x5c4] ss:$16 sps:$4 sm:$0xff]  }
 0x407   : > { %6444 = vmatpush2.bf16.msra.mxu1 %v14241_v6  ;;  %6404 = vmatprep.subr.bf16.mxu0 %v14246_v51  ;;  %v14342_v6 = vld [vmem:[#allocation10 + $0x684] ss:$16 sps:$4 sm:$0xff]   ;;  %v14301_v51 = vld [vmem:[#allocation10 + $0x5c0] ss:$16 sps:$4 sm:$0xff]  }
 0x408   : > { %6445 = vmatprep.subr.bf16.mxu1 %v14249_v53  ;;  %v14340_v53 = vld [vmem:[#allocation10 + $0x680] ss:$16 sps:$4 sm:$0xff]  }
 0x40a   : > { %6405 = vmatpush2.bf16.msra.mxu0 %v14244_v54  ;;  %v14306_v54 = vld [vmem:[#allocation10 + $0x5a4] ss:$16 sps:$4 sm:$0xff]  }
 0x40b   : > { %6446 = vmatpush2.bf16.msra.mxu1 %v14247_v58  ;;  %6406 = vmatprep.subr.bf16.mxu0 %v14252_v20  ;;  %v14348_v58 = vld [vmem:[#allocation10 + $0x664] ss:$16 sps:$4 sm:$0xff]   ;;  %v14304_v20 = vld [vmem:[#allocation10 + $0x5a0] ss:$16 sps:$4 sm:$0xff]  }
 0x40c   : > { %6447 = vmatprep.subr.bf16.mxu1 %v14255_v8  ;;  %v14346_v8 = vld [vmem:[#allocation10 + $0x660] ss:$16 sps:$4 sm:$0xff]  }
 0x40e   : > { %6407 = vmatpush2.bf16.msra.mxu0 %v14250_v9  ;;  %v14309_v9 = vld [vmem:[#allocation10 + $0x584] ss:$16 sps:$4 sm:$0xff]  }
 0x40f   : > { %6448 = vmatpush2.bf16.msra.mxu1 %v14253_v10  ;;  %6408 = vmatprep.subr.bf16.mxu0 %v14258_v4  ;;  %v14354_v10 = vld [vmem:[#allocation10 + $0x644] ss:$16 sps:$4 sm:$0xff]   ;;  %v14307_v4 = vld [vmem:[#allocation10 + $0x580] ss:$16 sps:$4 sm:$0xff]  }
 0x410   : > { %6449 = vmatprep.subr.bf16.mxu1 %v14261_v11  ;;  %v14352_v11 = vld [vmem:[#allocation10 + $0x640] ss:$16 sps:$4 sm:$0xff]  }
 0x412   : > { %6409 = vmatpush2.bf16.msra.mxu0 %v14256_v35  ;;  %v14312_v35 = vld [vmem:[#allocation10 + $0x564] ss:$16 sps:$4 sm:$0xff]  }
 0x413   : > { %6450 = vmatpush2.bf16.msra.mxu1 %v14259_v12  ;;  %6410 = vmatprep.subr.bf16.mxu0 %v14264_v0  ;;  %v14360_v12 = vld [vmem:[#allocation10 + $0x624] ss:$16 sps:$4 sm:$0xff]   ;;  %v14310_v0 = vld [vmem:[#allocation10 + $0x560] ss:$16 sps:$4 sm:$0xff]  }
 0x414   : > { %6451 = vmatprep.subr.bf16.mxu1 %v14267_v22  ;;  %v14358_v22 = vld [vmem:[#allocation10 + $0x620] ss:$16 sps:$4 sm:$0xff]  }
 0x416   : > { %6411 = vmatpush2.bf16.msra.mxu0 %v14262_v15  ;;  %v14315_v15 = vld [vmem:[#allocation10 + $0x544] ss:$16 sps:$4 sm:$0xff]  }
 0x417   : > { %6452 = vmatpush2.bf16.msra.mxu1 %v14265_v16  ;;  %6412 = vmatprep.subr.bf16.mxu0 %v14270_v55  ;;  %v14366_v16 = vld [vmem:[#allocation10 + $0x604] ss:$16 sps:$4 sm:$0xff]   ;;  %v14313_v55 = vld [vmem:[#allocation10 + $0x540] ss:$16 sps:$4 sm:$0xff]  }
 0x418   : > { %6453 = vmatprep.subr.bf16.mxu1 %v14273_v17  ;;  %v14364_v17 = vld [vmem:[#allocation10 + $0x600] ss:$16 sps:$4 sm:$0xff]  }
 0x41a   : > { %6413 = vmatpush2.bf16.msra.mxu0 %v14268_v62  ;;  %v14318_v62 = vld [vmem:[#allocation10 + $0x524] ss:$16 sps:$4 sm:$0xff]  }
 0x41b   : > { %6454 = vmatpush2.bf16.msra.mxu1 %v14271_v27  ;;  %7471 = vmatprep.subr.bf16.mxu0 %v14276_v18  ;;  %v14372_v27 = vld [vmem:[#allocation10 + $0x7e4] ss:$16 sps:$4 sm:$0xff]   ;;  %v14316_v18 = vld [vmem:[#allocation10 + $0x520] ss:$16 sps:$4 sm:$0xff]  }
 0x41c   : > { %7512 = vmatprep.subr.bf16.mxu1 %v14324_v43  ;;  %v14408_v43 = vld [vmem:[#allocation10 + $0x724] ss:$16 sps:$4 sm:$0xff]  }
 0x41d   : > { %v5377_v21 = vpop.f32.mrf.mxu0  ;;  %6415 = vmatmul.mubr.bf16.vlgmr.msra.gmra.mxu0 %v15964_v39 }
 0x41e   : > { %v5418_v25 = vpop.f32.mrf.mxu1  ;;  %6456 = vmatmul.mubr.bf16.vlgmr.msra.gmra.mxu1 %v15966_v14  ;;  %7472 = vmatpush1.bf16.msra.mxu0 %v14274_v34  ;;  %v14285_v14 = vld [vmem:[#allocation10 + $0x484] ss:$16 sps:$4 sm:$0xff]   ;;  %v14370_v34 = vld [vmem:[#allocation10 + $0x7e0] ss:$16 sps:$4 sm:$0xff]  }
 0x41f   : > { %v5419_v2 = vadd.f32 %v5418_v25, %v5377_v21  ;;  %v5379_v24 = vpop.f32.mrf.mxu0  ;;  %7473 = vmatprep.subr.bf16.mxu0 %v14279_v19  ;;  %7513 = vmatpush1.bf16.msra.mxu1 %v14322_v7  ;;  %v14321_v19 = vld [vmem:[#allocation10 + $0x504] ss:$16 sps:$4 sm:$0xff]   ;;  %v14319_v21 = vld [vmem:[#allocation10 + $0x500] ss:$16 sps:$4 sm:$0xff]   ;;  %v14327_v25 = vld [vmem:[#allocation10 + $0x4ec] ss:$16 sps:$4 sm:$0xff]  }
 0x420   : > { %v5420_v61 = vpop.f32.mrf.mxu1  ;;  %7514 = vmatprep.subr.bf16.mxu1 %v14330_v44  ;;  %v14402_v7 = vld [vmem:[#allocation10 + $0x744] ss:$16 sps:$4 sm:$0xff]   ;;  %v14406_v44 = vld [vmem:[#allocation10 + $0x720] ss:$16 sps:$4 sm:$0xff]  }
 0x421   : > { %v15981_v28 = vadd.f32 %v5419_v2, %v15957_v42  ;;  %v5421_v31 = vadd.f32 %v5420_v61, %v5379_v24  ;;  %v5381_v32 = vpop.f32.mrf.mxu0  ;;  %v14291_v42 = vld [vmem:[#allocation10 + $0x444] ss:$16 sps:$4 sm:$0xff]   ;;  %v14376_v2 = vld [vmem:[#allocation10 + $0x7c0] ss:$16 sps:$4 sm:$0xff]  }
 0x422   : > { %v5422_v33 = vpop.f32.mrf.mxu1  ;;  %7474 = vmatpush1.bf16.msra.mxu0 %v14277_v30  ;;  %v14378_v30 = vld [vmem:[#allocation10 + $0x7c4] ss:$16 sps:$4 sm:$0xff]  }
 0x423   : > { %v15984_v39 = vadd.f32 %v5421_v31, %v15960_v46  ;;  %v5382_v37 = vpop.f32.mrf.mxu0  ;;  %7475 = vmatprep.subr.bf16.mxu0 %v14282_v5  ;;  %v14297_v46 = vld [vmem:[#allocation10 + $0x404] ss:$16 sps:$4 sm:$0xff]   ;;  %7515 = vmatpush1.bf16.msra.mxu1 %v14328_v41  ;;  %v14382_v33 = vld [vmem:[#allocation10 + $0x7a0] ss:$16 sps:$4 sm:$0xff]   ;;  %v14420_v41 = vld [vmem:[#allocation10 + $0x6ec] ss:$16 sps:$4 sm:$0xff]  }
 0x424   : > { %v5423_v50 = vpop.f32.mrf.mxu1  ;;  %7516 = vmatprep.subr.bf16.mxu1 %v14336_v47  ;;  %v14384_v61 = vld [vmem:[#allocation10 + $0x7a4] ss:$16 sps:$4 sm:$0xff]  }
 0x426   : > { %7476 = vmatpush1.bf16.msra.mxu0 %v14280_v13 }
 0x427   : > { %7477 = vmatprep.subr.bf16.mxu0 %v14285_v14  ;;  %7517 = vmatpush1.bf16.msra.mxu1 %v14334_v49 }
 0x428   : > { %7518 = vmatprep.subr.bf16.mxu1 %v14342_v6 }
 0x42a   : > { %7478 = vmatpush1.bf16.msra.mxu0 %v14283_v52 }
 0x42b   : > { %7479 = vmatprep.subr.bf16.mxu0 %v14288_v1  ;;  %7519 = vmatpush1.bf16.msra.mxu1 %v14340_v53  ;;  %v14390_v1 = vld [vmem:[#allocation10 + $0x784] ss:$16 sps:$4 sm:$0xff]  }
 0x42c   : > { %7520 = vmatprep.subr.bf16.mxu1 %v14348_v58 }
 0x42e   : > { %7480 = vmatpush1.bf16.msra.mxu0 %v14286_v29 }
 0x42f   : > { %7481 = vmatprep.subr.bf16.mxu0 %v14291_v42  ;;  %7521 = vmatpush1.bf16.msra.mxu1 %v14346_v8 }
 0x430   : > { %7522 = vmatprep.subr.bf16.mxu1 %v14354_v10 }
 0x432   : > { %7482 = vmatpush1.bf16.msra.mxu0 %v14289_v40  ;;  %v14388_v40 = vld [vmem:[#allocation10 + $0x780] ss:$16 sps:$4 sm:$0xff]  }
 0x433   : > { %7483 = vmatprep.subr.bf16.mxu0 %v14294_v3  ;;  %7523 = vmatpush1.bf16.msra.mxu1 %v14352_v11 }
 0x434   : > { %7524 = vmatprep.subr.bf16.mxu1 %v14360_v12 }
 0x436   : > { %7484 = vmatpush1.bf16.msra.mxu0 %v14292_v23  ;;  %v14396_v23 = vld [vmem:[#allocation10 + $0x764] ss:$16 sps:$4 sm:$0xff]  }
 0x437   : > { %7485 = vmatprep.subr.bf16.mxu0 %v14297_v46  ;;  %7525 = vmatpush1.bf16.msra.mxu1 %v14358_v22  ;;  %v14394_v46 = vld [vmem:[#allocation10 + $0x760] ss:$16 sps:$4 sm:$0xff]   ;;  %v16002_v22 = vld [vmem:[#allocation2] sm:$0x88] }
 0x438   : > { %7526 = vmatprep.subr.bf16.mxu1 %v14366_v16 }
 0x43a   : > { %7486 = vmatpush1.bf16.msra.mxu0 %v14295_v45  ;;  %v14414_v45 = vld [vmem:[#allocation10 + $0x704] ss:$16 sps:$4 sm:$0xff]  }
 0x43b   : > { %7487 = vmatprep.subr.bf16.mxu0 %v14300_v63  ;;  %7527 = vmatpush1.bf16.msra.mxu1 %v14364_v17  ;;  %v15992_v63 = vld [vmem:[#allocation13] sm:$0xf] }
 0x43c   : > { %7528 = vmatprep.subr.bf16.mxu1 %v14372_v27  ;;  %v6477_v58 = vrot.slane %v15992_v63, %v15812_v59 }
 0x43e   : > { %7488 = vmatpush2.bf16.msra.mxu0 %v14298_v48 }
 0x43f   : > { %7489 = vmatprep.subr.bf16.mxu0 %v14303_v38  ;;  %7529 = vmatpush2.bf16.msra.mxu1 %v14370_v34  ;;  %v6473_v38 = vrot.slane %v15992_v63, %v15808_v56 }
 0x440   : > { %7530 = vmatprep.subr.bf16.mxu1 %v14378_v30 }
 0x442   : > { %7490 = vmatpush2.bf16.msra.mxu0 %v14301_v51 }
 0x443   : > { %7491 = vmatprep.subr.bf16.mxu0 %v14306_v54  ;;  %7531 = vmatpush2.bf16.msra.mxu1 %v14376_v2  ;;  %v14333_v2 = vld [vmem:[#allocation10 + $0x4cc] ss:$16 sps:$4 sm:$0xff]  }
 0x444   : > { %7532 = vmatprep.subr.bf16.mxu1 %v14384_v61  ;;  %v14337_v61 = vld [vmem:[#allocation10 + $0x4a8] ss:$16 sps:$4 sm:$0xff]  }
 0x446   : > { %7492 = vmatpush2.bf16.msra.mxu0 %v14304_v20 }
 0x447   : > { %7493 = vmatprep.subr.bf16.mxu0 %v14309_v9  ;;  %7533 = vmatpush2.bf16.msra.mxu1 %v14382_v33  ;;  %v14351_v33 = vld [vmem:[#allocation10 + $0x46c] ss:$16 sps:$4 sm:$0xff]  }
 0x448   : > { %7534 = vmatprep.subr.bf16.mxu1 %v14390_v1  ;;  %v14361_v1 = vld [vmem:[#allocation10 + $0x428] ss:$16 sps:$4 sm:$0xff]  }
 0x44a   : > { %7494 = vmatpush2.bf16.msra.mxu0 %v14307_v4 }
 0x44b   : > { %7495 = vmatprep.subr.bf16.mxu0 %v14312_v35  ;;  %7535 = vmatpush2.bf16.msra.mxu1 %v14388_v40  ;;  %v14367_v40 = vld [vmem:[#allocation10 + $0x408] ss:$16 sps:$4 sm:$0xff]  }
 0x44c   : > { %7536 = vmatprep.subr.bf16.mxu1 %v14396_v23  ;;  %v14373_v23 = vld [vmem:[#allocation10 + $0x5e8] ss:$16 sps:$4 sm:$0xff]  }
 0x44e   : > { %7496 = vmatpush2.bf16.msra.mxu0 %v14310_v0 }
 0x44f   : > { %7497 = vmatprep.subr.bf16.mxu0 %v14315_v15  ;;  %7537 = vmatpush2.bf16.msra.mxu1 %v14394_v46  ;;  %v14381_v46 = vld [vmem:[#allocation10 + $0x5cc] ss:$16 sps:$4 sm:$0xff]  }
 0x450   : > { %7538 = vmatprep.subr.bf16.mxu1 %v14402_v7  ;;  %v14379_v7 = vld [vmem:[#allocation10 + $0x5c8] ss:$16 sps:$4 sm:$0xff]  }
 0x452   : > { %7498 = vmatpush2.bf16.msra.mxu0 %v14313_v55 }
 0x453   : > { %7499 = vmatprep.subr.bf16.mxu0 %v14318_v62 }
 0x456   : > { %7500 = vmatpush2.bf16.msra.mxu0 %v14316_v18 }
 0x457   : > { %7501 = vmatprep.subr.bf16.mxu0 %v14321_v19 }
 0x45a   : > { %7502 = vmatpush2.bf16.msra.mxu0 %v14319_v21 }
 0x45b   : > { %7553 = vmatprep.subr.bf16.mxu0 %v14327_v25  ;;  %v14325_v25 = vld [vmem:[#allocation10 + $0x4e8] ss:$16 sps:$4 sm:$0xff]  }
 0x45d   : > { %v5459_v24 = vpop.f32.mrf.mxu0 }
 0x45e   : > { %v5500_v5 = vpop.f32.mrf.mxu1 }
 0x45f   : > { %v5501_v31 = vadd.f32 %v5500_v5, %v5459_v24  ;;  %v5461_v32 = vpop.f32.mrf.mxu0  ;;  %v14331_v24 = vld [vmem:[#allocation10 + $0x4c8] ss:$16 sps:$4 sm:$0xff]   ;;  %v14339_v5 = vld [vmem:[#allocation10 + $0x4ac] ss:$16 sps:$4 sm:$0xff]  }
 0x460   : > { %v5502_v13 = vpop.f32.mrf.mxu1 }
 0x461   : > { %v15987_v37 = vadd.f32 %v5501_v31, %v15973_v26  ;;  %v5503_v14 = vadd.f32 %v5502_v13, %v5461_v32  ;;  %v5463_v50 = vpop.f32.mrf.mxu0  ;;  %v14400_v26 = vld [vmem:[#allocation10 + $0x740] ss:$16 sps:$4 sm:$0xff]   ;;  %v14345_v31 = vld [vmem:[#allocation10 + $0x48c] ss:$16 sps:$4 sm:$0xff]   ;;  %v14343_v32 = vld [vmem:[#allocation10 + $0x488] ss:$16 sps:$4 sm:$0xff]  }
 0x462   : > { %v5504_v52 = vpop.f32.mrf.mxu1  ;;  %7539 = vmatpush2.bf16.msra.mxu1 %v14400_v26  ;;  %v14349_v13 = vld [vmem:[#allocation10 + $0x468] ss:$16 sps:$4 sm:$0xff]   ;;  %v14387_v26 = vld [vmem:[#allocation10 + $0x5ac] ss:$16 sps:$4 sm:$0xff]  }
 0x463   : > { %v15990_v29 = vadd.f32 %v5503_v14, %v15976_v36  ;;  %v5464_v42 = vpop.f32.mrf.mxu0  ;;  %7540 = vmatprep.subr.bf16.mxu1 %v14408_v43  ;;  %v14412_v36 = vld [vmem:[#allocation10 + $0x700] ss:$16 sps:$4 sm:$0xff]   ;;  %v14357_v14 = vld [vmem:[#allocation10 + $0x44c] ss:$16 sps:$4 sm:$0xff]   ;;  %v14355_v50 = vld [vmem:[#allocation10 + $0x448] ss:$16 sps:$4 sm:$0xff]  }
 0x464   : > { %v5505_v3 = vpop.f32.mrf.mxu1  ;;  %v14363_v52 = vld [vmem:[#allocation10 + $0x42c] ss:$16 sps:$4 sm:$0xff]   ;;  %v14385_v43 = vld [vmem:[#allocation10 + $0x5a8] ss:$16 sps:$4 sm:$0xff]  }
 0x465   : > { %v14369_v42 = vld [vmem:[#allocation10 + $0x40c] ss:$16 sps:$4 sm:$0xff]  }
 0x466   : > { %7541 = vmatpush2.bf16.msra.mxu1 %v14406_v44  ;;  %v14375_v3 = vld [vmem:[#allocation10 + $0x5ec] ss:$16 sps:$4 sm:$0xff]  }
 0x467   : > { %7542 = vmatprep.subr.bf16.mxu1 %v14414_v45  ;;  %v14393_v44 = vld [vmem:[#allocation10 + $0x58c] ss:$16 sps:$4 sm:$0xff]  }
 0x46a   : > { %7543 = vmatpush2.bf16.msra.mxu1 %v14412_v36  ;;  %v14391_v36 = vld [vmem:[#allocation10 + $0x588] ss:$16 sps:$4 sm:$0xff]  }
 0x46b   : > { %7594 = vmatprep.subr.bf16.mxu1 %v14420_v41 }
 0x49d   : > { %v6334_v47 = vpop.f32.mrf.mxu0 }
 0x49e   : > { %v6375_v48 = vpop.f32.mrf.mxu1 }
 0x49f   : > { %v6376_v49 = vadd.f32 %v6375_v48, %v6334_v47  ;;  %v6336_v6 = vpop.f32.mrf.mxu0  ;;  %v14399_v47 = vld [vmem:[#allocation10 + $0x56c] ss:$16 sps:$4 sm:$0xff]  }
 0x4a0   : > { %v6377_v51 = vpop.f32.mrf.mxu1 }
 0x4a1   : > { %v6464_v53 = vadd.f32 %v6376_v49, %v15981_v28  ;;  %v6378_v54 = vadd.f32 %v6377_v51, %v6336_v6  ;;  %v6338_v20 = vpop.f32.mrf.mxu0  ;;  %v6481_v49 = vrot.slane %v15992_v63, %v15810_v57 }
 0x4a2   : > { %v6379_v8 = vpop.f32.mrf.mxu1  ;;  %v14397_v20 = vld [vmem:[#allocation10 + $0x568] ss:$16 sps:$4 sm:$0xff]  }
 0x4a3   : > { %v6490_v9 = vadd.f32 %v6473_v38, %v6464_v53  ;;  %v6465_v10 = vadd.f32 %v6378_v54, %v15984_v39  ;;  %v6339_v4 = vpop.f32.mrf.mxu0  ;;  %v6485_v54 = vrot.slane %v15992_v63, %v15814_v60  ;;  %v16018_v63 = vld [vmem:[#allocation2 + $0x8] sm:$0x88] }
 0x4a4   : > { %v6380_v11 = vpop.f32.mrf.mxu1 }
 0x4a5   : > { %v6491_v35 = vadd.f32 %v6477_v58, %v6465_v10  ;;  %v6494_v12 = vmax.f32 %v6490_v9, 0.0  ;;  %v14405_v9 = vld [vmem:[#allocation10 + $0x54c] ss:$16 sps:$4 sm:$0xff]  }
 0x4a7   : > { %v16000_v0 = vmax.f32 %v6491_v35, 0.0 }
 0x4a9   : > { %v13009_v15 = vpack.c.bf16 %v16000_v0, %v6494_v12 }
 0x4ab   : > { %6514 = vst [vmem:[#allocation2 + $0x10] sm:$0xff] %v13009_v15  ;;  %v12343_v28 = vcombine.high %v16002_v22, %v13009_v15  ;;  %v12342_v16 = vcombine.low %v16002_v22, %v13009_v15  ;;  %v14403_v15 = vld [vmem:[#allocation10 + $0x548] ss:$16 sps:$4 sm:$0xff]  }
 0x4ad   : > { %v6804_v55 = vshrl.u32 %v12343_v28, 16  ;;  %v6807_v17 = vshll.u32 %v12343_v28, 16  ;;  %v6796_v62 = vshrl.u32 %v12342_v16, 16  ;;  %v6799_v27 = vshll.u32 %v12342_v16, 16 }
 0x4af   : > { %v6806_v39 = vrot.slane %v6804_v55, 3  ;;  %v6809_v18 = vrot.slane %v6807_v17, 4  ;;  %v6798_v34 = vrot.slane %v6796_v62, 3  ;;  %v6801_v19 = vrot.slane %v6799_v27, 4  ;;  %v14409_v17 = vld [vmem:[#allocation10 + $0x528] ss:$16 sps:$4 sm:$0xff]  }
 0x4b0   : > { %v14417_v62 = vld [vmem:[#allocation10 + $0x50c] ss:$16 sps:$4 sm:$0xff]  }
 0x4b1   : > { %v6810_v21 = vor.u32 %v6809_v18, %v6806_v39  ;;  %v16007_v30 = vor.u32 %v6801_v19, %v6798_v34  ;;  %v14415_v39 = vld [vmem:[#allocation10 + $0x508] ss:$16 sps:$4 sm:$0xff]  }
 0x4b3   : > { %7503 = vmatprep.mubr.bf16.mxu0 %v6810_v21 }
 0x4b4   : > { %7504 = vmatmul.mubr.bf16.vlgmr.msra.gmra.mxu0 %v16007_v30 }
 0x4b5   : > { %7554 = vmatpush1.bf16.msra.mxu0 %v14325_v25  ;;  %7585 = vmatprep.mubr.bf16.mxu0 %v6810_v21  ;;  %v16023_v25 = vld [vmem:[#allocation2 + $0x10] sm:$0x77] }
 0x4b6   : > { %7555 = vmatprep.subr.bf16.mxu0 %v14333_v2  ;;  %v14423_v2 = vld [vmem:[#allocation10 + $0xe4] ss:$16 sps:$4 sm:$0xff]  }
 0x4b9   : > { %7556 = vmatpush1.bf16.msra.mxu0 %v14331_v24 }
 0x4ba   : > { %7557 = vmatprep.subr.bf16.mxu0 %v14339_v5 }
 0x4bd   : > { %7558 = vmatpush1.bf16.msra.mxu0 %v14337_v61 }
 0x4be   : > { %7559 = vmatprep.subr.bf16.mxu0 %v14345_v31 }
 0x4c1   : > { %7560 = vmatpush1.bf16.msra.mxu0 %v14343_v32  ;;  %v12475_v32 = vcombine.high %v16002_v22, %v16023_v25 }
 0x4c2   : > { %7561 = vmatprep.subr.bf16.mxu0 %v14351_v33 }
 0x4c5   : > { %7562 = vmatpush1.bf16.msra.mxu0 %v14349_v13  ;;  %v14418_v13 = vld [vmem:[#allocation10 + $0x6e8] ss:$16 sps:$4 sm:$0xff]  }
 0x4c6   : > { %7563 = vmatprep.subr.bf16.mxu0 %v14357_v14  ;;  %v14421_v14 = vld [vmem:[#allocation10 + $0xe0] ss:$16 sps:$4 sm:$0xff]  }
 0x4c9   : > { %7564 = vmatpush1.bf16.msra.mxu0 %v14355_v50 }
 0x4ca   : > { %7565 = vmatprep.subr.bf16.mxu0 %v14363_v52  ;;  %v14428_v52 = vld [vmem:[#allocation10 + $0x6cc] ss:$16 sps:$4 sm:$0xff]  }
 0x4cd   : > { %7566 = vmatpush1.bf16.msra.mxu0 %v14361_v1  ;;  %v14431_v1 = vld [vmem:[#allocation10 + $0xc4] ss:$16 sps:$4 sm:$0xff]  }
 0x4ce   : > { %7567 = vmatprep.subr.bf16.mxu0 %v14369_v42  ;;  %v16031_v42 = vrot.slane %v12475_v32, 3  ;;  %v14503_v32 = vld [vmem:[#allocation10 + $0x144] ss:$16 sps:$4 sm:$0xff]  }
 0x4d1   : > { %7568 = vmatpush1.bf16.msra.mxu0 %v14367_v40  ;;  %v14426_v40 = vld [vmem:[#allocation10 + $0x6c8] ss:$16 sps:$4 sm:$0xff]  }
 0x4d2   : > { %7569 = vmatprep.subr.bf16.mxu0 %v14375_v3  ;;  %v14429_v3 = vld [vmem:[#allocation10 + $0xc0] ss:$16 sps:$4 sm:$0xff]  }
 0x4d5   : > { %7570 = vmatpush2.bf16.msra.mxu0 %v14373_v23  ;;  %v14434_v23 = vld [vmem:[#allocation10 + $0x6ac] ss:$16 sps:$4 sm:$0xff]  }
 0x4d6   : > { %7571 = vmatprep.subr.bf16.mxu0 %v14381_v46  ;;  %v14437_v46 = vld [vmem:[#allocation10 + $0xa4] ss:$16 sps:$4 sm:$0xff]  }
 0x4d9   : > { %7572 = vmatpush2.bf16.msra.mxu0 %v14379_v7  ;;  %v14432_v7 = vld [vmem:[#allocation10 + $0x6a8] ss:$16 sps:$4 sm:$0xff]  }
 0x4da   : > { %7573 = vmatprep.subr.bf16.mxu0 %v14387_v26  ;;  %v14435_v26 = vld [vmem:[#allocation10 + $0xa0] ss:$16 sps:$4 sm:$0xff]  }
 0x4dd   : > { %v6416_v45 = vpop.f32.mrf.mxu0  ;;  %7574 = vmatpush2.bf16.msra.mxu0 %v14385_v43  ;;  %v14443_v43 = vld [vmem:[#allocation10 + $0x84] ss:$16 sps:$4 sm:$0xff]  }
 0x4de   : > { %v6457_v41 = vpop.f32.mrf.mxu1  ;;  %7575 = vmatprep.subr.bf16.mxu0 %v14393_v44  ;;  %v14438_v44 = vld [vmem:[#allocation10 + $0x688] ss:$16 sps:$4 sm:$0xff]  }
 0x4df   : > { %v6458_v48 = vadd.f32 %v6457_v41, %v6416_v45  ;;  %v6418_v38 = vpop.f32.mrf.mxu0  ;;  %v14441_v45 = vld [vmem:[#allocation10 + $0x80] ss:$16 sps:$4 sm:$0xff]   ;;  %v14449_v41 = vld [vmem:[#allocation10 + $0x64] ss:$16 sps:$4 sm:$0xff]  }
 0x4e0   : > { %v6459_v6 = vpop.f32.mrf.mxu1 }
 0x4e1   : > { %v6466_v51 = vadd.f32 %v6458_v48, %v15987_v37  ;;  %v6460_v53 = vadd.f32 %v6459_v6, %v6418_v38  ;;  %v6420_v58 = vpop.f32.mrf.mxu0  ;;  %7576 = vmatpush2.bf16.msra.mxu0 %v14391_v36  ;;  %v14411_v37 = vld [vmem:[#allocation10 + $0x52c] ss:$16 sps:$4 sm:$0xff]   ;;  %v14447_v48 = vld [vmem:[#allocation10 + $0x60] ss:$16 sps:$4 sm:$0xff]   ;;  %v14455_v38 = vld [vmem:[#allocation10 + $0x44] ss:$16 sps:$4 sm:$0xff]  }
 0x4e2   : > { %v6461_v8 = vpop.f32.mrf.mxu1  ;;  %7577 = vmatprep.subr.bf16.mxu0 %v14399_v47  ;;  %v14446_v36 = vld [vmem:[#allocation10 + $0x66c] ss:$16 sps:$4 sm:$0xff]   ;;  %v14444_v47 = vld [vmem:[#allocation10 + $0x668] ss:$16 sps:$4 sm:$0xff]  }
 0x4e3   : > { %v6492_v10 = vadd.f32 %v6481_v49, %v6466_v51  ;;  %v6467_v4 = vadd.f32 %v6460_v53, %v15990_v29  ;;  %v6421_v11 = vpop.f32.mrf.mxu0  ;;  %v14452_v49 = vld [vmem:[#allocation10 + $0x64c] ss:$16 sps:$4 sm:$0xff]   ;;  %v14450_v6 = vld [vmem:[#allocation10 + $0x648] ss:$16 sps:$4 sm:$0xff]   ;;  %v14453_v51 = vld [vmem:[#allocation10 + $0x40] ss:$16 sps:$4 sm:$0xff]  }
 0x4e4   : > { %v6462_v35 = vpop.f32.mrf.mxu1  ;;  %v14458_v53 = vld [vmem:[#allocation10 + $0x62c] ss:$16 sps:$4 sm:$0xff]   ;;  %v14456_v58 = vld [vmem:[#allocation10 + $0x628] ss:$16 sps:$4 sm:$0xff]  }
 0x4e5   : > { %v6493_v12 = vadd.f32 %v6485_v54, %v6467_v4  ;;  %7578 = vmatpush2.bf16.msra.mxu0 %v14397_v20  ;;  %v6496_v28 = vmax.f32 %v6492_v10, 0.0  ;;  %v14461_v54 = vld [vmem:[#allocation10 + $0x24] ss:$16 sps:$4 sm:$0xff]   ;;  %v14459_v20 = vld [vmem:[#allocation10 + $0x20] ss:$16 sps:$4 sm:$0xff]  }
 0x4e6   : > { %7579 = vmatprep.subr.bf16.mxu0 %v14405_v9  ;;  %v14464_v8 = vld [vmem:[#allocation10 + $0x60c] ss:$16 sps:$4 sm:$0xff]   ;;  %v14467_v9 = vld [vmem:[#allocation10 + $0x4] ss:$16 sps:$4 sm:$0xff]   ;;  %v14462_v10 = vld [vmem:[#allocation10 + $0x608] ss:$16 sps:$4 sm:$0xff]  }
 0x4e7   : > { %v16016_v16 = vmax.f32 %v6493_v12, 0.0  ;;  %v14465_v4 = vld [vmem:[#allocation10] ss:$16 sps:$4 sm:$0xff]   ;;  %v14470_v11 = vld [vmem:[#allocation10 + $0x7ec] ss:$16 sps:$4 sm:$0xff]  }
 0x4e8   : > { %v14473_v35 = vld [vmem:[#allocation10 + $0x1e4] ss:$16 sps:$4 sm:$0xff]   ;;  %v14468_v12 = vld [vmem:[#allocation10 + $0x7e8] ss:$16 sps:$4 sm:$0xff]  }
 0x4e9   : > { %v13010_v55 = vpack.c.bf16 %v16016_v16, %v6496_v28  ;;  %7580 = vmatpush2.bf16.msra.mxu0 %v14403_v15  ;;  %v14471_v15 = vld [vmem:[#allocation10 + $0x1e0] ss:$16 sps:$4 sm:$0xff]   ;;  %v14479_v28 = vld [vmem:[#allocation10 + $0x1c4] ss:$16 sps:$4 sm:$0xff]  }
 0x4ea   : > { %7581 = vmatprep.subr.bf16.mxu0 %v14411_v37  ;;  %v14476_v37 = vld [vmem:[#allocation10 + $0x7cc] ss:$16 sps:$4 sm:$0xff]  }
 0x4eb   : > { %6515 = vst [vmem:[#allocation2 + $0x18] sm:$0xff] %v13010_v55  ;;  %v12345_v29 = vcombine.high %v16018_v63, %v13010_v55  ;;  %v12344_v27 = vcombine.low %v16018_v63, %v13010_v55  ;;  %v14474_v55 = vld [vmem:[#allocation10 + $0x7c8] ss:$16 sps:$4 sm:$0xff]  }
 0x4ed   : > { %7582 = vmatpush2.bf16.msra.mxu0 %v14409_v17  ;;  %v6820_v18 = vshrl.u32 %v12345_v29, 16  ;;  %v6823_v34 = vshll.u32 %v12345_v29, 16  ;;  %v6812_v19 = vshrl.u32 %v12344_v27, 16  ;;  %v6815_v21 = vshll.u32 %v12344_v27, 16  ;;  %v14477_v17 = vld [vmem:[#allocation10 + $0x1c0] ss:$16 sps:$4 sm:$0xff]  }
 0x4ee   : > { %7583 = vmatprep.subr.bf16.mxu0 %v14417_v62  ;;  %v14482_v62 = vld [vmem:[#allocation10 + $0x7ac] ss:$16 sps:$4 sm:$0xff]   ;;  %v14485_v29 = vld [vmem:[#allocation10 + $0x1a4] ss:$16 sps:$4 sm:$0xff]   ;;  %v14480_v27 = vld [vmem:[#allocation10 + $0x7a8] ss:$16 sps:$4 sm:$0xff]  }
 0x4ef   : > { %v6822_v24 = vrot.slane %v6820_v18, 3  ;;  %v6825_v5 = vrot.slane %v6823_v34, 4  ;;  %v6814_v61 = vrot.slane %v6812_v19, 3  ;;  %v6817_v31 = vrot.slane %v6815_v21, 4  ;;  %v14488_v18 = vld [vmem:[#allocation10 + $0x78c] ss:$16 sps:$4 sm:$0xff]  }
 0x4f0   : > { %v14491_v34 = vld [vmem:[#allocation10 + $0x184] ss:$16 sps:$4 sm:$0xff]   ;;  %v14486_v19 = vld [vmem:[#allocation10 + $0x788] ss:$16 sps:$4 sm:$0xff]   ;;  %v14489_v21 = vld [vmem:[#allocation10 + $0x180] ss:$16 sps:$4 sm:$0xff]  }
 0x4f1   : > { %7584 = vmatpush2.bf16.msra.mxu0 %v14415_v39  ;;  %v6826_v33 = vor.u32 %v6825_v5, %v6822_v24  ;;  %v16027_v50 = vor.u32 %v6817_v31, %v6814_v61  ;;  %v14483_v39 = vld [vmem:[#allocation10 + $0x1a0] ss:$16 sps:$4 sm:$0xff]   ;;  %v14497_v24 = vld [vmem:[#allocation10 + $0x164] ss:$16 sps:$4 sm:$0xff]   ;;  %v14492_v5 = vld [vmem:[#allocation10 + $0x768] ss:$16 sps:$4 sm:$0xff]  }
 0x4f2   : > { %8293 = vmatprep.subr.bf16.mxu0 %v14423_v2  ;;  %v14494_v2 = vld [vmem:[#allocation10 + $0x76c] ss:$16 sps:$4 sm:$0xff]   ;;  %v14495_v61 = vld [vmem:[#allocation10 + $0x160] ss:$16 sps:$4 sm:$0xff]  }
 0x4f3   : > { %7544 = vmatprep.mubr.bf16.mxu1 %v6826_v33  ;;  %v14500_v31 = vld [vmem:[#allocation10 + $0x74c] ss:$16 sps:$4 sm:$0xff]  }
 0x4f4   : > { %7586 = vmatmul.mubr.bf16.vlgmr.msra.gmra.mxu0 %v16007_v30  ;;  %7545 = vmatmul.mubr.bf16.vlgmr.msra.gmra.mxu1 %v16027_v50  ;;  %v14440_v30 = vld [vmem:[#allocation10 + $0x68c] ss:$16 sps:$4 sm:$0xff]  }
 0x4f5   : > { %7595 = vmatpush1.bf16.msra.mxu1 %v14418_v13  ;;  %8294 = vmatpush1.bf16.msra.mxu0 %v14421_v14  ;;  %v14501_v13 = vld [vmem:[#allocation10 + $0x140] ss:$16 sps:$4 sm:$0xff]   ;;  %v14506_v14 = vld [vmem:[#allocation10 + $0x72c] ss:$16 sps:$4 sm:$0xff]  }
 0x4f6   : > { %8325 = vmatprep.mubr.bf16.mxu0 %v16031_v42  ;;  %7626 = vmatprep.mubr.bf16.mxu1 %v6826_v33  ;;  %v14498_v33 = vld [vmem:[#allocation10 + $0x748] ss:$16 sps:$4 sm:$0xff]  }
 0x4f7   : > { %7596 = vmatprep.subr.bf16.mxu1 %v14428_v52  ;;  %8295 = vmatprep.subr.bf16.mxu0 %v14431_v1  ;;  %v14509_v52 = vld [vmem:[#allocation10 + $0x124] ss:$16 sps:$4 sm:$0xff]   ;;  %v14504_v1 = vld [vmem:[#allocation10 + $0x728] ss:$16 sps:$4 sm:$0xff]  }
 0x4f9   : > { %7597 = vmatpush1.bf16.msra.mxu1 %v14426_v40  ;;  %8296 = vmatpush1.bf16.msra.mxu0 %v14429_v3  ;;  %v14507_v40 = vld [vmem:[#allocation10 + $0x120] ss:$16 sps:$4 sm:$0xff]   ;;  %v14512_v3 = vld [vmem:[#allocation10 + $0x70c] ss:$16 sps:$4 sm:$0xff]  }
 0x4fa   : > { %7598 = vmatprep.subr.bf16.mxu1 %v14434_v23  ;;  %8297 = vmatprep.subr.bf16.mxu0 %v14437_v46  ;;  %v14515_v23 = vld [vmem:[#allocation10 + $0x104] ss:$16 sps:$4 sm:$0xff]  }
 0x4fb   : > { %v16034_v46 = vld [vmem:[#allocation2 + $0x18] sm:$0x77] }
 0x4fd   : > { %7599 = vmatpush1.bf16.msra.mxu1 %v14432_v7  ;;  %8298 = vmatpush1.bf16.msra.mxu0 %v14435_v26  ;;  %v14510_v7 = vld [vmem:[#allocation10 + $0x708] ss:$16 sps:$4 sm:$0xff]   ;;  %v14513_v26 = vld [vmem:[#allocation10 + $0x100] ss:$16 sps:$4 sm:$0xff]  }
 0x4fe   : > { %7600 = vmatprep.subr.bf16.mxu1 %v14440_v30  ;;  %8299 = vmatprep.subr.bf16.mxu0 %v14443_v43  ;;  %v12474_v30 = vcombine.low %v16002_v22, %v16023_v25  ;;  %v14518_v43 = vld [vmem:[#allocation10 + $0x2e4] ss:$16 sps:$4 sm:$0xff]   ;;  %v14524_v22 = vld [vmem:[#allocation10 + $0x2c0] ss:$16 sps:$4 sm:$0xff]   ;;  %v14527_v25 = vld [vmem:[#allocation10 + $0xc8] ss:$16 sps:$4 sm:$0xff]  }
 0x501   : > { %7601 = vmatpush1.bf16.msra.mxu1 %v14438_v44  ;;  %8300 = vmatpush1.bf16.msra.mxu0 %v14441_v45  ;;  %v14521_v44 = vld [vmem:[#allocation10 + $0xec] ss:$16 sps:$4 sm:$0xff]   ;;  %v12477_v45 = vcombine.high %v16018_v63, %v16034_v46 }
 0x502   : > { %7602 = vmatprep.subr.bf16.mxu1 %v14446_v36  ;;  %8301 = vmatprep.subr.bf16.mxu0 %v14449_v41  ;;  %v14516_v36 = vld [vmem:[#allocation10 + $0x2e0] ss:$16 sps:$4 sm:$0xff]   ;;  %v16040_v41 = vrot.slane %v12474_v30, 3  ;;  %v14598_v30 = vld [vmem:[#allocation10 + $0x344] ss:$16 sps:$4 sm:$0xff]  }
 0x505   : > { %7603 = vmatpush1.bf16.msra.mxu1 %v14444_v47  ;;  %8302 = vmatpush1.bf16.msra.mxu0 %v14447_v48  ;;  %v14519_v47 = vld [vmem:[#allocation10 + $0xe8] ss:$16 sps:$4 sm:$0xff]   ;;  %v16042_v48 = vrot.slane %v12477_v45, 3 }
 0x506   : > { %7604 = vmatprep.subr.bf16.mxu1 %v14452_v49  ;;  %8303 = vmatprep.subr.bf16.mxu0 %v14455_v38  ;;  %v14526_v49 = vld [vmem:[#allocation10 + $0x2c4] ss:$16 sps:$4 sm:$0xff]   ;;  %v14529_v38 = vld [vmem:[#allocation10 + $0xcc] ss:$16 sps:$4 sm:$0xff]   ;;  %v14599_v45 = vld [vmem:[#allocation10 + $0x148] ss:$16 sps:$4 sm:$0xff]  }
 0x509   : > { %7605 = vmatpush1.bf16.msra.mxu1 %v14450_v6  ;;  %8304 = vmatpush1.bf16.msra.mxu0 %v14453_v51  ;;  %v14532_v6 = vld [vmem:[#allocation10 + $0x2a4] ss:$16 sps:$4 sm:$0xff]   ;;  %v14535_v51 = vld [vmem:[#allocation10 + $0xac] ss:$16 sps:$4 sm:$0xff]  }
 0x50a   : > { %7606 = vmatprep.subr.bf16.mxu1 %v14458_v53  ;;  %8305 = vmatprep.subr.bf16.mxu0 %v14461_v54  ;;  %v14530_v53 = vld [vmem:[#allocation10 + $0x2a0] ss:$16 sps:$4 sm:$0xff]   ;;  %v14533_v54 = vld [vmem:[#allocation10 + $0xa8] ss:$16 sps:$4 sm:$0xff]  }
 0x50d   : > { %7607 = vmatpush1.bf16.msra.mxu1 %v14456_v58  ;;  %8306 = vmatpush1.bf16.msra.mxu0 %v14459_v20  ;;  %v14541_v58 = vld [vmem:[#allocation10 + $0x8c] ss:$16 sps:$4 sm:$0xff]   ;;  %v14536_v20 = vld [vmem:[#allocation10 + $0x280] ss:$16 sps:$4 sm:$0xff]  }
 0x50e   : > { %7608 = vmatprep.subr.bf16.mxu1 %v14464_v8  ;;  %8307 = vmatprep.subr.bf16.mxu0 %v14467_v9  ;;  %v14539_v8 = vld [vmem:[#allocation10 + $0x88] ss:$16 sps:$4 sm:$0xff]   ;;  %v14544_v9 = vld [vmem:[#allocation10 + $0x264] ss:$16 sps:$4 sm:$0xff]  }
 0x511   : > { %7609 = vmatpush1.bf16.msra.mxu1 %v14462_v10  ;;  %8308 = vmatpush1.bf16.msra.mxu0 %v14465_v4  ;;  %v14542_v10 = vld [vmem:[#allocation10 + $0x260] ss:$16 sps:$4 sm:$0xff]   ;;  %v14545_v4 = vld [vmem:[#allocation10 + $0x68] ss:$16 sps:$4 sm:$0xff]  }
 0x512   : > { %7610 = vmatprep.subr.bf16.mxu1 %v14470_v11  ;;  %8309 = vmatprep.subr.bf16.mxu0 %v14473_v35  ;;  %v14550_v11 = vld [vmem:[#allocation10 + $0x244] ss:$16 sps:$4 sm:$0xff]   ;;  %v14553_v35 = vld [vmem:[#allocation10 + $0x4c] ss:$16 sps:$4 sm:$0xff]  }
 0x515   : > { %7611 = vmatpush2.bf16.msra.mxu1 %v14468_v12  ;;  %8310 = vmatpush2.bf16.msra.mxu0 %v14471_v15  ;;  %v14548_v12 = vld [vmem:[#allocation10 + $0x240] ss:$16 sps:$4 sm:$0xff]   ;;  %v14551_v15 = vld [vmem:[#allocation10 + $0x48] ss:$16 sps:$4 sm:$0xff]  }
 0x516   : > { %7612 = vmatprep.subr.bf16.mxu1 %v14476_v37  ;;  %8311 = vmatprep.subr.bf16.mxu0 %v14479_v28  ;;  %v14556_v37 = vld [vmem:[#allocation10 + $0x224] ss:$16 sps:$4 sm:$0xff]   ;;  %v14559_v28 = vld [vmem:[#allocation10 + $0x2c] ss:$16 sps:$4 sm:$0xff]  }
 0x519   : > { %7613 = vmatpush2.bf16.msra.mxu1 %v14474_v55  ;;  %8312 = vmatpush2.bf16.msra.mxu0 %v14477_v17  ;;  %v14554_v55 = vld [vmem:[#allocation10 + $0x220] ss:$16 sps:$4 sm:$0xff]   ;;  %v14557_v17 = vld [vmem:[#allocation10 + $0x28] ss:$16 sps:$4 sm:$0xff]  }
 0x51a   : > { %7614 = vmatprep.subr.bf16.mxu1 %v14482_v62  ;;  %8313 = vmatprep.subr.bf16.mxu0 %v14485_v29  ;;  %v14562_v62 = vld [vmem:[#allocation10 + $0x204] ss:$16 sps:$4 sm:$0xff]   ;;  %v14565_v29 = vld [vmem:[#allocation10 + $0xc] ss:$16 sps:$4 sm:$0xff]  }
 0x51d   : > { %7615 = vmatpush2.bf16.msra.mxu1 %v14480_v27  ;;  %8314 = vmatpush2.bf16.msra.mxu0 %v14483_v39  ;;  %v14560_v27 = vld [vmem:[#allocation10 + $0x200] ss:$16 sps:$4 sm:$0xff]   ;;  %v14563_v39 = vld [vmem:[#allocation10 + $0x8] ss:$16 sps:$4 sm:$0xff]  }
 0x51e   : > { %7616 = vmatprep.subr.bf16.mxu1 %v14488_v18  ;;  %8315 = vmatprep.subr.bf16.mxu0 %v14491_v34  ;;  %v14568_v18 = vld [vmem:[#allocation10 + $0x3e4] ss:$16 sps:$4 sm:$0xff]   ;;  %v14571_v34 = vld [vmem:[#allocation10 + $0x1ec] ss:$16 sps:$4 sm:$0xff]  }
 0x521   : > { %7617 = vmatpush2.bf16.msra.mxu1 %v14486_v19  ;;  %8316 = vmatpush2.bf16.msra.mxu0 %v14489_v21  ;;  %v14566_v19 = vld [vmem:[#allocation10 + $0x3e0] ss:$16 sps:$4 sm:$0xff]   ;;  %v14569_v21 = vld [vmem:[#allocation10 + $0x1e8] ss:$16 sps:$4 sm:$0xff]  }
 0x522   : > { %7618 = vmatprep.subr.bf16.mxu1 %v14494_v2  ;;  %8317 = vmatprep.subr.bf16.mxu0 %v14497_v24  ;;  %v14574_v2 = vld [vmem:[#allocation10 + $0x3c4] ss:$16 sps:$4 sm:$0xff]   ;;  %v14577_v24 = vld [vmem:[#allocation10 + $0x1cc] ss:$16 sps:$4 sm:$0xff]  }
 0x525   : > { %7619 = vmatpush2.bf16.msra.mxu1 %v14492_v5  ;;  %8318 = vmatpush2.bf16.msra.mxu0 %v14495_v61  ;;  %v14572_v5 = vld [vmem:[#allocation10 + $0x3c0] ss:$16 sps:$4 sm:$0xff]   ;;  %v14575_v61 = vld [vmem:[#allocation10 + $0x1c8] ss:$16 sps:$4 sm:$0xff]  }
 0x526   : > { %7620 = vmatprep.subr.bf16.mxu1 %v14500_v31  ;;  %8319 = vmatprep.subr.bf16.mxu0 %v14503_v32  ;;  %v14580_v31 = vld [vmem:[#allocation10 + $0x3a4] ss:$16 sps:$4 sm:$0xff]   ;;  %v14583_v32 = vld [vmem:[#allocation10 + $0x1ac] ss:$16 sps:$4 sm:$0xff]  }
 0x529   : > { %7621 = vmatpush2.bf16.msra.mxu1 %v14498_v33  ;;  %8320 = vmatpush2.bf16.msra.mxu0 %v14501_v13  ;;  %v14578_v33 = vld [vmem:[#allocation10 + $0x3a0] ss:$16 sps:$4 sm:$0xff]   ;;  %v14581_v13 = vld [vmem:[#allocation10 + $0x1a8] ss:$16 sps:$4 sm:$0xff]  }
 0x52a   : > { %7622 = vmatprep.subr.bf16.mxu1 %v14506_v14  ;;  %8321 = vmatprep.subr.bf16.mxu0 %v14509_v52  ;;  %v14586_v14 = vld [vmem:[#allocation10 + $0x384] ss:$16 sps:$4 sm:$0xff]   ;;  %v14589_v52 = vld [vmem:[#allocation10 + $0x18c] ss:$16 sps:$4 sm:$0xff]  }
 0x52d   : > { %7623 = vmatpush2.bf16.msra.mxu1 %v14504_v1  ;;  %8322 = vmatpush2.bf16.msra.mxu0 %v14507_v40  ;;  %v14584_v1 = vld [vmem:[#allocation10 + $0x380] ss:$16 sps:$4 sm:$0xff]   ;;  %v14587_v40 = vld [vmem:[#allocation10 + $0x188] ss:$16 sps:$4 sm:$0xff]  }
 0x52e   : > { %7624 = vmatprep.subr.bf16.mxu1 %v14512_v3  ;;  %8323 = vmatprep.subr.bf16.mxu0 %v14515_v23  ;;  %v14592_v3 = vld [vmem:[#allocation10 + $0x364] ss:$16 sps:$4 sm:$0xff]   ;;  %v14595_v23 = vld [vmem:[#allocation10 + $0x16c] ss:$16 sps:$4 sm:$0xff]  }
 0x531   : > { %7625 = vmatpush2.bf16.msra.mxu1 %v14510_v7  ;;  %8324 = vmatpush2.bf16.msra.mxu0 %v14513_v26  ;;  %v14590_v7 = vld [vmem:[#allocation10 + $0x360] ss:$16 sps:$4 sm:$0xff]   ;;  %v14593_v26 = vld [vmem:[#allocation10 + $0x168] ss:$16 sps:$4 sm:$0xff]  }
 0x532   : > { %8334 = vmatprep.subr.bf16.mxu1 %v14518_v43  ;;  %8375 = vmatprep.subr.bf16.mxu0 %v14521_v44  ;;  %v14601_v43 = vld [vmem:[#allocation10 + $0x14c] ss:$16 sps:$4 sm:$0xff]   ;;  %v14596_v44 = vld [vmem:[#allocation10 + $0x340] ss:$16 sps:$4 sm:$0xff]  }
 0x534   : > { %7627 = vmatmul.mubr.bf16.vlgmr.msra.gmra.mxu1 %v16027_v50  ;;  %8326 = vmatmul.mubr.bf16.vlgmr.msra.gmra.mxu0 %v16040_v41  ;;  %v14538_v50 = vld [vmem:[#allocation10 + $0x284] ss:$16 sps:$4 sm:$0xff]  }
 0x535   : > { %8335 = vmatpush1.bf16.msra.mxu1 %v14516_v36  ;;  %8366 = vmatprep.mubr.bf16.mxu1 %v16042_v48  ;;  %v14604_v36 = vld [vmem:[#allocation10 + $0x324] ss:$16 sps:$4 sm:$0xff]  }
 0x536   : > { %8376 = vmatpush1.bf16.msra.mxu0 %v14519_v47  ;;  %8407 = vmatprep.mubr.bf16.mxu0 %v16031_v42  ;;  %v14547_v42 = vld [vmem:[#allocation10 + $0x6c] ss:$16 sps:$4 sm:$0xff]  }
 0x537   : > { %8336 = vmatprep.subr.bf16.mxu1 %v14526_v49  ;;  %8377 = vmatprep.subr.bf16.mxu0 %v14529_v38  ;;  %v14607_v47 = vld [vmem:[#allocation10 + $0x12c] ss:$16 sps:$4 sm:$0xff]   ;;  %v14602_v49 = vld [vmem:[#allocation10 + $0x320] ss:$16 sps:$4 sm:$0xff]   ;;  %v14605_v38 = vld [vmem:[#allocation10 + $0x128] ss:$16 sps:$4 sm:$0xff]  }
 0x539   : > { %8337 = vmatpush1.bf16.msra.mxu1 %v14524_v22  ;;  %v14610_v22 = vld [vmem:[#allocation10 + $0x304] ss:$16 sps:$4 sm:$0xff]  }
 0x53a   : > { %8378 = vmatpush1.bf16.msra.mxu0 %v14527_v25  ;;  %8338 = vmatprep.subr.bf16.mxu1 %v14532_v6  ;;  %v14613_v25 = vld [vmem:[#allocation10 + $0x10c] ss:$16 sps:$4 sm:$0xff]   ;;  %v14608_v6 = vld [vmem:[#allocation10 + $0x300] ss:$16 sps:$4 sm:$0xff]  }
 0x53b   : > { %8379 = vmatprep.subr.bf16.mxu0 %v14535_v51  ;;  %v12476_v51 = vcombine.low %v16018_v63, %v16034_v46  ;;  %v14625_v63 = vld [vmem:[#allocation10 + $0x8c4] ss:$16 sps:$4 sm:$0xff]   ;;  %v16058_v46 = vpack.c.bf16 %v16000_v0, %v16000_v0  ;;  %v14629_v0 = vld [vmem:[#allocation10 + $0x8a0] ss:$16 sps:$4 sm:$0xff]  }
 0x53d   : > { %8339 = vmatpush1.bf16.msra.mxu1 %v14530_v53  ;;  %v14611_v53 = vld [vmem:[#allocation10 + $0x108] ss:$16 sps:$4 sm:$0xff]  }
 0x53e   : > { %8380 = vmatpush1.bf16.msra.mxu0 %v14533_v54  ;;  %8340 = vmatprep.subr.bf16.mxu1 %v14538_v50  ;;  %v14616_v54 = vld [vmem:[#allocation10 + $0x2ec] ss:$16 sps:$4 sm:$0xff]   ;;  %v14619_v50 = vld [vmem:[#allocation10 + $0x8e4] ss:$16 sps:$4 sm:$0xff]  }
 0x53f   : > { %8381 = vmatprep.subr.bf16.mxu0 %v14541_v58  ;;  %v14614_v58 = vld [vmem:[#allocation10 + $0x2e8] ss:$16 sps:$4 sm:$0xff]  }
 0x541   : > { %8341 = vmatpush1.bf16.msra.mxu1 %v14536_v20  ;;  %v16050_v20 = vrot.slane %v12476_v51, 3  ;;  %v14689_v51 = vld [vmem:[#allocation10 + $0x960] ss:$16 sps:$4 sm:$0xff]  }
 0x542   : > { %8382 = vmatpush1.bf16.msra.mxu0 %v14539_v8  ;;  %8342 = vmatprep.subr.bf16.mxu1 %v14544_v9  ;;  %v14617_v8 = vld [vmem:[#allocation10 + $0x8e0] ss:$16 sps:$4 sm:$0xff]   ;;  %v14622_v9 = vld [vmem:[#allocation10 + $0x2cc] ss:$16 sps:$4 sm:$0xff]  }
 0x543   : > { %8383 = vmatprep.subr.bf16.mxu0 %v14547_v42 }
 0x545   : > { %8343 = vmatpush1.bf16.msra.mxu1 %v14542_v10  ;;  %v14620_v10 = vld [vmem:[#allocation10 + $0x2c8] ss:$16 sps:$4 sm:$0xff]  }
 0x546   : > { %8384 = vmatpush1.bf16.msra.mxu0 %v14545_v4  ;;  %8344 = vmatprep.subr.bf16.mxu1 %v14550_v11  ;;  %v14623_v11 = vld [vmem:[#allocation10 + $0x8c0] ss:$16 sps:$4 sm:$0xff]  }
 0x547   : > { %8385 = vmatprep.subr.bf16.mxu0 %v14553_v35  ;;  %v14628_v35 = vld [vmem:[#allocation10 + $0x2ac] ss:$16 sps:$4 sm:$0xff]  }
 0x549   : > { %8345 = vmatpush1.bf16.msra.mxu1 %v14548_v12  ;;  %v14631_v12 = vld [vmem:[#allocation10 + $0x8a4] ss:$16 sps:$4 sm:$0xff]  }
 0x54a   : > { %8386 = vmatpush1.bf16.msra.mxu0 %v14551_v15  ;;  %8346 = vmatprep.subr.bf16.mxu1 %v14556_v37 }
 0x54b   : > { %8387 = vmatprep.subr.bf16.mxu0 %v14559_v28  ;;  %v14634_v28 = vld [vmem:[#allocation10 + $0x28c] ss:$16 sps:$4 sm:$0xff]  }
 0x54d   : > { %8347 = vmatpush1.bf16.msra.mxu1 %v14554_v55  ;;  %v14632_v55 = vld [vmem:[#allocation10 + $0x288] ss:$16 sps:$4 sm:$0xff]  }
 0x54e   : > { %8388 = vmatpush1.bf16.msra.mxu0 %v14557_v17  ;;  %8348 = vmatprep.subr.bf16.mxu1 %v14562_v62  ;;  %v14635_v17 = vld [vmem:[#allocation10 + $0x880] ss:$16 sps:$4 sm:$0xff]   ;;  %v14640_v62 = vld [vmem:[#allocation10 + $0x26c] ss:$16 sps:$4 sm:$0xff]  }
 0x54f   : > { %8389 = vmatprep.subr.bf16.mxu0 %v14565_v29  ;;  %v14643_v29 = vld [vmem:[#allocation10 + $0x864] ss:$16 sps:$4 sm:$0xff]  }
 0x551   : > { %8349 = vmatpush1.bf16.msra.mxu1 %v14560_v27  ;;  %v14638_v27 = vld [vmem:[#allocation10 + $0x268] ss:$16 sps:$4 sm:$0xff]  }
 0x552   : > { %8390 = vmatpush1.bf16.msra.mxu0 %v14563_v39  ;;  %8350 = vmatprep.subr.bf16.mxu1 %v14568_v18  ;;  %v14641_v39 = vld [vmem:[#allocation10 + $0x860] ss:$16 sps:$4 sm:$0xff]   ;;  %v14646_v18 = vld [vmem:[#allocation10 + $0x24c] ss:$16 sps:$4 sm:$0xff]  }
 0x553   : > { %8391 = vmatprep.subr.bf16.mxu0 %v14571_v34  ;;  %v14649_v34 = vld [vmem:[#allocation10 + $0x844] ss:$16 sps:$4 sm:$0xff]  }
 0x555   : > { %8351 = vmatpush2.bf16.msra.mxu1 %v14566_v19  ;;  %v14644_v19 = vld [vmem:[#allocation10 + $0x248] ss:$16 sps:$4 sm:$0xff]  }
 0x556   : > { %8392 = vmatpush2.bf16.msra.mxu0 %v14569_v21  ;;  %8352 = vmatprep.subr.bf16.mxu1 %v14574_v2  ;;  %v14647_v21 = vld [vmem:[#allocation10 + $0x840] ss:$16 sps:$4 sm:$0xff]   ;;  %v14652_v2 = vld [vmem:[#allocation10 + $0x22c] ss:$16 sps:$4 sm:$0xff]  }
 0x557   : > { %8393 = vmatprep.subr.bf16.mxu0 %v14577_v24  ;;  %v14655_v24 = vld [vmem:[#allocation10 + $0x824] ss:$16 sps:$4 sm:$0xff]  }
 0x559   : > { %8353 = vmatpush2.bf16.msra.mxu1 %v14572_v5  ;;  %v14650_v5 = vld [vmem:[#allocation10 + $0x228] ss:$16 sps:$4 sm:$0xff]  }
 0x55a   : > { %8394 = vmatpush2.bf16.msra.mxu0 %v14575_v61  ;;  %8354 = vmatprep.subr.bf16.mxu1 %v14580_v31  ;;  %v14653_v61 = vld [vmem:[#allocation10 + $0x820] ss:$16 sps:$4 sm:$0xff]   ;;  %v14658_v31 = vld [vmem:[#allocation10 + $0x20c] ss:$16 sps:$4 sm:$0xff]  }
 0x55b   : > { %8395 = vmatprep.subr.bf16.mxu0 %v14583_v32  ;;  %v14661_v32 = vld [vmem:[#allocation10 + $0x804] ss:$16 sps:$4 sm:$0xff]  }
 0x55d   : > { %8355 = vmatpush2.bf16.msra.mxu1 %v14578_v33  ;;  %v14656_v33 = vld [vmem:[#allocation10 + $0x208] ss:$16 sps:$4 sm:$0xff]  }
 0x55e   : > { %8396 = vmatpush2.bf16.msra.mxu0 %v14581_v13  ;;  %8356 = vmatprep.subr.bf16.mxu1 %v14586_v14  ;;  %v14659_v13 = vld [vmem:[#allocation10 + $0x800] ss:$16 sps:$4 sm:$0xff]   ;;  %v14664_v14 = vld [vmem:[#allocation10 + $0x3ec] ss:$16 sps:$4 sm:$0xff]  }
 0x55f   : > { %8397 = vmatprep.subr.bf16.mxu0 %v14589_v52  ;;  %v14667_v52 = vld [vmem:[#allocation10 + $0x9e4] ss:$16 sps:$4 sm:$0xff]  }
 0x561   : > { %8357 = vmatpush2.bf16.msra.mxu1 %v14584_v1  ;;  %v14662_v1 = vld [vmem:[#allocation10 + $0x3e8] ss:$16 sps:$4 sm:$0xff]  }
 0x562   : > { %8398 = vmatpush2.bf16.msra.mxu0 %v14587_v40  ;;  %8358 = vmatprep.subr.bf16.mxu1 %v14592_v3  ;;  %v14665_v40 = vld [vmem:[#allocation10 + $0x9e0] ss:$16 sps:$4 sm:$0xff]   ;;  %v14670_v3 = vld [vmem:[#allocation10 + $0x3cc] ss:$16 sps:$4 sm:$0xff]  }
 0x563   : > { %8399 = vmatprep.subr.bf16.mxu0 %v14595_v23  ;;  %v14673_v23 = vld [vmem:[#allocation10 + $0x9c4] ss:$16 sps:$4 sm:$0xff]  }
 0x565   : > { %8359 = vmatpush2.bf16.msra.mxu1 %v14590_v7  ;;  %v14668_v7 = vld [vmem:[#allocation10 + $0x3c8] ss:$16 sps:$4 sm:$0xff]  }
 0x566   : > { %8400 = vmatpush2.bf16.msra.mxu0 %v14593_v26  ;;  %8360 = vmatprep.subr.bf16.mxu1 %v14598_v30  ;;  %v14671_v26 = vld [vmem:[#allocation10 + $0x9c0] ss:$16 sps:$4 sm:$0xff]   ;;  %v14676_v30 = vld [vmem:[#allocation10 + $0x3ac] ss:$16 sps:$4 sm:$0xff]  }
 0x567   : > { %8401 = vmatprep.subr.bf16.mxu0 %v14601_v43  ;;  %v14679_v43 = vld [vmem:[#allocation10 + $0x9a4] ss:$16 sps:$4 sm:$0xff]  }
 0x569   : > { %8361 = vmatpush2.bf16.msra.mxu1 %v14596_v44  ;;  %v14674_v44 = vld [vmem:[#allocation10 + $0x3a8] ss:$16 sps:$4 sm:$0xff]  }
 0x56a   : > { %8402 = vmatpush2.bf16.msra.mxu0 %v14599_v45  ;;  %8362 = vmatprep.subr.bf16.mxu1 %v14604_v36  ;;  %v14677_v45 = vld [vmem:[#allocation10 + $0x9a0] ss:$16 sps:$4 sm:$0xff]   ;;  %v14682_v36 = vld [vmem:[#allocation10 + $0x38c] ss:$16 sps:$4 sm:$0xff]  }
 0x56b   : > { %8403 = vmatprep.subr.bf16.mxu0 %v14607_v47  ;;  %v14685_v47 = vld [vmem:[#allocation10 + $0x984] ss:$16 sps:$4 sm:$0xff]  }
 0x56d   : > { %8363 = vmatpush2.bf16.msra.mxu1 %v14602_v49  ;;  %v14680_v49 = vld [vmem:[#allocation10 + $0x388] ss:$16 sps:$4 sm:$0xff]  }
 0x56e   : > { %8404 = vmatpush2.bf16.msra.mxu0 %v14605_v38  ;;  %8364 = vmatprep.subr.bf16.mxu1 %v14610_v22  ;;  %v14683_v38 = vld [vmem:[#allocation10 + $0x980] ss:$16 sps:$4 sm:$0xff]   ;;  %v14688_v22 = vld [vmem:[#allocation10 + $0x36c] ss:$16 sps:$4 sm:$0xff]  }
 0x56f   : > { %8405 = vmatprep.subr.bf16.mxu0 %v14613_v25  ;;  %v14691_v25 = vld [vmem:[#allocation10 + $0x964] ss:$16 sps:$4 sm:$0xff]  }
 0x571   : > { %8365 = vmatpush2.bf16.msra.mxu1 %v14608_v6  ;;  %v14686_v6 = vld [vmem:[#allocation10 + $0x368] ss:$16 sps:$4 sm:$0xff]  }
 0x572   : > { %8406 = vmatpush2.bf16.msra.mxu0 %v14611_v53  ;;  %8416 = vmatprep.subr.bf16.mxu1 %v14616_v54  ;;  %v14694_v53 = vld [vmem:[#allocation10 + $0x34c] ss:$16 sps:$4 sm:$0xff]   ;;  %v14697_v54 = vld [vmem:[#allocation10 + $0x944] ss:$16 sps:$4 sm:$0xff]  }
 0x573   : > { %9234 = vmatprep.subr.bf16.mxu0 %v14619_v50  ;;  %v14692_v50 = vld [vmem:[#allocation10 + $0x348] ss:$16 sps:$4 sm:$0xff]  }
 0x574   : > { %8367 = vmatmul.mubr.bf16.vlgmr.msra.gmra.mxu1 %v16050_v20  ;;  %v16053_v42 = vpop.f32.mrf.mxu0 }
 0x575   : > { %8408 = vmatmul.mubr.bf16.vlgmr.msra.gmra.mxu0 %v16040_v41  ;;  %8417 = vmatpush1.bf16.msra.mxu1 %v14614_v58  ;;  %v14626_v41 = vld [vmem:[#allocation10 + $0x2a8] ss:$16 sps:$4 sm:$0xff]   ;;  %v14695_v58 = vld [vmem:[#allocation10 + $0x940] ss:$16 sps:$4 sm:$0xff]  }
 0x576   : > { %8448 = vmatprep.mubr.bf16.mxu1 %v16042_v48  ;;  %9235 = vmatpush1.bf16.msra.mxu0 %v14617_v8  ;;  %v16061_v4 = vpop.f32.mrf.mxu0  ;;  %v14637_v48 = vld [vmem:[#allocation10 + $0x884] ss:$16 sps:$4 sm:$0xff]   ;;  %v14700_v8 = vld [vmem:[#allocation10 + $0x32c] ss:$16 sps:$4 sm:$0xff]  }
 0x577   : > { %9266 = vmatprep.mubr.bf16.mxu0 %v16058_v46  ;;  %8418 = vmatprep.subr.bf16.mxu1 %v14622_v9  ;;  %v14703_v9 = vld [vmem:[#allocation10 + $0x924] ss:$16 sps:$4 sm:$0xff]  }
 0x578   : > { %9236 = vmatprep.subr.bf16.mxu0 %v14625_v63  ;;  %v7509_v15 = vpop.f32.mrf.mxu0  ;;  %v14698_v63 = vld [vmem:[#allocation10 + $0x328] ss:$16 sps:$4 sm:$0xff]  }
 0x579   : > { %8419 = vmatpush1.bf16.msra.mxu1 %v14620_v10  ;;  %v14701_v10 = vld [vmem:[#allocation10 + $0x920] ss:$16 sps:$4 sm:$0xff]  }
 0x57a   : > { %9237 = vmatpush1.bf16.msra.mxu0 %v14623_v11  ;;  %v7510_v37 = vpop.f32.mrf.mxu0  ;;  %8420 = vmatprep.subr.bf16.mxu1 %v14628_v35  ;;  %v14706_v11 = vld [vmem:[#allocation10 + $0x30c] ss:$16 sps:$4 sm:$0xff]   ;;  %v14709_v35 = vld [vmem:[#allocation10 + $0x904] ss:$16 sps:$4 sm:$0xff]   ;;  %v14707_v15 = vld [vmem:[#allocation10 + $0x900] ss:$16 sps:$4 sm:$0xff]  }
 0x57b   : > { %9238 = vmatprep.subr.bf16.mxu0 %v14631_v12  ;;  %v14704_v12 = vld [vmem:[#allocation10 + $0x308] ss:$16 sps:$4 sm:$0xff]   ;;  %v14715_v37 = vld [vmem:[#allocation10 + $0x8ec] ss:$16 sps:$4 sm:$0xff]  }
 0x57d   : > { %8421 = vmatpush1.bf16.msra.mxu1 %v14626_v41  ;;  %v14712_v41 = vld [vmem:[#allocation10 + $0xae4] ss:$16 sps:$4 sm:$0xff]  }
 0x57e   : > { %9239 = vmatpush1.bf16.msra.mxu0 %v14629_v0  ;;  %8422 = vmatprep.subr.bf16.mxu1 %v14634_v28  ;;  %v14710_v0 = vld [vmem:[#allocation10 + $0xae0] ss:$16 sps:$4 sm:$0xff]   ;;  %v14713_v28 = vld [vmem:[#allocation10 + $0x8e8] ss:$16 sps:$4 sm:$0xff]  }
 0x57f   : > { %9240 = vmatprep.subr.bf16.mxu0 %v14637_v48  ;;  %v15252_v48 = vld [vmem:[#allocation2 + $0x10] sm:$0xff] }
 0x581   : > { %8423 = vmatpush1.bf16.msra.mxu1 %v14632_v55  ;;  %v16064_v55 = vcombine.low %v15252_v48, %v15252_v48  ;;  %v14785_v48 = vld [vmem:[#allocation10 + $0x968] ss:$16 sps:$4 sm:$0xff]  }
 0x582   : > { %9241 = vmatpush1.bf16.msra.mxu0 %v14635_v17  ;;  %8424 = vmatprep.subr.bf16.mxu1 %v14640_v62  ;;  %v14718_v17 = vld [vmem:[#allocation10 + $0xac4] ss:$16 sps:$4 sm:$0xff]  }
 0x583   : > { %9242 = vmatprep.subr.bf16.mxu0 %v14643_v29 }
 0x585   : > { %8425 = vmatpush1.bf16.msra.mxu1 %v14638_v27  ;;  %v16071_v27 = vpack.c.bf16 %v16016_v16, %v16016_v16 }
 0x586   : > { %9243 = vmatpush1.bf16.msra.mxu0 %v14641_v39  ;;  %8426 = vmatprep.subr.bf16.mxu1 %v14646_v18  ;;  %v14721_v39 = vld [vmem:[#allocation10 + $0x8cc] ss:$16 sps:$4 sm:$0xff]  }
 0x587   : > { %9244 = vmatprep.subr.bf16.mxu0 %v14649_v34  ;;  %v14716_v34 = vld [vmem:[#allocation10 + $0xac0] ss:$16 sps:$4 sm:$0xff]  }
 0x589   : > { %8427 = vmatpush1.bf16.msra.mxu1 %v14644_v19 }
 0x58a   : > { %9245 = vmatpush1.bf16.msra.mxu0 %v14647_v21  ;;  %8428 = vmatprep.subr.bf16.mxu1 %v14652_v2  ;;  %v14724_v2 = vld [vmem:[#allocation10 + $0xaa4] ss:$16 sps:$4 sm:$0xff]  }
 0x58b   : > { %9246 = vmatprep.subr.bf16.mxu0 %v14655_v24  ;;  %v14727_v24 = vld [vmem:[#allocation10 + $0x8ac] ss:$16 sps:$4 sm:$0xff]  }
 0x58d   : > { %8429 = vmatpush1.bf16.msra.mxu1 %v14650_v5 }
 0x58e   : > { %9247 = vmatpush1.bf16.msra.mxu0 %v14653_v61  ;;  %8430 = vmatprep.subr.bf16.mxu1 %v14658_v31  ;;  %v14722_v61 = vld [vmem:[#allocation10 + $0xaa0] ss:$16 sps:$4 sm:$0xff]  }
 0x58f   : > { %9248 = vmatprep.subr.bf16.mxu0 %v14661_v32 }
 0x591   : > { %8431 = vmatpush1.bf16.msra.mxu1 %v14656_v33  ;;  %v14725_v33 = vld [vmem:[#allocation10 + $0x8a8] ss:$16 sps:$4 sm:$0xff]  }
 0x592   : > { %9249 = vmatpush1.bf16.msra.mxu0 %v14659_v13  ;;  %8432 = vmatprep.subr.bf16.mxu1 %v14664_v14  ;;  %v14730_v13 = vld [vmem:[#allocation10 + $0xa84] ss:$16 sps:$4 sm:$0xff]   ;;  %v14733_v14 = vld [vmem:[#allocation10 + $0x88c] ss:$16 sps:$4 sm:$0xff]  }
 0x593   : > { %9250 = vmatprep.subr.bf16.mxu0 %v14667_v52  ;;  %v14736_v52 = vld [vmem:[#allocation10 + $0xa64] ss:$16 sps:$4 sm:$0xff]  }
 0x595   : > { %8433 = vmatpush2.bf16.msra.mxu1 %v14662_v1  ;;  %v14739_v1 = vld [vmem:[#allocation10 + $0x86c] ss:$16 sps:$4 sm:$0xff]  }
 0x596   : > { %9251 = vmatpush2.bf16.msra.mxu0 %v14665_v40  ;;  %8434 = vmatprep.subr.bf16.mxu1 %v14670_v3  ;;  %v14734_v40 = vld [vmem:[#allocation10 + $0xa60] ss:$16 sps:$4 sm:$0xff]   ;;  %v14737_v3 = vld [vmem:[#allocation10 + $0x868] ss:$16 sps:$4 sm:$0xff]  }
 0x597   : > { %9252 = vmatprep.subr.bf16.mxu0 %v14673_v23  ;;  %v14742_v23 = vld [vmem:[#allocation10 + $0xa44] ss:$16 sps:$4 sm:$0xff]  }
 0x599   : > { %8435 = vmatpush2.bf16.msra.mxu1 %v14668_v7  ;;  %v14745_v7 = vld [vmem:[#allocation10 + $0x84c] ss:$16 sps:$4 sm:$0xff]  }
 0x59a   : > { %9253 = vmatpush2.bf16.msra.mxu0 %v14671_v26  ;;  %8436 = vmatprep.subr.bf16.mxu1 %v14676_v30  ;;  %v14740_v26 = vld [vmem:[#allocation10 + $0xa40] ss:$16 sps:$4 sm:$0xff]   ;;  %v14743_v30 = vld [vmem:[#allocation10 + $0x848] ss:$16 sps:$4 sm:$0xff]  }
 0x59b   : > { %9254 = vmatprep.subr.bf16.mxu0 %v14679_v43  ;;  %v14748_v43 = vld [vmem:[#allocation10 + $0xa24] ss:$16 sps:$4 sm:$0xff]  }
 0x59d   : > { %8437 = vmatpush2.bf16.msra.mxu1 %v14674_v44  ;;  %v14751_v44 = vld [vmem:[#allocation10 + $0x82c] ss:$16 sps:$4 sm:$0xff]  }
 0x59e   : > { %9255 = vmatpush2.bf16.msra.mxu0 %v14677_v45  ;;  %8438 = vmatprep.subr.bf16.mxu1 %v14682_v36  ;;  %v14746_v45 = vld [vmem:[#allocation10 + $0xa20] ss:$16 sps:$4 sm:$0xff]   ;;  %v14749_v36 = vld [vmem:[#allocation10 + $0x828] ss:$16 sps:$4 sm:$0xff]  }
 0x59f   : > { %9256 = vmatprep.subr.bf16.mxu0 %v14685_v47  ;;  %v14754_v47 = vld [vmem:[#allocation10 + $0xa04] ss:$16 sps:$4 sm:$0xff]  }
 0x5a1   : > { %8439 = vmatpush2.bf16.msra.mxu1 %v14680_v49  ;;  %v14757_v49 = vld [vmem:[#allocation10 + $0x80c] ss:$16 sps:$4 sm:$0xff]  }
 0x5a2   : > { %9257 = vmatpush2.bf16.msra.mxu0 %v14683_v38  ;;  %8440 = vmatprep.subr.bf16.mxu1 %v14688_v22  ;;  %v14752_v38 = vld [vmem:[#allocation10 + $0xa00] ss:$16 sps:$4 sm:$0xff]   ;;  %v14755_v22 = vld [vmem:[#allocation10 + $0x808] ss:$16 sps:$4 sm:$0xff]  }
 0x5a3   : > { %9258 = vmatprep.subr.bf16.mxu0 %v14691_v25  ;;  %v14760_v25 = vld [vmem:[#allocation10 + $0xbe4] ss:$16 sps:$4 sm:$0xff]  }
 0x5a5   : > { %8441 = vmatpush2.bf16.msra.mxu1 %v14686_v6  ;;  %v14763_v6 = vld [vmem:[#allocation10 + $0x9ec] ss:$16 sps:$4 sm:$0xff]  }
 0x5a6   : > { %9259 = vmatpush2.bf16.msra.mxu0 %v14689_v51  ;;  %8442 = vmatprep.subr.bf16.mxu1 %v14694_v53  ;;  %v14758_v51 = vld [vmem:[#allocation10 + $0xbe0] ss:$16 sps:$4 sm:$0xff]   ;;  %v14761_v53 = vld [vmem:[#allocation10 + $0x9e8] ss:$16 sps:$4 sm:$0xff]  }
 0x5a7   : > { %9260 = vmatprep.subr.bf16.mxu0 %v14697_v54  ;;  %v14766_v54 = vld [vmem:[#allocation10 + $0xbc4] ss:$16 sps:$4 sm:$0xff]  }
 0x5a9   : > { %8443 = vmatpush2.bf16.msra.mxu1 %v14692_v50  ;;  %v14769_v50 = vld [vmem:[#allocation10 + $0x9cc] ss:$16 sps:$4 sm:$0xff]  }
 0x5aa   : > { %9261 = vmatpush2.bf16.msra.mxu0 %v14695_v58  ;;  %8444 = vmatprep.subr.bf16.mxu1 %v14700_v8  ;;  %v14764_v58 = vld [vmem:[#allocation10 + $0xbc0] ss:$16 sps:$4 sm:$0xff]   ;;  %v14767_v8 = vld [vmem:[#allocation10 + $0x9c8] ss:$16 sps:$4 sm:$0xff]  }
 0x5ab   : > { %9262 = vmatprep.subr.bf16.mxu0 %v14703_v9  ;;  %v14772_v9 = vld [vmem:[#allocation10 + $0xba4] ss:$16 sps:$4 sm:$0xff]  }
 0x5ad   : > { %8445 = vmatpush2.bf16.msra.mxu1 %v14698_v63  ;;  %v14775_v63 = vld [vmem:[#allocation10 + $0x9ac] ss:$16 sps:$4 sm:$0xff]  }
 0x5ae   : > { %9263 = vmatpush2.bf16.msra.mxu0 %v14701_v10  ;;  %8446 = vmatprep.subr.bf16.mxu1 %v14706_v11  ;;  %v14770_v10 = vld [vmem:[#allocation10 + $0xba0] ss:$16 sps:$4 sm:$0xff]   ;;  %v14773_v11 = vld [vmem:[#allocation10 + $0x9a8] ss:$16 sps:$4 sm:$0xff]  }
 0x5af   : > { %9264 = vmatprep.subr.bf16.mxu0 %v14709_v35  ;;  %v14778_v35 = vld [vmem:[#allocation10 + $0xb84] ss:$16 sps:$4 sm:$0xff]  }
 0x5b1   : > { %8447 = vmatpush2.bf16.msra.mxu1 %v14704_v12  ;;  %v14781_v12 = vld [vmem:[#allocation10 + $0x98c] ss:$16 sps:$4 sm:$0xff]  }
 0x5b2   : > { %9265 = vmatpush2.bf16.msra.mxu0 %v14707_v15  ;;  %9275 = vmatprep.subr.bf16.mxu1 %v14712_v41  ;;  %v14776_v15 = vld [vmem:[#allocation10 + $0xb80] ss:$16 sps:$4 sm:$0xff]   ;;  %v14779_v41 = vld [vmem:[#allocation10 + $0x988] ss:$16 sps:$4 sm:$0xff]  }
 0x5b3   : > { %9316 = vmatprep.subr.bf16.mxu0 %v14715_v37  ;;  %v14784_v37 = vld [vmem:[#allocation10 + $0xb64] ss:$16 sps:$4 sm:$0xff]  }
 0x5b4   : > { %v16066_v62 = vpop.f32.mrf.mxu0  ;;  %8449 = vmatmul.mubr.bf16.vlgmr.msra.gmra.mxu1 %v16050_v20  ;;  %v7546_v29 = vpop.f32.mrf.mxu1  ;;  %v14719_v20 = vld [vmem:[#allocation10 + $0x8c8] ss:$16 sps:$4 sm:$0xff]  }
 0x5b5   : > { %9267 = vmatmul.mubr.bf16.vlgmr.msra.gmra.mxu0 %v16064_v55  ;;  %v16075_v18 = vadd.f32 %v7546_v29, %v16053_v42  ;;  %9276 = vmatpush1.bf16.msra.mxu1 %v14710_v0  ;;  %v14787_v0 = vld [vmem:[#allocation10 + $0x96c] ss:$16 sps:$4 sm:$0xff]  }
 0x5b6   : > { %9307 = vmatprep.mubr.bf16.mxu1 %v16071_v27  ;;  %9317 = vmatpush1.bf16.msra.mxu0 %v14713_v28  ;;  %v16078_v19 = vpop.f32.mrf.mxu0  ;;  %v7548_v21 = vpop.f32.mrf.mxu1  ;;  %v14782_v28 = vld [vmem:[#allocation10 + $0xb60] ss:$16 sps:$4 sm:$0xff]   ;;  %v14793_v29 = vld [vmem:[#allocation10 + $0x94c] ss:$16 sps:$4 sm:$0xff]  }
 0x5b7   : > { %9348 = vmatprep.mubr.bf16.mxu0 %v16058_v46  ;;  %v16082_v16 = vadd.f32 %v7548_v21, %v16061_v4  ;;  %9277 = vmatprep.subr.bf16.mxu1 %v14718_v17  ;;  %v14728_v46 = vld [vmem:[#allocation10 + $0xa80] ss:$16 sps:$4 sm:$0xff]   ;;  %v14731_v4 = vld [vmem:[#allocation10 + $0x888] ss:$16 sps:$4 sm:$0xff]   ;;  %v14790_v17 = vld [vmem:[#allocation10 + $0xb44] ss:$16 sps:$4 sm:$0xff]  }
 0x5b8   : > { %v7591_v5 = vpop.f32.mrf.mxu0  ;;  %9318 = vmatprep.subr.bf16.mxu0 %v14721_v39  ;;  %v7550_v42 = vpop.f32.mrf.mxu1  ;;  %v14788_v39 = vld [vmem:[#allocation10 + $0xb40] ss:$16 sps:$4 sm:$0xff]   ;;  %v14791_v21 = vld [vmem:[#allocation10 + $0x948] ss:$16 sps:$4 sm:$0xff]  }
 0x5b9   : > { %9278 = vmatpush1.bf16.msra.mxu1 %v14716_v34  ;;  %v16084_v34 = vld [vmem:[#allocation2 + $0x20] sm:$0x11]  ;;  %v14794_v5 = vld [vmem:[#allocation10 + $0xb20] ss:$16 sps:$4 sm:$0xff]  }
 0x5ba   : > { %9319 = vmatpush1.bf16.msra.mxu0 %v14719_v20  ;;  %v7592_v31 = vpop.f32.mrf.mxu0  ;;  %v7551_v32 = vpop.f32.mrf.mxu1  ;;  %9279 = vmatprep.subr.bf16.mxu1 %v14724_v2  ;;  %v14796_v20 = vld [vmem:[#allocation10 + $0xb24] ss:$16 sps:$4 sm:$0xff]   ;;  %v16086_v2 = vld [vmem:[#allocation2 + $0x10] sm:$0xff] }
 0x5bb   : > { %9320 = vmatprep.subr.bf16.mxu0 %v14727_v24  ;;  %v14799_v24 = vld [vmem:[#allocation10 + $0x92c] ss:$16 sps:$4 sm:$0xff]   ;;  %v12739_v42 = vcombine.high %v16086_v2, %v16084_v34  ;;  %v14802_v31 = vld [vmem:[#allocation10 + $0xb04] ss:$16 sps:$4 sm:$0xff]  }
 0x5bc   : > { %v14805_v32 = vld [vmem:[#allocation10 + $0x90c] ss:$16 sps:$4 sm:$0xff]  }
 0x5bd   : > { %9280 = vmatpush1.bf16.msra.mxu1 %v14722_v61  ;;  %v14797_v61 = vld [vmem:[#allocation10 + $0x928] ss:$16 sps:$4 sm:$0xff]  }
 0x5be   : > { %9321 = vmatpush1.bf16.msra.mxu0 %v14725_v33  ;;  %9281 = vmatprep.subr.bf16.mxu1 %v14730_v13  ;;  %v14800_v33 = vld [vmem:[#allocation10 + $0xb00] ss:$16 sps:$4 sm:$0xff]   ;;  %v9561_v13 = vshll.u32 %v12739_v42, 16 }
 0x5bf   : > { %9322 = vmatprep.subr.bf16.mxu0 %v14733_v14  ;;  %v14803_v14 = vld [vmem:[#allocation10 + $0x908] ss:$16 sps:$4 sm:$0xff]  }
 0x5c1   : > { %9282 = vmatpush1.bf16.msra.mxu1 %v14728_v46  ;;  %v14808_v46 = vld [vmem:[#allocation10 + $0xaec] ss:$16 sps:$4 sm:$0xff]  }
 0x5c2   : > { %9323 = vmatpush1.bf16.msra.mxu0 %v14731_v4  ;;  %9283 = vmatprep.subr.bf16.mxu1 %v14736_v52  ;;  %v14811_v4 = vld [vmem:[#allocation10 + $0xce4] ss:$16 sps:$4 sm:$0xff]   ;;  %v14806_v52 = vld [vmem:[#allocation10 + $0xae8] ss:$16 sps:$4 sm:$0xff]  }
 0x5c3   : > { %9324 = vmatprep.subr.bf16.mxu0 %v14739_v1  ;;  %v9563_v1 = vrot.slane %v9561_v13, 1  ;;  %v14865_v13 = vld [vmem:[#allocation10 + $0xdc0] ss:$16 sps:$4 sm:$0xff]  }
 0x5c5   : > { %9284 = vmatpush1.bf16.msra.mxu1 %v14734_v40  ;;  %v15253_v40 = vld [vmem:[#allocation2 + $0x18] sm:$0xff] }
 0x5c6   : > { %9325 = vmatpush1.bf16.msra.mxu0 %v14737_v3  ;;  %9285 = vmatprep.subr.bf16.mxu1 %v14742_v23  ;;  %v16090_v3 = vcombine.low %v15253_v40, %v15253_v40  ;;  %v14809_v23 = vld [vmem:[#allocation10 + $0xce0] ss:$16 sps:$4 sm:$0xff]   ;;  %v14879_v40 = vld [vmem:[#allocation10 + $0xd84] ss:$16 sps:$4 sm:$0xff]  }
 0x5c7   : > { %9326 = vmatprep.subr.bf16.mxu0 %v14745_v7  ;;  %v9559_v7 = vshrl.u32 %v12739_v42, 16  ;;  %v14856_v42 = vld [vmem:[#allocation10 + $0xbe8] ss:$16 sps:$4 sm:$0xff]  }
 0x5c9   : > { %9286 = vmatpush1.bf16.msra.mxu1 %v14740_v26  ;;  %v14816_v26 = vld [vmem:[#allocation10 + $0xacc] ss:$16 sps:$4 sm:$0xff]  }
 0x5ca   : > { %9327 = vmatpush1.bf16.msra.mxu0 %v14743_v30  ;;  %9287 = vmatprep.subr.bf16.mxu1 %v14748_v43 }
 0x5cb   : > { %9328 = vmatprep.subr.bf16.mxu0 %v14751_v44  ;;  %v14819_v44 = vld [vmem:[#allocation10 + $0xcc4] ss:$16 sps:$4 sm:$0xff]  }
 0x5cd   : > { %9288 = vmatpush1.bf16.msra.mxu1 %v14746_v45 }
 0x5ce   : > { %9329 = vmatpush1.bf16.msra.mxu0 %v14749_v36  ;;  %9289 = vmatprep.subr.bf16.mxu1 %v14754_v47  ;;  %v16100_v47 = vor.u32 %v9563_v1, %v9559_v7  ;;  %v14876_v1 = vld [vmem:[#allocation10 + $0xb8c] ss:$16 sps:$4 sm:$0xff]   ;;  %v14877_v7 = vld [vmem:[#allocation10 + $0xd80] ss:$16 sps:$4 sm:$0xff]  }
 0x5cf   : > { %9330 = vmatprep.subr.bf16.mxu0 %v14757_v49  ;;  %v14814_v49 = vld [vmem:[#allocation10 + $0xac8] ss:$16 sps:$4 sm:$0xff]  }
 0x5d1   : > { %9290 = vmatpush1.bf16.msra.mxu1 %v14752_v38 }
 0x5d2   : > { %9331 = vmatpush1.bf16.msra.mxu0 %v14755_v22  ;;  %9291 = vmatprep.subr.bf16.mxu1 %v14760_v25  ;;  %v14817_v25 = vld [vmem:[#allocation10 + $0xcc0] ss:$16 sps:$4 sm:$0xff]  }
 0x5d3   : > { %9332 = vmatprep.subr.bf16.mxu0 %v14763_v6  ;;  %v14822_v6 = vld [vmem:[#allocation10 + $0xaac] ss:$16 sps:$4 sm:$0xff]  }
 0x5d5   : > { %9292 = vmatpush2.bf16.msra.mxu1 %v14758_v51 }
 0x5d6   : > { %9333 = vmatpush2.bf16.msra.mxu0 %v14761_v53  ;;  %9293 = vmatprep.subr.bf16.mxu1 %v14766_v54 }
 0x5d7   : > { %9334 = vmatprep.subr.bf16.mxu0 %v14769_v50 }
 0x5d9   : > { %9294 = vmatpush2.bf16.msra.mxu1 %v14764_v58  ;;  %v14823_v58 = vld [vmem:[#allocation10 + $0xca0] ss:$16 sps:$4 sm:$0xff]  }
 0x5da   : > { %9335 = vmatpush2.bf16.msra.mxu0 %v14767_v8  ;;  %9295 = vmatprep.subr.bf16.mxu1 %v14772_v9  ;;  %v14828_v8 = vld [vmem:[#allocation10 + $0xa8c] ss:$16 sps:$4 sm:$0xff]   ;;  %v14831_v9 = vld [vmem:[#allocation10 + $0xc84] ss:$16 sps:$4 sm:$0xff]  }
 0x5db   : > { %9336 = vmatprep.subr.bf16.mxu0 %v14775_v63  ;;  %v14834_v63 = vld [vmem:[#allocation10 + $0xa6c] ss:$16 sps:$4 sm:$0xff]  }
 0x5dd   : > { %9296 = vmatpush2.bf16.msra.mxu1 %v14770_v10  ;;  %v14837_v10 = vld [vmem:[#allocation10 + $0xc64] ss:$16 sps:$4 sm:$0xff]  }
 0x5de   : > { %9337 = vmatpush2.bf16.msra.mxu0 %v14773_v11  ;;  %9297 = vmatprep.subr.bf16.mxu1 %v14778_v35  ;;  %v14832_v11 = vld [vmem:[#allocation10 + $0xa68] ss:$16 sps:$4 sm:$0xff]   ;;  %v14835_v35 = vld [vmem:[#allocation10 + $0xc60] ss:$16 sps:$4 sm:$0xff]  }
 0x5df   : > { %9338 = vmatprep.subr.bf16.mxu0 %v14781_v12  ;;  %v14840_v12 = vld [vmem:[#allocation10 + $0xa4c] ss:$16 sps:$4 sm:$0xff]  }
 0x5e1   : > { %9298 = vmatpush2.bf16.msra.mxu1 %v14776_v15  ;;  %v14843_v15 = vld [vmem:[#allocation10 + $0xc44] ss:$16 sps:$4 sm:$0xff]  }
 0x5e2   : > { %9339 = vmatpush2.bf16.msra.mxu0 %v14779_v41  ;;  %9299 = vmatprep.subr.bf16.mxu1 %v14784_v37  ;;  %v14838_v41 = vld [vmem:[#allocation10 + $0xa48] ss:$16 sps:$4 sm:$0xff]   ;;  %v14841_v37 = vld [vmem:[#allocation10 + $0xc40] ss:$16 sps:$4 sm:$0xff]  }
 0x5e3   : > { %9340 = vmatprep.subr.bf16.mxu0 %v14787_v0  ;;  %v14846_v0 = vld [vmem:[#allocation10 + $0xa2c] ss:$16 sps:$4 sm:$0xff]  }
 0x5e5   : > { %9300 = vmatpush2.bf16.msra.mxu1 %v14782_v28  ;;  %v14849_v28 = vld [vmem:[#allocation10 + $0xc24] ss:$16 sps:$4 sm:$0xff]  }
 0x5e6   : > { %9341 = vmatpush2.bf16.msra.mxu0 %v14785_v48  ;;  %9301 = vmatprep.subr.bf16.mxu1 %v14790_v17  ;;  %v14844_v48 = vld [vmem:[#allocation10 + $0xa28] ss:$16 sps:$4 sm:$0xff]   ;;  %v14847_v17 = vld [vmem:[#allocation10 + $0xc20] ss:$16 sps:$4 sm:$0xff]  }
 0x5e7   : > { %9342 = vmatprep.subr.bf16.mxu0 %v14793_v29  ;;  %v14852_v29 = vld [vmem:[#allocation10 + $0xa0c] ss:$16 sps:$4 sm:$0xff]  }
 0x5e9   : > { %9302 = vmatpush2.bf16.msra.mxu1 %v14788_v39  ;;  %v14855_v39 = vld [vmem:[#allocation10 + $0xc04] ss:$16 sps:$4 sm:$0xff]  }
 0x5ea   : > { %9343 = vmatpush2.bf16.msra.mxu0 %v14791_v21  ;;  %9303 = vmatprep.subr.bf16.mxu1 %v14796_v20  ;;  %v14850_v21 = vld [vmem:[#allocation10 + $0xa08] ss:$16 sps:$4 sm:$0xff]   ;;  %v14853_v20 = vld [vmem:[#allocation10 + $0xc00] ss:$16 sps:$4 sm:$0xff]  }
 0x5eb   : > { %9344 = vmatprep.subr.bf16.mxu0 %v14799_v24  ;;  %v14858_v24 = vld [vmem:[#allocation10 + $0xbec] ss:$16 sps:$4 sm:$0xff]  }
 0x5ed   : > { %9304 = vmatpush2.bf16.msra.mxu1 %v14794_v5  ;;  %v14861_v5 = vld [vmem:[#allocation10 + $0xde4] ss:$16 sps:$4 sm:$0xff]  }
 0x5ee   : > { %9345 = vmatpush2.bf16.msra.mxu0 %v14797_v61  ;;  %9305 = vmatprep.subr.bf16.mxu1 %v14802_v31  ;;  %v14859_v61 = vld [vmem:[#allocation10 + $0xde0] ss:$16 sps:$4 sm:$0xff]   ;;  %v14864_v31 = vld [vmem:[#allocation10 + $0xbcc] ss:$16 sps:$4 sm:$0xff]  }
 0x5ef   : > { %9346 = vmatprep.subr.bf16.mxu0 %v14805_v32  ;;  %v14867_v32 = vld [vmem:[#allocation10 + $0xdc4] ss:$16 sps:$4 sm:$0xff]  }
 0x5f1   : > { %9306 = vmatpush2.bf16.msra.mxu1 %v14800_v33  ;;  %v14862_v33 = vld [vmem:[#allocation10 + $0xbc8] ss:$16 sps:$4 sm:$0xff]  }
 0x5f2   : > { %9347 = vmatpush2.bf16.msra.mxu0 %v14803_v14  ;;  %9357 = vmatprep.subr.bf16.mxu1 %v14808_v46  ;;  %v14870_v14 = vld [vmem:[#allocation10 + $0xbac] ss:$16 sps:$4 sm:$0xff]   ;;  %v14873_v46 = vld [vmem:[#allocation10 + $0xda4] ss:$16 sps:$4 sm:$0xff]  }
 0x5f3   : > { %10223 = vmatprep.subr.bf16.mxu0 %v14811_v4  ;;  %v14868_v4 = vld [vmem:[#allocation10 + $0xba8] ss:$16 sps:$4 sm:$0xff]  }
 0x5f4   : > { %v7628_v30 = vpop.f32.mrf.mxu1  ;;  %v8327_v43 = vpop.f32.mrf.mxu0  ;;  %9308 = vmatmul.mubr.bf16.vlgmr.msra.gmra.mxu1 %v16090_v3 }
 0x5f5   : > { %v16094_v45 = vadd.f32 %v7628_v30, %v16066_v62  ;;  %v16097_v36 = vadd.f32 %v8327_v43, %v16075_v18  ;;  %9349 = vmatmul.mubr.bf16.vlgmr.msra.gmra.mxu0 %v16064_v55  ;;  %9358 = vmatpush1.bf16.msra.mxu1 %v14806_v52  ;;  %v14825_v55 = vld [vmem:[#allocation10 + $0xca4] ss:$16 sps:$4 sm:$0xff]   ;;  %v14871_v52 = vld [vmem:[#allocation10 + $0xda0] ss:$16 sps:$4 sm:$0xff]   ;;  %v14880_v43 = vld [vmem:[#allocation10 + $0xb68] ss:$16 sps:$4 sm:$0xff]  }
 0x5f6   : > { %9389 = vmatprep.mubr.bf16.mxu1 %v16071_v27  ;;  %10224 = vmatpush1.bf16.msra.mxu0 %v14809_v23  ;;  %v7630_v38 = vpop.f32.mrf.mxu1  ;;  %v8329_v22 = vpop.f32.mrf.mxu0  ;;  %v14820_v27 = vld [vmem:[#allocation10 + $0xaa8] ss:$16 sps:$4 sm:$0xff]   ;;  %v14885_v30 = vld [vmem:[#allocation10 + $0xd64] ss:$16 sps:$4 sm:$0xff]  }
 0x5f7   : > { %10255 = vmatprep.mubr.bf16.mxu0 %v16100_v47  ;;  %v16105_v62 = vadd.f32 %v7630_v38, %v16078_v19  ;;  %v16108_v18 = vadd.f32 %v8329_v22, %v16082_v16  ;;  %9359 = vmatprep.subr.bf16.mxu1 %v14816_v26  ;;  %v14826_v19 = vld [vmem:[#allocation10 + $0xa88] ss:$16 sps:$4 sm:$0xff]   ;;  %v14829_v16 = vld [vmem:[#allocation10 + $0xc80] ss:$16 sps:$4 sm:$0xff]   ;;  %v14882_v26 = vld [vmem:[#allocation10 + $0xb6c] ss:$16 sps:$4 sm:$0xff]  }
 0x5f8   : > { %v7632_v51 = vpop.f32.mrf.mxu1  ;;  %v8331_v53 = vpop.f32.mrf.mxu0  ;;  %10225 = vmatprep.subr.bf16.mxu0 %v14819_v44  ;;  %v14874_v23 = vld [vmem:[#allocation10 + $0xb88] ss:$16 sps:$4 sm:$0xff]   ;;  %v14883_v44 = vld [vmem:[#allocation10 + $0xd60] ss:$16 sps:$4 sm:$0xff]   ;;  %v14891_v38 = vld [vmem:[#allocation10 + $0xd44] ss:$16 sps:$4 sm:$0xff]  }
 0x5f9   : > { %9360 = vmatpush1.bf16.msra.mxu1 %v14814_v49  ;;  %v14888_v49 = vld [vmem:[#allocation10 + $0xb4c] ss:$16 sps:$4 sm:$0xff]   ;;  %v14886_v22 = vld [vmem:[#allocation10 + $0xb48] ss:$16 sps:$4 sm:$0xff]   ;;  %v12738_v53 = vcombine.low %v16086_v2, %v16084_v34  ;;  %v14901_v2 = vld [vmem:[#allocation10 + $0xd00] ss:$16 sps:$4 sm:$0xff]  }
 0x5fa   : > { %10226 = vmatpush1.bf16.msra.mxu0 %v14817_v25  ;;  %v7633_v54 = vpop.f32.mrf.mxu1  ;;  %v8332_v50 = vpop.f32.mrf.mxu0  ;;  %9361 = vmatprep.subr.bf16.mxu1 %v14822_v6  ;;  %v16110_v25 = vld [vmem:[#allocation2 + $0x18] sm:$0xff]  ;;  %v16112_v6 = vld [vmem:[#allocation2 + $0x28] sm:$0x11]  ;;  %v14894_v51 = vld [vmem:[#allocation10 + $0xb2c] ss:$16 sps:$4 sm:$0xff]  }
 0x5fb   : > { %10227 = vmatprep.subr.bf16.mxu0 %v14825_v55  ;;  %v14889_v55 = vld [vmem:[#allocation10 + $0xd40] ss:$16 sps:$4 sm:$0xff]   ;;  %v12741_v54 = vcombine.high %v16110_v25, %v16112_v6  ;;  %v14892_v50 = vld [vmem:[#allocation10 + $0xb28] ss:$16 sps:$4 sm:$0xff]  }
 0x5fd   : > { %9362 = vmatpush1.bf16.msra.mxu1 %v14820_v27  ;;  %v14897_v27 = vld [vmem:[#allocation10 + $0xd24] ss:$16 sps:$4 sm:$0xff]  }
 0x5fe   : > { %10228 = vmatpush1.bf16.msra.mxu0 %v14823_v58  ;;  %9363 = vmatprep.subr.bf16.mxu1 %v14828_v8  ;;  %v14895_v58 = vld [vmem:[#allocation10 + $0xd20] ss:$16 sps:$4 sm:$0xff]   ;;  %v14900_v8 = vld [vmem:[#allocation10 + $0xb0c] ss:$16 sps:$4 sm:$0xff]  }
 0x5ff   : > { %10229 = vmatprep.subr.bf16.mxu0 %v14831_v9  ;;  %v14903_v9 = vld [vmem:[#allocation10 + $0xd04] ss:$16 sps:$4 sm:$0xff]  }
 0x601   : > { %9364 = vmatpush1.bf16.msra.mxu1 %v14826_v19  ;;  %v9554_v19 = vshll.u32 %v12738_v53, 16 }
 0x602   : > { %10230 = vmatpush1.bf16.msra.mxu0 %v14829_v16  ;;  %9365 = vmatprep.subr.bf16.mxu1 %v14834_v63  ;;  %v9575_v16 = vshll.u32 %v12741_v54, 16  ;;  %v14898_v63 = vld [vmem:[#allocation10 + $0xb08] ss:$16 sps:$4 sm:$0xff]  }
 0x603   : > { %10231 = vmatprep.subr.bf16.mxu0 %v14837_v10  ;;  %v14906_v10 = vld [vmem:[#allocation10 + $0xee4] ss:$16 sps:$4 sm:$0xff]  }
 0x605   : > { %9366 = vmatpush1.bf16.msra.mxu1 %v14832_v11  ;;  %v9556_v11 = vrot.slane %v9554_v19, 1  ;;  %v14957_v19 = vld [vmem:[#allocation10 + $0xde8] ss:$16 sps:$4 sm:$0xff]  }
 0x606   : > { %10232 = vmatpush1.bf16.msra.mxu0 %v14835_v35  ;;  %9367 = vmatprep.subr.bf16.mxu1 %v14840_v12  ;;  %v14909_v35 = vld [vmem:[#allocation10 + $0xcec] ss:$16 sps:$4 sm:$0xff]   ;;  %v9577_v12 = vrot.slane %v9575_v16, 1  ;;  %v14962_v16 = vld [vmem:[#allocation10 + $0xfc4] ss:$16 sps:$4 sm:$0xff]  }
 0x607   : > { %10233 = vmatprep.subr.bf16.mxu0 %v14843_v15  ;;  %v9552_v15 = vshrl.u32 %v12738_v53, 16  ;;  %v14950_v53 = vld [vmem:[#allocation10 + $0xe04] ss:$16 sps:$4 sm:$0xff]  }
 0x609   : > { %9368 = vmatpush1.bf16.msra.mxu1 %v14838_v41  ;;  %v14904_v41 = vld [vmem:[#allocation10 + $0xee0] ss:$16 sps:$4 sm:$0xff]  }
 0x60a   : > { %10234 = vmatpush1.bf16.msra.mxu0 %v14841_v37  ;;  %9369 = vmatprep.subr.bf16.mxu1 %v14846_v0  ;;  %v14907_v37 = vld [vmem:[#allocation10 + $0xce8] ss:$16 sps:$4 sm:$0xff]   ;;  %v9573_v0 = vshrl.u32 %v12741_v54, 16  ;;  %v14948_v54 = vld [vmem:[#allocation10 + $0xe00] ss:$16 sps:$4 sm:$0xff]  }
 0x60b   : > { %10235 = vmatprep.subr.bf16.mxu0 %v14849_v28  ;;  %v16118_v28 = vor.u32 %v9556_v11, %v9552_v15  ;;  %v14968_v11 = vld [vmem:[#allocation10 + $0xfa4] ss:$16 sps:$4 sm:$0xff]   ;;  %v14969_v15 = vld [vmem:[#allocation10 + $0xda8] ss:$16 sps:$4 sm:$0xff]  }
 0x60d   : > { %9370 = vmatpush1.bf16.msra.mxu1 %v14844_v48  ;;  %v14914_v48 = vld [vmem:[#allocation10 + $0xec4] ss:$16 sps:$4 sm:$0xff]  }
 0x60e   : > { %10236 = vmatpush1.bf16.msra.mxu0 %v14847_v17  ;;  %9371 = vmatprep.subr.bf16.mxu1 %v14852_v29  ;;  %v16121_v29 = vor.u32 %v9577_v12, %v9573_v0  ;;  %v14966_v12 = vld [vmem:[#allocation10 + $0xfa0] ss:$16 sps:$4 sm:$0xff]  }
 0x60f   : > { %10237 = vmatprep.subr.bf16.mxu0 %v14855_v39  ;;  %v14917_v39 = vld [vmem:[#allocation10 + $0xccc] ss:$16 sps:$4 sm:$0xff]   ;;  %v14972_v0 = vld [vmem:[#allocation10 + $0xf80] ss:$16 sps:$4 sm:$0xff]  }
 0x611   : > { %9372 = vmatpush1.bf16.msra.mxu1 %v14850_v21 }
 0x612   : > { %10238 = vmatpush1.bf16.msra.mxu0 %v14853_v20  ;;  %9373 = vmatprep.subr.bf16.mxu1 %v14858_v24  ;;  %v14912_v24 = vld [vmem:[#allocation10 + $0xec0] ss:$16 sps:$4 sm:$0xff]  }
 0x613   : > { %10239 = vmatprep.subr.bf16.mxu0 %v14861_v5 }
 0x615   : > { %9374 = vmatpush2.bf16.msra.mxu1 %v14856_v42 }
 0x616   : > { %10240 = vmatpush2.bf16.msra.mxu0 %v14859_v61  ;;  %9375 = vmatprep.subr.bf16.mxu1 %v14864_v31  ;;  %v14915_v61 = vld [vmem:[#allocation10 + $0xcc8] ss:$16 sps:$4 sm:$0xff]  }
 0x617   : > { %10241 = vmatprep.subr.bf16.mxu0 %v14867_v32  ;;  %v14923_v32 = vld [vmem:[#allocation10 + $0xcac] ss:$16 sps:$4 sm:$0xff]  }
 0x619   : > { %9376 = vmatpush2.bf16.msra.mxu1 %v14862_v33 }
 0x61a   : > { %10242 = vmatpush2.bf16.msra.mxu0 %v14865_v13  ;;  %9377 = vmatprep.subr.bf16.mxu1 %v14870_v14  ;;  %v14918_v14 = vld [vmem:[#allocation10 + $0xea0] ss:$16 sps:$4 sm:$0xff]  }
 0x61b   : > { %10243 = vmatprep.subr.bf16.mxu0 %v14873_v46 }
 0x61d   : > { %9378 = vmatpush2.bf16.msra.mxu1 %v14868_v4  ;;  %v14921_v4 = vld [vmem:[#allocation10 + $0xca8] ss:$16 sps:$4 sm:$0xff]  }
 0x61e   : > { %10244 = vmatpush2.bf16.msra.mxu0 %v14871_v52  ;;  %9379 = vmatprep.subr.bf16.mxu1 %v14876_v1  ;;  %v14926_v52 = vld [vmem:[#allocation10 + $0xe84] ss:$16 sps:$4 sm:$0xff]   ;;  %v14924_v1 = vld [vmem:[#allocation10 + $0xe80] ss:$16 sps:$4 sm:$0xff]  }
 0x61f   : > { %10245 = vmatprep.subr.bf16.mxu0 %v14879_v40  ;;  %v14927_v40 = vld [vmem:[#allocation10 + $0xc88] ss:$16 sps:$4 sm:$0xff]  }
 0x621   : > { %9380 = vmatpush2.bf16.msra.mxu1 %v14874_v23  ;;  %v14935_v23 = vld [vmem:[#allocation10 + $0xc6c] ss:$16 sps:$4 sm:$0xff]  }
 0x622   : > { %10246 = vmatpush2.bf16.msra.mxu0 %v14877_v7  ;;  %9381 = vmatprep.subr.bf16.mxu1 %v14882_v26  ;;  %v14930_v7 = vld [vmem:[#allocation10 + $0xe60] ss:$16 sps:$4 sm:$0xff]   ;;  %v14933_v26 = vld [vmem:[#allocation10 + $0xc68] ss:$16 sps:$4 sm:$0xff]  }
 0x623   : > { %10247 = vmatprep.subr.bf16.mxu0 %v14885_v30  ;;  %v14938_v30 = vld [vmem:[#allocation10 + $0xe44] ss:$16 sps:$4 sm:$0xff]  }
 0x625   : > { %9382 = vmatpush2.bf16.msra.mxu1 %v14880_v43  ;;  %v14941_v43 = vld [vmem:[#allocation10 + $0xc4c] ss:$16 sps:$4 sm:$0xff]  }
 0x626   : > { %10248 = vmatpush2.bf16.msra.mxu0 %v14883_v44  ;;  %9383 = vmatprep.subr.bf16.mxu1 %v14888_v49  ;;  %v14936_v44 = vld [vmem:[#allocation10 + $0xe40] ss:$16 sps:$4 sm:$0xff]   ;;  %v14939_v49 = vld [vmem:[#allocation10 + $0xc48] ss:$16 sps:$4 sm:$0xff]  }
 0x627   : > { %10249 = vmatprep.subr.bf16.mxu0 %v14891_v38  ;;  %v14944_v38 = vld [vmem:[#allocation10 + $0xe24] ss:$16 sps:$4 sm:$0xff]  }
 0x629   : > { %9384 = vmatpush2.bf16.msra.mxu1 %v14886_v22  ;;  %v14947_v22 = vld [vmem:[#allocation10 + $0xc2c] ss:$16 sps:$4 sm:$0xff]  }
 0x62a   : > { %10250 = vmatpush2.bf16.msra.mxu0 %v14889_v55  ;;  %9385 = vmatprep.subr.bf16.mxu1 %v14894_v51  ;;  %v14942_v55 = vld [vmem:[#allocation10 + $0xe20] ss:$16 sps:$4 sm:$0xff]   ;;  %v14945_v51 = vld [vmem:[#allocation10 + $0xc28] ss:$16 sps:$4 sm:$0xff]  }
 0x62b   : > { %10251 = vmatprep.subr.bf16.mxu0 %v14897_v27  ;;  %v14953_v27 = vld [vmem:[#allocation10 + $0xc0c] ss:$16 sps:$4 sm:$0xff]  }
 0x62d   : > { %9386 = vmatpush2.bf16.msra.mxu1 %v14892_v50  ;;  %v14951_v50 = vld [vmem:[#allocation10 + $0xc08] ss:$16 sps:$4 sm:$0xff]  }
 0x62e   : > { %10252 = vmatpush2.bf16.msra.mxu0 %v14895_v58  ;;  %9387 = vmatprep.subr.bf16.mxu1 %v14900_v8  ;;  %v14956_v58 = vld [vmem:[#allocation10 + $0xfe4] ss:$16 sps:$4 sm:$0xff]   ;;  %v14959_v8 = vld [vmem:[#allocation10 + $0xdec] ss:$16 sps:$4 sm:$0xff]  }
 0x62f   : > { %10253 = vmatprep.subr.bf16.mxu0 %v14903_v9  ;;  %v14954_v9 = vld [vmem:[#allocation10 + $0xfe0] ss:$16 sps:$4 sm:$0xff]  }
 0x631   : > { %9388 = vmatpush2.bf16.msra.mxu1 %v14898_v63  ;;  %v14965_v63 = vld [vmem:[#allocation10 + $0xdcc] ss:$16 sps:$4 sm:$0xff]  }
 0x632   : > { %10254 = vmatpush2.bf16.msra.mxu0 %v14901_v2  ;;  %10264 = vmatprep.subr.bf16.mxu1 %v14906_v10  ;;  %v14960_v2 = vld [vmem:[#allocation10 + $0xfc0] ss:$16 sps:$4 sm:$0xff]   ;;  %v14963_v10 = vld [vmem:[#allocation10 + $0xdc8] ss:$16 sps:$4 sm:$0xff]  }
 0x633   : > { %10305 = vmatprep.subr.bf16.mxu0 %v14909_v35  ;;  %v14971_v35 = vld [vmem:[#allocation10 + $0xdac] ss:$16 sps:$4 sm:$0xff]  }
 0x634   : > { %v8368_v17 = vpop.f32.mrf.mxu1  ;;  %9390 = vmatmul.mubr.bf16.vlgmr.msra.gmra.mxu1 %v16090_v3  ;;  %v14920_v3 = vld [vmem:[#allocation10 + $0xea4] ss:$16 sps:$4 sm:$0xff]  }
 0x635   : > { %v16124_v21 = vadd.f32 %v8368_v17, %v16097_v36  ;;  %v8409_v20 = vpop.f32.mrf.mxu0  ;;  %10256 = vmatmul.mubr.bf16.vlgmr.msra.gmra.mxu0 %v16118_v28  ;;  %10265 = vmatpush1.bf16.msra.mxu1 %v14904_v41  ;;  %v14974_v41 = vld [vmem:[#allocation10 + $0xf84] ss:$16 sps:$4 sm:$0xff]  }
 0x636   : > { %v16128_v5 = vadd.f32 %v8409_v20, %v16094_v45  ;;  %10296 = vmatprep.mubr.bf16.mxu1 %v16121_v29  ;;  %10306 = vmatpush1.bf16.msra.mxu0 %v14907_v37  ;;  %v8370_v42 = vpop.f32.mrf.mxu1  ;;  %v14977_v37 = vld [vmem:[#allocation10 + $0xd8c] ss:$16 sps:$4 sm:$0xff]   ;;  %v14980_v17 = vld [vmem:[#allocation10 + $0xf64] ss:$16 sps:$4 sm:$0xff]   ;;  %v14978_v20 = vld [vmem:[#allocation10 + $0xf60] ss:$16 sps:$4 sm:$0xff]  }
 0x637   : > { %10337 = vmatprep.mubr.bf16.mxu0 %v16100_v47  ;;  %v16133_v31 = vadd.f32 %v8370_v42, %v16108_v18  ;;  %v8411_v36 = vpop.f32.mrf.mxu0  ;;  %10266 = vmatprep.subr.bf16.mxu1 %v14914_v48  ;;  %v14929_v18 = vld [vmem:[#allocation10 + $0xc8c] ss:$16 sps:$4 sm:$0xff]   ;;  %v14975_v48 = vld [vmem:[#allocation10 + $0xd88] ss:$16 sps:$4 sm:$0xff]   ;;  %v14986_v42 = vld [vmem:[#allocation10 + $0xf44] ss:$16 sps:$4 sm:$0xff]  }
 0x638   : > { %v16136_v33 = vadd.f32 %v8411_v36, %v16105_v62  ;;  %v8372_v13 = vpop.f32.mrf.mxu1  ;;  %10307 = vmatprep.subr.bf16.mxu0 %v14917_v39  ;;  %v14932_v62 = vld [vmem:[#allocation10 + $0xe64] ss:$16 sps:$4 sm:$0xff]   ;;  %v14983_v39 = vld [vmem:[#allocation10 + $0xd6c] ss:$16 sps:$4 sm:$0xff]   ;;  %v12740_v36 = vcombine.low %v16110_v25, %v16112_v6  ;;  %v14999_v25 = vld [vmem:[#allocation10 + $0xd08] ss:$16 sps:$4 sm:$0xff]  }
 0x639   : > { %v8413_v45 = vpop.f32.mrf.mxu0  ;;  %10267 = vmatpush1.bf16.msra.mxu1 %v14912_v24  ;;  %v14981_v24 = vld [vmem:[#allocation10 + $0xd68] ss:$16 sps:$4 sm:$0xff]   ;;  %v14992_v13 = vld [vmem:[#allocation10 + $0xf24] ss:$16 sps:$4 sm:$0xff]  }
 0x63a   : > { %10308 = vmatpush1.bf16.msra.mxu0 %v14915_v61  ;;  %v8373_v46 = vpop.f32.mrf.mxu1  ;;  %10268 = vmatprep.subr.bf16.mxu1 %v14920_v3  ;;  %v14989_v61 = vld [vmem:[#allocation10 + $0xd4c] ss:$16 sps:$4 sm:$0xff]   ;;  %v14984_v3 = vld [vmem:[#allocation10 + $0xf40] ss:$16 sps:$4 sm:$0xff]  }
 0x63b   : > { %v8414_v47 = vpop.f32.mrf.mxu0  ;;  %10309 = vmatprep.subr.bf16.mxu0 %v14923_v32  ;;  %v14987_v32 = vld [vmem:[#allocation10 + $0xd48] ss:$16 sps:$4 sm:$0xff]   ;;  %v14995_v45 = vld [vmem:[#allocation10 + $0xd2c] ss:$16 sps:$4 sm:$0xff]  }
 0x63c   : > { %v14993_v46 = vld [vmem:[#allocation10 + $0xd28] ss:$16 sps:$4 sm:$0xff]   ;;  %v15001_v47 = vld [vmem:[#allocation10 + $0xd0c] ss:$16 sps:$4 sm:$0xff]  }
 0x63d   : > { %10269 = vmatpush1.bf16.msra.mxu1 %v14918_v14  ;;  %v14990_v14 = vld [vmem:[#allocation10 + $0xf20] ss:$16 sps:$4 sm:$0xff]  }
 0x63e   : > { %10310 = vmatpush1.bf16.msra.mxu0 %v14921_v4  ;;  %10270 = vmatprep.subr.bf16.mxu1 %v14926_v52  ;;  %v14998_v4 = vld [vmem:[#allocation10 + $0xf04] ss:$16 sps:$4 sm:$0xff]   ;;  %v9568_v52 = vshll.u32 %v12740_v36, 16 }
 0x63f   : > { %10311 = vmatprep.subr.bf16.mxu0 %v14929_v18  ;;  %v14996_v18 = vld [vmem:[#allocation10 + $0xf00] ss:$16 sps:$4 sm:$0xff]  }
 0x641   : > { %10271 = vmatpush1.bf16.msra.mxu1 %v14924_v1  ;;  %v16140_v1 = vld [vmem:[#allocation2 + $0x10] sm:$0xee] }
 0x642   : > { %10312 = vmatpush1.bf16.msra.mxu0 %v14927_v40  ;;  %10272 = vmatprep.subr.bf16.mxu1 %v14932_v62  ;;  %v9570_v40 = vrot.slane %v9568_v52, 1  ;;  %v15004_v62 = vld [vmem:[#allocation10 + $0xeec] ss:$16 sps:$4 sm:$0xff]  }
 0x643   : > { %10313 = vmatprep.subr.bf16.mxu0 %v14935_v23  ;;  %v15007_v23 = vld [vmem:[#allocation10 + $0x10e4] ss:$16 sps:$4 sm:$0xff]   ;;  %v15060_v52 = vld [vmem:[#allocation10 + $0xfcc] ss:$16 sps:$4 sm:$0xff]  }
 0x645   : > { %10273 = vmatpush1.bf16.msra.mxu1 %v14930_v7  ;;  %v9566_v7 = vshrl.u32 %v12740_v36, 16  ;;  %v15051_v36 = vld [vmem:[#allocation10 + $0x1004] ss:$16 sps:$4 sm:$0xff]  }
 0x646   : > { %10314 = vmatpush1.bf16.msra.mxu0 %v14933_v26  ;;  %10274 = vmatprep.subr.bf16.mxu1 %v14938_v30  ;;  %v15002_v26 = vld [vmem:[#allocation10 + $0xee8] ss:$16 sps:$4 sm:$0xff]   ;;  %v12871_v30 = vcombine.high %v16140_v1, %v16084_v34 }
 0x647   : > { %10315 = vmatprep.subr.bf16.mxu0 %v14941_v43  ;;  %v16144_v43 = vor.u32 %v9570_v40, %v9566_v7  ;;  %v15066_v40 = vld [vmem:[#allocation10 + $0xfac] ss:$16 sps:$4 sm:$0xff]   ;;  %v15067_v7 = vld [vmem:[#allocation10 + $0x11a0] ss:$16 sps:$4 sm:$0xff]  }
 0x649   : > { %10275 = vmatpush1.bf16.msra.mxu1 %v14936_v44  ;;  %v15005_v44 = vld [vmem:[#allocation10 + $0x10e0] ss:$16 sps:$4 sm:$0xff]  }
 0x64a   : > { %10316 = vmatpush1.bf16.msra.mxu0 %v14939_v49  ;;  %10276 = vmatprep.subr.bf16.mxu1 %v14944_v38  ;;  %v15012_v49 = vld [vmem:[#allocation10 + $0xecc] ss:$16 sps:$4 sm:$0xff]  }
 0x64b   : > { %10317 = vmatprep.subr.bf16.mxu0 %v14947_v22  ;;  %v15015_v22 = vld [vmem:[#allocation10 + $0x10c4] ss:$16 sps:$4 sm:$0xff]  }
 0x64d   : > { %10277 = vmatpush1.bf16.msra.mxu1 %v14942_v55 }
 0x64e   : > { %10318 = vmatpush1.bf16.msra.mxu0 %v14945_v51  ;;  %10278 = vmatprep.subr.bf16.mxu1 %v14950_v53  ;;  %v16153_v53 = vrot.slane %v12871_v30, 1  ;;  %v15075_v30 = vld [vmem:[#allocation10 + $0x1184] ss:$16 sps:$4 sm:$0xff]  }
 0x64f   : > { %10319 = vmatprep.subr.bf16.mxu0 %v14953_v27  ;;  %v15010_v27 = vld [vmem:[#allocation10 + $0xec8] ss:$16 sps:$4 sm:$0xff]  }
 0x651   : > { %10279 = vmatpush1.bf16.msra.mxu1 %v14948_v54 }
 0x652   : > { %10320 = vmatpush1.bf16.msra.mxu0 %v14951_v50  ;;  %10280 = vmatprep.subr.bf16.mxu1 %v14956_v58  ;;  %v15013_v50 = vld [vmem:[#allocation10 + $0x10c0] ss:$16 sps:$4 sm:$0xff]   ;;  %v15018_v58 = vld [vmem:[#allocation10 + $0xeac] ss:$16 sps:$4 sm:$0xff]  }
 0x653   : > { %10321 = vmatprep.subr.bf16.mxu0 %v14959_v8 }
 0x655   : > { %10281 = vmatpush2.bf16.msra.mxu1 %v14954_v9  ;;  %v15021_v9 = vld [vmem:[#allocation10 + $0x10a4] ss:$16 sps:$4 sm:$0xff]  }
 0x656   : > { %10322 = vmatpush2.bf16.msra.mxu0 %v14957_v19  ;;  %10282 = vmatprep.subr.bf16.mxu1 %v14962_v16  ;;  %v15016_v16 = vld [vmem:[#allocation10 + $0xea8] ss:$16 sps:$4 sm:$0xff]  }
 0x657   : > { %10323 = vmatprep.subr.bf16.mxu0 %v14965_v63  ;;  %v15019_v63 = vld [vmem:[#allocation10 + $0x10a0] ss:$16 sps:$4 sm:$0xff]  }
 0x659   : > { %10283 = vmatpush2.bf16.msra.mxu1 %v14960_v2  ;;  %v15024_v2 = vld [vmem:[#allocation10 + $0xe8c] ss:$16 sps:$4 sm:$0xff]  }
 0x65a   : > { %10324 = vmatpush2.bf16.msra.mxu0 %v14963_v10  ;;  %10284 = vmatprep.subr.bf16.mxu1 %v14968_v11  ;;  %v15027_v11 = vld [vmem:[#allocation10 + $0x1084] ss:$16 sps:$4 sm:$0xff]  }
 0x65b   : > { %10325 = vmatprep.subr.bf16.mxu0 %v14971_v35  ;;  %v15025_v35 = vld [vmem:[#allocation10 + $0x1080] ss:$16 sps:$4 sm:$0xff]  }
 0x65d   : > { %10285 = vmatpush2.bf16.msra.mxu1 %v14966_v12  ;;  %v15030_v12 = vld [vmem:[#allocation10 + $0xe6c] ss:$16 sps:$4 sm:$0xff]  }
 0x65e   : > { %10326 = vmatpush2.bf16.msra.mxu0 %v14969_v15  ;;  %10286 = vmatprep.subr.bf16.mxu1 %v14974_v41  ;;  %v15033_v15 = vld [vmem:[#allocation10 + $0x1064] ss:$16 sps:$4 sm:$0xff]   ;;  %v15028_v41 = vld [vmem:[#allocation10 + $0xe68] ss:$16 sps:$4 sm:$0xff]  }
 0x65f   : > { %10327 = vmatprep.subr.bf16.mxu0 %v14977_v37  ;;  %v15031_v37 = vld [vmem:[#allocation10 + $0x1060] ss:$16 sps:$4 sm:$0xff]  }
 0x661   : > { %10287 = vmatpush2.bf16.msra.mxu1 %v14972_v0  ;;  %v15036_v0 = vld [vmem:[#allocation10 + $0xe4c] ss:$16 sps:$4 sm:$0xff]  }
 0x662   : > { %10328 = vmatpush2.bf16.msra.mxu0 %v14975_v48  ;;  %10288 = vmatprep.subr.bf16.mxu1 %v14980_v17  ;;  %v15039_v48 = vld [vmem:[#allocation10 + $0x1044] ss:$16 sps:$4 sm:$0xff]   ;;  %v15034_v17 = vld [vmem:[#allocation10 + $0xe48] ss:$16 sps:$4 sm:$0xff]  }
 0x663   : > { %10329 = vmatprep.subr.bf16.mxu0 %v14983_v39  ;;  %v15037_v39 = vld [vmem:[#allocation10 + $0x1040] ss:$16 sps:$4 sm:$0xff]  }
 0x665   : > { %10289 = vmatpush2.bf16.msra.mxu1 %v14978_v20  ;;  %v15042_v20 = vld [vmem:[#allocation10 + $0xe2c] ss:$16 sps:$4 sm:$0xff]  }
 0x666   : > { %10330 = vmatpush2.bf16.msra.mxu0 %v14981_v24  ;;  %10290 = vmatprep.subr.bf16.mxu1 %v14986_v42  ;;  %v15045_v24 = vld [vmem:[#allocation10 + $0x1024] ss:$16 sps:$4 sm:$0xff]   ;;  %v15040_v42 = vld [vmem:[#allocation10 + $0xe28] ss:$16 sps:$4 sm:$0xff]  }
 0x667   : > { %10331 = vmatprep.subr.bf16.mxu0 %v14989_v61  ;;  %v15043_v61 = vld [vmem:[#allocation10 + $0x1020] ss:$16 sps:$4 sm:$0xff]  }
 0x669   : > { %10291 = vmatpush2.bf16.msra.mxu1 %v14984_v3  ;;  %v15048_v3 = vld [vmem:[#allocation10 + $0xe0c] ss:$16 sps:$4 sm:$0xff]  }
 0x66a   : > { %10332 = vmatpush2.bf16.msra.mxu0 %v14987_v32  ;;  %10292 = vmatprep.subr.bf16.mxu1 %v14992_v13  ;;  %v15046_v32 = vld [vmem:[#allocation10 + $0xe08] ss:$16 sps:$4 sm:$0xff]   ;;  %v15049_v13 = vld [vmem:[#allocation10 + $0x1000] ss:$16 sps:$4 sm:$0xff]  }
 0x66b   : > { %10333 = vmatprep.subr.bf16.mxu0 %v14995_v45  ;;  %v15054_v45 = vld [vmem:[#allocation10 + $0xfec] ss:$16 sps:$4 sm:$0xff]  }
 0x66d   : > { %10293 = vmatpush2.bf16.msra.mxu1 %v14990_v14  ;;  %v15057_v14 = vld [vmem:[#allocation10 + $0x11e4] ss:$16 sps:$4 sm:$0xff]  }
 0x66e   : > { %10334 = vmatpush2.bf16.msra.mxu0 %v14993_v46  ;;  %10294 = vmatprep.subr.bf16.mxu1 %v14998_v4  ;;  %v15052_v46 = vld [vmem:[#allocation10 + $0xfe8] ss:$16 sps:$4 sm:$0xff]   ;;  %v15055_v4 = vld [vmem:[#allocation10 + $0x11e0] ss:$16 sps:$4 sm:$0xff]  }
 0x66f   : > { %10335 = vmatprep.subr.bf16.mxu0 %v15001_v47  ;;  %v15063_v47 = vld [vmem:[#allocation10 + $0x11c4] ss:$16 sps:$4 sm:$0xff]  }
 0x671   : > { %10295 = vmatpush2.bf16.msra.mxu1 %v14996_v18  ;;  %v15058_v18 = vld [vmem:[#allocation10 + $0xfc8] ss:$16 sps:$4 sm:$0xff]  }
 0x672   : > { %10336 = vmatpush2.bf16.msra.mxu0 %v14999_v25  ;;  %10346 = vmatprep.subr.bf16.mxu1 %v15004_v62  ;;  %v15061_v25 = vld [vmem:[#allocation10 + $0x11c0] ss:$16 sps:$4 sm:$0xff]   ;;  %v15069_v62 = vld [vmem:[#allocation10 + $0x11a4] ss:$16 sps:$4 sm:$0xff]  }
 0x673   : > { %11180 = vmatprep.subr.bf16.mxu0 %v15007_v23  ;;  %v15064_v23 = vld [vmem:[#allocation10 + $0xfa8] ss:$16 sps:$4 sm:$0xff]  }
 0x674   : > { %v8450_v38 = vpop.f32.mrf.mxu1  ;;  %10297 = vmatmul.mubr.bf16.vlgmr.msra.gmra.mxu1 %v16144_v43 }
 0x675   : > { %v16148_v55 = vadd.f32 %v8450_v38, %v16128_v5  ;;  %v16150_v51 = vpop.f32.mrf.mxu0  ;;  %10338 = vmatmul.mubr.bf16.vlgmr.msra.gmra.mxu0 %v16118_v28  ;;  %10347 = vmatpush1.bf16.msra.mxu1 %v15002_v26  ;;  %v15072_v26 = vld [vmem:[#allocation10 + $0xf8c] ss:$16 sps:$4 sm:$0xff]  }
 0x676   : > { %10378 = vmatprep.mubr.bf16.mxu1 %v16121_v29  ;;  %11181 = vmatpush1.bf16.msra.mxu0 %v15005_v44  ;;  %v8452_v54 = vpop.f32.mrf.mxu1  ;;  %v15070_v44 = vld [vmem:[#allocation10 + $0xf88] ss:$16 sps:$4 sm:$0xff]   ;;  %v15078_v38 = vld [vmem:[#allocation10 + $0xf6c] ss:$16 sps:$4 sm:$0xff]  }
 0x677   : > { %11212 = vmatprep.mubr.bf16.mxu0 %v16153_v53  ;;  %v16158_v8 = vadd.f32 %v8452_v54, %v16136_v33  ;;  %v16160_v5 = vpop.f32.mrf.mxu0  ;;  %10348 = vmatprep.subr.bf16.mxu1 %v15012_v49  ;;  %v15022_v33 = vld [vmem:[#allocation10 + $0xe88] ss:$16 sps:$4 sm:$0xff]   ;;  %v15073_v49 = vld [vmem:[#allocation10 + $0x1180] ss:$16 sps:$4 sm:$0xff]  }
 0x678   : > { %v8454_v28 = vpop.f32.mrf.mxu1  ;;  %11182 = vmatprep.subr.bf16.mxu0 %v15015_v22  ;;  %v15081_v22 = vld [vmem:[#allocation10 + $0x1164] ss:$16 sps:$4 sm:$0xff]   ;;  %v15079_v54 = vld [vmem:[#allocation10 + $0x1160] ss:$16 sps:$4 sm:$0xff]  }
 0x679   : > { %v9272_v19 = vpop.f32.mrf.mxu0  ;;  %10349 = vmatpush1.bf16.msra.mxu1 %v15010_v27  ;;  %v15076_v27 = vld [vmem:[#allocation10 + $0xf68] ss:$16 sps:$4 sm:$0xff]   ;;  %v15085_v28 = vld [vmem:[#allocation10 + $0x1140] ss:$16 sps:$4 sm:$0xff]  }
 0x67a   : > { %11183 = vmatpush1.bf16.msra.mxu0 %v15013_v50  ;;  %v8455_v29 = vpop.f32.mrf.mxu1  ;;  %10350 = vmatprep.subr.bf16.mxu1 %v15018_v58  ;;  %v15084_v50 = vld [vmem:[#allocation10 + $0xf4c] ss:$16 sps:$4 sm:$0xff]   ;;  %v15087_v58 = vld [vmem:[#allocation10 + $0x1144] ss:$16 sps:$4 sm:$0xff]  }
 0x67b   : > { %v9273_v10 = vpop.f32.mrf.mxu0  ;;  %11184 = vmatprep.subr.bf16.mxu0 %v15021_v9  ;;  %v15082_v9 = vld [vmem:[#allocation10 + $0xf48] ss:$16 sps:$4 sm:$0xff]   ;;  %v15090_v19 = vld [vmem:[#allocation10 + $0xf2c] ss:$16 sps:$4 sm:$0xff]  }
 0x67c   : > { %v15088_v29 = vld [vmem:[#allocation10 + $0xf28] ss:$16 sps:$4 sm:$0xff]   ;;  %v15099_v10 = vld [vmem:[#allocation10 + $0x1104] ss:$16 sps:$4 sm:$0xff]  }
 0x67d   : > { %10351 = vmatpush1.bf16.msra.mxu1 %v15016_v16  ;;  %v15093_v16 = vld [vmem:[#allocation10 + $0x1124] ss:$16 sps:$4 sm:$0xff]  }
 0x67e   : > { %11185 = vmatpush1.bf16.msra.mxu0 %v15019_v63  ;;  %10352 = vmatprep.subr.bf16.mxu1 %v15024_v2  ;;  %v15091_v63 = vld [vmem:[#allocation10 + $0x1120] ss:$16 sps:$4 sm:$0xff]   ;;  %v15096_v2 = vld [vmem:[#allocation10 + $0xf0c] ss:$16 sps:$4 sm:$0xff]  }
 0x67f   : > { %11186 = vmatprep.subr.bf16.mxu0 %v15027_v11  ;;  %v15094_v11 = vld [vmem:[#allocation10 + $0xf08] ss:$16 sps:$4 sm:$0xff]  }
 0x681   : > { %10353 = vmatpush1.bf16.msra.mxu1 %v15022_v33  ;;  %v16162_v33 = vld [vmem:[#allocation2 + $0x18] sm:$0xee] }
 0x682   : > { %11187 = vmatpush1.bf16.msra.mxu0 %v15025_v35  ;;  %10354 = vmatprep.subr.bf16.mxu1 %v15030_v12  ;;  %v15097_v35 = vld [vmem:[#allocation10 + $0x1100] ss:$16 sps:$4 sm:$0xff]   ;;  %v15102_v12 = vld [vmem:[#allocation10 + $0x12e4] ss:$16 sps:$4 sm:$0xff]  }
 0x683   : > { %11188 = vmatprep.subr.bf16.mxu0 %v15033_v15  ;;  %v12870_v15 = vcombine.low %v16140_v1, %v16084_v34  ;;  %v15113_v34 = vld [vmem:[#allocation10 + $0x10cc] ss:$16 sps:$4 sm:$0xff]  }
 0x685   : > { %10355 = vmatpush1.bf16.msra.mxu1 %v15028_v41  ;;  %v15105_v41 = vld [vmem:[#allocation10 + $0x10ec] ss:$16 sps:$4 sm:$0xff]  }
 0x686   : > { %11189 = vmatpush1.bf16.msra.mxu0 %v15031_v37  ;;  %10356 = vmatprep.subr.bf16.mxu1 %v15036_v0  ;;  %v12873_v37 = vcombine.high %v16162_v33, %v16112_v6  ;;  %v15100_v0 = vld [vmem:[#allocation10 + $0x12e0] ss:$16 sps:$4 sm:$0xff]  }
 0x687   : > { %11190 = vmatprep.subr.bf16.mxu0 %v15039_v48  ;;  %v15103_v48 = vld [vmem:[#allocation10 + $0x10e8] ss:$16 sps:$4 sm:$0xff]  }
 0x689   : > { %10357 = vmatpush1.bf16.msra.mxu1 %v15034_v17  ;;  %v16168_v17 = vrot.slane %v12870_v15, 1  ;;  %v15167_v15 = vld [vmem:[#allocation10 + $0x11ac] ss:$16 sps:$4 sm:$0xff]  }
 0x68a   : > { %11191 = vmatpush1.bf16.msra.mxu0 %v15037_v39  ;;  %10358 = vmatprep.subr.bf16.mxu1 %v15042_v20  ;;  %v15110_v39 = vld [vmem:[#allocation10 + $0x12c4] ss:$16 sps:$4 sm:$0xff]  }
 0x68b   : > { %11192 = vmatprep.subr.bf16.mxu0 %v15045_v24  ;;  %v16171_v24 = vrot.slane %v12873_v37, 1  ;;  %v15165_v37 = vld [vmem:[#allocation10 + $0x11a8] ss:$16 sps:$4 sm:$0xff]  }
 0x68d   : > { %10359 = vmatpush1.bf16.msra.mxu1 %v15040_v42 }
 0x68e   : > { %11193 = vmatpush1.bf16.msra.mxu0 %v15043_v61  ;;  %10360 = vmatprep.subr.bf16.mxu1 %v15048_v3  ;;  %v15108_v61 = vld [vmem:[#allocation10 + $0x12c0] ss:$16 sps:$4 sm:$0xff]  }
 0x68f   : > { %11194 = vmatprep.subr.bf16.mxu0 %v15051_v36  ;;  %v15111_v36 = vld [vmem:[#allocation10 + $0x10c8] ss:$16 sps:$4 sm:$0xff]  }
 0x691   : > { %10361 = vmatpush1.bf16.msra.mxu1 %v15046_v32  ;;  %v15116_v32 = vld [vmem:[#allocation10 + $0x12a4] ss:$16 sps:$4 sm:$0xff]  }
 0x692   : > { %11195 = vmatpush1.bf16.msra.mxu0 %v15049_v13  ;;  %10362 = vmatprep.subr.bf16.mxu1 %v15054_v45  ;;  %v15119_v45 = vld [vmem:[#allocation10 + $0x10ac] ss:$16 sps:$4 sm:$0xff]  }
 0x693   : > { %11196 = vmatprep.subr.bf16.mxu0 %v15057_v14 }
 0x695   : > { %10363 = vmatpush2.bf16.msra.mxu1 %v15052_v46 }
 0x696   : > { %11197 = vmatpush2.bf16.msra.mxu0 %v15055_v4  ;;  %10364 = vmatprep.subr.bf16.mxu1 %v15060_v52  ;;  %v15114_v52 = vld [vmem:[#allocation10 + $0x12a0] ss:$16 sps:$4 sm:$0xff]  }
 0x697   : > { %11198 = vmatprep.subr.bf16.mxu0 %v15063_v47 }
 0x699   : > { %10365 = vmatpush2.bf16.msra.mxu1 %v15058_v18  ;;  %v15122_v18 = vld [vmem:[#allocation10 + $0x1284] ss:$16 sps:$4 sm:$0xff]  }
 0x69a   : > { %11199 = vmatpush2.bf16.msra.mxu0 %v15061_v25  ;;  %10366 = vmatprep.subr.bf16.mxu1 %v15066_v40  ;;  %v15120_v25 = vld [vmem:[#allocation10 + $0x1280] ss:$16 sps:$4 sm:$0xff]   ;;  %v15123_v40 = vld [vmem:[#allocation10 + $0x1088] ss:$16 sps:$4 sm:$0xff]  }
 0x69b   : > { %11200 = vmatprep.subr.bf16.mxu0 %v15069_v62  ;;  %v15128_v62 = vld [vmem:[#allocation10 + $0x1264] ss:$16 sps:$4 sm:$0xff]  }
 0x69d   : > { %10367 = vmatpush2.bf16.msra.mxu1 %v15064_v23  ;;  %v15126_v23 = vld [vmem:[#allocation10 + $0x1260] ss:$16 sps:$4 sm:$0xff]  }
 0x69e   : > { %11201 = vmatpush2.bf16.msra.mxu0 %v15067_v7  ;;  %10368 = vmatprep.subr.bf16.mxu1 %v15072_v26  ;;  %v15129_v7 = vld [vmem:[#allocation10 + $0x1068] ss:$16 sps:$4 sm:$0xff]   ;;  %v15134_v26 = vld [vmem:[#allocation10 + $0x1244] ss:$16 sps:$4 sm:$0xff]  }
 0x69f   : > { %11202 = vmatprep.subr.bf16.mxu0 %v15075_v30  ;;  %v15137_v30 = vld [vmem:[#allocation10 + $0x104c] ss:$16 sps:$4 sm:$0xff]  }
 0x6a1   : > { %10369 = vmatpush2.bf16.msra.mxu1 %v15070_v44  ;;  %v15132_v44 = vld [vmem:[#allocation10 + $0x1240] ss:$16 sps:$4 sm:$0xff]  }
 0x6a2   : > { %11203 = vmatpush2.bf16.msra.mxu0 %v15073_v49  ;;  %10370 = vmatprep.subr.bf16.mxu1 %v15078_v38  ;;  %v15135_v49 = vld [vmem:[#allocation10 + $0x1048] ss:$16 sps:$4 sm:$0xff]   ;;  %v15140_v38 = vld [vmem:[#allocation10 + $0x1224] ss:$16 sps:$4 sm:$0xff]  }
 0x6a3   : > { %11204 = vmatprep.subr.bf16.mxu0 %v15081_v22  ;;  %v15143_v22 = vld [vmem:[#allocation10 + $0x102c] ss:$16 sps:$4 sm:$0xff]  }
 0x6a5   : > { %10371 = vmatpush2.bf16.msra.mxu1 %v15076_v27  ;;  %v15138_v27 = vld [vmem:[#allocation10 + $0x1220] ss:$16 sps:$4 sm:$0xff]  }
 0x6a6   : > { %11205 = vmatpush2.bf16.msra.mxu0 %v15079_v54  ;;  %10372 = vmatprep.subr.bf16.mxu1 %v15084_v50  ;;  %v15141_v54 = vld [vmem:[#allocation10 + $0x1028] ss:$16 sps:$4 sm:$0xff]   ;;  %v15146_v50 = vld [vmem:[#allocation10 + $0x1204] ss:$16 sps:$4 sm:$0xff]  }
 0x6a7   : > { %11206 = vmatprep.subr.bf16.mxu0 %v15087_v58  ;;  %v15149_v58 = vld [vmem:[#allocation10 + $0x100c] ss:$16 sps:$4 sm:$0xff]  }
 0x6a9   : > { %10373 = vmatpush2.bf16.msra.mxu1 %v15082_v9  ;;  %v15144_v9 = vld [vmem:[#allocation10 + $0x1200] ss:$16 sps:$4 sm:$0xff]  }
 0x6aa   : > { %11207 = vmatpush2.bf16.msra.mxu0 %v15085_v28  ;;  %10374 = vmatprep.subr.bf16.mxu1 %v15090_v19  ;;  %v15147_v28 = vld [vmem:[#allocation10 + $0x1008] ss:$16 sps:$4 sm:$0xff]   ;;  %v15152_v19 = vld [vmem:[#allocation10 + $0x13e4] ss:$16 sps:$4 sm:$0xff]  }
 0x6ab   : > { %11208 = vmatprep.subr.bf16.mxu0 %v15093_v16  ;;  %v15155_v16 = vld [vmem:[#allocation10 + $0x11ec] ss:$16 sps:$4 sm:$0xff]  }
 0x6ad   : > { %10375 = vmatpush2.bf16.msra.mxu1 %v15088_v29  ;;  %v15150_v29 = vld [vmem:[#allocation10 + $0x13e0] ss:$16 sps:$4 sm:$0xff]  }
 0x6ae   : > { %11209 = vmatpush2.bf16.msra.mxu0 %v15091_v63  ;;  %10376 = vmatprep.subr.bf16.mxu1 %v15096_v2  ;;  %v15153_v63 = vld [vmem:[#allocation10 + $0x11e8] ss:$16 sps:$4 sm:$0xff]   ;;  %v15158_v2 = vld [vmem:[#allocation10 + $0x13c4] ss:$16 sps:$4 sm:$0xff]  }
 0x6af   : > { %11210 = vmatprep.subr.bf16.mxu0 %v15099_v10  ;;  %v15161_v10 = vld [vmem:[#allocation10 + $0x11cc] ss:$16 sps:$4 sm:$0xff]  }
 0x6b1   : > { %10377 = vmatpush2.bf16.msra.mxu1 %v15094_v11  ;;  %v15156_v11 = vld [vmem:[#allocation10 + $0x13c0] ss:$16 sps:$4 sm:$0xff]  }
 0x6b2   : > { %11211 = vmatpush2.bf16.msra.mxu0 %v15097_v35  ;;  %11221 = vmatprep.subr.bf16.mxu1 %v15102_v12  ;;  %v15159_v35 = vld [vmem:[#allocation10 + $0x11c8] ss:$16 sps:$4 sm:$0xff]   ;;  %v15164_v12 = vld [vmem:[#allocation10 + $0x13a4] ss:$16 sps:$4 sm:$0xff]  }
 0x6b3   : > { %11262 = vmatprep.subr.bf16.mxu0 %v15105_v41  ;;  %v15162_v41 = vld [vmem:[#allocation10 + $0x13a0] ss:$16 sps:$4 sm:$0xff]  }
 0x6b4   : > { %v9309_v20 = vpop.f32.mrf.mxu1  ;;  %10379 = vmatmul.mubr.bf16.vlgmr.msra.gmra.mxu1 %v16144_v43 }
 0x6b5   : > { %v9310_v1 = vadd.f32 %v9309_v20, %v16150_v51  ;;  %v16174_v42 = vpop.f32.mrf.mxu0  ;;  %11213 = vmatmul.mubr.bf16.vlgmr.msra.gmra.mxu0 %v16168_v17  ;;  %11222 = vmatpush1.bf16.msra.mxu1 %v15100_v0  ;;  %v15170_v0 = vld [vmem:[#allocation10 + $0x1384] ss:$16 sps:$4 sm:$0xff]   ;;  %v15171_v20 = vld [vmem:[#allocation10 + $0x1188] ss:$16 sps:$4 sm:$0xff]  }
 0x6b6   : > { %11253 = vmatprep.mubr.bf16.mxu1 %v16171_v24  ;;  %11263 = vmatpush1.bf16.msra.mxu0 %v15103_v48  ;;  %v9311_v3 = vpop.f32.mrf.mxu1  ;;  %v15173_v48 = vld [vmem:[#allocation10 + $0x118c] ss:$16 sps:$4 sm:$0xff]  }
 0x6b7   : > { %v16179_v13 = vadd.f32 %v9310_v1, %v16124_v21  ;;  %11294 = vmatprep.mubr.bf16.mxu0 %v16153_v53  ;;  %v9312_v43 = vadd.f32 %v9311_v3, %v16160_v5  ;;  %v16183_v51 = vpop.f32.mrf.mxu0  ;;  %11223 = vmatprep.subr.bf16.mxu1 %v15110_v39  ;;  %v15117_v21 = vld [vmem:[#allocation10 + $0x10a8] ss:$16 sps:$4 sm:$0xff]   ;;  %v15125_v5 = vld [vmem:[#allocation10 + $0x108c] ss:$16 sps:$4 sm:$0xff]   ;;  %v15168_v39 = vld [vmem:[#allocation10 + $0x1380] ss:$16 sps:$4 sm:$0xff]  }
 0x6b8   : > { %v9313_v14 = vpop.f32.mrf.mxu1  ;;  %11264 = vmatprep.subr.bf16.mxu0 %v15113_v34  ;;  %v15176_v34 = vld [vmem:[#allocation10 + $0x1364] ss:$16 sps:$4 sm:$0xff]   ;;  %v15179_v1 = vld [vmem:[#allocation10 + $0x116c] ss:$16 sps:$4 sm:$0xff]   ;;  %v15177_v3 = vld [vmem:[#allocation10 + $0x1168] ss:$16 sps:$4 sm:$0xff]  }
 0x6b9   : > { %v16186_v46 = vadd.f32 %v9312_v43, %v16133_v31  ;;  %v9354_v4 = vpop.f32.mrf.mxu0  ;;  %11224 = vmatpush1.bf16.msra.mxu1 %v15108_v61  ;;  %v15131_v31 = vld [vmem:[#allocation10 + $0x106c] ss:$16 sps:$4 sm:$0xff]   ;;  %v15174_v61 = vld [vmem:[#allocation10 + $0x1360] ss:$16 sps:$4 sm:$0xff]   ;;  %v15188_v14 = vld [vmem:[#allocation10 + $0x1324] ss:$16 sps:$4 sm:$0xff]  }
 0x6ba   : > { %11265 = vmatpush1.bf16.msra.mxu0 %v15111_v36  ;;  %v9314_v47 = vpop.f32.mrf.mxu1  ;;  %11225 = vmatprep.subr.bf16.mxu1 %v15116_v32  ;;  %v15182_v36 = vld [vmem:[#allocation10 + $0x1344] ss:$16 sps:$4 sm:$0xff]   ;;  %v15185_v32 = vld [vmem:[#allocation10 + $0x114c] ss:$16 sps:$4 sm:$0xff]   ;;  %v15180_v43 = vld [vmem:[#allocation10 + $0x1340] ss:$16 sps:$4 sm:$0xff]  }
 0x6bb   : > { %v9355_v53 = vpop.f32.mrf.mxu0  ;;  %11266 = vmatprep.subr.bf16.mxu0 %v15119_v45  ;;  %v15183_v45 = vld [vmem:[#allocation10 + $0x1148] ss:$16 sps:$4 sm:$0xff]   ;;  %v15191_v4 = vld [vmem:[#allocation10 + $0x112c] ss:$16 sps:$4 sm:$0xff]  }
 0x6bc   : > { %v15189_v47 = vld [vmem:[#allocation10 + $0x1128] ss:$16 sps:$4 sm:$0xff]   ;;  %v15192_v53 = vld [vmem:[#allocation10 + $0x1300] ss:$16 sps:$4 sm:$0xff]  }
 0x6bd   : > { %11226 = vmatpush1.bf16.msra.mxu1 %v15114_v52  ;;  %v15186_v52 = vld [vmem:[#allocation10 + $0x1320] ss:$16 sps:$4 sm:$0xff]  }
 0x6be   : > { %11267 = vmatpush1.bf16.msra.mxu0 %v15117_v21  ;;  %11227 = vmatprep.subr.bf16.mxu1 %v15122_v18  ;;  %v15194_v21 = vld [vmem:[#allocation10 + $0x1304] ss:$16 sps:$4 sm:$0xff]   ;;  %v15197_v18 = vld [vmem:[#allocation10 + $0x110c] ss:$16 sps:$4 sm:$0xff]  }
 0x6bf   : > { %11268 = vmatprep.subr.bf16.mxu0 %v15125_v5  ;;  %v12872_v5 = vcombine.low %v16162_v33, %v16112_v6  ;;  %v15201_v6 = vld [vmem:[#allocation10 + $0x12c8] ss:$16 sps:$4 sm:$0xff]  }
 0x6c1   : > { %11228 = vmatpush1.bf16.msra.mxu1 %v15120_v25  ;;  %v15195_v25 = vld [vmem:[#allocation10 + $0x1108] ss:$16 sps:$4 sm:$0xff]  }
 0x6c2   : > { %11269 = vmatpush1.bf16.msra.mxu0 %v15123_v40  ;;  %11229 = vmatprep.subr.bf16.mxu1 %v15128_v62  ;;  %v15200_v40 = vld [vmem:[#allocation10 + $0x12ec] ss:$16 sps:$4 sm:$0xff]   ;;  %v15198_v62 = vld [vmem:[#allocation10 + $0x12e8] ss:$16 sps:$4 sm:$0xff]  }
 0x6c3   : > { %11270 = vmatprep.subr.bf16.mxu0 %v15131_v31  ;;  %v16190_v31 = vrot.slane %v12872_v5, 1 }
 0x6c5   : > { %11230 = vmatpush1.bf16.msra.mxu1 %v15126_v23  ;;  %v15203_v23 = vld [vmem:[#allocation10 + $0x12cc] ss:$16 sps:$4 sm:$0xff]  }
 0x6c6   : > { %11271 = vmatpush1.bf16.msra.mxu0 %v15129_v7  ;;  %11231 = vmatprep.subr.bf16.mxu1 %v15134_v26 }
 0x6c7   : > { %11272 = vmatprep.subr.bf16.mxu0 %v15137_v30 }
 0x6c9   : > { %11232 = vmatpush1.bf16.msra.mxu1 %v15132_v44  ;;  %v15206_v44 = vld [vmem:[#allocation10 + $0x12ac] ss:$16 sps:$4 sm:$0xff]  }
 0x6ca   : > { %11273 = vmatpush1.bf16.msra.mxu0 %v15135_v49  ;;  %11233 = vmatprep.subr.bf16.mxu1 %v15140_v38 }
 0x6cb   : > { %11274 = vmatprep.subr.bf16.mxu0 %v15143_v22 }
 0x6cd   : > { %11234 = vmatpush1.bf16.msra.mxu1 %v15138_v27 }
 0x6ce   : > { %11275 = vmatpush1.bf16.msra.mxu0 %v15141_v54  ;;  %11235 = vmatprep.subr.bf16.mxu1 %v15146_v50 }
 0x6cf   : > { %11276 = vmatprep.subr.bf16.mxu0 %v15149_v58 }
 0x6d1   : > { %11236 = vmatpush1.bf16.msra.mxu1 %v15144_v9  ;;  %v15207_v9 = vld [vmem:[#allocation10 + $0x1288] ss:$16 sps:$4 sm:$0xff]  }
 0x6d2   : > { %11277 = vmatpush1.bf16.msra.mxu0 %v15147_v28  ;;  %11237 = vmatprep.subr.bf16.mxu1 %v15152_v19  ;;  %v15210_v28 = vld [vmem:[#allocation10 + $0x1268] ss:$16 sps:$4 sm:$0xff]  }
 0x6d3   : > { %11278 = vmatprep.subr.bf16.mxu0 %v15155_v16  ;;  %v15213_v19 = vld [vmem:[#allocation10 + $0x1248] ss:$16 sps:$4 sm:$0xff]  }
 0x6d4   : > { %v15216_v16 = vld [vmem:[#allocation10 + $0x1228] ss:$16 sps:$4 sm:$0xff]  }
 0x6d5   : > { %11238 = vmatpush2.bf16.msra.mxu1 %v15150_v29  ;;  %v15221_v29 = vld [vmem:[#allocation10 + $0x120c] ss:$16 sps:$4 sm:$0xff]  }
 0x6d6   : > { %11279 = vmatpush2.bf16.msra.mxu0 %v15153_v63  ;;  %11239 = vmatprep.subr.bf16.mxu1 %v15158_v2  ;;  %v15219_v63 = vld [vmem:[#allocation10 + $0x1208] ss:$16 sps:$4 sm:$0xff]   ;;  %v15224_v2 = vld [vmem:[#allocation10 + $0x13ec] ss:$16 sps:$4 sm:$0xff]  }
 0x6d7   : > { %11280 = vmatprep.subr.bf16.mxu0 %v15161_v10  ;;  %v15222_v10 = vld [vmem:[#allocation10 + $0x13e8] ss:$16 sps:$4 sm:$0xff]  }
 0x6d9   : > { %11240 = vmatpush2.bf16.msra.mxu1 %v15156_v11  ;;  %v15227_v11 = vld [vmem:[#allocation10 + $0x13cc] ss:$16 sps:$4 sm:$0xff]  }
 0x6da   : > { %11281 = vmatpush2.bf16.msra.mxu0 %v15159_v35  ;;  %11241 = vmatprep.subr.bf16.mxu1 %v15164_v12  ;;  %v15225_v35 = vld [vmem:[#allocation10 + $0x13c8] ss:$16 sps:$4 sm:$0xff]   ;;  %v15230_v12 = vld [vmem:[#allocation10 + $0x13ac] ss:$16 sps:$4 sm:$0xff]  }
 0x6db   : > { %11282 = vmatprep.subr.bf16.mxu0 %v15167_v15  ;;  %v15228_v15 = vld [vmem:[#allocation10 + $0x13a8] ss:$16 sps:$4 sm:$0xff]  }
 0x6dd   : > { %11242 = vmatpush2.bf16.msra.mxu1 %v15162_v41  ;;  %v15233_v41 = vld [vmem:[#allocation10 + $0x138c] ss:$16 sps:$4 sm:$0xff]  }
 0x6de   : > { %11283 = vmatpush2.bf16.msra.mxu0 %v15165_v37  ;;  %11243 = vmatprep.subr.bf16.mxu1 %v15170_v0  ;;  %v15231_v37 = vld [vmem:[#allocation10 + $0x1388] ss:$16 sps:$4 sm:$0xff]   ;;  %v15236_v0 = vld [vmem:[#allocation10 + $0x136c] ss:$16 sps:$4 sm:$0xff]  }
 0x6df   : > { %11284 = vmatprep.subr.bf16.mxu0 %v15173_v48  ;;  %v15234_v48 = vld [vmem:[#allocation10 + $0x1368] ss:$16 sps:$4 sm:$0xff]  }
 0x6e1   : > { %11244 = vmatpush2.bf16.msra.mxu1 %v15168_v39  ;;  %v15239_v39 = vld [vmem:[#allocation10 + $0x134c] ss:$16 sps:$4 sm:$0xff]  }
 0x6e2   : > { %11285 = vmatpush2.bf16.msra.mxu0 %v15171_v20  ;;  %11245 = vmatprep.subr.bf16.mxu1 %v15176_v34  ;;  %v15237_v20 = vld [vmem:[#allocation10 + $0x1348] ss:$16 sps:$4 sm:$0xff]   ;;  %v15242_v34 = vld [vmem:[#allocation10 + $0x132c] ss:$16 sps:$4 sm:$0xff]  }
 0x6e3   : > { %11286 = vmatprep.subr.bf16.mxu0 %v15179_v1  ;;  %v15240_v1 = vld [vmem:[#allocation10 + $0x1328] ss:$16 sps:$4 sm:$0xff]  }
 0x6e5   : > { %11246 = vmatpush2.bf16.msra.mxu1 %v15174_v61  ;;  %v15245_v61 = vld [vmem:[#allocation10 + $0x130c] ss:$16 sps:$4 sm:$0xff]  }
 0x6e6   : > { %11287 = vmatpush2.bf16.msra.mxu0 %v15177_v3  ;;  %11247 = vmatprep.subr.bf16.mxu1 %v15182_v36  ;;  %v15243_v3 = vld [vmem:[#allocation10 + $0x1308] ss:$16 sps:$4 sm:$0xff]  }
 0x6e7   : > { %11288 = vmatprep.subr.bf16.mxu0 %v15185_v32 }
 0x6e9   : > { %11248 = vmatpush2.bf16.msra.mxu1 %v15180_v43 }
 0x6ea   : > { %11289 = vmatpush2.bf16.msra.mxu0 %v15183_v45  ;;  %11249 = vmatprep.subr.bf16.mxu1 %v15188_v14 }
 0x6eb   : > { %11290 = vmatprep.subr.bf16.mxu0 %v15191_v4 }
 0x6ed   : > { %11250 = vmatpush2.bf16.msra.mxu1 %v15186_v52 }
 0x6ee   : > { %11291 = vmatpush2.bf16.msra.mxu0 %v15189_v47  ;;  %11251 = vmatprep.subr.bf16.mxu1 %v15194_v21 }
 0x6ef   : > { %11292 = vmatprep.subr.bf16.mxu0 %v15197_v18 }
 0x6f1   : > { %11252 = vmatpush2.bf16.msra.mxu1 %v15192_v53 }
 0x6f2   : > { %11293 = vmatpush2.bf16.msra.mxu0 %v15195_v25  ;;  %11303 = vmatprep.subr.bf16.mxu1 %v15200_v40 }
 0x6f4   : > { %v9391_v7 = vpop.f32.mrf.mxu1  ;;  %11254 = vmatmul.mubr.bf16.vlgmr.msra.gmra.mxu1 %v16190_v31 }
 0x6f5   : > { %v9392_v26 = vadd.f32 %v9391_v7, %v16174_v42  ;;  %v16194_v30 = vpop.f32.mrf.mxu0  ;;  %11295 = vmatmul.mubr.bf16.vlgmr.msra.gmra.mxu0 %v16168_v17  ;;  %11304 = vmatpush1.bf16.msra.mxu1 %v15198_v62  ;;  %v15204_v17 = vld [vmem:[#allocation10 + $0x12a8] ss:$16 sps:$4 sm:$0xff]  }
 0x6f6   : > { %11335 = vmatprep.mubr.bf16.mxu1 %v16171_v24  ;;  %v9393_v33 = vpop.f32.mrf.mxu1  ;;  %11305 = vmatprep.subr.bf16.mxu1 %v15203_v23  ;;  %v15209_v24 = vld [vmem:[#allocation10 + $0x128c] ss:$16 sps:$4 sm:$0xff]  }
 0x6f7   : > { %v16199_v49 = vadd.f32 %v9392_v26, %v16148_v55  ;;  %v9394_v38 = vadd.f32 %v9393_v33, %v16183_v51  ;;  %v16202_v22 = vpop.f32.mrf.mxu0  ;;  %v15212_v55 = vld [vmem:[#allocation10 + $0x126c] ss:$16 sps:$4 sm:$0xff]  }
 0x6f8   : > { %v9395_v27 = vpop.f32.mrf.mxu1  ;;  %v15215_v51 = vld [vmem:[#allocation10 + $0x124c] ss:$16 sps:$4 sm:$0xff]  }
 0x6f9   : > { %v16205_v42 = vadd.f32 %v9394_v38, %v16158_v8  ;;  %v10261_v54 = vpop.f32.mrf.mxu0  ;;  %11306 = vmatpush1.bf16.msra.mxu1 %v15201_v6  ;;  %v15218_v8 = vld [vmem:[#allocation10 + $0x122c] ss:$16 sps:$4 sm:$0xff]   ;;  %v11348_v38 = vld [vmem:[#allocation15] sm:$0xf] }
 0x6fa   : > { %v9396_v50 = vpop.f32.mrf.mxu1  ;;  %11307 = vmatprep.subr.bf16.mxu1 %v15206_v44  ;;  %v11353_v27 = vrot.slane %v11348_v38, %v15808_v56 }
 0x6fb   : > { %v10262_v58 = vpop.f32.mrf.mxu0 }
 0x6fd   : > { %11308 = vmatpush1.bf16.msra.mxu1 %v15204_v17 }
 0x6fe   : > { %11309 = vmatprep.subr.bf16.mxu1 %v15209_v24 }
 0x701   : > { %11310 = vmatpush1.bf16.msra.mxu1 %v15207_v9 }
 0x702   : > { %11311 = vmatprep.subr.bf16.mxu1 %v15212_v55 }
 0x705   : > { %11312 = vmatpush1.bf16.msra.mxu1 %v15210_v28 }
 0x706   : > { %11313 = vmatprep.subr.bf16.mxu1 %v15215_v51 }
 0x709   : > { %11314 = vmatpush1.bf16.msra.mxu1 %v15213_v19 }
 0x70a   : > { %11315 = vmatprep.subr.bf16.mxu1 %v15218_v8 }
 0x70d   : > { %11316 = vmatpush1.bf16.msra.mxu1 %v15216_v16 }
 0x70e   : > { %11317 = vmatprep.subr.bf16.mxu1 %v15221_v29 }
 0x711   : > { %11318 = vmatpush1.bf16.msra.mxu1 %v15219_v63 }
 0x712   : > { %11319 = vmatprep.subr.bf16.mxu1 %v15224_v2  ;;  %v11361_v2 = vrot.slane %v11348_v38, %v15810_v57 }
 0x715   : > { %11320 = vmatpush2.bf16.msra.mxu1 %v15222_v10 }
 0x716   : > { %11321 = vmatprep.subr.bf16.mxu1 %v15227_v11 }
 0x719   : > { %11322 = vmatpush2.bf16.msra.mxu1 %v15225_v35  ;;  %v11365_v35 = vrot.slane %v11348_v38, %v15814_v60 }
 0x71a   : > { %11323 = vmatprep.subr.bf16.mxu1 %v15230_v12 }
 0x71d   : > { %11324 = vmatpush2.bf16.msra.mxu1 %v15228_v15 }
 0x71e   : > { %11325 = vmatprep.subr.bf16.mxu1 %v15233_v41 }
 0x721   : > { %11326 = vmatpush2.bf16.msra.mxu1 %v15231_v37 }
 0x722   : > { %11327 = vmatprep.subr.bf16.mxu1 %v15236_v0 }
 0x725   : > { %11328 = vmatpush2.bf16.msra.mxu1 %v15234_v48 }
 0x726   : > { %11329 = vmatprep.subr.bf16.mxu1 %v15239_v39 }
 0x729   : > { %11330 = vmatpush2.bf16.msra.mxu1 %v15237_v20 }
 0x72a   : > { %11331 = vmatprep.subr.bf16.mxu1 %v15242_v34 }
 0x72d   : > { %11332 = vmatpush2.bf16.msra.mxu1 %v15240_v1 }
 0x72e   : > { %11333 = vmatprep.subr.bf16.mxu1 %v15245_v61 }
 0x731   : > { %11334 = vmatpush2.bf16.msra.mxu1 %v15243_v3 }
 0x734   : > { %v10298_v36 = vpop.f32.mrf.mxu1  ;;  %11336 = vmatmul.mubr.bf16.vlgmr.msra.gmra.mxu1 %v16190_v31 }
 0x735   : > { %v10299_v32 = vadd.f32 %v10298_v36, %v16194_v30  ;;  %v10339_v43 = vpop.f32.mrf.mxu0 }
 0x736   : > { %v10300_v45 = vpop.f32.mrf.mxu1 }
 0x737   : > { %v10387_v14 = vadd.f32 %v10299_v32, %v16179_v13  ;;  %v10301_v4 = vadd.f32 %v10300_v45, %v16202_v22  ;;  %v10341_v52 = vpop.f32.mrf.mxu0 }
 0x738   : > { %v10302_v47 = vpop.f32.mrf.mxu1 }
 0x739   : > { %v10388_v21 = vadd.f32 %v10301_v4, %v16186_v46  ;;  %v10343_v18 = vpop.f32.mrf.mxu0 }
 0x73a   : > { %v10303_v53 = vpop.f32.mrf.mxu1 }
 0x73b   : > { %v10344_v5 = vpop.f32.mrf.mxu0 }
 0x774   : > { %v10380_v25 = vpop.f32.mrf.mxu1 }
 0x775   : > { %v10381_v40 = vadd.f32 %v10380_v25, %v10339_v43  ;;  %v11214_v62 = vpop.f32.mrf.mxu0 }
 0x776   : > { %v10382_v31 = vpop.f32.mrf.mxu1 }
 0x777   : > { %v10389_v23 = vadd.f32 %v10381_v40, %v16199_v49  ;;  %v10383_v7 = vadd.f32 %v10382_v31, %v10341_v52  ;;  %v11216_v26 = vpop.f32.mrf.mxu0  ;;  %v11357_v49 = vrot.slane %v11348_v38, %v15812_v59 }
 0x778   : > { %v10384_v30 = vpop.f32.mrf.mxu1 }
 0x779   : > { %v10390_v13 = vadd.f32 %v10383_v7, %v16205_v42  ;;  %v11218_v6 = vpop.f32.mrf.mxu0 }
 0x77a   : > { %v10385_v33 = vpop.f32.mrf.mxu1 }
 0x77b   : > { %v11219_v44 = vpop.f32.mrf.mxu0 }
 0x7b4   : > { %v11255_v46 = vpop.f32.mrf.mxu1 }
 0x7b5   : > { %v11256_v22 = vadd.f32 %v11255_v46, %v11214_v62  ;;  %v11296_v54 = vpop.f32.mrf.mxu0 }
 0x7b6   : > { %v11257_v17 = vpop.f32.mrf.mxu1 }
 0x7b7   : > { %v11344_v50 = vadd.f32 %v11256_v22, %v10387_v14  ;;  %v11258_v24 = vadd.f32 %v11257_v17, %v11216_v26  ;;  %v11298_v58 = vpop.f32.mrf.mxu0 }
 0x7b8   : > { %v11259_v9 = vpop.f32.mrf.mxu1 }
 0x7b9   : > { %v11370_v55 = vadd.f32 %v11353_v27, %v11344_v50  ;;  %v11345_v28 = vadd.f32 %v11258_v24, %v10388_v21  ;;  %v11300_v42 = vpop.f32.mrf.mxu0 }
 0x7ba   : > { %v11260_v51 = vpop.f32.mrf.mxu1 }
 0x7bb   : > { %v11374_v19 = vmax.f32 %v11370_v55, 0.0  ;;  %v11371_v8 = vadd.f32 %v11357_v49, %v11345_v28  ;;  %v11301_v16 = vpop.f32.mrf.mxu0 }
 0x7bd   : > { %11378 = vst [vmem:[%s374_s8] sm:$0xff] %v11374_v19  ;;  %v11375_v56 = vmax.f32 %v11371_v8, 0.0 }
 0x7bf   : > { %11379 = vst [vmem:[%s374_s8 + $0x8] sm:$0xff] %v11375_v56 }
 0x7f4   : > { %v11337_v29 = vpop.f32.mrf.mxu1 }
 0x7f5   : > { %v11338_v63 = vadd.f32 %v11337_v29, %v11296_v54 }
 0x7f6   : > { %v11339_v10 = vpop.f32.mrf.mxu1 }
 0x7f7   : > { %v11346_v59 = vadd.f32 %v11338_v63, %v10389_v23  ;;  %v11340_v11 = vadd.f32 %v11339_v10, %v11298_v58 }
 0x7f8   : > { %v11341_v12 = vpop.f32.mrf.mxu1 }
 0x7f9   : > { %v11372_v15 = vadd.f32 %v11361_v2, %v11346_v59  ;;  %v11347_v41 = vadd.f32 %v11340_v11, %v10390_v13 }
 0x7fa   : > { %v11342_v37 = vpop.f32.mrf.mxu1 }
 0x7fb   : > { %v11376_v0 = vmax.f32 %v11372_v15, 0.0  ;;  %v11373_v48 = vadd.f32 %v11365_v35, %v11347_v41 }
 0x7fd   : > { %11380 = vst [vmem:[%s374_s8 + $0x10] sm:$0xff] %v11376_v0  ;;  %v11377_v39 = vmax.f32 %v11373_v48, 0.0 }
 0x7ff   : > { %11381 = vst [vmem:[%s374_s8 + $0x18] sm:$0xff] %v11377_v39 }
 0x800   : > { %15453 = shalt.err (!%p15450_p1)
}
 0x801   : > { %s15454_s13 = scalar_lea.hbm %s11395_s9, 512  ;;  %s15458_s23 = scalar_lea.hbm %s16261_s7, 1024 }
 0x802   : > { %p15455_p3 = scmp.ne.s32.totalorder %s11395_s9, %s15454_s13  ;;  %p15459_p12 = scmp.lt.s32.totalorder %s11395_s9, %s16261_s7 }
 0x803   : > { %p15460_p11 = scmp.lt.s32.totalorder %s15458_s23, %s15454_s13 }
 0x804   : > { %p15456_p6 = pnand %p15455_p3, %p16286_p2 }
 0x805   : > { %p15461_p7 = por %p15460_p11, %p15459_p12 }
 0x806   : > { %p15457_p10 = pneg %p15456_p6 }
 0x808   : > { %p15462_p5 = pnand %p15461_p7, %p15457_p10 }
 0x80a   : > { %15465 = shalt.err (!%p15462_p5)
}
 0x80b   : > { %13038 = dma.vmem_to_hbm [thread:$0]  (%p16286_p2), %s11398_s17, 512, %s11395_s9, %s11383_s16  }
 0x80c PF: > { %s11409_s8 = sand.u32 1, %s15504_s24   ;;  %p16287_p8 = scmp.ne.s32.totalorder %s16276_s20, 0 }
 0x80d   : > { %p16288_p9 = scmp.ge.s32.totalorder %s15516_s27, 2  ;;  %s11410_s18 = scalar_lea.sflag [#allocation6], %s11409_s8 }
 0x80f   : > { %p13064_p4 = pnand %p16288_p9, %p16287_p8 }
 0x811   : > { %p13065_p0 = pneg %p13064_p4 }
 0x813   : > { %15499 = dma.done.wait (%p13065_p0), %s11410_s18, 512  }
 0x814   : > { %15501 = vsyncadd (%p13065_p0), %s11410_s18, 4294966784  ;;  %p23_p13 = scmp.ge.s32.totalorder %s15681_s11, 4   ;;  %s16289_s24 = smov %s15508_s25 }
 0x815   : > { %s16290_s25 = smov %s15512_s26  ;;  %s16291_s26 = smov %s15692_s12 }
 0x816   : > { %s16292_s27 = smov %s15681_s11  ;;  %25 = sbr.rel (!%p23_p13) target bundleno = 11 (0xb), region = 129 }
 0x81b   :  { %11415 = vsyncpa [#allocation5], 1 }
 0x81c   :  { %11417 = vsyncpa [#allocation5 + $0x1], 1 }
 0x81d   :  { %11418 = vsyncpa [#allocation8], 1 }
 0x81e   :  { %11419 = vsyncpa [#allocation11], 1 }
 0x81f   :  { %11420 = vsyncpa [#allocation14], 1 }
 0x820   :  { %11421 = vsyncpa [#allocation6], 1 }
 0x821   :  { %11423 = vsyncpa [#allocation6 + $0x1], 1 }

</bundles_post_ra>
